<compile_context>
chip_gen: v7x
topology: tpu7x:2x2x1
jax: 0.10.0
libtpu: 0.0.40
codegen_flags: <defaults>
</compile_context>

<pallas_src>
import math

import numpy as np

import jax
import jax.numpy as jnp
from jax.experimental import pallas as pl
from jax.experimental.pallas import tpu as pltpu


# ----------------------------------------------------------------------------
# Relative position index (pure numpy, identical to the PyTorch helper).
# ----------------------------------------------------------------------------
def get_relative_position_index(win_h: int, win_w: int) -> np.ndarray:
    coords = np.stack(np.meshgrid(np.arange(win_h), np.arange(win_w), indexing="ij"))
    coords_flatten = coords.reshape(2, -1)                         # (2, N)
    rel = coords_flatten[:, :, None] - coords_flatten[:, None, :]  # (2, N, N)
    rel = rel.transpose(1, 2, 0).copy()                            # (N, N, 2)
    rel[:, :, 0] += win_h - 1
    rel[:, :, 1] += win_w - 1
    rel[:, :, 0] *= 2 * win_w - 1
    return rel.sum(-1)                                             # (N, N)


def _round_up(a: int, m: int) -> int:
    return (a + m - 1) // m * m


def _sublane_align(dtype) -> int:
    # rows per sublane-packed tile: f32 -> 8, bf16 -> 16, int8/fp8 -> 32.
    return 8 * (4 // jnp.dtype(dtype).itemsize)


def _pick_block_windows(num_windows: int, tokens: int, *, row_align: int,
                        per_window_bytes: int, target_rows: int = 512,
                        vmem_budget_bytes: int = 40 << 20) -> int:
    """Pick the windows-per-grid-step.

    Largest divisor of num_windows whose block (a) keeps bw*tokens a multiple of
    the sublane alignment (or covers the full array), (b) fits the VMEM budget,
    (c) stays under target_rows, and (d) -- if possible -- keeps the grid length
    >= 2 so both TensorCores of a v7x chip get work.
    """
    full_rows = num_windows * tokens
    valid = []
    for bw in range(1, num_windows + 1):
        if num_windows % bw:
            continue
        rows = bw * tokens
        if rows % row_align != 0 and rows != full_rows:
            continue
        if bw * per_window_bytes > vmem_budget_bytes:
            continue
        valid.append(bw)
    if not valid:
        # Fallback: one grid step covering the whole array (block == array dims
        # is always a legal layout).  TODO(synk): token padding for ragged N.
        return num_windows
    under = [bw for bw in valid if bw * tokens <= target_rows]
    pool = under if under else valid[:1]          # smallest valid if all too big
    multi = [bw for bw in pool if num_windows // bw >= 2]
    if multi:                                     # keep >= 2 grid steps (v7x 2-TC)
        pool = multi
    return max(pool)


# ----------------------------------------------------------------------------
# Pallas kernel factory: one grid step = BW windows, all heads fused.
# ----------------------------------------------------------------------------
def _make_window_attn_kernel(*, num_heads, head_dim, block_windows, tokens,
                             mxu_dtype, has_mask, approx_recip):
    attn_dim = num_heads * head_dim
    bw, n, hd = block_windows, tokens, head_dim

    def kernel(*refs):
        if has_mask:
            (x_ref, qkv_w_ref, qkv_b_ref, rel_bias_ref, mask_ref,
             proj_w_ref, proj_b_ref, o_ref) = refs
        else:
            (x_ref, qkv_w_ref, qkv_b_ref, rel_bias_ref,
             proj_w_ref, proj_b_ref, o_ref) = refs

        # ---- fused QKV projection for all BW windows: one big MXU matmul ----
        x = x_ref[...].astype(mxu_dtype)            # in-kernel VPU cast, no extra HBM pass
        qkv = jnp.dot(x, qkv_w_ref[...], preferred_element_type=jnp.float32)
        qkv = (qkv + qkv_b_ref[...]).astype(mxu_dtype)   # single downcast; q*scale pre-folded

        # ---- split heads ONCE into a merged (H*BW) batch axis ----
        # Each per-head lane slice is reshaped (row-split only) and stacked along
        # a new leading axis; the result feeds single-batch-dim einsums, which is
        # the well-supported Mosaic batched-matmul form (no 4-D transposes, no
        # multi-batch dot_general).
        def split_heads(base):
            parts = [qkv[:, base + h * hd:base + (h + 1) * hd].reshape(bw, n, hd)
                     for h in range(num_heads)]
            return jnp.stack(parts, axis=0).reshape(num_heads * bw, n, hd)

        q = split_heads(0)                          # (H*BW, N, hd)
        k = split_heads(attn_dim)
        v = split_heads(2 * attn_dim)

        # ---- merged-batch attention scores, f32 accumulation ----
        s = jnp.einsum("znd,zmd->znm", q, k, preferred_element_type=jnp.float32)
        s = s.reshape(num_heads, bw, n, n)
        s = s + rel_bias_ref[...][:, None]          # (H, 1, N, N) broadcast over windows
        if has_mask:
            s = s + mask_ref[...][None]             # (1, BW, N, N) broadcast over heads

        # ---- softmax in f32 ----
        s = s - jnp.max(s, axis=-1, keepdims=True)
        p = jnp.exp(s)
        p = p * pl.reciprocal(jnp.sum(p, axis=-1, keepdims=True), approx=approx_recip)
        p = p.reshape(num_heads * bw, n, n).astype(mxu_dtype)

        # ---- PV (one batched einsum) ----
        o = jnp.einsum("znm,zmd->znd", p, v, preferred_element_type=jnp.float32)
        o = o.astype(mxu_dtype).reshape(num_heads, bw * n, hd)

        # ---- output projection: per-head accumulation (no lane-dim concat) ----
        y = jnp.dot(o[0], proj_w_ref[0:hd, :], preferred_element_type=jnp.float32)
        for h in range(1, num_heads):
            y = y + jnp.dot(o[h], proj_w_ref[h * hd:(h + 1) * hd, :],
                            preferred_element_type=jnp.float32)
        o_ref[...] = (y + proj_b_ref[...]).astype(o_ref.dtype)   # lane-dense (BW*N, Cp)

    return kernel


# ----------------------------------------------------------------------------
# Wrapper: weight prep (scale folding, padding), specs, cost/VMEM sizing.
# ----------------------------------------------------------------------------
def window_attention(x, params, *, num_heads, head_dim, window_size, mask=None,
                     block_windows=None, mxu_dtype=jnp.bfloat16, out_dtype=None,
                     target_rows=512, vmem_budget_bytes=40 << 20,
                     single_buffer_weights=False, approx_recip=False,
                     vmem_limit_bytes=None):
    B_, N, C = x.shape
    attn_dim = num_heads * head_dim
    win_h, win_w = window_size
    assert N == win_h * win_w
    scale = head_dim ** (-0.5)
    out_dtype = jnp.dtype(out_dtype if out_dtype is not None else x.dtype)
    has_mask = mask is not None
    mxu_bytes = jnp.dtype(mxu_dtype).itemsize

    # ---- relative position bias gather (tiny parameter-setup glue) ----
    rel_index = jnp.asarray(get_relative_position_index(win_h, win_w))   # (N, N)
    table = params["rel_pos_bias_table"]                                 # ((2h-1)(2w-1), H)
    rel_bias = table[rel_index.reshape(-1)].reshape(N, N, num_heads)
    rel_bias = jnp.transpose(rel_bias, (2, 0, 1)).astype(jnp.float32)    # (H, N, N)

    # ---- fold the attention scale into the q columns of the qkv projection ----
    qkv_w = params["qkv_w"].astype(jnp.float32)                          # (C, 3*attn_dim)
    qkv_b = params["qkv_b"].astype(jnp.float32)                          # (3*attn_dim,)
    q_scale = jnp.concatenate([jnp.full((attn_dim,), scale, jnp.float32),
                               jnp.ones((2 * attn_dim,), jnp.float32)])
    qkv_w = qkv_w * q_scale[None, :]
    qkv_b = (qkv_b * q_scale).reshape(1, 3 * attn_dim)
    proj_w = params["proj_w"].astype(jnp.float32)                        # (attn_dim, C)
    proj_b = params["proj_b"].astype(jnp.float32).reshape(1, C)

    # ---- channel padding only when C is not already lane-dense ----
    Cp = _round_up(C, 128)
    if Cp != C:
        x = jnp.pad(x, ((0, 0), (0, 0), (0, Cp - C)))
        qkv_w = jnp.pad(qkv_w, ((0, Cp - C), (0, 0)))
        proj_w = jnp.pad(proj_w, ((0, 0), (0, Cp - C)))
        proj_b = jnp.pad(proj_b, ((0, 0), (0, Cp - C)))

    # x stays in its native dtype (cast happens in-kernel); weights go to MXU dtype.
    x2 = x.reshape(B_ * N, Cp)
    qkv_w = qkv_w.astype(mxu_dtype)
    proj_w = proj_w.astype(mxu_dtype)

    # ---- sublane alignment required for the (bw*N, Cp) x / out blocks ----
    row_align = max(_sublane_align(x2.dtype), _sublane_align(out_dtype))

    # ---- VMEM-aware window batching ----
    per_window_bytes = (
        2 * N * Cp * (x2.dtype.itemsize + out_dtype.itemsize)        # x/out, double-buffered
        + N * 3 * attn_dim * (4 + 2 * mxu_bytes)                     # qkv f32 + mxu + q/k/v stacks
        + 3 * num_heads * N * N * 4                                  # scores / exp / probs
        + N * attn_dim * (4 + mxu_bytes)                             # PV output
        + N * Cp * 4                                                 # projection accumulator
        + (2 * N * N * 4 if has_mask else 0))

    bw = None
    if block_windows is not None:
        ok = (B_ % block_windows == 0
              and (block_windows * N % row_align == 0 or block_windows == B_))
        bw = block_windows if ok else None           # graceful fallback to auto-pick
    if bw is None:
        bw = _pick_block_windows(B_, N, row_align=row_align,
                                 per_window_bytes=per_window_bytes,
                                 target_rows=target_rows,
                                 vmem_budget_bytes=vmem_budget_bytes)
    grid = (B_ // bw,)

    # ---- BlockSpecs ----
    def wspec(shape, imap):
        # Grid-resident weights: constant index_map -> fetched once.  On
        # VMEM-tight chips (v7x, 64 MiB) single-buffer them to reclaim VMEM.
        if single_buffer_weights:
            return pl.BlockSpec(shape, imap, pipeline_mode=pl.Buffered(1))
        return pl.BlockSpec(shape, imap)

    in_specs = [
        pl.BlockSpec((bw * N, Cp), lambda g: (g, 0)),                 # x slab
        wspec((Cp, 3 * attn_dim), lambda g: (0, 0)),                  # qkv_w
        wspec((1, 3 * attn_dim), lambda g: (0, 0)),                   # qkv_b
        wspec((num_heads, N, N), lambda g: (0, 0, 0)),                # rel bias
    ]
    args = [x2, qkv_w, qkv_b, rel_bias]

    if has_mask:
        num_win = mask.shape[0]
        assert B_ % num_win == 0, "B_ must be a multiple of the number of shift masks"
        # Window b uses mask[b % num_win]; a block of BW consecutive windows repeats
        # with period = num_win / gcd(BW, num_win) grid steps.
        period = num_win // math.gcd(bw, num_win)
        win_ids = np.arange(period * bw) % num_win
        mask_grouped = mask.astype(jnp.float32)[win_ids].reshape(period, bw, N, N)
        in_specs.append(
            pl.BlockSpec((None, bw, N, N), lambda g: (g % period, 0, 0, 0)))
        args.append(mask_grouped)

    in_specs += [wspec((attn_dim, Cp), lambda g: (0, 0)),             # proj_w
                 wspec((1, Cp), lambda g: (0, 0))]                    # proj_b
    args += [proj_w, proj_b]

    # ---- advisory cost estimate for XLA's scheduler ----
    flops = (2 * B_ * N * Cp * 3 * attn_dim        # qkv projection
             + 4 * B_ * N * N * attn_dim           # qk^T + pv
             + 2 * B_ * N * attn_dim * Cp)         # output projection
    bytes_accessed = (sum(int(a.size) * jnp.dtype(a.dtype).itemsize for a in args)
                      + B_ * N * Cp * out_dtype.itemsize)
    cost = pl.CostEstimate(flops=int(flops),
                           transcendentals=int(B_ * num_heads * N * N),
                           bytes_accessed=int(bytes_accessed))

    # ---- explicit scoped-VMEM limit (v5e default 16 MiB is the tightest) ----
    if vmem_limit_bytes is None:
        wbuf = 1 if single_buffer_weights else 2
        resident = wbuf * (qkv_w.size * mxu_bytes + qkv_b.size * 4
                           + rel_bias.size * 4 + proj_w.size * mxu_bytes
                           + proj_b.size * 4
                           + (bw * N * N * 4 if has_mask else 0))
        blocks = 2 * bw * N * Cp * (x2.dtype.itemsize + out_dtype.itemsize)
        inter = (bw * N * 3 * attn_dim * (4 + 2 * mxu_bytes)
                 + 3 * num_heads * bw * N * N * 4
                 + bw * N * attn_dim * (4 + mxu_bytes)
                 + bw * N * Cp * 4)
        vmem_limit_bytes = max(int(1.25 * (resident + blocks + inter)) + (1 << 20),
                               32 << 20)

    kernel = _make_window_attn_kernel(
        num_heads=num_heads, head_dim=head_dim, block_windows=bw, tokens=N,
        mxu_dtype=mxu_dtype, has_mask=has_mask, approx_recip=approx_recip)

    out2 = pl.pallas_call(
        kernel,
        out_shape=jax.ShapeDtypeStruct((B_ * N, Cp), out_dtype),
        grid_spec=pltpu.PrefetchScalarGridSpec(
            num_scalar_prefetch=0,
            grid=grid,
            in_specs=in_specs,
            out_specs=pl.BlockSpec((bw * N, Cp), lambda g: (g, 0)),
        ),
        compiler_params=pltpu.CompilerParams(
            dimension_semantics=("parallel",),       # window axis: megacore / v7x 2-TC
            vmem_limit_bytes=int(vmem_limit_bytes)),
        cost_estimate=cost,
    )(*args)

    out = out2.reshape(B_, N, Cp)
    if Cp != C:
        out = out[..., :C]   # TODO(synk): fuse the un-pad into the consumer when C % 128 != 0
    return out


# ----------------------------------------------------------------------------
# Pure-JAX reference (mirrors the PyTorch non-fused path).
# ----------------------------------------------------------------------------
def window_attention_ref(x, params, *, num_heads, head_dim, window_size, mask=None):
    B_, N, C = x.shape
    attn_dim = num_heads * head_dim
    win_h, win_w = window_size
    scale = head_dim ** (-0.5)

    qkv = x @ params["qkv_w"] + params["qkv_b"]
    qkv = qkv.reshape(B_, N, 3, num_heads, head_dim).transpose(2, 0, 3, 1, 4)
    q, k, v = qkv[0], qkv[1], qkv[2]

    rel_index = jnp.asarray(get_relative_position_index(win_h, win_w))
    table = params["rel_pos_bias_table"]
    rel_bias = table[rel_index.reshape(-1)].reshape(N, N, num_heads)
    rel_bias = jnp.transpose(rel_bias, (2, 0, 1))[None]                  # (1, H, N, N)

    attn = (q * scale) @ jnp.swapaxes(k, -2, -1) + rel_bias
    if mask is not None:
        num_win = mask.shape[0]
        attn = attn.reshape(-1, num_win, num_heads, N, N) + mask[None, :, None]
        attn = attn.reshape(-1, num_heads, N, N)
    attn = jax.nn.softmax(attn, axis=-1)
    out = attn @ v
    out = jnp.swapaxes(out, 1, 2).reshape(B_, N, attn_dim)
    return out @ params["proj_w"] + params["proj_b"]


# ----------------------------------------------------------------------------
if __name__ == "__main__":
    # Small, module-consistent shapes (lane/sublane aligned: N % 8 == 0, C % 128 == 0).
    dim = 128
    num_heads = 4
    head_dim = dim // num_heads                # 32
    attn_dim = num_heads * head_dim            # 128
    window_size = (4, 4)
    N = window_size[0] * window_size[1]        # 16 tokens per window
    num_win = 8
    batch = 4
    B_ = batch * num_win                       # 32 windows total

    key = jax.random.PRNGKey(0)
    k_x, k_tab, k_qw, k_qb, k_pw, k_pb, k_m = jax.random.split(key, 7)

    x = jax.random.normal(k_x, (B_, N, dim), dtype=jnp.float32)
    mask = jax.random.normal(k_m, (num_win, N, N), dtype=jnp.float32)

    params = {
        # trunc_normal_(std=0.02) approximated deterministically with normal*0.02
        "rel_pos_bias_table": 0.02 * jax.random.normal(
            k_tab, ((2 * window_size[0] - 1) * (2 * window_size[1] - 1), num_heads),
            dtype=jnp.float32),
        "qkv_w": 0.1 * jax.random.normal(k_qw, (dim, 3 * attn_dim), dtype=jnp.float32),
        "qkv_b": 0.1 * jax.random.normal(k_qb, (3 * attn_dim,), dtype=jnp.float32),
        "proj_w": 0.1 * jax.random.normal(k_pw, (attn_dim, dim), dtype=jnp.float32),
        "proj_b": 0.1 * jax.random.normal(k_pb, (dim,), dtype=jnp.float32),
    }

    ref_mask = window_attention_ref(x, params, num_heads=num_heads, head_dim=head_dim,
                                    window_size=window_size, mask=mask)
    ref_nomask = window_attention_ref(x, params, num_heads=num_heads, head_dim=head_dim,
                                      window_size=window_size, mask=None)

    # 1) f32 MXU path, auto window batch (prefers grid >= 2 -> bw=16, 256 rows/step),
    #    masked.  Tolerance covers TPU default (bf16-pass) matmul precision in the
    #    pure-JAX reference.
    out_f32 = window_attention(x, params, num_heads=num_heads, head_dim=head_dim,
                               window_size=window_size, mask=mask,
                               mxu_dtype=jnp.float32)
    out_f32 = jax.block_until_ready(out_f32)
    np.testing.assert_allclose(np.asarray(out_f32), np.asarray(ref_mask),
                               atol=2e-2, rtol=2e-2)

    # 2) bf16 MXU path (the fast configuration); explicit smaller window batch to
    #    also exercise the periodic mask index_map (period = 2).
    out_bf16 = window_attention(x, params, num_heads=num_heads, head_dim=head_dim,
                                window_size=window_size, mask=mask,
                                block_windows=4, mxu_dtype=jnp.bfloat16)
    out_bf16 = jax.block_until_ready(out_bf16)
    np.testing.assert_allclose(np.asarray(out_bf16), np.asarray(ref_mask),
                               atol=5e-2, rtol=5e-2)

    # 3) mask=None path (no mask input is built or DMA'd at all).
    out_nm = window_attention(x, params, num_heads=num_heads, head_dim=head_dim,
                              window_size=window_size, mask=None,
                              mxu_dtype=jnp.bfloat16)
    out_nm = jax.block_until_ready(out_nm)
    np.testing.assert_allclose(np.asarray(out_nm), np.asarray(ref_nomask),
                               atol=5e-2, rtol=5e-2)

    print("KERNEL_OK")
</pallas_src>

<mosaic_0001>
module attributes {stable_mosaic.version = 11 : i64} {
  func.func @kernel(%arg0: i32, %arg1: memref<256x128xf32, #tpu.memory_space<vmem>>, %arg2: memref<128x384xf32, #tpu.memory_space<vmem>>, %arg3: memref<1x384xf32, #tpu.memory_space<vmem>>, %arg4: memref<4x16x16xf32, #tpu.memory_space<vmem>>, %arg5: memref<1x16x16x16xf32, #tpu.memory_space<vmem>>, %arg6: memref<128x128xf32, #tpu.memory_space<vmem>>, %arg7: memref<1x128xf32, #tpu.memory_space<vmem>>, %arg8: memref<256x128xf32, #tpu.memory_space<vmem>>) attributes {dimension_semantics = [#tpu.dimension_semantics<parallel>], iteration_bounds = array<i64: 2>, scalar_prefetch = 0 : i64, scratch_operands = 0 : i64, tpu.core_type = #tpu.core_type<tc>, window_params = [{transform_indices = @transform_0, window_bounds = array<i64: 256, 128>}, {pipeline_mode = #tpu.pipeline_mode<synchronous>, transform_indices = @transform_1, window_bounds = array<i64: 128, 384>}, {pipeline_mode = #tpu.pipeline_mode<synchronous>, transform_indices = @transform_2, window_bounds = array<i64: 1, 384>}, {pipeline_mode = #tpu.pipeline_mode<synchronous>, transform_indices = @transform_3, window_bounds = array<i64: 4, 16, 16>}, {transform_indices = @transform_4, window_bounds = array<i64: 1, 16, 16, 16>}, {pipeline_mode = #tpu.pipeline_mode<synchronous>, transform_indices = @transform_5, window_bounds = array<i64: 128, 128>}, {pipeline_mode = #tpu.pipeline_mode<synchronous>, transform_indices = @transform_6, window_bounds = array<i64: 1, 128>}, {transform_indices = @transform_7, window_bounds = array<i64: 256, 128>}]} {
    %c0 = arith.constant 0 : index
    %c0_0 = arith.constant 0 : index
    %0 = vector.load %arg1[%c0, %c0_0] : memref<256x128xf32, #tpu.memory_space<vmem>>, vector<256x128xf32>
    %c0_1 = arith.constant 0 : index
    %c0_2 = arith.constant 0 : index
    %1 = vector.load %arg2[%c0_1, %c0_2] : memref<128x384xf32, #tpu.memory_space<vmem>>, vector<128x384xf32>
    %cst = arith.constant dense<0.000000e+00> : vector<256x384xf32>
    %2 = tpu.matmul %0, %1, %cst {dimension_numbers = #tpu.dot_dimension_numbers<[1], [0], [0], [1], [0, 0, 1, 1], [], []>} : vector<256x128xf32>, vector<128x384xf32>, vector<256x384xf32> -> vector<256x384xf32>
    %c0_3 = arith.constant 0 : index
    %c0_4 = arith.constant 0 : index
    %3 = vector.load %arg3[%c0_3, %c0_4] : memref<1x384xf32, #tpu.memory_space<vmem>>, vector<1x384xf32>
    %4 = vector.broadcast %3 : vector<1x384xf32> to vector<256x384xf32>
    %5 = arith.addf %2, %4 : vector<256x384xf32>
    %6 = vector.extract_strided_slice %5 {offsets = [0, 0], sizes = [256, 32], strides = [1, 1]} : vector<256x384xf32> to vector<256x32xf32>
    %7 = vector.shape_cast %6 : vector<256x32xf32> to vector<16x16x32xf32>
    %8 = vector.extract_strided_slice %5 {offsets = [0, 32], sizes = [256, 32], strides = [1, 1]} : vector<256x384xf32> to vector<256x32xf32>
    %9 = vector.shape_cast %8 : vector<256x32xf32> to vector<16x16x32xf32>
    %10 = vector.extract_strided_slice %5 {offsets = [0, 64], sizes = [256, 32], strides = [1, 1]} : vector<256x384xf32> to vector<256x32xf32>
    %11 = vector.shape_cast %10 : vector<256x32xf32> to vector<16x16x32xf32>
    %12 = vector.extract_strided_slice %5 {offsets = [0, 96], sizes = [256, 32], strides = [1, 1]} : vector<256x384xf32> to vector<256x32xf32>
    %13 = vector.shape_cast %12 : vector<256x32xf32> to vector<16x16x32xf32>
    %14 = vector.shape_cast %7 : vector<16x16x32xf32> to vector<1x16x16x32xf32>
    %15 = vector.shape_cast %9 : vector<16x16x32xf32> to vector<1x16x16x32xf32>
    %16 = vector.shape_cast %11 : vector<16x16x32xf32> to vector<1x16x16x32xf32>
    %17 = vector.shape_cast %13 : vector<16x16x32xf32> to vector<1x16x16x32xf32>
    %18 = tpu.concatenate %14, %15, %16, %17 in 0 : vector<1x16x16x32xf32>, vector<1x16x16x32xf32>, vector<1x16x16x32xf32>, vector<1x16x16x32xf32> -> vector<4x16x16x32xf32>
    %19 = vector.shape_cast %18 : vector<4x16x16x32xf32> to vector<64x16x32xf32>
    %20 = vector.extract_strided_slice %5 {offsets = [0, 128], sizes = [256, 32], strides = [1, 1]} : vector<256x384xf32> to vector<256x32xf32>
    %21 = vector.shape_cast %20 : vector<256x32xf32> to vector<16x16x32xf32>
    %22 = vector.extract_strided_slice %5 {offsets = [0, 160], sizes = [256, 32], strides = [1, 1]} : vector<256x384xf32> to vector<256x32xf32>
    %23 = vector.shape_cast %22 : vector<256x32xf32> to vector<16x16x32xf32>
    %24 = vector.extract_strided_slice %5 {offsets = [0, 192], sizes = [256, 32], strides = [1, 1]} : vector<256x384xf32> to vector<256x32xf32>
    %25 = vector.shape_cast %24 : vector<256x32xf32> to vector<16x16x32xf32>
    %26 = vector.extract_strided_slice %5 {offsets = [0, 224], sizes = [256, 32], strides = [1, 1]} : vector<256x384xf32> to vector<256x32xf32>
    %27 = vector.shape_cast %26 : vector<256x32xf32> to vector<16x16x32xf32>
    %28 = vector.shape_cast %21 : vector<16x16x32xf32> to vector<1x16x16x32xf32>
    %29 = vector.shape_cast %23 : vector<16x16x32xf32> to vector<1x16x16x32xf32>
    %30 = vector.shape_cast %25 : vector<16x16x32xf32> to vector<1x16x16x32xf32>
    %31 = vector.shape_cast %27 : vector<16x16x32xf32> to vector<1x16x16x32xf32>
    %32 = tpu.concatenate %28, %29, %30, %31 in 0 : vector<1x16x16x32xf32>, vector<1x16x16x32xf32>, vector<1x16x16x32xf32>, vector<1x16x16x32xf32> -> vector<4x16x16x32xf32>
    %33 = vector.shape_cast %32 : vector<4x16x16x32xf32> to vector<64x16x32xf32>
    %34 = vector.extract_strided_slice %5 {offsets = [0, 256], sizes = [256, 32], strides = [1, 1]} : vector<256x384xf32> to vector<256x32xf32>
    %35 = vector.shape_cast %34 : vector<256x32xf32> to vector<16x16x32xf32>
    %36 = vector.extract_strided_slice %5 {offsets = [0, 288], sizes = [256, 32], strides = [1, 1]} : vector<256x384xf32> to vector<256x32xf32>
    %37 = vector.shape_cast %36 : vector<256x32xf32> to vector<16x16x32xf32>
    %38 = vector.extract_strided_slice %5 {offsets = [0, 320], sizes = [256, 32], strides = [1, 1]} : vector<256x384xf32> to vector<256x32xf32>
    %39 = vector.shape_cast %38 : vector<256x32xf32> to vector<16x16x32xf32>
    %40 = vector.extract_strided_slice %5 {offsets = [0, 352], sizes = [256, 32], strides = [1, 1]} : vector<256x384xf32> to vector<256x32xf32>
    %41 = vector.shape_cast %40 : vector<256x32xf32> to vector<16x16x32xf32>
    %42 = vector.shape_cast %35 : vector<16x16x32xf32> to vector<1x16x16x32xf32>
    %43 = vector.shape_cast %37 : vector<16x16x32xf32> to vector<1x16x16x32xf32>
    %44 = vector.shape_cast %39 : vector<16x16x32xf32> to vector<1x16x16x32xf32>
    %45 = vector.shape_cast %41 : vector<16x16x32xf32> to vector<1x16x16x32xf32>
    %46 = tpu.concatenate %42, %43, %44, %45 in 0 : vector<1x16x16x32xf32>, vector<1x16x16x32xf32>, vector<1x16x16x32xf32>, vector<1x16x16x32xf32> -> vector<4x16x16x32xf32>
    %47 = vector.shape_cast %46 : vector<4x16x16x32xf32> to vector<64x16x32xf32>
    "tpu.trace_start"() <{level = 10 : i32, message = "znd,zmd->znm"}> : () -> ()
    %cst_5 = arith.constant dense<0.000000e+00> : vector<64x16x16xf32>
    %48 = tpu.matmul %19, %33, %cst_5 {dimension_numbers = #tpu.dot_dimension_numbers<[2], [2], [1], [1], [0, 0, 0, 1, 1, 1], [0], [0]>} : vector<64x16x32xf32>, vector<64x16x32xf32>, vector<64x16x16xf32> -> vector<64x16x16xf32>
    "tpu.trace_stop"() : () -> ()
    %49 = vector.shape_cast %48 : vector<64x16x16xf32> to vector<4x16x16x16xf32>
    %c0_6 = arith.constant 0 : index
    %c0_7 = arith.constant 0 : index
    %c0_8 = arith.constant 0 : index
    %50 = vector.load %arg4[%c0_6, %c0_7, %c0_8] : memref<4x16x16xf32, #tpu.memory_space<vmem>>, vector<4x16x16xf32>
    %51 = vector.shape_cast %50 : vector<4x16x16xf32> to vector<4x1x16x16xf32>
    %52 = vector.broadcast %51 : vector<4x1x16x16xf32> to vector<4x16x16x16xf32>
    %53 = arith.addf %49, %52 : vector<4x16x16x16xf32>
    %c0_9 = arith.constant 0 : index
    %c0_10 = arith.constant 0 : index
    %c0_11 = arith.constant 0 : index
    %c0_12 = arith.constant 0 : index
    %54 = vector.load %arg5[%c0_9, %c0_10, %c0_11, %c0_12] : memref<1x16x16x16xf32, #tpu.memory_space<vmem>>, vector<1x16x16x16xf32>
    %55 = vector.shape_cast %54 : vector<1x16x16x16xf32> to vector<16x16x16xf32>
    %56 = vector.shape_cast %55 : vector<16x16x16xf32> to vector<1x16x16x16xf32>
    %57 = vector.broadcast %56 : vector<1x16x16x16xf32> to vector<4x16x16x16xf32>
    %58 = arith.addf %53, %57 : vector<4x16x16x16xf32>
    %cst_13 = arith.constant dense<0xFF800000> : vector<4x16x16xf32>
    %59 = vector.multi_reduction <maximumf>, %58, %cst_13 [3] : vector<4x16x16x16xf32> to vector<4x16x16xf32>
    %60 = vector.shape_cast %59 : vector<4x16x16xf32> to vector<4x16x16x1xf32>
    %61 = vector.broadcast %60 : vector<4x16x16x1xf32> to vector<4x16x16x16xf32>
    %62 = arith.subf %58, %61 : vector<4x16x16x16xf32>
    %63 = math.exp %62 : vector<4x16x16x16xf32>
    %cst_14 = arith.constant dense<0.000000e+00> : vector<4x16x16xf32>
    %64 = vector.multi_reduction <add>, %63, %cst_14 [3] : vector<4x16x16x16xf32> to vector<4x16x16xf32>
    %65 = vector.shape_cast %64 : vector<4x16x16xf32> to vector<4x16x16x1xf32>
    %66 = tpu.reciprocal %65 : vector<4x16x16x1xf32> -> vector<4x16x16x1xf32>
    %67 = vector.broadcast %66 : vector<4x16x16x1xf32> to vector<4x16x16x16xf32>
    %68 = arith.mulf %63, %67 : vector<4x16x16x16xf32>
    %69 = vector.shape_cast %68 : vector<4x16x16x16xf32> to vector<64x16x16xf32>
    "tpu.trace_start"() <{level = 10 : i32, message = "znm,zmd->znd"}> : () -> ()
    %cst_15 = arith.constant dense<0.000000e+00> : vector<64x16x32xf32>
    %70 = tpu.matmul %69, %47, %cst_15 {dimension_numbers = #tpu.dot_dimension_numbers<[2], [1], [1], [2], [0, 0, 0, 1, 1, 2], [0], [0]>} : vector<64x16x16xf32>, vector<64x16x32xf32>, vector<64x16x32xf32> -> vector<64x16x32xf32>
    "tpu.trace_stop"() : () -> ()
    %71 = vector.shape_cast %70 : vector<64x16x32xf32> to vector<4x256x32xf32>
    %72 = vector.extract_strided_slice %71 {offsets = [0, 0, 0], sizes = [1, 256, 32], strides = [1, 1, 1]} : vector<4x256x32xf32> to vector<1x256x32xf32>
    %73 = vector.shape_cast %72 : vector<1x256x32xf32> to vector<256x32xf32>
    %c0_16 = arith.constant 0 : index
    %c0_17 = arith.constant 0 : index
    %74 = vector.load %arg6[%c0_16, %c0_17] : memref<128x128xf32, #tpu.memory_space<vmem>>, vector<32x128xf32>
    %cst_18 = arith.constant dense<0.000000e+00> : vector<256x128xf32>
    %75 = tpu.matmul %73, %74, %cst_18 {dimension_numbers = #tpu.dot_dimension_numbers<[1], [0], [0], [1], [0, 0, 1, 1], [], []>} : vector<256x32xf32>, vector<32x128xf32>, vector<256x128xf32> -> vector<256x128xf32>
    %76 = vector.extract_strided_slice %71 {offsets = [1, 0, 0], sizes = [1, 256, 32], strides = [1, 1, 1]} : vector<4x256x32xf32> to vector<1x256x32xf32>
    %77 = vector.shape_cast %76 : vector<1x256x32xf32> to vector<256x32xf32>
    %c32 = arith.constant 32 : index
    %c0_19 = arith.constant 0 : index
    %78 = vector.load %arg6[%c32, %c0_19] : memref<128x128xf32, #tpu.memory_space<vmem>>, vector<32x128xf32>
    %cst_20 = arith.constant dense<0.000000e+00> : vector<256x128xf32>
    %79 = tpu.matmul %77, %78, %cst_20 {dimension_numbers = #tpu.dot_dimension_numbers<[1], [0], [0], [1], [0, 0, 1, 1], [], []>} : vector<256x32xf32>, vector<32x128xf32>, vector<256x128xf32> -> vector<256x128xf32>
    %80 = arith.addf %75, %79 : vector<256x128xf32>
    %81 = vector.extract_strided_slice %71 {offsets = [2, 0, 0], sizes = [1, 256, 32], strides = [1, 1, 1]} : vector<4x256x32xf32> to vector<1x256x32xf32>
    %82 = vector.shape_cast %81 : vector<1x256x32xf32> to vector<256x32xf32>
    %c64 = arith.constant 64 : index
    %c0_21 = arith.constant 0 : index
    %83 = vector.load %arg6[%c64, %c0_21] : memref<128x128xf32, #tpu.memory_space<vmem>>, vector<32x128xf32>
    %cst_22 = arith.constant dense<0.000000e+00> : vector<256x128xf32>
    %84 = tpu.matmul %82, %83, %cst_22 {dimension_numbers = #tpu.dot_dimension_numbers<[1], [0], [0], [1], [0, 0, 1, 1], [], []>} : vector<256x32xf32>, vector<32x128xf32>, vector<256x128xf32> -> vector<256x128xf32>
    %85 = arith.addf %80, %84 : vector<256x128xf32>
    %86 = vector.extract_strided_slice %71 {offsets = [3, 0, 0], sizes = [1, 256, 32], strides = [1, 1, 1]} : vector<4x256x32xf32> to vector<1x256x32xf32>
    %87 = vector.shape_cast %86 : vector<1x256x32xf32> to vector<256x32xf32>
    %c96 = arith.constant 96 : index
    %c0_23 = arith.constant 0 : index
    %88 = vector.load %arg6[%c96, %c0_23] : memref<128x128xf32, #tpu.memory_space<vmem>>, vector<32x128xf32>
    %cst_24 = arith.constant dense<0.000000e+00> : vector<256x128xf32>
    %89 = tpu.matmul %87, %88, %cst_24 {dimension_numbers = #tpu.dot_dimension_numbers<[1], [0], [0], [1], [0, 0, 1, 1], [], []>} : vector<256x32xf32>, vector<32x128xf32>, vector<256x128xf32> -> vector<256x128xf32>
    %90 = arith.addf %85, %89 : vector<256x128xf32>
    %c0_25 = arith.constant 0 : index
    %c0_26 = arith.constant 0 : index
    %91 = vector.load %arg7[%c0_25, %c0_26] : memref<1x128xf32, #tpu.memory_space<vmem>>, vector<1x128xf32>
    %92 = vector.broadcast %91 : vector<1x128xf32> to vector<256x128xf32>
    %93 = arith.addf %90, %92 : vector<256x128xf32>
    %c0_27 = arith.constant 0 : index
    %c0_28 = arith.constant 0 : index
    %94 = vector.load %arg8[%c0_27, %c0_28] : memref<256x128xf32, #tpu.memory_space<vmem>>, vector<256x128xf32>
    tpu.vector_store %arg8[%c0_27, %c0_28], %93 {strides = array<i32>} : memref<256x128xf32, #tpu.memory_space<vmem>>, vector<256x128xf32>,
    return
  }
  func.func @transform_0(%arg0: i32) -> (i32, i32) {
    %c0_i32 = arith.constant 0 : i32
    %c0_i32_0 = arith.constant 0 : i32
    return %arg0, %c0_i32 : i32, i32
  }
  func.func @transform_1(%arg0: i32) -> (i32, i32) {
    %c0_i32 = arith.constant 0 : i32
    %c0_i32_0 = arith.constant 0 : i32
    %c0_i32_1 = arith.constant 0 : i32
    return %c0_i32, %c0_i32_0 : i32, i32
  }
  func.func @transform_2(%arg0: i32) -> (i32, i32) {
    %c0_i32 = arith.constant 0 : i32
    %c0_i32_0 = arith.constant 0 : i32
    %c0_i32_1 = arith.constant 0 : i32
    return %c0_i32, %c0_i32_0 : i32, i32
  }
  func.func @transform_3(%arg0: i32) -> (i32, i32, i32) {
    %c0_i32 = arith.constant 0 : i32
    %c0_i32_0 = arith.constant 0 : i32
    %c0_i32_1 = arith.constant 0 : i32
    %c0_i32_2 = arith.constant 0 : i32
    return %c0_i32, %c0_i32_0, %c0_i32_1 : i32, i32, i32
  }
  func.func @transform_4(%arg0: i32) -> (i32, i32, i32, i32) {
    %c1_i32 = arith.constant 1 : i32
    %c0_i32 = arith.constant 0 : i32
    %0 = arith.cmpi eq, %c1_i32, %c0_i32 : i32
    %c1_i32_0 = arith.constant 1 : i32
    %1 = arith.select %0, %c1_i32_0, %c1_i32 : i32
    %2 = arith.remsi %arg0, %1 : i32
    %c0_i32_1 = arith.constant 0 : i32
    %3 = arith.cmpi ne, %2, %c0_i32_1 : i32
    %c0_i32_2 = arith.constant 0 : i32
    %4 = arith.cmpi slt, %2, %c0_i32_2 : i32
    %c0_i32_3 = arith.constant 0 : i32
    %5 = arith.cmpi slt, %1, %c0_i32_3 : i32
    %6 = arith.xori %4, %5 : i1
    %7 = arith.andi %6, %3 : i1
    %8 = arith.addi %2, %1 : i32
    %9 = arith.select %7, %8, %2 : i32
    %c0_i32_4 = arith.constant 0 : i32
    %c0_i32_5 = arith.constant 0 : i32
    %c0_i32_6 = arith.constant 0 : i32
    %c0_i32_7 = arith.constant 0 : i32
    return %9, %c0_i32_4, %c0_i32_5, %c0_i32_6 : i32, i32, i32, i32
  }
  func.func @transform_5(%arg0: i32) -> (i32, i32) {
    %c0_i32 = arith.constant 0 : i32
    %c0_i32_0 = arith.constant 0 : i32
    %c0_i32_1 = arith.constant 0 : i32
    return %c0_i32, %c0_i32_0 : i32, i32
  }
  func.func @transform_6(%arg0: i32) -> (i32, i32) {
    %c0_i32 = arith.constant 0 : i32
    %c0_i32_0 = arith.constant 0 : i32
    %c0_i32_1 = arith.constant 0 : i32
    return %c0_i32, %c0_i32_0 : i32, i32
  }
  func.func @transform_7(%arg0: i32) -> (i32, i32) {
    %c0_i32 = arith.constant 0 : i32
    %c0_i32_0 = arith.constant 0 : i32
    return %arg0, %c0_i32 : i32, i32
  }
}

</mosaic_0001>

<bundles_post_ra>
// kernel: tpu_custom_call.1
= control target key start
LH: loop header
LB: loop body
LE: loop exit
PB: predicated region body
PF: predicated region fallthrough
CT: control target
= control target key end

     0   :  { %12 = vsyncpa [#allocation3], 0  ;;  %s25144_s0 = inlined_call_operand.hbm [shape: f32[512,128], index: 0, kind: input, shape index: {}]   ;;  %s25145_s1 = inlined_call_operand.hbm [shape: f32[128,384], index: 1, kind: input, shape index: {}]   ;;  %s25146_s2 = inlined_call_operand.vmem [shape: f32[1,384], index: 2, kind: input, shape index: {}]   ;;  %s25147_s3 = inlined_call_operand.hbm [shape: f32[4,16,16], index: 3, kind: input, shape index: {}]   ;;  %s25148_s4 = inlined_call_operand.hbm [shape: f32[1,16,16,16], index: 4, kind: input, shape index: {}]   ;;  %s25149_s5 = inlined_call_operand.hbm [shape: f32[128,128], index: 5, kind: input, shape index: {}]   ;;  %s25150_s6 = inlined_call_operand.vmem [shape: f32[1,128], index: 6, kind: input, shape index: {}]   ;;  %s25151_s7 = inlined_call_operand.hbm [shape: f32[512,128], index: 7, kind: output, shape index: {}]  }
   0x1   :  { %14 = vsyncpa [#allocation3 + $0x1], 0 }
   0x2   :  { %15 = vsyncpa [#allocation6], 0 }
   0x3   :  { %16 = vsyncpa [#allocation9], 0 }
   0x4   :  { %17 = vsyncpa [#allocation4], 0 }
   0x5   :  { %19 = vsyncpa [#allocation4 + $0x1], 0  ;;  %s20162_s24 = smov 0   ;;  %s20164_s25 = smov 0  }
   0x6   :  { %s20166_s26 = smov 0   ;;  %s20168_s27 = smov 0  }
   0x7 LB: > { %25353 = sst [smem:[#allocation16_spill]] %s20092_s24  ;;  %s20183_s28 = sadd.s32 4294967295, %s20104_s27   ;;  %s20104_s27 = sphi %s20168_s27, %s26174_s27   ;;  %s20100_s26 = sphi %s20166_s26, %s26173_s26   ;;  %s20096_s25 = sphi %s20164_s25, %s26172_s25   ;;  %s20092_s24 = sphi %s20162_s24, %s26171_s24  }
   0x8   : > { %s15466_s29 = sadd.s32 4294967294, %s20104_s27   ;;  %p45_p0 = scmp.ne.s32.totalorder %s20096_s25, %s20092_s24 }
   0x9   : > { %p25152_p1 = scmp.eq.s32.totalorder %s20183_s28, 0  ;;  %p201_p3 = scmp.eq.s32.totalorder %s15466_s29, 1 }
   0xa   : > { %p15467_p5 = scmp.ge.s32.totalorder %s20104_s27, 1  ;;  %p208_p7 = scmp.lt.s32.totalorder %s20104_s27, 3 }
   0xb   : > { %p20192_p4 = por %p25152_p1, %p45_p0  ;;  %p20197_p6 = por %p201_p3, %p45_p0 }
   0xc   : > { %p20202_p8 = pnand %p15467_p5, %p208_p7  ;;  %s20106_s10 = smov [#allocation5]  }
   0xd   : > { %s25354_s30 = scalar_select %p20192_p4, 1, 0 }
   0xe   : > { %s25355_s8 = scalar_select %p20197_p6, 1, 0 }
   0xf   : > { %s25357_s9 = scalar_select %p20202_p8, 1, 0 }
  0x10   : > { %25356 = sst [smem:[#allocation17_spill]] %s25355_s8  ;;  %s220_s11 = sshll.u32 %s20106_s10, 4  ;;  %s221_s11 = int_to_ptr.vmem [resolvable:$true] %s220_s11 }
  0x11   : > { %p18759_p9 = pneg %p20202_p8  ;;  %s20107_s13 = smov [#allocation8]  }
  0x12   : > { %s249_s14 = sshll.u32 %s20107_s13, 4  ;;  %s19888_s17 = scalar_lea.hbm %s25145_s1, 6144  ;;  %s250_s14 = int_to_ptr.vmem [resolvable:$true] %s249_s14 }
  0x13   : > { %p20211_p11 = pnand %p18759_p9, %p25152_p1  ;;  %p19889_p12 = scmp.ne.s32.totalorder %s25145_s1, %s19888_s17 }
  0x14   : > { %p19895_p5 = scmp.lt.u32.totalorder %s19888_s17, %s25145_s1 }
  0x15   : > { %p20223_p13 = pneg %p20211_p11 }
  0x17   : > { %p19891_p0 = pnand %p20223_p13, %p19889_p12 }
  0x19   : > { %p19892_p3 = pneg %p19891_p0 }
  0x1b   : > { %p19897_p7 = pnand %p19895_p5, %p19892_p3 }
  0x1d   : > { %19900 = shalt.err (!%p19897_p7)
}
  0x1e   : > { %s19901_s23 = scalar_lea.vmem %s221_s11, 6144  ;;  %p19909_p2 = scmp.lt.s32.totalorder %s221_s11, %s221_s11 }
  0x1f   : > { %p19902_p9 = scmp.ne.s32.totalorder %s221_s11, %s19901_s23  ;;  %p19910_p6 = scmp.lt.s32.totalorder %s19901_s23, %s19901_s23 }
  0x21   : > { %p19904_p10 = pnand %p19902_p9, %p20223_p13  ;;  %p19911_p4 = por %p19910_p6, %p19909_p2 }
  0x23   : > { %p19905_p1 = pneg %p19904_p10 }
  0x25   : > { %p19912_p8 = pnand %p19911_p4, %p19905_p1 }
  0x27   : > { %19915 = shalt.err (!%p19912_p8)
}
  0x28   : > { %s20108_s29 = smov 384   ;;  %s20109_s10 = smov 24  }
  0x29   : > { %18762 = dma.hbm_to_vmem [thread:$0]  (!%p20211_p11), %s25145_s1, 6144, %s221_s11, [#allocation6], %s20108_s29, %s20108_s29, %s20109_s10  }
  0x2a   : > { %s20110_s16 = smov [#allocation7]   ;;  %s19916_s21 = scalar_lea.hbm %s25148_s4, 4096 }
  0x2b   : > { %s236_s17 = sshll.u32 %s20110_s16, 4  ;;  %p19917_p1 = scmp.ne.s32.totalorder %s25148_s4, %s19916_s21  ;;  %s237_s17 = int_to_ptr.vmem [resolvable:$true] %s236_s17 }
  0x2c   : > { %p19923_p6 = scmp.lt.u32.totalorder %s19916_s21, %s25148_s4 }
  0x2d   : > { %p19919_p2 = pnand %p19917_p1, %p20223_p13 }
  0x2f   : > { %p19920_p4 = pneg %p19919_p2 }
  0x31   : > { %p19925_p8 = pnand %p19923_p6, %p19920_p4 }
  0x33   : > { %19928 = shalt.err (!%p19925_p8)
}
  0x34   : > { %s19929_s11 = scalar_lea.vmem %s250_s14, 4096  ;;  %p19937_p3 = scmp.lt.s32.totalorder %s250_s14, %s250_s14 }
  0x35   : > { %p19930_p10 = scmp.ne.s32.totalorder %s250_s14, %s19929_s11  ;;  %p19938_p5 = scmp.lt.s32.totalorder %s19929_s11, %s19929_s11 }
  0x37   : > { %p19932_p12 = pnand %p19930_p10, %p20223_p13  ;;  %p19939_p7 = por %p19938_p5, %p19937_p3 }
  0x39   : > { %p19933_p0 = pneg %p19932_p12 }
  0x3b   : > { %p19940_p9 = pnand %p19939_p7, %p19933_p0 }
  0x3d   : > { %19943 = shalt.err (!%p19940_p9)
}
  0x3e   : > { %s20111_s29 = smov 128   ;;  %s20112_s10 = smov 8  }
  0x3f   : > { %18768 = dma.hbm_to_vmem [thread:$0]  (!%p20211_p11), %s25148_s4, 4096, %s250_s14, [#allocation9], %s20111_s29, %s20111_s29, %s20112_s10  }
  0x40   : > { %s19944_s16 = scalar_lea.hbm %s25147_s3, 1024 }
  0x41   : > { %p19945_p1 = scmp.ne.s32.totalorder %s25147_s3, %s19944_s16  ;;  %p19951_p6 = scmp.lt.u32.totalorder %s19944_s16, %s25147_s3 }
  0x43   : > { %p19947_p2 = pnand %p19945_p1, %p20223_p13 }
  0x45   : > { %p19948_p4 = pneg %p19947_p2 }
  0x47   : > { %p19953_p8 = pnand %p19951_p6, %p19948_p4 }
  0x49   : > { %19956 = shalt.err (!%p19953_p8)
}
  0x4a   : > { %s19957_s23 = scalar_lea.vmem %s237_s17, 1024  ;;  %p19965_p3 = scmp.lt.s32.totalorder %s237_s17, %s237_s17 }
  0x4b   : > { %p19958_p10 = scmp.ne.s32.totalorder %s237_s17, %s19957_s23  ;;  %p19966_p5 = scmp.lt.s32.totalorder %s19957_s23, %s19957_s23 }
  0x4d   : > { %p19960_p12 = pnand %p19958_p10, %p20223_p13  ;;  %p19967_p7 = por %p19966_p5, %p19965_p3 }
  0x4f   : > { %p19961_p0 = pneg %p19960_p12 }
  0x51   : > { %p19968_p9 = pnand %p19967_p7, %p19961_p0 }
  0x53   : > { %19971 = shalt.err (!%p19968_p9)
}
  0x54   : > { %18765 = dma.hbm_to_vmem [thread:$0]  (!%p20211_p11), %s25147_s3, 1024, %s237_s17, [#allocation6], %s20111_s29, %s20111_s29, %s20112_s10  }
  0x55   : > { %s20113_s24 = smov [#allocation10]   ;;  %s19972_s16 = scalar_lea.hbm %s25149_s5, 2048 }
  0x56   : > { %s262_s8 = sshll.u32 %s20113_s24, 4  ;;  %p19973_p1 = scmp.ne.s32.totalorder %s25149_s5, %s19972_s16  ;;  %s263_s8 = int_to_ptr.vmem [resolvable:$true] %s262_s8 }
  0x57   : > { %p19979_p6 = scmp.lt.u32.totalorder %s19972_s16, %s25149_s5 }
  0x58   : > { %p19975_p2 = pnand %p19973_p1, %p20223_p13 }
  0x5a   : > { %p19976_p4 = pneg %p19975_p2 }
  0x5c   : > { %p19981_p8 = pnand %p19979_p6, %p19976_p4 }
  0x5e   : > { %19984 = shalt.err (!%p19981_p8)
}
  0x5f   : > { %s19985_s17 = scalar_lea.vmem %s263_s8, 2048  ;;  %p19993_p3 = scmp.lt.s32.totalorder %s263_s8, %s263_s8 }
  0x60   : > { %p19986_p10 = scmp.ne.s32.totalorder %s263_s8, %s19985_s17  ;;  %p19994_p5 = scmp.lt.s32.totalorder %s19985_s17, %s19985_s17 }
  0x62   : > { %p19988_p12 = pnand %p19986_p10, %p20223_p13  ;;  %p19995_p7 = por %p19994_p5, %p19993_p3 }
  0x64   : > { %p19989_p0 = pneg %p19988_p12 }
  0x66   : > { %p19996_p9 = pnand %p19995_p7, %p19989_p0 }
  0x68   : > { %19999 = shalt.err (!%p19996_p9)
}
  0x69   : > { %18771 = dma.hbm_to_vmem [thread:$0]  (!%p20211_p11), %s25149_s5, 2048, %s263_s8, [#allocation9], %s20111_s29, %s20111_s29, %s20112_s10  }
  0x6a   : > { %s20303_s20 = sadd.s32 1, %s20104_s27   ;;  %s32_s12 = sadd.s32 1, %s20100_s26 }
  0x6b   : > { %s29_s11 = ssub.s32 %s20104_s27, %s20303_s20  ;;  %p39_p13 = scmp.ne.s32.totalorder %s20100_s26, %s20096_s25 }
  0x6c   : > { %p30_p1 = scmp.eq.s32.totalorder %s29_s11, 0  ;;  %p40_p2 = scmp.eq.s32.totalorder %s20104_s27, 0 }
  0x6d   : > { %p25360_p4 = scmp.eq.s32.totalorder %s20183_s28, 1  ;;  %p18784_p8 = scmp.lt.s32.totalorder %s20104_s27, 2 }
  0x6e   : > { %s20319_s13 = scalar_select %p30_p1, %s20100_s26, %s32_s12  }
  0x6f   : > { %p20313_p6 = por %p25360_p4, %p39_p13  ;;  %p41_p10 = por %p40_p2, %p39_p13 }
  0x70   : > { %s279_s15 = sand.u32 1, %s20100_s26   ;;  %s16001_s8 = sshll.u32 %s20104_s27, 12 }
  0x71   : > { %s15473_s16 = sshll.u32 %s279_s15, 8  ;;  %s20326_s21 = scalar_lea.hbm %s25144_s0, %s16001_s8 }
  0x72   : > { %s283_s22 = scalar_lea.vmem [#allocation2], %s15473_s16  ;;  %p20330_p11 = pnand %p18784_p8, %p41_p10 }
  0x73   : > { %s290_s17 = sshll.u32 %s283_s22, 4  ;;  %s20334_s14 = scalar_lea.sflag [#allocation3], %s279_s15  ;;  %s20328_s17 = int_to_ptr.vmem [resolvable:$true] %s290_s17 }
  0x74   : > { %s20000_s12 = scalar_lea.hbm %s20326_s21, 4096  ;;  %p20002_p0 = pneg %p20330_p11 }
  0x75   : > { %p20001_p12 = scmp.ne.s32.totalorder %s20326_s21, %s20000_s12  ;;  %s20005_s8 = scalar_lea.hbm %s25144_s0, 8192 }
  0x76   : > { %p20006_p7 = scmp.lt.u32.totalorder %s20326_s21, %s25144_s0  ;;  %p20007_p9 = scmp.lt.u32.totalorder %s20005_s8, %s20000_s12 }
  0x77   : > { %p20003_p3 = pnand %p20002_p0, %p20001_p12  ;;  %p20009_p1 = scmp.lt.u32.totalorder %s20000_s12, %s20326_s21 }
  0x78   : > { %p20008_p13 = por %p20007_p9, %p20006_p7 }
  0x79   : > { %p20004_p5 = pneg %p20003_p3 }
  0x7a   : > { %p20010_p2 = por %p20009_p1, %p20008_p13 }
  0x7c   : > { %p20011_p4 = pnand %p20010_p2, %p20004_p5 }
  0x7e   : > { %20014 = shalt.err (!%p20011_p4)
}
  0x7f   : > { %s20015_s15 = scalar_lea.vmem %s20328_s17, 4096  ;;  %s20114_s22 = smov [#allocation2]  }
  0x80   : > { %p20016_p8 = scmp.ne.s32.totalorder %s20328_s17, %s20015_s15  ;;  %s20020_s11 = sshll.u32 %s20114_s22, 4  ;;  %s20021_s11 = int_to_ptr.vmem [resolvable:$false] %s20020_s11 }
  0x81   : > { %s20022_s16 = scalar_lea.vmem %s20021_s11, 8192  ;;  %p20023_p3 = scmp.lt.s32.totalorder %s20328_s17, %s20021_s11 }
  0x82   : > { %p20018_p10 = pnand %p20016_p8, %p20002_p0  ;;  %p20024_p7 = scmp.lt.s32.totalorder %s20022_s16, %s20015_s15 }
  0x84   : > { %p20019_p12 = pneg %p20018_p10  ;;  %p20025_p9 = por %p20024_p7, %p20023_p3 }
  0x86   : > { %p20026_p13 = pnand %p20025_p9, %p20019_p12 }
  0x88   : > { %20029 = shalt.err (!%p20026_p13)
}
  0x89   : > { %18775 = dma.hbm_to_vmem [thread:$0]  (!%p20330_p11), %s20326_s21, 4096, %s20328_s17, %s20334_s14, %s20111_s29, %s20111_s29, %s20112_s10  }
  0x8a   : > { %p25363_p0 = scmp.ne.s32.totalorder %s25357_s9, 0 }
  0x8c   : > { %302 = sbr.rel (%p25363_p0) target bundleno = 2727 (0xaa7), region = 48 }
  0x93   : > { %s20368_s12 = sand.u32 1, %s20096_s25   ;;  %p25364_p5 = scmp.ne.s32.totalorder %s25354_s30, 0 }
  0x94   : > { %s15477_s8 = sshll.u32 %s20368_s12, 8  ;;  %s305_s18 = scalar_lea.sflag [#allocation3], %s20368_s12 }
  0x95   : > { %s20374_s23 = scalar_lea.vmem [#allocation2], %s15477_s8 }
  0x96   : > { %20075 = dma.done.wait (%p25364_p5), %s305_s18, 4096  }
  0x97   : > { %20077 = vsyncadd (%p25364_p5), %s305_s18, 4294963200  ;;  %p25365_p11 = scmp.eq.s32.totalorder %s20183_s28, 0 }
  0x99   : > { %20079 = dma.done.wait (%p25365_p11), [#allocation6], 7168   ;;  %p25366_p1 = pmov %p25365_p11 }
  0x9b   : > { %20081 = vsyncadd (%p25366_p1), [#allocation6], 4294960128  ;;  %p25367_p2 = pmov %p25366_p1 }
  0x9c   : > { %p25368_p4 = pmov %p25366_p1 }
  0x9d   : > { %20083 = dma.done.wait (%p25367_p2), [#allocation9], 6144  }
  0x9e   : > { %20085 = vsyncadd (%p25368_p4), [#allocation9], 4294961152  ;;  %v20115_v0 = vmov 0.0   ;;  %v390_v1 = vld [vmem:[#allocation5 + $0x8] sm:$0xff]  ;;  %v393_v2 = vld [vmem:[#allocation5 + $0x20] sm:$0xff]  ;;  %vm1704_vm0 = vcmask 261120  }
  0x9f   : > { %518 = vmatprep.mubr.f32.mxu1 %v20115_v0  ;;  %v389_v3 = vld [vmem:[#allocation5] sm:$0xff]  ;;  %v17907_v4 = vpack.c.bf16 %v393_v2, %v390_v1  ;;  %v392_v5 = vld [vmem:[#allocation5 + $0x18] sm:$0xff]  ;;  %v399_v7 = vld [vmem:[#allocation5 + $0x50] sm:$0xff]  ;;  %s20116_s29 = smov 64   ;;  %s20117_s10 = smov 96   ;;  %vm7313_vm2 = vcmask 130048  }
  0xa0   : > { %v396_v6 = vld [vmem:[#allocation5 + $0x38] sm:$0xff]  ;;  %v17909_v8 = vpack.c.bf16 %v392_v5, %v389_v3  ;;  %v395_v10 = vld [vmem:[#allocation5 + $0x30] sm:$0xff]  ;;  %v398_v11 = vld [vmem:[#allocation5 + $0x48] sm:$0xff]  ;;  %s20118_s21 = smov 32   ;;  %s25029_s19 = scalar_lea.vmem [#allocation11], %s15477_s8 }
  0xa1   : > { %v17911_v9 = vpack.c.bf16 %v399_v7, %v396_v6  ;;  %v402_v12 = vld [vmem:[#allocation5 + $0x68] sm:$0xff]  ;;  %17908 = vmatprep.subr.bf16.mxu1 %v17907_v4  ;;  %v405_v13 = vld [vmem:[#allocation5 + $0x80] sm:$0xff]  ;;  %v17913_v14 = vpack.c.bf16 %v398_v11, %v395_v10  ;;  %v404_v17 = vld [vmem:[#allocation5 + $0x78] sm:$0xff]  ;;  %s16002_s15 = sshll.u32 %s20183_s28, 12  ;;  %s15355_s22 = sshll.u32 %s25029_s19, 4  ;;  %s25097_s22 = int_to_ptr.vmem [resolvable:$true] %s15355_s22 }
  0xa2   : > { %17910 = vmatpush1.bf16.msra.mxu1 %v17909_v8  ;;  %v17915_v15 = vpack.c.bf16 %v405_v13, %v402_v12  ;;  %v401_v16 = vld [vmem:[#allocation5 + $0x60] sm:$0xff]  ;;  %v408_v18 = vld [vmem:[#allocation5 + $0x98] sm:$0xff]  ;;  %v411_v19 = vld [vmem:[#allocation5 + $0xb0] sm:$0xff]  ;;  %s25095_s8 = scalar_lea.hbm %s25151_s7, %s16002_s15  ;;  %s15342_s28 = scalar_lea.sflag [#allocation4], %s20368_s12 }
  0xa3   : > { %17912 = vmatprep.subr.bf16.mxu1 %v17911_v9  ;;  %v17917_v20 = vpack.c.bf16 %v404_v17, %v401_v16  ;;  %v17919_v21 = vpack.c.bf16 %v411_v19, %v408_v18  ;;  %v407_v22 = vld [vmem:[#allocation5 + $0x90] sm:$0xff]  ;;  %v410_v23 = vld [vmem:[#allocation5 + $0xa8] sm:$0xff]  ;;  %v417_v25 = vld [vmem:[#allocation5 + $0xe0] sm:$0xff]  ;;  %s20030_s18 = scalar_lea.vmem %s25097_s22, 4096 }
  0xa4   : > { %v414_v24 = vld [vmem:[#allocation5 + $0xc8] sm:$0xff]  ;;  %v17921_v26 = vpack.c.bf16 %v410_v23, %v407_v22  ;;  %v413_v28 = vld [vmem:[#allocation5 + $0xc0] sm:$0xff]  ;;  %v416_v29 = vld [vmem:[#allocation5 + $0xd8] sm:$0xff]  ;;  %p20031_p8 = scmp.ne.s32.totalorder %s25097_s22, %s20030_s18 }
  0xa5   : > { %v17923_v27 = vpack.c.bf16 %v417_v25, %v414_v24  ;;  %v420_v30 = vld [vmem:[#allocation5 + $0xf8] sm:$0xff]  ;;  %v423_v31 = vld [vmem:[#allocation5 + $0x110] sm:$0xff]  ;;  %v17925_v32 = vpack.c.bf16 %v416_v29, %v413_v28  ;;  %v422_v35 = vld [vmem:[#allocation5 + $0x108] sm:$0xff] }
  0xa6   : > { %17914 = vmatpush1.bf16.msra.mxu1 %v17913_v14  ;;  %v17927_v33 = vpack.c.bf16 %v423_v31, %v420_v30  ;;  %v419_v34 = vld [vmem:[#allocation5 + $0xf0] sm:$0xff]  ;;  %v426_v36 = vld [vmem:[#allocation5 + $0x128] sm:$0xff]  ;;  %v429_v37 = vld [vmem:[#allocation5 + $0x140] sm:$0xff]  ;;  %p20032_p10 = pnand %p20031_p8, %p20313_p6 }
  0xa7   : > { %17916 = vmatprep.subr.bf16.mxu1 %v17915_v15  ;;  %v17929_v38 = vpack.c.bf16 %v422_v35, %v419_v34  ;;  %v17931_v39 = vpack.c.bf16 %v429_v37, %v426_v36  ;;  %v425_v40 = vld [vmem:[#allocation5 + $0x120] sm:$0xff]  ;;  %v428_v41 = vld [vmem:[#allocation5 + $0x138] sm:$0xff]  ;;  %v435_v43 = vld [vmem:[#allocation5 + $0x170] sm:$0xff] }
  0xa8   : > { %v432_v42 = vld [vmem:[#allocation5 + $0x158] sm:$0xff]  ;;  %v17933_v44 = vpack.c.bf16 %v428_v41, %v425_v40  ;;  %v431_v46 = vld [vmem:[#allocation5 + $0x150] sm:$0xff]  ;;  %v434_v47 = vld [vmem:[#allocation5 + $0x168] sm:$0xff]  ;;  %p20033_p12 = pneg %p20032_p10 }
  0xa9   : > { %v17935_v45 = vpack.c.bf16 %v435_v43, %v432_v42  ;;  %v17937_v48 = vpack.c.bf16 %v434_v47, %v431_v46  ;;  %v391_v49 = vld [vmem:[#allocation5 + $0x10] sm:$0xff]  ;;  %v394_v50 = vld [vmem:[#allocation5 + $0x28] sm:$0xff]  ;;  %v397_v51 = vld [vmem:[#allocation5 + $0x40] sm:$0xff] }
  0xaa   : > { %17918 = vmatpush1.bf16.msra.mxu1 %v17917_v20  ;;  %v20390_v52 = vld [vmem:[%s20374_s23] sm:$0xff]  ;;  %v17939_v53 = vpack.c.bf16 %v394_v50, %v391_v49  ;;  %v400_v54 = vld [vmem:[#allocation5 + $0x58] sm:$0xff]  ;;  %v403_v56 = vld [vmem:[#allocation5 + $0x70] sm:$0xff] }
  0xab   : > { %17920 = vmatprep.subr.bf16.mxu1 %v17919_v21  ;;  %v17943_v55 = vpack.c.bf16 %v400_v54, %v397_v51  ;;  %v406_v57 = vld [vmem:[#allocation5 + $0x88] sm:$0xff]  ;;  %v409_v60 = vld [vmem:[#allocation5 + $0xa0] sm:$0xff]  ;;  %v412_v61 = vld [vmem:[#allocation5 + $0xb8] sm:$0xff] }
  0xac   : > { %v20395_v58 = vld [vmem:[%s20374_s23 + $0x8] sm:$0xff]  ;;  %v17947_v59 = vpack.c.bf16 %v406_v57, %v403_v56  ;;  %v20400_v62 = vld [vmem:[%s20374_s23 + $0x10] sm:$0xff]  ;;  %v17951_v63 = vpack.c.bf16 %v412_v61, %v409_v60  ;;  %v20405_v3 = vld [vmem:[%s20374_s23 + $0x18] sm:$0xff] }
  0xad   : > { %v415_v1 = vld [vmem:[#allocation5 + $0xd0] sm:$0xff]  ;;  %v418_v2 = vld [vmem:[#allocation5 + $0xe8] sm:$0xff]  ;;  %v421_v5 = vld [vmem:[#allocation5 + $0x100] sm:$0xff] }
  0xae   : > { %17922 = vmatpush1.bf16.msra.mxu1 %v17921_v26  ;;  %v17955_v4 = vpack.c.bf16 %v418_v2, %v415_v1  ;;  %v424_v6 = vld [vmem:[#allocation5 + $0x118] sm:$0xff]  ;;  %v20410_v7 = vld [vmem:[%s20374_s23 + $0x20] sm:$0xff]  ;;  %v427_v9 = vld [vmem:[#allocation5 + $0x130] sm:$0xff] }
  0xaf   : > { %17924 = vmatprep.subr.bf16.mxu1 %v17923_v27  ;;  %v17959_v8 = vpack.c.bf16 %v424_v6, %v421_v5  ;;  %v430_v10 = vld [vmem:[#allocation5 + $0x148] sm:$0xff]  ;;  %v433_v13 = vld [vmem:[#allocation5 + $0x160] sm:$0xff]  ;;  %v436_v14 = vld [vmem:[#allocation5 + $0x178] sm:$0xff] }
  0xb0   : > { %v20415_v11 = vld [vmem:[%s20374_s23 + $0x28] sm:$0xff]  ;;  %v17963_v12 = vpack.c.bf16 %v430_v10, %v427_v9  ;;  %v20420_v15 = vld [vmem:[%s20374_s23 + $0x30] sm:$0xff]  ;;  %v17967_v16 = vpack.c.bf16 %v436_v14, %v433_v13  ;;  %v20425_v17 = vld [vmem:[%s20374_s23 + $0x38] sm:$0xff] }
  0xb1   : > { %v20430_v18 = vld [vmem:[%s20374_s23 + $0x40] sm:$0xff]  ;;  %v20435_v19 = vld [vmem:[%s20374_s23 + $0x48] sm:$0xff]  ;;  %v20440_v20 = vld [vmem:[%s20374_s23 + $0x50] sm:$0xff] }
  0xb2   : > { %17926 = vmatpush1.bf16.msra.mxu1 %v17925_v32  ;;  %v20445_v21 = vld [vmem:[%s20374_s23 + $0x58] sm:$0xff]  ;;  %v20450_v22 = vld [vmem:[%s20374_s23 + $0x60] sm:$0xff]  ;;  %v20455_v23 = vld [vmem:[%s20374_s23 + $0x68] sm:$0xff] }
  0xb3   : > { %17928 = vmatprep.subr.bf16.mxu1 %v17927_v33  ;;  %v20460_v24 = vld [vmem:[%s20374_s23 + $0x70] sm:$0xff]  ;;  %v20465_v25 = vld [vmem:[%s20374_s23 + $0x78] sm:$0xff]  ;;  %v373_v26 = vld [vmem:[%s20374_s23 + $0x80] sm:$0xff] }
  0xb4   : > { %v374_v27 = vld [vmem:[%s20374_s23 + $0x88] sm:$0xff]  ;;  %v375_v28 = vld [vmem:[%s20374_s23 + $0x90] sm:$0xff]  ;;  %v376_v29 = vld [vmem:[%s20374_s23 + $0x98] sm:$0xff] }
  0xb5   : > { %v377_v30 = vld [vmem:[%s20374_s23 + $0xa0] sm:$0xff]  ;;  %v378_v31 = vld [vmem:[%s20374_s23 + $0xa8] sm:$0xff]  ;;  %v379_v32 = vld [vmem:[%s20374_s23 + $0xb0] sm:$0xff] }
  0xb6   : > { %17930 = vmatpush1.bf16.msra.mxu1 %v17929_v38  ;;  %v380_v33 = vld [vmem:[%s20374_s23 + $0xb8] sm:$0xff]  ;;  %v381_v34 = vld [vmem:[%s20374_s23 + $0xc0] sm:$0xff]  ;;  %v382_v35 = vld [vmem:[%s20374_s23 + $0xc8] sm:$0xff] }
  0xb7   : > { %17932 = vmatprep.subr.bf16.mxu1 %v17931_v39  ;;  %v383_v36 = vld [vmem:[%s20374_s23 + $0xd0] sm:$0xff]  ;;  %v384_v37 = vld [vmem:[%s20374_s23 + $0xd8] sm:$0xff]  ;;  %v385_v38 = vld [vmem:[%s20374_s23 + $0xe0] sm:$0xff] }
  0xb8   : > { %v386_v39 = vld [vmem:[%s20374_s23 + $0xe8] sm:$0xff]  ;;  %v387_v40 = vld [vmem:[%s20374_s23 + $0xf0] sm:$0xff]  ;;  %v388_v41 = vld [vmem:[%s20374_s23 + $0xf8] sm:$0xff]  ;;  %s20119_s23 = smov [#allocation11]  }
  0xb9   : > { %vm20542_vm1 = vmpackc.low %vm1704_vm0, %vm1704_vm0  ;;  %s20034_s30 = sshll.u32 %s20119_s23, 4  ;;  %s20035_s30 = int_to_ptr.vmem [resolvable:$false] %s20034_s30 }
  0xba   : > { %17934 = vmatpush1.bf16.msra.mxu1 %v17933_v44  ;;  %v20522_v44 = vld [vmem:[%s25146_s2] sm:$0x7]  ;;  %s20036_s9 = scalar_lea.vmem %s20035_s30, 8192  ;;  %p20037_p3 = scmp.lt.s32.totalorder %s25097_s22, %s20035_s30 }
  0xbb   : > { %17936 = vmatprep.subr.bf16.mxu1 %v17935_v45  ;;  %p20038_p7 = scmp.lt.s32.totalorder %s20036_s9, %s20030_s18 }
  0xbd   : > { %p20039_p9 = por %p20038_p7, %p20037_p3 }
  0xbe   : > { %17938 = vmatpush1.bf16.msra.mxu1 %v17937_v48 }
  0xbf   : > { %17940 = vmatprep.subr.bf16.mxu1 %v17939_v53  ;;  %p20040_p13 = pnand %p20039_p9, %p20033_p12 }
  0xc1   : > { %519 = vmatmul.mubr.f32.vlgmr.msra.gmra.mrb[0].mxu1 %v20390_v52 }
  0xc2   : > { %524 = vmatprep.mubr.f32.mxu1 %v20115_v0  ;;  %17942 = vmatpush3.bf16.msra.mxu1 %v17939_v53 }
  0xc3   : > { %17944 = vmatprep.subr.bf16.mxu1 %v17943_v55 }
  0xc5   : > { %525 = vmatmul.mubr.f32.gmra.mrb[2].mxu1 %v20395_v58 }
  0xc6   : > { %530 = vmatprep.mubr.f32.mxu1 %v20115_v0  ;;  %17946 = vmatpush3.bf16.msra.mxu1 %v17943_v55 }
  0xc7   : > { %17948 = vmatprep.subr.bf16.mxu1 %v17947_v59 }
  0xc9   : > { %531 = vmatmul.mubr.f32.gmra.mrb[4].mxu1 %v20400_v62 }
  0xca   : > { %536 = vmatprep.mubr.f32.mxu1 %v20115_v0  ;;  %17950 = vmatpush3.bf16.msra.mxu1 %v17947_v59 }
  0xcb   : > { %17952 = vmatprep.subr.bf16.mxu1 %v17951_v63 }
  0xcd   : > { %537 = vmatmul.mubr.f32.gmra.mrb[6].mxu1 %v20405_v3 }
  0xce   : > { %542 = vmatprep.mubr.f32.mxu1 %v20115_v0  ;;  %17954 = vmatpush3.bf16.msra.mxu1 %v17951_v63 }
  0xcf   : > { %17956 = vmatprep.subr.bf16.mxu1 %v17955_v4 }
  0xd1   : > { %543 = vmatmul.mubr.f32.gmra.mrb[8].mxu1 %v20410_v7 }
  0xd2   : > { %548 = vmatprep.mubr.f32.mxu1 %v20115_v0  ;;  %17958 = vmatpush3.bf16.msra.mxu1 %v17955_v4 }
  0xd3   : > { %17960 = vmatprep.subr.bf16.mxu1 %v17959_v8 }
  0xd5   : > { %549 = vmatmul.mubr.f32.gmra.mrb[10].mxu1 %v20415_v11 }
  0xd6   : > { %554 = vmatprep.mubr.f32.mxu1 %v20115_v0  ;;  %17962 = vmatpush3.bf16.msra.mxu1 %v17959_v8 }
  0xd7   : > { %17964 = vmatprep.subr.bf16.mxu1 %v17963_v12 }
  0xd9   : > { %555 = vmatmul.mubr.f32.gmra.mrb[12].mxu1 %v20420_v15 }
  0xda   : > { %560 = vmatprep.mubr.f32.mxu1 %v20115_v0  ;;  %17966 = vmatpush3.bf16.msra.mxu1 %v17963_v12 }
  0xdb   : > { %17968 = vmatprep.subr.bf16.mxu1 %v17967_v16 }
  0xdd   : > { %561 = vmatmul.mubr.f32.gmra.mrb[14].mxu1 %v20425_v17 }
  0xde   : > { %566 = vmatprep.mubr.f32.mxu1 %v20115_v0  ;;  %17970 = vmatpush3.bf16.msra.mxu1 %v17967_v16 }
  0xe1   : > { %567 = vmatmul.mubr.f32.gmra.mrb[16].mxu1 %v20430_v18 }
  0xe2   : > { %572 = vmatprep.mubr.f32.mxu1 %v20115_v0 }
  0xe5   : > { %573 = vmatmul.mubr.f32.gmra.mrb[18].mxu1 %v20435_v19 }
  0xe6   : > { %578 = vmatprep.mubr.f32.mxu1 %v20115_v0 }
  0xe9   : > { %579 = vmatmul.mubr.f32.gmra.mrb[20].mxu1 %v20440_v20 }
  0xea   : > { %584 = vmatprep.mubr.f32.mxu1 %v20115_v0 }
  0xed   : > { %585 = vmatmul.mubr.f32.gmra.mrb[22].mxu1 %v20445_v21 }
  0xee   : > { %590 = vmatprep.mubr.f32.mxu1 %v20115_v0 }
  0xf1   : > { %591 = vmatmul.mubr.f32.gmra.mrb[24].mxu1 %v20450_v22 }
  0xf2   : > { %596 = vmatprep.mubr.f32.mxu1 %v20115_v0 }
  0xf5   : > { %597 = vmatmul.mubr.f32.gmra.mrb[26].mxu1 %v20455_v23 }
  0xf6   : > { %602 = vmatprep.mubr.f32.mxu1 %v20115_v0 }
  0xf9   : > { %603 = vmatmul.mubr.f32.gmra.mrb[28].mxu1 %v20460_v24 }
  0xfa   : > { %608 = vmatprep.mubr.f32.mxu1 %v20115_v0 }
  0xfd   : > { %609 = vmatmul.mubr.f32.gmra.mrb[30].mxu1 %v20465_v25 }
  0xfe   : > { %614 = vmatprep.mubr.f32.mxu1 %v20115_v0 }
 0x101   : > { %615 = vmatmul.mubr.f32.gmra.mrb[32].mxu1 %v373_v26 }
 0x102   : > { %620 = vmatprep.mubr.f32.mxu1 %v20115_v0 }
 0x105   : > { %621 = vmatmul.mubr.f32.gmra.mrb[34].mxu1 %v374_v27 }
 0x106   : > { %626 = vmatprep.mubr.f32.mxu1 %v20115_v0 }
 0x109   : > { %627 = vmatmul.mubr.f32.gmra.mrb[36].mxu1 %v375_v28 }
 0x10a   : > { %632 = vmatprep.mubr.f32.mxu1 %v20115_v0 }
 0x10d   : > { %633 = vmatmul.mubr.f32.gmra.mrb[38].mxu1 %v376_v29 }
 0x10e   : > { %638 = vmatprep.mubr.f32.mxu1 %v20115_v0 }
 0x111   : > { %639 = vmatmul.mubr.f32.gmra.mrb[40].mxu1 %v377_v30 }
 0x112   : > { %644 = vmatprep.mubr.f32.mxu1 %v20115_v0 }
 0x115   : > { %645 = vmatmul.mubr.f32.gmra.mrb[42].mxu1 %v378_v31 }
 0x116   : > { %650 = vmatprep.mubr.f32.mxu1 %v20115_v0 }
 0x119   : > { %651 = vmatmul.mubr.f32.gmra.mrb[44].mxu1 %v379_v32 }
 0x11a   : > { %656 = vmatprep.mubr.f32.mxu1 %v20115_v0 }
 0x11d   : > { %657 = vmatmul.mubr.f32.gmra.mrb[46].mxu1 %v380_v33 }
 0x11e   : > { %662 = vmatprep.mubr.f32.mxu1 %v20115_v0 }
 0x121   : > { %663 = vmatmul.mubr.f32.gmra.mrb[48].mxu1 %v381_v34 }
 0x122   : > { %668 = vmatprep.mubr.f32.mxu1 %v20115_v0 }
 0x125   : > { %669 = vmatmul.mubr.f32.gmra.mrb[50].mxu1 %v382_v35 }
 0x126   : > { %674 = vmatprep.mubr.f32.mxu1 %v20115_v0 }
 0x129   : > { %675 = vmatmul.mubr.f32.gmra.mrb[52].mxu1 %v383_v36 }
 0x12a   : > { %680 = vmatprep.mubr.f32.mxu1 %v20115_v0 }
 0x12d   : > { %681 = vmatmul.mubr.f32.gmra.mrb[54].mxu1 %v384_v37 }
 0x12e   : > { %686 = vmatprep.mubr.f32.mxu1 %v20115_v0 }
 0x131   : > { %687 = vmatmul.mubr.f32.gmra.mrb[56].mxu1 %v385_v38 }
 0x132   : > { %692 = vmatprep.mubr.f32.mxu1 %v20115_v0 }
 0x135   : > { %693 = vmatmul.mubr.f32.gmra.mrb[58].mxu1 %v386_v39 }
 0x136   : > { %698 = vmatprep.mubr.f32.mxu1 %v20115_v0 }
 0x139   : > { %699 = vmatmul.mubr.f32.gmra.mrb[60].mxu1 %v387_v40 }
 0x13a   : > { %704 = vmatprep.mubr.f32.mxu1 %v20115_v0  ;;  %v439_v0 = vlaneseq }
 0x13c   : > { %v20516_v42 = vshrl.u32 %v439_v0, 7 }
 0x13d   : > { %705 = vmatmul.mubr.f32.gmra.mrb[62].mxu1 %v388_v41 }
 0x13e   : > { %16739 = vmatprep.mubr.f32.mxu1 %v20390_v52  ;;  %v441_v43 = vsub.s32 0, %v20516_v42  ;;  %v445_v46 = vsub.s32 1, %v20516_v42 }
 0x140   : > { %v20525_v45 = vrot.slane %v20522_v44, %v441_v43  ;;  %v20530_v50 = vrot.slane %v20522_v44, %v445_v46 }
 0x141   : > { %16740 = vmatmul.mubr.f32.vlgmr.msra.gmra.mrb[64].mxu1 %v20395_v58 }
 0x142   : > { %16742 = vmatprep.mubr.f32.mxu1 %v20400_v62 }
 0x145   : > { %16743 = vmatmul.mubr.f32.gmra.mrb[66].mxu1 %v20405_v3 }
 0x146   : > { %16745 = vmatprep.mubr.f32.mxu1 %v20410_v7 }
 0x149   : > { %16746 = vmatmul.mubr.f32.gmra.mrb[68].mxu1 %v20415_v11 }
 0x14a   : > { %16748 = vmatprep.mubr.f32.mxu1 %v20420_v15 }
 0x14d   : > { %16749 = vmatmul.mubr.f32.gmra.mrb[70].mxu1 %v20425_v17 }
 0x14e   : > { %16751 = vmatprep.mubr.f32.mxu1 %v20430_v18 }
 0x151   : > { %16752 = vmatmul.mubr.f32.gmra.mrb[72].mxu1 %v20435_v19 }
 0x152   : > { %16754 = vmatprep.mubr.f32.mxu1 %v20440_v20 }
 0x155   : > { %16755 = vmatmul.mubr.f32.gmra.mrb[74].mxu1 %v20445_v21 }
 0x156   : > { %16757 = vmatprep.mubr.f32.mxu1 %v20450_v22 }
 0x159   : > { %16758 = vmatmul.mubr.f32.gmra.mrb[76].mxu1 %v20455_v23 }
 0x15a   : > { %16760 = vmatprep.mubr.f32.mxu1 %v20460_v24 }
 0x15d   : > { %16761 = vmatmul.mubr.f32.gmra.mrb[78].mxu1 %v20465_v25 }
 0x15e   : > { %16763 = vmatprep.mubr.f32.mxu1 %v373_v26 }
 0x161   : > { %16764 = vmatmul.mubr.f32.gmra.mrb[80].mxu1 %v374_v27 }
 0x162   : > { %16766 = vmatprep.mubr.f32.mxu1 %v375_v28 }
 0x165   : > { %16767 = vmatmul.mubr.f32.gmra.mrb[82].mxu1 %v376_v29 }
 0x166   : > { %16769 = vmatprep.mubr.f32.mxu1 %v377_v30 }
 0x169   : > { %16770 = vmatmul.mubr.f32.gmra.mrb[84].mxu1 %v378_v31 }
 0x16a   : > { %16772 = vmatprep.mubr.f32.mxu1 %v379_v32 }
 0x16d   : > { %16773 = vmatmul.mubr.f32.gmra.mrb[86].mxu1 %v380_v33 }
 0x16e   : > { %16775 = vmatprep.mubr.f32.mxu1 %v381_v34 }
 0x171   : > { %16776 = vmatmul.mubr.f32.gmra.mrb[88].mxu1 %v382_v35 }
 0x172   : > { %16778 = vmatprep.mubr.f32.mxu1 %v383_v36 }
 0x175   : > { %16779 = vmatmul.mubr.f32.gmra.mrb[90].mxu1 %v384_v37 }
 0x176   : > { %16781 = vmatprep.mubr.f32.mxu1 %v385_v38 }
 0x179   : > { %16782 = vmatmul.mubr.f32.gmra.mrb[92].mxu1 %v386_v39 }
 0x17a   : > { %16784 = vmatprep.mubr.f32.mxu1 %v387_v40 }
 0x17d   : > { %16785 = vmatmul.mubr.f32.gmra.mrb[94].mxu1 %v388_v41 }
 0x194   : > { %v520_v47 = vpop.f32.mrb[0].mxu1 }
 0x195   : > { %v521_v48 = vadd.f32 %v520_v47, %v20525_v45  ;;  %v522_v49 = vpop.f32.mrb[1].mxu1 }
 0x196   : > { %v523_v54 = vadd.f32 %v522_v49, %v20530_v50 }
 0x197   : > { %1032 = vrot.lane.b32.xlu0 %v521_v48, %s20116_s29  ;;  %968 = vrot.lane.b32.xlu1 %v521_v48, %s20117_s10 }
 0x198   : > { %16791 = vmatprep.mubr.msk.f32.mxu0 %vm1704_vm0, %v521_v48  ;;  %v526_v51 = vpop.f32.mrb[2].mxu1 }
 0x199   : > { %v527_v52 = vadd.f32 %v526_v51, %v20525_v45  ;;  %v528_v53 = vpop.f32.mrb[3].mxu1 }
 0x19a   : > { %v529_v55 = vadd.f32 %v528_v53, %v20530_v50 }
 0x19b   : > { %1096 = vrot.lane.b32.xlu0 %v521_v48, %s20118_s21  ;;  %1034 = vrot.lane.b32.xlu1 %v527_v52, %s20116_s29 }
 0x19c   : > { %v532_v57 = vpop.f32.mrb[4].mxu1  ;;  %v17971_v58 = vpack.c.bf16 %v529_v55, %v523_v54  ;;  %v18836_v59 = vpack.i.bf16 %v529_v55, %v523_v54 }
 0x19d   : > { %v533_v60 = vadd.f32 %v532_v57, %v20525_v45  ;;  %v534_v61 = vpop.f32.mrb[5].mxu1 }
 0x19e   : > { %17973 = vmatprep.subr.msk.bf16.mxu0 %vm20542_vm1, %v17971_v58  ;;  %v535_v62 = vadd.f32 %v534_v61, %v20530_v50 }
 0x19f   : > { %17976 = vmatpush3.bf16.xpose.msk.msra.mxu0 %vm20542_vm1, %v17971_v58  ;;  %970 = vrot.lane.b32.xlu0 %v527_v52, %s20117_s10 }
 0x1a0   : > { %1098 = vrot.lane.b32.xlu1 %v527_v52, %s20118_s21  ;;  %v538_v63 = vpop.f32.mrb[6].mxu1  ;;  %16798 = vmatprep.mubr.msk.f32.mxu1 %vm1704_vm0, %v533_v60 }
 0x1a1   : > { %v540_v1 = vpop.f32.mrb[7].mxu1  ;;  %v539_v10 = vadd.f32 %v538_v63, %v20525_v45 }
 0x1a2   : > { %v541_v2 = vadd.f32 %v540_v1, %v20530_v50 }
 0x1a3   : > { %18837 = vrot.lane.b32.xlu0 %v18836_v59, %s20117_s10 }
 0x1a4   : > { %18847 = vrot.lane.b32.xlu1 %v18836_v59, %s20118_s21  ;;  %v17977_v3 = vpack.c.bf16 %v541_v2, %v535_v62  ;;  %v544_v4 = vpop.f32.mrb[8].mxu1  ;;  %v18851_v5 = vpack.i.bf16 %v541_v2, %v535_v62 }
 0x1a5   : > { %v546_v6 = vpop.f32.mrb[9].mxu1  ;;  %v545_v12 = vadd.f32 %v544_v4, %v20525_v45 }
 0x1a6   : > { %16792 = vmatmul.mubr.msk.f32.vlgmr.msra.gmra.mrb[0].mxu0 %vm1704_vm0, %v527_v52  ;;  %17979 = vmatprep.subr.msk.bf16.mxu1 %vm20542_vm1, %v17977_v3  ;;  %v547_v7 = vadd.f32 %v546_v6, %v20530_v50 }
 0x1a7   : > { %17982 = vmatpush3.bf16.xpose.msk.msra.mxu1 %vm20542_vm1, %v17977_v3  ;;  %18842 = vrot.lane.b32.xlu0 %v18836_v59, %s20116_s29 }
 0x1a8   : > { %1036 = vrot.lane.b32.xlu1 %v533_v60, %s20116_s29  ;;  %v550_v8 = vpop.f32.mrb[10].mxu1 }
 0x1a9   : > { %v552_v9 = vpop.f32.mrb[11].mxu1  ;;  %v551_v20 = vadd.f32 %v550_v8, %v20525_v45 }
 0x1aa   : > { %v553_v11 = vadd.f32 %v552_v9, %v20530_v50 }
 0x1ab   : > { %972 = vrot.lane.b32.xlu0 %v533_v60, %s20117_s10 }
 0x1ac   : > { %1100 = vrot.lane.b32.xlu1 %v533_v60, %s20118_s21  ;;  %v17983_v13 = vpack.c.bf16 %v553_v11, %v547_v7  ;;  %v18866_v14 = vpack.i.bf16 %v553_v11, %v547_v7  ;;  %v556_v15 = vpop.f32.mrb[12].mxu1 }
 0x1ad   : > { %v558_v16 = vpop.f32.mrb[13].mxu1  ;;  %v20584_v22 = vadd.f32 %v556_v15, %v20525_v45 }
 0x1ae   : > { %16799 = vmatmul.mubr.msk.f32.vlgmr.msra.gmra.mrb[96].mxu1 %vm1704_vm0, %v539_v10  ;;  %17985 = vmatprep.subr.msk.bf16.mxu1 %vm20542_vm1, %v17983_v13  ;;  %v559_v17 = vadd.f32 %v558_v16, %v20530_v50 }
 0x1af   : > { %1038 = vrot.lane.b32.xlu0 %v539_v10, %s20116_s29  ;;  %17988 = vmatpush3.bf16.xpose.msk.msra.mxu1 %vm20542_vm1, %v17983_v13 }
 0x1b0   : > { %974 = vrot.lane.b32.xlu1 %v539_v10, %s20117_s10  ;;  %16805 = vmatprep.mubr.msk.f32.mxu1 %vm1704_vm0, %v545_v12  ;;  %v562_v18 = vpop.f32.mrb[14].mxu1 }
 0x1b1   : > { %v564_v19 = vpop.f32.mrb[15].mxu1  ;;  %v20600_v30 = vadd.f32 %v562_v18, %v20525_v45 }
 0x1b2   : > { %v565_v21 = vadd.f32 %v564_v19, %v20530_v50 }
 0x1b3   : > { %1102 = vrot.lane.b32.xlu0 %v539_v10, %s20118_s21 }
 0x1b4   : > { %976 = vrot.lane.b32.xlu1 %v545_v12, %s20117_s10  ;;  %v17989_v23 = vpack.c.bf16 %v565_v21, %v559_v17  ;;  %v568_v24 = vpop.f32.mrb[16].mxu1  ;;  %v20587_v25 = vpack.i.bf16 %v565_v21, %v559_v17 }
 0x1b5   : > { %v570_v26 = vpop.f32.mrb[17].mxu1  ;;  %v20605_v32 = vadd.f32 %v568_v24, %v20525_v45 }
 0x1b6   : > { %16806 = vmatmul.mubr.msk.f32.vlgmr.msra.gmra.mrb[98].mxu1 %vm1704_vm0, %v551_v20  ;;  %17991 = vmatprep.subr.msk.bf16.mxu1 %vm20542_vm1, %v17989_v23  ;;  %v571_v27 = vadd.f32 %v570_v26, %v20530_v50 }
 0x1b7   : > { %18852 = vrot.lane.b32.xlu0 %v18851_v5, %s20117_s10  ;;  %17994 = vmatpush3.bf16.xpose.msk.msra.mxu1 %vm20542_vm1, %v17989_v23 }
 0x1b8   : > { %1040 = vrot.lane.b32.xlu1 %v545_v12, %s20116_s29  ;;  %16812 = vmatprep.mubr.msk.f32.mxu1 %vm1704_vm0, %v20584_v22  ;;  %v574_v28 = vpop.f32.mrb[18].mxu1 }
 0x1b9   : > { %v576_v29 = vpop.f32.mrb[19].mxu1  ;;  %v20622_v40 = vadd.f32 %v574_v28, %v20525_v45 }
 0x1ba   : > { %v577_v31 = vadd.f32 %v576_v29, %v20530_v50 }
 0x1bb   : > { %18857 = vrot.lane.b32.xlu0 %v18851_v5, %s20116_s29 }
 0x1bc   : > { %1106 = vrot.lane.b32.xlu1 %v551_v20, %s20118_s21  ;;  %v17995_v33 = vpack.c.bf16 %v577_v31, %v571_v27  ;;  %v580_v34 = vpop.f32.mrb[20].mxu1  ;;  %v20608_v35 = vpack.i.bf16 %v577_v31, %v571_v27 }
 0x1bd   : > { %v582_v36 = vpop.f32.mrb[21].mxu1  ;;  %v20627_v0 = vadd.f32 %v580_v34, %v20525_v45 }
 0x1be   : > { %16813 = vmatmul.mubr.msk.f32.vlgmr.msra.gmra.mrb[100].mxu1 %vm1704_vm0, %v20600_v30  ;;  %17997 = vmatprep.subr.msk.bf16.mxu1 %vm20542_vm1, %v17995_v33  ;;  %v583_v37 = vadd.f32 %v582_v36, %v20530_v50 }
 0x1bf   : > { %18862 = vrot.lane.b32.xlu0 %v18851_v5, %s20118_s21  ;;  %18000 = vmatpush3.bf16.xpose.msk.msra.mxu1 %vm20542_vm1, %v17995_v33 }
 0x1c0   : > { %18867 = vrot.lane.b32.xlu1 %v18866_v14, %s20117_s10  ;;  %16819 = vmatprep.mubr.msk.f32.mxu1 %vm1704_vm0, %v20605_v32  ;;  %v586_v38 = vpop.f32.mrb[22].mxu1 }
 0x1c1   : > { %v588_v39 = vpop.f32.mrb[23].mxu1  ;;  %v20644_v53 = vadd.f32 %v586_v38, %v20525_v45 }
 0x1c2   : > { %v589_v41 = vadd.f32 %v588_v39, %v20530_v50 }
 0x1c3   : > { %1104 = vrot.lane.b32.xlu0 %v545_v12, %s20118_s21 }
 0x1c4   : > { %18872 = vrot.lane.b32.xlu1 %v18866_v14, %s20116_s29  ;;  %v592_v43 = vpop.f32.mrb[24].mxu1  ;;  %v18001_v46 = vpack.c.bf16 %v589_v41, %v583_v37  ;;  %v20630_v47 = vpack.i.bf16 %v589_v41, %v583_v37 }
 0x1c5   : > { %v594_v48 = vpop.f32.mrb[25].mxu1  ;;  %v20649_v55 = vadd.f32 %v592_v43, %v20525_v45 }
 0x1c6   : > { %16820 = vmatmul.mubr.msk.f32.vlgmr.msra.gmra.mrb[102].mxu1 %vm1704_vm0, %v20622_v40  ;;  %18003 = vmatprep.subr.msk.bf16.mxu1 %vm20542_vm1, %v18001_v46  ;;  %v595_v49 = vadd.f32 %v594_v48, %v20530_v50 }
 0x1c7   : > { %978 = vrot.lane.b32.xlu0 %v551_v20, %s20117_s10  ;;  %18006 = vmatpush3.bf16.xpose.msk.msra.mxu1 %vm20542_vm1, %v18001_v46 }
 0x1c8   : > { %18877 = vrot.lane.b32.xlu1 %v18866_v14, %s20118_s21  ;;  %v598_v51 = vpop.f32.mrb[26].mxu1  ;;  %16826 = vmatprep.mubr.msk.f32.mxu1 %vm1704_vm0, %v20627_v0 }
 0x1c9   : > { %v600_v52 = vpop.f32.mrb[27].mxu1  ;;  %v20669_v1 = vadd.f32 %v598_v51, %v20525_v45 }
 0x1ca   : > { %v601_v54 = vadd.f32 %v600_v52, %v20530_v50 }
 0x1cb   : > { %1042 = vrot.lane.b32.xlu0 %v551_v20, %s20116_s29 }
 0x1cc   : > { %1044 = vrot.lane.b32.xlu1 %v20584_v22, %s20116_s29  ;;  %v604_v57 = vpop.f32.mrb[28].mxu1  ;;  %v18007_v58 = vpack.c.bf16 %v601_v54, %v595_v49  ;;  %v20653_v59 = vpack.i.bf16 %v601_v54, %v595_v49 }
 0x1cd   : > { %v606_v60 = vpop.f32.mrb[29].mxu1  ;;  %v20675_v3 = vadd.f32 %v604_v57, %v20525_v45 }
 0x1ce   : > { %16827 = vmatmul.mubr.msk.f32.vlgmr.msra.gmra.mrb[104].mxu1 %vm1704_vm0, %v20644_v53  ;;  %18009 = vmatprep.subr.msk.bf16.mxu1 %vm20542_vm1, %v18007_v58  ;;  %v607_v61 = vadd.f32 %v606_v60, %v20530_v50 }
 0x1cf   : > { %980 = vrot.lane.b32.xlu0 %v20584_v22, %s20117_s10  ;;  %18012 = vmatpush3.bf16.xpose.msk.msra.mxu1 %vm20542_vm1, %v18007_v58 }
 0x1d0   : > { %1108 = vrot.lane.b32.xlu1 %v20584_v22, %s20118_s21  ;;  %v610_v62 = vpop.f32.mrb[30].mxu1  ;;  %16833 = vmatprep.mubr.msk.f32.mxu1 %vm1704_vm0, %v20649_v55 }
 0x1d1   : > { %v612_v63 = vpop.f32.mrb[31].mxu1  ;;  %v20700_v12 = vadd.f32 %v610_v62, %v20525_v45 }
 0x1d2   : > { %v613_v2 = vadd.f32 %v612_v63, %v20530_v50 }
 0x1d3   : > { %1046 = vrot.lane.b32.xlu0 %v20600_v30, %s20116_s29 }
 0x1d4   : > { %982 = vrot.lane.b32.xlu1 %v20600_v30, %s20117_s10  ;;  %v616_v4 = vpop.f32.mrb[32].mxu1  ;;  %v18013_v5 = vpack.c.bf16 %v613_v2, %v607_v61  ;;  %v20679_v6 = vpack.i.bf16 %v613_v2, %v607_v61 }
 0x1d5   : > { %v20682_v7 = vadd.f32 %v616_v4, %v20525_v45  ;;  %v618_v8 = vpop.f32.mrb[33].mxu1 }
 0x1d6   : > { %18015 = vmatprep.subr.msk.bf16.mxu1 %vm20542_vm1, %v18013_v5  ;;  %16834 = vmatmul.mubr.msk.f32.vlgmr.msra.gmra.mrb[106].mxu1 %vm1704_vm0, %v20669_v1  ;;  %v619_v9 = vadd.f32 %v618_v8, %v20530_v50 }
 0x1d7   : > { %1110 = vrot.lane.b32.xlu0 %v20600_v30, %s20118_s21  ;;  %18018 = vmatpush3.bf16.xpose.msk.msra.mxu1 %vm20542_vm1, %v18013_v5 }
 0x1d8   : > { %18882 = vrot.lane.b32.xlu1 %v20587_v25, %s20117_s10  ;;  %v622_v10 = vpop.f32.mrb[34].mxu1  ;;  %16840 = vmatprep.mubr.msk.f32.mxu1 %vm1704_vm0, %v20675_v3 }
 0x1d9   : > { %v624_v11 = vpop.f32.mrb[35].mxu1  ;;  %16847 = vmatprep.mubr.msk.f32.mxu0 %vm1704_vm0, %v20682_v7  ;;  %v20726_v22 = vadd.f32 %v622_v10, %v20525_v45 }
 0x1da   : > { %v625_v13 = vadd.f32 %v624_v11, %v20530_v50 }
 0x1db   : > { %18887 = vrot.lane.b32.xlu0 %v20587_v25, %s20116_s29 }
 0x1dc   : > { %984 = vrot.lane.b32.xlu1 %v20605_v32, %s20117_s10  ;;  %v628_v14 = vpop.f32.mrb[36].mxu1  ;;  %v18019_v15 = vpack.c.bf16 %v625_v13, %v619_v9  ;;  %v20707_v16 = vpack.i.bf16 %v625_v13, %v619_v9 }
 0x1dd   : > { %v20710_v17 = vadd.f32 %v628_v14, %v20525_v45  ;;  %v630_v18 = vpop.f32.mrb[37].mxu1 }
 0x1de   : > { %18021 = vmatprep.subr.msk.bf16.mxu0 %vm20542_vm1, %v18019_v15  ;;  %16841 = vmatmul.mubr.msk.f32.vlgmr.msra.gmra.mrb[108].mxu1 %vm1704_vm0, %v20700_v12  ;;  %v631_v19 = vadd.f32 %v630_v18, %v20530_v50 }
 0x1df   : > { %18892 = vrot.lane.b32.xlu0 %v20587_v25, %s20118_s21  ;;  %18024 = vmatpush3.bf16.xpose.msk.msra.mxu0 %vm20542_vm1, %v18019_v15 }
 0x1e0   : > { %1050 = vrot.lane.b32.xlu1 %v20622_v40, %s20116_s29  ;;  %v634_v20 = vpop.f32.mrb[38].mxu1  ;;  %16854 = vmatprep.mubr.msk.f32.mxu1 %vm1704_vm0, %v20710_v17 }
 0x1e1   : > { %v636_v21 = vpop.f32.mrb[39].mxu1  ;;  %v20752_v33 = vadd.f32 %v634_v20, %v20525_v45 }
 0x1e2   : > { %v637_v23 = vadd.f32 %v636_v21, %v20530_v50 }
 0x1e3   : > { %1048 = vrot.lane.b32.xlu0 %v20605_v32, %s20116_s29 }
 0x1e4   : > { %1114 = vrot.lane.b32.xlu1 %v20622_v40, %s20118_s21  ;;  %v640_v24 = vpop.f32.mrb[40].mxu1  ;;  %v18025_v25 = vpack.c.bf16 %v637_v23, %v631_v19  ;;  %v20733_v26 = vpack.i.bf16 %v637_v23, %v631_v19 }
 0x1e5   : > { %v20736_v27 = vadd.f32 %v640_v24, %v20525_v45  ;;  %v642_v28 = vpop.f32.mrb[41].mxu1 }
 0x1e6   : > { %18027 = vmatprep.subr.msk.bf16.mxu1 %vm20542_vm1, %v18025_v25  ;;  %16848 = vmatmul.mubr.msk.f32.vlgmr.msra.gmra.mrb[2].mxu0 %vm1704_vm0, %v20726_v22  ;;  %v643_v29 = vadd.f32 %v642_v28, %v20530_v50 }
 0x1e7   : > { %1112 = vrot.lane.b32.xlu0 %v20605_v32, %s20118_s21  ;;  %18030 = vmatpush3.bf16.xpose.msk.msra.mxu1 %vm20542_vm1, %v18025_v25 }
 0x1e8   : > { %18907 = vrot.lane.b32.xlu1 %v20608_v35, %s20118_s21  ;;  %v646_v30 = vpop.f32.mrb[42].mxu1  ;;  %16861 = vmatprep.mubr.msk.f32.mxu0 %vm1704_vm0, %v20736_v27 }
 0x1e9   : > { %v648_v31 = vpop.f32.mrb[43].mxu1  ;;  %v20778_v46 = vadd.f32 %v646_v30, %v20525_v45 }
 0x1ea   : > { %v649_v34 = vadd.f32 %v648_v31, %v20530_v50 }
 0x1eb   : > { %986 = vrot.lane.b32.xlu0 %v20622_v40, %s20117_s10 }
 0x1ec   : > { %1052 = vrot.lane.b32.xlu1 %v20627_v0, %s20116_s29  ;;  %v652_v32 = vpop.f32.mrb[44].mxu1  ;;  %v18031_v36 = vpack.c.bf16 %v649_v34, %v643_v29  ;;  %v20759_v37 = vpack.i.bf16 %v649_v34, %v643_v29 }
 0x1ed   : > { %v20762_v38 = vadd.f32 %v652_v32, %v20525_v45  ;;  %v654_v39 = vpop.f32.mrb[45].mxu1 }
 0x1ee   : > { %18033 = vmatprep.subr.msk.bf16.mxu0 %vm20542_vm1, %v18031_v36  ;;  %16855 = vmatmul.mubr.msk.f32.vlgmr.msra.gmra.mrb[110].mxu1 %vm1704_vm0, %v20752_v33  ;;  %v655_v40 = vadd.f32 %v654_v39, %v20530_v50 }
 0x1ef   : > { %18897 = vrot.lane.b32.xlu0 %v20608_v35, %s20117_s10  ;;  %18036 = vmatpush3.bf16.xpose.msk.msra.mxu0 %vm20542_vm1, %v18031_v36 }
 0x1f0   : > { %990 = vrot.lane.b32.xlu1 %v20644_v53, %s20117_s10  ;;  %v658_v41 = vpop.f32.mrb[46].mxu1  ;;  %16868 = vmatprep.mubr.msk.f32.mxu1 %vm1704_vm0, %v20762_v38 }
 0x1f1   : > { %v660_v43 = vpop.f32.mrb[47].mxu1  ;;  %v20804_v61 = vadd.f32 %v658_v41, %v20525_v45 }
 0x1f2   : > { %v661_v48 = vadd.f32 %v660_v43, %v20530_v50 }
 0x1f3   : > { %18902 = vrot.lane.b32.xlu0 %v20608_v35, %s20116_s29 }
 0x1f4   : > { %1118 = vrot.lane.b32.xlu1 %v20644_v53, %s20118_s21  ;;  %v664_v49 = vpop.f32.mrb[48].mxu1  ;;  %v18037_v51 = vpack.c.bf16 %v661_v48, %v655_v40  ;;  %v20785_v52 = vpack.i.bf16 %v661_v48, %v655_v40 }
 0x1f5   : > { %v20788_v54 = vadd.f32 %v664_v49, %v20525_v45  ;;  %v666_v57 = vpop.f32.mrb[49].mxu1 }
 0x1f6   : > { %18039 = vmatprep.subr.msk.bf16.mxu1 %vm20542_vm1, %v18037_v51  ;;  %16862 = vmatmul.mubr.msk.f32.vlgmr.msra.gmra.mrb[4].mxu0 %vm1704_vm0, %v20778_v46  ;;  %v667_v35 = vadd.f32 %v666_v57, %v20530_v50 }
 0x1f7   : > { %988 = vrot.lane.b32.xlu0 %v20627_v0, %s20117_s10  ;;  %18042 = vmatpush3.bf16.xpose.msk.msra.mxu1 %vm20542_vm1, %v18037_v51 }
 0x1f8   : > { %18912 = vrot.lane.b32.xlu1 %v20630_v47, %s20117_s10  ;;  %v670_v58 = vpop.f32.mrb[50].mxu1  ;;  %16875 = vmatprep.mubr.msk.f32.mxu0 %vm1704_vm0, %v20788_v54 }
 0x1f9   : > { %v672_v60 = vpop.f32.mrb[51].mxu1  ;;  %v20830_v11 = vadd.f32 %v670_v58, %v20525_v45 }
 0x1fa   : > { %v673_v62 = vadd.f32 %v672_v60, %v20530_v50 }
 0x1fb   : > { %1116 = vrot.lane.b32.xlu0 %v20627_v0, %s20118_s21 }
 0x1fc   : > { %992 = vrot.lane.b32.xlu1 %v20649_v55, %s20117_s10  ;;  %v676_v63 = vpop.f32.mrb[52].mxu1  ;;  %v18043_v2 = vpack.c.bf16 %v673_v62, %v667_v35  ;;  %v20811_v4 = vpack.i.bf16 %v673_v62, %v667_v35 }
 0x1fd   : > { %v20814_v5 = vadd.f32 %v676_v63, %v20525_v45  ;;  %v678_v8 = vpop.f32.mrb[53].mxu1 }
 0x1fe   : > { %18045 = vmatprep.subr.msk.bf16.mxu0 %vm20542_vm1, %v18043_v2  ;;  %16869 = vmatmul.mubr.msk.f32.vlgmr.msra.gmra.mrb[112].mxu1 %vm1704_vm0, %v20804_v61  ;;  %v679_v0 = vadd.f32 %v678_v8, %v20530_v50 }
 0x1ff   : > { %1054 = vrot.lane.b32.xlu0 %v20644_v53, %s20116_s29  ;;  %18048 = vmatpush3.bf16.xpose.msk.msra.mxu0 %vm20542_vm1, %v18043_v2 }
 0x200   : > { %1056 = vrot.lane.b32.xlu1 %v20649_v55, %s20116_s29  ;;  %v682_v9 = vpop.f32.mrb[54].mxu1  ;;  %16882 = vmatprep.mubr.msk.f32.mxu1 %vm1704_vm0, %v20814_v5 }
 0x201   : > { %v684_v10 = vpop.f32.mrb[55].mxu1  ;;  %v20858_v25 = vadd.f32 %v682_v9, %v20525_v45 }
 0x202   : > { %v685_v13 = vadd.f32 %v684_v10, %v20530_v50 }
 0x203   : > { %18917 = vrot.lane.b32.xlu0 %v20630_v47, %s20116_s29 }
 0x204   : > { %1122 = vrot.lane.b32.xlu1 %v20669_v1, %s20118_s21  ;;  %v688_v53 = vpop.f32.mrb[56].mxu1  ;;  %v18049_v14 = vpack.c.bf16 %v685_v13, %v679_v0  ;;  %v20837_v15 = vpack.i.bf16 %v685_v13, %v679_v0 }
 0x205   : > { %v20840_v18 = vadd.f32 %v688_v53, %v20525_v45  ;;  %v690_v19 = vpop.f32.mrb[57].mxu1 }
 0x206   : > { %18051 = vmatprep.subr.msk.bf16.mxu1 %vm20542_vm1, %v18049_v14  ;;  %16876 = vmatmul.mubr.msk.f32.vlgmr.msra.gmra.mrb[6].mxu0 %vm1704_vm0, %v20830_v11  ;;  %v691_v20 = vadd.f32 %v690_v19, %v20530_v50 }
 0x207   : > { %18922 = vrot.lane.b32.xlu0 %v20630_v47, %s20118_s21  ;;  %18054 = vmatpush3.bf16.xpose.msk.msra.mxu1 %vm20542_vm1, %v18049_v14 }
 0x208   : > { %18932 = vrot.lane.b32.xlu1 %v20653_v59, %s20116_s29  ;;  %v694_v21 = vpop.f32.mrb[58].mxu1  ;;  %16889 = vmatprep.mubr.msk.f32.mxu0 %vm1704_vm0, %v20840_v18 }
 0x209   : > { %v696_v23 = vpop.f32.mrb[59].mxu1  ;;  %v20855_v24 = vpop.permute.xlu0 %1032  ;;  %v20888_v48 = vadd.f32 %v694_v21, %v20525_v45 }
 0x20a   : > { %25371 = vst [vmem:[#allocation18_spill] sm:$0xff] %v20855_v24  ;;  %v697_v47 = vadd.f32 %v696_v23, %v20530_v50  ;;  %v969_v28 = vpop.permute.xlu1 %968 }
 0x20b   : > { %1120 = vrot.lane.b32.xlu0 %v20649_v55, %s20118_s21 }
 0x20c   : > { %18937 = vrot.lane.b32.xlu1 %v20653_v59, %s20118_s21  ;;  %v700_v29 = vpop.f32.mrb[60].mxu1  ;;  %v18055_v30 = vpack.c.bf16 %v697_v47, %v691_v20  ;;  %v20885_v43 = vpack.i.bf16 %v697_v47, %v691_v20 }
 0x20d   : > { %v20865_v31 = vpop.permute.xlu0 %1096  ;;  %v20868_v34 = vadd.f32 %v700_v29, %v20525_v45  ;;  %v702_v32 = vpop.f32.mrb[61].mxu1 }
 0x20e   : > { %25372 = vst [vmem:[#allocation19_spill] sm:$0xff] %v20865_v31  ;;  %v20870_v36 = vpop.permute.xlu1 %1034  ;;  %18057 = vmatprep.subr.msk.bf16.mxu0 %vm20542_vm1, %v18055_v30  ;;  %16883 = vmatmul.mubr.msk.f32.vlgmr.msra.gmra.mrb[114].mxu1 %vm1704_vm0, %v20858_v25  ;;  %v703_v55 = vadd.f32 %v702_v32, %v20530_v50 }
 0x20f   : > { %25373 = vst [vmem:[#allocation20_spill] sm:$0xff] %v20870_v36  ;;  %994 = vrot.lane.b32.xlu0 %v20669_v1, %s20117_s10  ;;  %18060 = vmatpush3.bf16.xpose.msk.msra.mxu0 %vm20542_vm1, %v18055_v30 }
 0x210   : > { %1060 = vrot.lane.b32.xlu1 %v20675_v3, %s20116_s29  ;;  %v706_v39 = vpop.f32.mrb[62].mxu1  ;;  %16896 = vmatprep.mubr.msk.f32.mxu1 %vm1704_vm0, %v20868_v34 }
 0x211   : > { %v708_v40 = vpop.f32.mrb[63].mxu1  ;;  %v971_v41 = vpop.permute.xlu0 %970  ;;  %v20917_v9 = vadd.f32 %v706_v39, %v20525_v45 }
 0x212   : > { %v709_v49 = vadd.f32 %v708_v40, %v20530_v50  ;;  %v20891_v51 = vpop.permute.xlu1 %1098 }
 0x213   : > { %25374 = vst [vmem:[#allocation21_spill] sm:$0xff] %v20891_v51  ;;  %1058 = vrot.lane.b32.xlu0 %v20669_v1, %s20116_s29 }
 0x214   : > { %1124 = vrot.lane.b32.xlu1 %v20675_v3, %s20118_s21  ;;  %v18061_v57 = vpack.c.bf16 %v709_v49, %v703_v55  ;;  %v20897_v35 = vpop.f32.mrb[64].mxu1 }
 0x215   : > { %v18838_v58 = vpop.permute.xlu0 %18837  ;;  %v20899_v60 = vpop.f32.mrb[65].mxu1 }
 0x216   : > { %v18840_v62 = vunpack.i.h.bf16 %v18838_v58  ;;  %v18839_v63 = vunpack.i.l.bf16 %v18838_v58  ;;  %v20901_v2 = vpop.permute.xlu1 %18847  ;;  %16890 = vmatmul.mubr.msk.f32.vlgmr.msra.gmra.mrb[8].mxu0 %vm1704_vm0, %v20888_v48  ;;  %18063 = vmatprep.subr.msk.bf16.mxu1 %vm20542_vm1, %v18061_v57 }
 0x217   : > { %25375 = vst [vmem:[#allocation22_spill] sm:$0xff] %v20901_v2  ;;  %18066 = vmatpush3.bf16.xpose.msk.msra.mxu1 %vm20542_vm1, %v18061_v57  ;;  %18927 = vrot.lane.b32.xlu0 %v20653_v59, %s20117_s10 }
 0x218   : > { %v18067_v50 = vpack.c.bf16 %v18840_v62, %v18839_v63  ;;  %998 = vrot.lane.b32.xlu1 %v20700_v12, %s20117_s10  ;;  %16903 = vmatprep.mubr.msk.f32.mxu0 %vm1704_vm0, %v969_v28  ;;  %v16744_v1 = vpop.f32.mrb[66].mxu1  ;;  %v20953_v28 = vpack.i.bf16 %v709_v49, %v703_v55  ;;  %v449_v55 = vsub.s32 2, %v20516_v42 }
 0x219   : > { %v20914_v8 = vpop.permute.xlu0 %18842  ;;  %v787_v0 = vpop.f32.mrb[67].mxu1 }
 0x21a   : > { %25376 = vst [vmem:[#allocation23_spill] sm:$0xff] %v20914_v8  ;;  %v20919_v10 = vpop.permute.xlu1 %1036  ;;  %18069 = vmatprep.subr.msk.bf16.mxu0 %vm20542_vm1, %v18067_v50  ;;  %v20978_v63 = vrot.slane %v20522_v44, %v449_v55 }
 0x21b   : > { %25377 = vst [vmem:[#allocation24_spill] sm:$0xff] %v20919_v10  ;;  %996 = vrot.lane.b32.xlu0 %v20675_v3, %s20117_s10  ;;  %18072 = vmatpush3.bf16.xpose.msk.msra.mxu0 %vm20542_vm1, %v18067_v50 }
 0x21c   : > { %18942 = vrot.lane.b32.xlu1 %v20679_v6, %s20117_s10  ;;  %v16747_v59 = vpop.f32.mrb[68].mxu1  ;;  %v20996_v44 = vadd.f32 %v20899_v60, %v20978_v63  ;;  %v21004_v55 = vadd.f32 %v787_v0, %v20978_v63 }
 0x21d   : > { %v973_v13 = vpop.permute.xlu0 %972  ;;  %v20929_v53 = vpop.f32.mrb[69].mxu1 }
 0x21e   : > { %v20931_v45 = vpop.permute.xlu1 %1100  ;;  %16897 = vmatmul.mubr.msk.f32.vlgmr.msra.gmra.mrb[116].mxu1 %vm1704_vm0, %v20917_v9 }
 0x21f   : > { %25378 = vst [vmem:[#allocation25_spill] sm:$0xff] %v20931_v45  ;;  %1062 = vrot.lane.b32.xlu0 %v20700_v12, %s20116_s29  ;;  %16910 = vmatprep.mubr.msk.f32.mxu1 %vm1704_vm0, %v973_v13 }
 0x220   : > { %18952 = vrot.lane.b32.xlu1 %v20679_v6, %s20118_s21  ;;  %v20940_v3 = vpop.f32.mrb[70].mxu1 }
 0x221   : > { %v20942_v14 = vpop.permute.xlu0 %1038  ;;  %v20944_v19 = vpop.f32.mrb[71].mxu1 }
 0x222   : > { %25379 = vst [vmem:[#allocation26_spill] sm:$0xff] %v20942_v14  ;;  %v975_v20 = vpop.permute.xlu1 %974  ;;  %16904 = vmatmul.mubr.msk.f32.vlgmr.msra.gmra.mrb[10].mxu0 %vm1704_vm0, %v971_v41 }
 0x223   : > { %1126 = vrot.lane.b32.xlu0 %v20700_v12, %s20118_s21 }
 0x224   : > { %1000 = vrot.lane.b32.xlu1 %v20682_v7, %s20117_s10  ;;  %v16753_v21 = vpop.f32.mrb[72].mxu1 }
 0x225   : > { %v20951_v23 = vpop.permute.xlu0 %1102  ;;  %v817_v47 = vpop.f32.mrb[73].mxu1 }
 0x226   : > { %25380 = vst [vmem:[#allocation27_spill] sm:$0xff] %v20951_v23  ;;  %v977_v29 = vpop.permute.xlu1 %976  ;;  %v21020_v0 = vadd.f32 %v817_v47, %v20978_v63 }
 0x227   : > { %16917 = vmatprep.mubr.msk.f32.mxu0 %vm1704_vm0, %v977_v29  ;;  %18947 = vrot.lane.b32.xlu0 %v20679_v6, %s20116_s29 }
 0x228   : > { %1066 = vrot.lane.b32.xlu1 %v20726_v22, %s20116_s29  ;;  %v20960_v30 = vpop.f32.mrb[74].mxu1 }
 0x229   : > { %v18853_v12 = vpop.permute.xlu0 %18852  ;;  %v20962_v32 = vpop.f32.mrb[75].mxu1 }
 0x22a   : > { %v18855_v39 = vunpack.i.h.bf16 %v18853_v12  ;;  %v18854_v40 = vunpack.i.l.bf16 %v18853_v12  ;;  %v20964_v41 = vpop.permute.xlu1 %1040  ;;  %v20992_v12 = vadd.f32 %v20897_v35, %v20978_v63 }
 0x22b   : > { %25381 = vst [vmem:[#allocation28_spill] sm:$0xff] %v20964_v41  ;;  %1064 = vrot.lane.b32.xlu0 %v20682_v7, %s20116_s29 }
 0x22c   : > { %v18073_v49 = vpack.c.bf16 %v18855_v39, %v18854_v40  ;;  %1130 = vrot.lane.b32.xlu1 %v20726_v22, %s20118_s21  ;;  %v16759_v6 = vpop.f32.mrb[76].mxu1  ;;  %v21001_v40 = vadd.f32 %v16744_v1, %v20978_v63  ;;  %v21017_v1 = vadd.f32 %v16753_v21, %v20978_v63 }
 0x22d   : > { %v20971_v57 = vpop.permute.xlu0 %18857  ;;  %v837_v58 = vpop.f32.mrb[77].mxu1 }
 0x22e   : > { %25382 = vst [vmem:[#allocation29_spill] sm:$0xff] %v20971_v57  ;;  %v20973_v62 = vpop.permute.xlu1 %1106  ;;  %18075 = vmatprep.subr.msk.bf16.mxu1 %vm20542_vm1, %v18073_v49  ;;  %v21050_v45 = vpack.i.bf16 %v21017_v1, %v21020_v0  ;;  %v21062_v51 = vadd.f32 %v837_v58, %v20978_v63  ;;  %v21083_v58 = vadd.f32 %v20962_v32, %v20978_v63 }
 0x22f   : > { %25383 = vst [vmem:[#allocation30_spill] sm:$0xff] %v20973_v62  ;;  %1128 = vrot.lane.b32.xlu0 %v20682_v7, %s20118_s21  ;;  %18078 = vmatpush3.bf16.xpose.msk.msra.mxu1 %vm20542_vm1, %v18073_v49 }
 0x230   : > { %18967 = vrot.lane.b32.xlu1 %v20707_v16, %s20118_s21  ;;  %v20986_v42 = vpop.f32.mrb[78].mxu1  ;;  %25390 = vst [vmem:[#allocation37_spill] sm:$0xff] %v21050_v45 }
 0x231   : > { %v20988_v50 = vpop.permute.xlu0 %18862  ;;  %v847_v13 = vpop.f32.mrb[79].mxu1  ;;  %v21120_v10 = vadd.f32 %v20986_v42, %v20978_v63 }
 0x232   : > { %25384 = vst [vmem:[#allocation31_spill] sm:$0xff] %v20988_v50  ;;  %v18868_v29 = vpop.permute.xlu1 %18867  ;;  %v21123_v41 = vadd.f32 %v847_v13, %v20978_v63 }
 0x233   : > { %v18870_v7 = vunpack.i.h.bf16 %v18868_v29  ;;  %v18869_v39 = vunpack.i.l.bf16 %v18868_v29  ;;  %1002 = vrot.lane.b32.xlu0 %v20726_v22, %s20117_s10  ;;  %v21014_v22 = vadd.f32 %v16747_v59, %v20978_v63  ;;  %v21028_v29 = vadd.f32 %v20929_v53, %v20978_v63 }
 0x234   : > { %1068 = vrot.lane.b32.xlu1 %v20710_v17, %s20116_s29  ;;  %v16765_v35 = vpop.f32.mrb[80].mxu1  ;;  %v21032_v59 = vpack.i.bf16 %v21001_v40, %v21004_v55  ;;  %v21046_v53 = vadd.f32 %v20940_v3, %v20978_v63 }
 0x235   : > { %v18079_v49 = vpack.c.bf16 %v18870_v7, %v18869_v39  ;;  %v21008_v23 = vpop.permute.xlu0 %1104  ;;  %v857_v60 = vpop.f32.mrb[81].mxu1  ;;  %v21066_v3 = vpack.i.bf16 %v21014_v22, %v21028_v29  ;;  %v21086_v2 = vadd.f32 %v16765_v35, %v20978_v63 }
 0x236   : > { %25385 = vst [vmem:[#allocation32_spill] sm:$0xff] %v21008_v23  ;;  %v21010_v62 = vpop.permute.xlu1 %18872  ;;  %16911 = vmatmul.mubr.msk.f32.vlgmr.msra.gmra.mrb[118].mxu1 %vm1704_vm0, %v975_v20  ;;  %25387 = vst [vmem:[#allocation34_spill] sm:$0xff] %v21032_v59  ;;  %v21036_v20 = vpack.i.bf16 %v20992_v12, %v20996_v44  ;;  %v21056_v23 = vadd.f32 %v20944_v19, %v20978_v63 }
 0x237   : > { %25386 = vst [vmem:[#allocation33_spill] sm:$0xff] %v21010_v62  ;;  %18081 = vmatprep.subr.msk.bf16.mxu0 %vm20542_vm1, %v18079_v49  ;;  %18957 = vrot.lane.b32.xlu0 %v20707_v16, %s20117_s10  ;;  %25391 = vst [vmem:[#allocation38_spill] sm:$0xff] %v21066_v3 }
 0x238   : > { %25388 = vst [vmem:[#allocation35_spill] sm:$0xff] %v21036_v20  ;;  %1006 = vrot.lane.b32.xlu1 %v20752_v33, %s20117_s10  ;;  %18084 = vmatpush3.bf16.xpose.msk.msra.mxu0 %vm20542_vm1, %v18079_v49  ;;  %v16768_v21 = vpop.f32.mrb[82].mxu1  ;;  %v21059_v49 = vadd.f32 %v16759_v6, %v20978_v63  ;;  %v21079_v6 = vadd.f32 %v20960_v30, %v20978_v63 }
 0x239   : > { %v979_v47 = vpop.permute.xlu0 %978  ;;  %v867_v7 = vpop.f32.mrb[83].mxu1  ;;  %v21103_v32 = vpack.i.bf16 %v21046_v53, %v21056_v23  ;;  %v21146_v24 = vadd.f32 %v16768_v21, %v20978_v63 }
 0x23a   : > { %v21042_v39 = vpop.permute.xlu1 %18877  ;;  %v21099_v30 = vpack.i.bf16 %v21059_v49, %v21062_v51  ;;  %v21149_v57 = vadd.f32 %v867_v7, %v20978_v63 }
 0x23b   : > { %25389 = vst [vmem:[#allocation36_spill] sm:$0xff] %v21042_v39  ;;  %18962 = vrot.lane.b32.xlu0 %v20707_v16, %s20116_s29  ;;  %25395 = vst [vmem:[#allocation42_spill] sm:$0xff] %v21103_v32 }
 0x23c   : > { %1134 = vrot.lane.b32.xlu1 %v20752_v33, %s20118_s21  ;;  %v16771_v31 = vpop.f32.mrb[84].mxu1  ;;  %25394 = vst [vmem:[#allocation41_spill] sm:$0xff] %v21099_v30 }
 0x23d   : > { %v21070_v50 = vpop.permute.xlu0 %1042  ;;  %v21073_v16 = vadd.f32 %v16771_v31, %v20978_v63  ;;  %v877_v19 = vpop.f32.mrb[85].mxu1  ;;  %v21095_v31 = vadd.f32 %v857_v60, %v20978_v63 }
 0x23e   : > { %25392 = vst [vmem:[#allocation39_spill] sm:$0xff] %v21070_v50  ;;  %v21075_v39 = vpop.permute.xlu1 %1044  ;;  %v21089_v14 = vadd.f32 %v877_v19, %v20978_v63 }
 0x23f   : > { %25393 = vst [vmem:[#allocation40_spill] sm:$0xff] %v21075_v39  ;;  %16918 = vmatmul.mubr.msk.f32.vlgmr.msra.gmra.mrb[12].mxu0 %vm1704_vm0, %v979_v47  ;;  %1004 = vrot.lane.b32.xlu0 %v20710_v17, %s20117_s10 }
 0x240   : > { %18972 = vrot.lane.b32.xlu1 %v20733_v26, %s20117_s10  ;;  %v16774_v35 = vpop.f32.mrb[86].mxu1 }
 0x241   : > { %v981_v19 = vpop.permute.xlu0 %980  ;;  %v21108_v47 = vadd.f32 %v16774_v35, %v20978_v63  ;;  %v887_v39 = vpop.f32.mrb[87].mxu1  ;;  %v21127_v35 = vpack.i.bf16 %v21086_v2, %v21095_v31 }
 0x242   : > { %v21110_v50 = vpop.permute.xlu1 %1108  ;;  %16924 = vmatprep.mubr.msk.f32.mxu1 %vm1704_vm0, %v981_v19  ;;  %v21114_v60 = vadd.f32 %v887_v39, %v20978_v63  ;;  %v21131_v19 = vpack.i.bf16 %v21079_v6, %v21083_v58 }
 0x243   : > { %25396 = vst [vmem:[#allocation43_spill] sm:$0xff] %v21110_v50  ;;  %1132 = vrot.lane.b32.xlu0 %v20710_v17, %s20118_s21  ;;  %25397 = vst [vmem:[#allocation44_spill] sm:$0xff] %v21127_v35 }
 0x244   : > { %25398 = vst [vmem:[#allocation45_spill] sm:$0xff] %v21131_v19  ;;  %1008 = vrot.lane.b32.xlu1 %v20736_v27, %s20117_s10  ;;  %v16777_v39 = vpop.f32.mrb[88].mxu1 }
 0x245   : > { %v21135_v17 = vpop.permute.xlu0 %1046  ;;  %v21138_v42 = vadd.f32 %v16777_v39, %v20978_v63  ;;  %v897_v50 = vpop.f32.mrb[89].mxu1 }
 0x246   : > { %25399 = vst [vmem:[#allocation46_spill] sm:$0xff] %v21135_v17  ;;  %v983_v13 = vpop.permute.xlu1 %982  ;;  %v21141_v36 = vadd.f32 %v897_v50, %v20978_v63  ;;  %v21153_v17 = vpack.i.bf16 %v21120_v10, %v21123_v41 }
 0x247   : > { %1070 = vrot.lane.b32.xlu0 %v20752_v33, %s20116_s29 }
 0x248   : > { %25400 = vst [vmem:[#allocation47_spill] sm:$0xff] %v21153_v17  ;;  %1074 = vrot.lane.b32.xlu1 %v20778_v46, %s20116_s29  ;;  %v16780_v39 = vpop.f32.mrb[90].mxu1  ;;  %v21169_v17 = vpack.i.bf16 %v21146_v24, %v21149_v57 }
 0x249   : > { %v21157_v62 = vpop.permute.xlu0 %1110  ;;  %v21160_v50 = vadd.f32 %v16780_v39, %v20978_v63  ;;  %v907_v33 = vpop.f32.mrb[91].mxu1 }
 0x24a   : > { %25401 = vst [vmem:[#allocation48_spill] sm:$0xff] %v21157_v62  ;;  %v18883_v8 = vpop.permute.xlu1 %18882  ;;  %v21163_v21 = vadd.f32 %v907_v33, %v20978_v63  ;;  %25402 = vst [vmem:[#allocation49_spill] sm:$0xff] %v21169_v17 }
 0x24b   : > { %v18885_v7 = vunpack.i.h.bf16 %v18883_v8  ;;  %v18884_v19 = vunpack.i.l.bf16 %v18883_v8  ;;  %18977 = vrot.lane.b32.xlu0 %v20733_v26, %s20116_s29 }
 0x24c   : > { %1138 = vrot.lane.b32.xlu1 %v20778_v46, %s20118_s21  ;;  %v16783_v62 = vpop.f32.mrb[92].mxu1 }
 0x24d   : > { %v18085_v39 = vpack.c.bf16 %v18885_v7, %v18884_v19  ;;  %v21173_v35 = vpop.permute.xlu0 %18887  ;;  %v21176_v32 = vadd.f32 %v16783_v62, %v20978_v63  ;;  %v917_v33 = vpop.f32.mrb[93].mxu1 }
 0x24e   : > { %25403 = vst [vmem:[#allocation50_spill] sm:$0xff] %v21173_v35  ;;  %v985_v30 = vpop.permute.xlu1 %984  ;;  %v21179_v8 = vadd.f32 %v917_v33, %v20978_v63 }
 0x24f   : > { %18087 = vmatprep.subr.msk.bf16.mxu1 %vm20542_vm1, %v18085_v39  ;;  %16931 = vmatprep.mubr.msk.f32.mxu0 %vm1704_vm0, %v985_v30 }
 0x250   : > { %18982 = vrot.lane.b32.xlu0 %v20733_v26, %s20118_s21  ;;  %18992 = vrot.lane.b32.xlu1 %v20759_v37, %s20116_s29  ;;  %v16786_v19 = vpop.f32.mrb[94].mxu1 }
 0x251   : > { %18090 = vmatpush3.bf16.xpose.msk.msra.mxu1 %vm20542_vm1, %v18085_v39  ;;  %v21190_v62 = vpop.permute.xlu0 %18892  ;;  %v21193_v7 = vadd.f32 %v16786_v19, %v20978_v63  ;;  %v927_v33 = vpop.f32.mrb[95].mxu1  ;;  %v21208_v39 = vpack.c.bf16 %v20992_v12, %v20996_v44 }
 0x252   : > { %25404 = vst [vmem:[#allocation51_spill] sm:$0xff] %v21190_v62  ;;  %v21195_v35 = vpop.permute.xlu1 %1050  ;;  %v21198_v30 = vadd.f32 %v927_v33, %v20978_v63  ;;  %v21221_v33 = vpack.c.bf16 %v21001_v40, %v21004_v55 }
 0x253   : > { %25405 = vst [vmem:[#allocation52_spill] sm:$0xff] %v21208_v39 }
 0x254   : > { %1072 = vrot.lane.b32.xlu0 %v20736_v27, %s20116_s29  ;;  %18997 = vrot.lane.b32.xlu1 %v20759_v37, %s20118_s21  ;;  %25408 = vst [vmem:[#allocation55_spill] sm:$0xff] %v21221_v33 }
 0x255   : > { %v21204_v26 = vpop.permute.xlu0 %1048 }
 0x256   : > { %v21210_v19 = vpop.permute.xlu1 %1114 }
 0x257   : > { %25406 = vst [vmem:[#allocation53_spill] sm:$0xff] %v21210_v19 }
 0x258   : > { %16925 = vmatmul.mubr.msk.f32.vlgmr.msra.gmra.mrb[120].mxu1 %vm1704_vm0, %v983_v13  ;;  %1136 = vrot.lane.b32.xlu0 %v20736_v27, %s20118_s21  ;;  %v21231_v27 = vpack.c.bf16 %v21014_v22, %v21028_v29 }
 0x259   : > { %1076 = vrot.lane.b32.xlu1 %v20762_v38, %s20116_s29  ;;  %v21217_v63 = vpop.permute.xlu0 %1112 }
 0x25a   : > { %25407 = vst [vmem:[#allocation54_spill] sm:$0xff] %v21217_v63  ;;  %v21223_v62 = vpop.permute.xlu1 %18907  ;;  %25410 = vst [vmem:[#allocation57_spill] sm:$0xff] %v21231_v27  ;;  %v21594_v63 = vld [vmem:[#allocation8] sm:$0xff] }
 0x25b   : > { %25409 = vst [vmem:[#allocation56_spill] sm:$0xff] %v21223_v62 }
 0x25c   : > { %1010 = vrot.lane.b32.xlu0 %v20778_v46, %s20117_s10  ;;  %v21241_v46 = vpack.c.bf16 %v21046_v53, %v21056_v23  ;;  %v21257_v23 = vpack.c.bf16 %v21017_v1, %v21020_v0 }
 0x25d   : > { %1140 = vrot.lane.b32.xlu1 %v20762_v38, %s20118_s21  ;;  %v987_v12 = vpop.permute.xlu0 %986 }
 0x25e   : > { %v21233_v44 = vpop.permute.xlu1 %1052  ;;  %25411 = vst [vmem:[#allocation58_spill] sm:$0xff] %v21241_v46  ;;  %25413 = vst [vmem:[#allocation60_spill] sm:$0xff] %v21257_v23 }
 0x260   : > { %18987 = vrot.lane.b32.xlu0 %v20759_v37, %s20117_s10 }
 0x261   : > { %1014 = vrot.lane.b32.xlu1 %v20804_v61, %s20117_s10  ;;  %v18898_v40 = vpop.permute.xlu0 %18897 }
 0x262   : > { %v18900_v55 = vunpack.i.h.bf16 %v18898_v40  ;;  %v18899_v13 = vunpack.i.l.bf16 %v18898_v40  ;;  %v991_v33 = vpop.permute.xlu1 %990 }
 0x264   : > { %v18091_v39 = vpack.c.bf16 %v18900_v55, %v18899_v13  ;;  %1012 = vrot.lane.b32.xlu0 %v20762_v38, %s20117_s10  ;;  %v21266_v55 = vpack.c.bf16 %v21079_v6, %v21083_v58  ;;  %v21280_v6 = vpack.c.bf16 %v21059_v49, %v21062_v51  ;;  %v21307_v49 = vpack.c.bf16 %v21086_v2, %v21095_v31 }
 0x265   : > { %19002 = vrot.lane.b32.xlu1 %v20785_v52, %s20117_s10  ;;  %v21247_v22 = vpop.permute.xlu0 %18902 }
 0x266   : > { %v21249_v37 = vpop.permute.xlu1 %1118  ;;  %18093 = vmatprep.subr.msk.bf16.mxu0 %vm20542_vm1, %v18091_v39  ;;  %25414 = vst [vmem:[#allocation61_spill] sm:$0xff] %v21266_v55  ;;  %25416 = vst [vmem:[#allocation63_spill] sm:$0xff] %v21280_v6 }
 0x267   : > { %25412 = vst [vmem:[#allocation59_spill] sm:$0xff] %v21249_v37  ;;  %18096 = vmatpush3.bf16.xpose.msk.msra.mxu0 %vm20542_vm1, %v18091_v39  ;;  %25420 = vst [vmem:[#allocation67_spill] sm:$0xff] %v21307_v49 }
 0x268   : > { %1078 = vrot.lane.b32.xlu0 %v20804_v61, %s20116_s29 }
 0x269   : > { %19012 = vrot.lane.b32.xlu1 %v20785_v52, %s20118_s21  ;;  %v989_v38 = vpop.permute.xlu0 %988 }
 0x26a   : > { %v18913_v29 = vpop.permute.xlu1 %18912  ;;  %16938 = vmatprep.mubr.msk.f32.mxu1 %vm1704_vm0, %v989_v38 }
 0x26b   : > { %v18915_v53 = vunpack.i.h.bf16 %v18913_v29  ;;  %v18914_v40 = vunpack.i.l.bf16 %v18913_v29 }
 0x26c   : > { %1142 = vrot.lane.b32.xlu0 %v20804_v61, %s20118_s21 }
 0x26d   : > { %v18097_v1 = vpack.c.bf16 %v18915_v53, %v18914_v40  ;;  %1016 = vrot.lane.b32.xlu1 %v20788_v54, %s20117_s10  ;;  %v21272_v0 = vpop.permute.xlu0 %1116  ;;  %v21359_v40 = vpack.i.bf16 %v21073_v16, %v21089_v14 }
 0x26e   : > { %25415 = vst [vmem:[#allocation62_spill] sm:$0xff] %v21272_v0  ;;  %v993_v39 = vpop.permute.xlu1 %992  ;;  %16932 = vmatmul.mubr.msk.f32.vlgmr.msra.gmra.mrb[14].mxu0 %vm1704_vm0, %v987_v12  ;;  %v21294_v12 = vpack.c.bf16 %v21120_v10, %v21123_v41 }
 0x26f   : > { %18099 = vmatprep.subr.msk.bf16.mxu1 %vm20542_vm1, %v18097_v1  ;;  %16945 = vmatprep.mubr.msk.f32.mxu0 %vm1704_vm0, %v993_v39  ;;  %25428 = vst [vmem:[#allocation75_spill] sm:$0xff] %v21359_v40 }
 0x270   : > { %19007 = vrot.lane.b32.xlu0 %v20785_v52, %s20116_s29  ;;  %18102 = vmatpush3.bf16.xpose.msk.msra.mxu1 %vm20542_vm1, %v18097_v1  ;;  %25418 = vst [vmem:[#allocation65_spill] sm:$0xff] %v21294_v12 }
 0x271   : > { %1082 = vrot.lane.b32.xlu1 %v20830_v11, %s20116_s29  ;;  %v21288_v61 = vpop.permute.xlu0 %1054 }
 0x272   : > { %25417 = vst [vmem:[#allocation64_spill] sm:$0xff] %v21288_v61  ;;  %v21290_v58 = vpop.permute.xlu1 %1056  ;;  %v21716_v61 = vld [vmem:[#allocation8 + $0x30] sm:$0xff] }
 0x274   : > { %1080 = vrot.lane.b32.xlu0 %v20788_v54, %s20116_s29 }
 0x275   : > { %1146 = vrot.lane.b32.xlu1 %v20830_v11, %s20118_s21  ;;  %v21300_v52 = vpop.permute.xlu0 %18917 }
 0x276   : > { %v21302_v51 = vpop.permute.xlu1 %1122 }
 0x277   : > { %25419 = vst [vmem:[#allocation66_spill] sm:$0xff] %v21302_v51  ;;  %16939 = vmatmul.mubr.msk.f32.vlgmr.msra.gmra.mrb[122].mxu1 %vm1704_vm0, %v991_v33  ;;  %v21323_v33 = vpack.c.bf16 %v21146_v24, %v21149_v57 }
 0x278   : > { %1144 = vrot.lane.b32.xlu0 %v20788_v54, %s20118_s21 }
 0x279   : > { %19022 = vrot.lane.b32.xlu1 %v20811_v4, %s20116_s29  ;;  %v21313_v10 = vpop.permute.xlu0 %18922  ;;  %v21315_v41 = vpop.f32.mrb[0].mxu0  ;;  %25422 = vst [vmem:[#allocation69_spill] sm:$0xff] %v21323_v33 }
 0x27a   : > { %25421 = vst [vmem:[#allocation68_spill] sm:$0xff] %v21313_v10  ;;  %v21317_v13 = vpop.permute.xlu1 %18932  ;;  %v21319_v38 = vpop.f32.mrb[1].mxu0 }
 0x27c   : > { %1018 = vrot.lane.b32.xlu0 %v20830_v11, %s20117_s10 }
 0x27d   : > { %19027 = vrot.lane.b32.xlu1 %v20811_v4, %s20118_s21  ;;  %v21329_v54 = vpop.permute.xlu0 %1120 }
 0x27e   : > { %25423 = vst [vmem:[#allocation70_spill] sm:$0xff] %v21329_v54  ;;  %v21331_v2 = vpop.permute.xlu1 %18937  ;;  %v21579_v54 = vld [vmem:[#allocation7] sm:$0xff] }
 0x27f   : > { %25424 = vst [vmem:[#allocation71_spill] sm:$0xff] %v21331_v2 }
 0x280   : > { %19017 = vrot.lane.b32.xlu0 %v20811_v4, %s20117_s10  ;;  %v21355_v4 = vpack.c.bf16 %v21073_v16, %v21089_v14  ;;  %v21375_v14 = vpack.i.bf16 %v21108_v47, %v21114_v60 }
 0x281   : > { %1084 = vrot.lane.b32.xlu1 %v20814_v5, %s20116_s29  ;;  %v21337_v31 = vpop.f32.mrb[96].mxu1  ;;  %v995_v24 = vpop.permute.xlu0 %994 }
 0x282   : > { %v21339_v57 = vpop.permute.xlu1 %1060  ;;  %v21341_v29 = vpop.f32.mrb[97].mxu1  ;;  %25427 = vst [vmem:[#allocation74_spill] sm:$0xff] %v21355_v4  ;;  %v21371_v4 = vpack.c.bf16 %v21108_v47, %v21114_v60  ;;  %25430 = vst [vmem:[#allocation77_spill] sm:$0xff] %v21375_v14  ;;  %v21388_v47 = vpack.c.bf16 %v21138_v42, %v21141_v36  ;;  %v21392_v60 = vpack.i.bf16 %v21138_v42, %v21141_v36 }
 0x283   : > { %25425 = vst [vmem:[#allocation72_spill] sm:$0xff] %v21339_v57  ;;  %v21412_v36 = vpack.c.bf16 %v21160_v50, %v21163_v21  ;;  %v21416_v42 = vpack.i.bf16 %v21160_v50, %v21163_v21  ;;  %v21432_v50 = vpack.i.bf16 %v21176_v32, %v21179_v8 }
 0x284   : > { %1020 = vrot.lane.b32.xlu0 %v20814_v5, %s20117_s10  ;;  %25429 = vst [vmem:[#allocation76_spill] sm:$0xff] %v21371_v4  ;;  %25431 = vst [vmem:[#allocation78_spill] sm:$0xff] %v21388_v47 }
 0x285   : > { %1022 = vrot.lane.b32.xlu1 %v20858_v25, %s20117_s10  ;;  %v21347_v11 = vpop.permute.xlu0 %1058  ;;  %25432 = vst [vmem:[#allocation79_spill] sm:$0xff] %v21392_v60  ;;  %25435 = vst [vmem:[#allocation82_spill] sm:$0xff] %v21412_v36 }
 0x286   : > { %v21349_v53 = vpop.permute.xlu1 %1124  ;;  %25436 = vst [vmem:[#allocation83_spill] sm:$0xff] %v21416_v42  ;;  %25439 = vst [vmem:[#allocation86_spill] sm:$0xff] %v21432_v50 }
 0x287   : > { %25426 = vst [vmem:[#allocation73_spill] sm:$0xff] %v21349_v53 }
 0x288   : > { %1148 = vrot.lane.b32.xlu0 %v20814_v5, %s20118_s21 }
 0x289   : > { %1150 = vrot.lane.b32.xlu1 %v20858_v25, %s20118_s21  ;;  %v18928_v1 = vpop.permute.xlu0 %18927  ;;  %v21363_v39 = vpop.f32.mrb[98].mxu1 }
 0x28a   : > { %v18930_v33 = vunpack.i.h.bf16 %v18928_v1  ;;  %v18929_v49 = vunpack.i.l.bf16 %v18928_v1  ;;  %v999_v12 = vpop.permute.xlu1 %998  ;;  %v21365_v6 = vpop.f32.mrb[99].mxu1 }
 0x28c   : > { %v18103_v5 = vpack.c.bf16 %v18930_v33, %v18929_v49  ;;  %1086 = vrot.lane.b32.xlu0 %v20858_v25, %s20116_s29 }
 0x28d   : > { %19032 = vrot.lane.b32.xlu1 %v20837_v15, %s20117_s10  ;;  %v997_v16 = vpop.permute.xlu0 %996 }
 0x28e   : > { %v18943_v1 = vpop.permute.xlu1 %18942  ;;  %18105 = vmatprep.subr.msk.bf16.mxu0 %vm20542_vm1, %v18103_v5  ;;  %16952 = vmatprep.mubr.msk.f32.mxu1 %vm1704_vm0, %v997_v16 }
 0x28f   : > { %v18945_v49 = vunpack.i.h.bf16 %v18943_v1  ;;  %v18944_v25 = vunpack.i.l.bf16 %v18943_v1  ;;  %18108 = vmatpush3.bf16.xpose.msk.msra.mxu0 %vm20542_vm1, %v18103_v5 }
 0x290   : > { %19037 = vrot.lane.b32.xlu0 %v20837_v15, %s20116_s29 }
 0x291   : > { %v18109_v33 = vpack.c.bf16 %v18945_v49, %v18944_v25  ;;  %1152 = vrot.lane.b32.xlu1 %v20840_v18, %s20118_s21  ;;  %v21396_v16 = vpop.permute.xlu0 %1062  ;;  %v21398_v1 = vpop.f32.mrb[100].mxu1 }
 0x292   : > { %25433 = vst [vmem:[#allocation80_spill] sm:$0xff] %v21396_v16  ;;  %v21400_v5 = vpop.permute.xlu1 %18952  ;;  %v21402_v14 = vpop.f32.mrb[101].mxu1 }
 0x293   : > { %25434 = vst [vmem:[#allocation81_spill] sm:$0xff] %v21400_v5  ;;  %18111 = vmatprep.subr.msk.bf16.mxu1 %vm20542_vm1, %v18109_v33  ;;  %v7031_v57 = vadd.f32 %v21579_v54, %v21402_v14 }
 0x294   : > { %19042 = vrot.lane.b32.xlu0 %v20837_v15, %s20118_s21  ;;  %18114 = vmatpush3.bf16.xpose.msk.msra.mxu1 %vm20542_vm1, %v18109_v33  ;;  %v21428_v15 = vpack.c.bf16 %v21176_v32, %v21179_v8  ;;  %v21449_v32 = vpack.c.bf16 %v21193_v7, %v21198_v30  ;;  %v21453_v8 = vpack.i.bf16 %v21193_v7, %v21198_v30 }
 0x295   : > { %1026 = vrot.lane.b32.xlu1 %v20888_v48, %s20117_s10  ;;  %v21420_v49 = vpop.permute.xlu0 %1126 }
 0x296   : > { %25437 = vst [vmem:[#allocation84_spill] sm:$0xff] %v21420_v49  ;;  %v1001_v25 = vpop.permute.xlu1 %1000  ;;  %16946 = vmatmul.mubr.msk.f32.vlgmr.msra.gmra.mrb[16].mxu0 %vm1704_vm0, %v995_v24  ;;  %25438 = vst [vmem:[#allocation85_spill] sm:$0xff] %v21428_v15 }
 0x297   : > { %16959 = vmatprep.mubr.msk.f32.mxu0 %vm1704_vm0, %v1001_v25  ;;  %25441 = vst [vmem:[#allocation88_spill] sm:$0xff] %v21449_v32  ;;  %25442 = vst [vmem:[#allocation89_spill] sm:$0xff] %v21453_v8 }
 0x298   : > { %1024 = vrot.lane.b32.xlu0 %v20840_v18, %s20117_s10 }
 0x299   : > { %1090 = vrot.lane.b32.xlu1 %v20888_v48, %s20116_s29  ;;  %v21436_v21 = vpop.permute.xlu0 %18947  ;;  %v21438_v33 = vpop.f32.mrb[102].mxu1 }
 0x29a   : > { %v21440_v24 = vpop.permute.xlu1 %1066  ;;  %v21442_v25 = vpop.f32.mrb[103].mxu1 }
 0x29b   : > { %25440 = vst [vmem:[#allocation87_spill] sm:$0xff] %v21440_v24  ;;  %16953 = vmatmul.mubr.msk.f32.vlgmr.msra.gmra.mrb[124].mxu1 %vm1704_vm0, %v999_v12 }
 0x29c   : > { %1088 = vrot.lane.b32.xlu0 %v20840_v18, %s20116_s29 }
 0x29d   : > { %19052 = vrot.lane.b32.xlu1 %v20885_v43, %s20116_s29  ;;  %v21457_v50 = vpop.permute.xlu0 %1064 }
 0x29e   : > { %v21459_v42 = vpop.permute.xlu1 %1130 }
 0x29f   : > { %25443 = vst [vmem:[#allocation90_spill] sm:$0xff] %v21459_v42 }
 0x2a0   : > { %1154 = vrot.lane.b32.xlu0 %v20888_v48, %s20118_s21 }
 0x2a1   : > { %19057 = vrot.lane.b32.xlu1 %v20885_v43, %s20118_s21  ;;  %v21465_v18 = vpop.permute.xlu0 %1128  ;;  %v21467_v12 = vpop.f32.mrb[104].mxu1 }
 0x2a2   : > { %25444 = vst [vmem:[#allocation91_spill] sm:$0xff] %v21465_v18  ;;  %v21469_v60 = vpop.permute.xlu1 %18967  ;;  %v21471_v7 = vpop.f32.mrb[105].mxu1 }
 0x2a3   : > { %25445 = vst [vmem:[#allocation92_spill] sm:$0xff] %v21469_v60 }
 0x2a4   : > { %19047 = vrot.lane.b32.xlu0 %v20885_v43, %s20117_s10 }
 0x2a5   : > { %1092 = vrot.lane.b32.xlu1 %v20868_v34, %s20116_s29  ;;  %v1003_v30 = vpop.permute.xlu0 %1002 }
 0x2a6   : > { %v21477_v8 = vpop.permute.xlu1 %1068 }
 0x2a7   : > { %25446 = vst [vmem:[#allocation93_spill] sm:$0xff] %v21477_v8  ;;  %v7033_v8 = vadd.f32 %v21579_v54, %v21442_v25 }
 0x2a8   : > { %1028 = vrot.lane.b32.xlu0 %v20868_v34, %s20117_s10 }
 0x2a9   : > { %1156 = vrot.lane.b32.xlu1 %v20868_v34, %s20118_s21  ;;  %v18958_v48 = vpop.permute.xlu0 %18957  ;;  %v21483_v32 = vpop.f32.mrb[106].mxu1 }
 0x2aa   : > { %v18960_v15 = vunpack.i.h.bf16 %v18958_v48  ;;  %v18959_v36 = vunpack.i.l.bf16 %v18958_v48  ;;  %v1007_v40 = vpop.permute.xlu1 %1006  ;;  %v21485_v47 = vpop.f32.mrb[107].mxu1 }
 0x2ab   : > { %v7037_v14 = vadd.f32 %v21579_v54, %v21485_v47 }
 0x2ac   : > { %v18115_v43 = vpack.c.bf16 %v18960_v15, %v18959_v36  ;;  %1094 = vrot.lane.b32.xlu0 %v20917_v9, %s20116_s29 }
 0x2ad   : > { %1030 = vrot.lane.b32.xlu1 %v20917_v9, %s20117_s10  ;;  %v21491_v4 = vpop.permute.xlu0 %18962 }
 0x2ae   : > { %v21493_v55 = vpop.permute.xlu1 %1134  ;;  %18117 = vmatprep.subr.msk.bf16.mxu0 %vm20542_vm1, %v18115_v43 }
 0x2af   : > { %25447 = vst [vmem:[#allocation94_spill] sm:$0xff] %v21493_v55  ;;  %18120 = vmatpush3.bf16.xpose.msk.msra.mxu0 %vm20542_vm1, %v18115_v43 }
 0x2b0   : > { %1158 = vrot.lane.b32.xlu0 %v20917_v9, %s20118_s21 }
 0x2b1   : > { %19062 = vrot.lane.b32.xlu1 %v20953_v28, %s20117_s10  ;;  %v1005_v34 = vpop.permute.xlu0 %1004  ;;  %v21503_v36 = vpop.f32.mrb[108].mxu1 }
 0x2b2   : > { %v18973_v15 = vpop.permute.xlu1 %18972  ;;  %16966 = vmatprep.mubr.msk.f32.mxu1 %vm1704_vm0, %v1005_v34  ;;  %v21506_v48 = vpop.f32.mrb[109].mxu1 }
 0x2b3   : > { %v18975_v23 = vunpack.i.h.bf16 %v18973_v15  ;;  %v18974_v46 = vunpack.i.l.bf16 %v18973_v15  ;;  %v25452_v15 = vld [vmem:[#allocation41_spill] sm:$0xff] }
 0x2b4   : > { %19067 = vrot.lane.b32.xlu0 %v20953_v28, %s20116_s29 }
 0x2b5   : > { %v18121_v43 = vpack.c.bf16 %v18975_v23, %v18974_v46  ;;  %19072 = vrot.lane.b32.xlu1 %v20953_v28, %s20118_s21  ;;  %v21512_v9 = vpop.permute.xlu0 %1132 }
 0x2b6   : > { %25448 = vst [vmem:[#allocation95_spill] sm:$0xff] %v21512_v9  ;;  %v1009_v27 = vpop.permute.xlu1 %1008  ;;  %16960 = vmatmul.mubr.msk.f32.vlgmr.msra.gmra.mrb[18].mxu0 %vm1704_vm0, %v1003_v30 }
 0x2b7   : > { %18123 = vmatprep.subr.msk.bf16.mxu1 %vm20542_vm1, %v18121_v43  ;;  %16973 = vmatprep.mubr.msk.f32.mxu0 %vm1704_vm0, %v1009_v27 }
 0x2b8   : > { %19082 = vrot.lane.b32.xlu0 %v21032_v59, %s20117_s10  ;;  %18126 = vmatpush3.bf16.xpose.msk.msra.mxu1 %vm20542_vm1, %v18121_v43  ;;  %v25453_v43 = vld [vmem:[#allocation42_spill] sm:$0xff] }
 0x2b9   : > { %19077 = vrot.lane.b32.xlu1 %v21036_v20, %s20117_s10  ;;  %v21524_v28 = vpop.permute.xlu0 %1070  ;;  %v21526_v46 = vpop.f32.mrb[2].mxu0 }
 0x2ba   : > { %25449 = vst [vmem:[#allocation96_spill] sm:$0xff] %v21524_v28  ;;  %v21528_v23 = vpop.permute.xlu1 %1074  ;;  %v21530_v30 = vpop.f32.mrb[3].mxu0 }
 0x2bb   : > { %25450 = vst [vmem:[#allocation97_spill] sm:$0xff] %v21528_v23  ;;  %v21672_v23 = vld [vmem:[#allocation8 + $0x18] sm:$0xff] }
 0x2bc   : > { %19097 = vrot.lane.b32.xlu0 %v21050_v45, %s20117_s10 }
 0x2bd   : > { %19087 = vrot.lane.b32.xlu1 %v21066_v3, %s20117_s10  ;;  %v21536_v27 = vpop.permute.xlu0 %18977  ;;  %v25455_v3 = vld [vmem:[#allocation44_spill] sm:$0xff] }
 0x2be   : > { %v21538_v34 = vpop.permute.xlu1 %1138 }
 0x2bf   : > { %25451 = vst [vmem:[#allocation98_spill] sm:$0xff] %v21538_v34  ;;  %16967 = vmatmul.mubr.msk.f32.vlgmr.msra.gmra.mrb[126].mxu1 %vm1704_vm0, %v1007_v40  ;;  %v25456_v34 = vld [vmem:[#allocation45_spill] sm:$0xff] }
 0x2c0   : > { %19107 = vrot.lane.b32.xlu0 %v25452_v15, %s20117_s10 }
 0x2c1   : > { %19092 = vrot.lane.b32.xlu1 %v25453_v43, %s20117_s10  ;;  %v21545_v59 = vpop.f32.mrb[110].mxu1  ;;  %v25459_v43 = vld [vmem:[#allocation47_spill] sm:$0xff] }
 0x2c2   : > { %v21547_v20 = vpop.permute.xlu0 %18982  ;;  %v21549_v45 = vpop.permute.xlu1 %18992 }
 0x2c3   : > { %25454 = vst [vmem:[#allocation99_spill] sm:$0xff] %v21547_v20  ;;  %v21551_v55 = vpop.f32.mrb[111].mxu1 }
 0x2c4   : > { %19117 = vrot.lane.b32.xlu0 %v25455_v3, %s20117_s10 }
 0x2c5   : > { %19102 = vrot.lane.b32.xlu1 %v25456_v34, %s20117_s10 }
 0x2c6   : > { %v21557_v40 = vpop.permute.xlu0 %1072  ;;  %v21559_v15 = vpop.permute.xlu1 %18997 }
 0x2c7   : > { %25457 = vst [vmem:[#allocation100_spill] sm:$0xff] %v21557_v40  ;;  %25458 = vst [vmem:[#allocation101_spill] sm:$0xff] %v21559_v15  ;;  %v21692_v40 = vld [vmem:[#allocation8 + $0x38] sm:$0xff] }
 0x2c9   : > { %19112 = vrot.lane.b32.xlu1 %v25459_v43, %s20117_s10  ;;  %v21563_v9 = vpop.f32.mrb[4].mxu0 }
 0x2ca   : > { %v21565_v49 = vpop.permute.xlu0 %1136  ;;  %v21567_v42 = vpop.f32.mrb[5].mxu0 }
 0x2cb   : > { %25460 = vst [vmem:[#allocation102_spill] sm:$0xff] %v21565_v49  ;;  %v21569_v53 = vpop.permute.xlu1 %1076 }
 0x2cc   : > { %25461 = vst [vmem:[#allocation103_spill] sm:$0xff] %v21569_v53 }
 0x2cd   : > { %19122 = vrot.lane.b32.xlu1 %v21169_v17, %s20117_s10 }
 0x2ce   : > { %v1011_v3 = vpop.permute.xlu0 %1010 }
 0x2cf   : > { %v21573_v34 = vpop.permute.xlu1 %1140 }
 0x2d0   : > { %25462 = vst [vmem:[#allocation104_spill] sm:$0xff] %v21573_v34 }
 0x2d1   : > { %v21575_v37 = vpop.f32.mrb[112].mxu1 }
 0x2d2   : > { %v18988_v18 = vpop.permute.xlu0 %18987  ;;  %v21577_v20 = vpop.f32.mrb[113].mxu1 }
 0x2d3   : > { %v18990_v43 = vunpack.i.h.bf16 %v18988_v18  ;;  %v18989_v51 = vunpack.i.l.bf16 %v18988_v18  ;;  %v1015_v0 = vpop.permute.xlu1 %1014  ;;  %v7025_v18 = vadd.f32 %v21579_v54, %v21319_v38 }
 0x2d5   : > { %v18127_v15 = vpack.c.bf16 %v18990_v43, %v18989_v51 }
 0x2d6   : > { %v1013_v49 = vpop.permute.xlu0 %1012 }
 0x2d7   : > { %v19003_v5 = vpop.permute.xlu1 %19002  ;;  %18129 = vmatprep.subr.msk.bf16.mxu0 %vm20542_vm1, %v18127_v15  ;;  %16980 = vmatprep.mubr.msk.f32.mxu1 %vm1704_vm0, %v1013_v49  ;;  %v21609_v49 = vld [vmem:[#allocation8 + $0x10] sm:$0xff] }
 0x2d8   : > { %v19005_v17 = vunpack.i.h.bf16 %v19003_v5  ;;  %v19004_v34 = vunpack.i.l.bf16 %v19003_v5  ;;  %18132 = vmatpush3.bf16.xpose.msk.msra.mxu0 %vm20542_vm1, %v18127_v15  ;;  %v21603_v5 = vadd.f32 %v21594_v63, %v7025_v18  ;;  %v21613_v15 = vld [vmem:[#allocation7 + $0x8] sm:$0xff] }
 0x2d9   : > { %v21586_v19 = vpop.f32.mrb[6].mxu0 }
 0x2da   : > { %v18133_v51 = vpack.c.bf16 %v19005_v17, %v19004_v34  ;;  %v21590_v43 = vpop.permute.xlu0 %1078  ;;  %v21592_v60 = vpop.f32.mrb[7].mxu0  ;;  %25465 = vst [vmem:[#allocation107_spill] sm:$0xff] %v21603_v5  ;;  %v7027_v17 = vadd.f32 %v21579_v54, %v21341_v29  ;;  %v7030_v29 = vadd.f32 %v21363_v39, %v21613_v15  ;;  %v7029_v39 = vadd.f32 %v21579_v54, %v21365_v6 }
 0x2db   : > { %25463 = vst [vmem:[#allocation105_spill] sm:$0xff] %v21590_v43  ;;  %v21596_v10 = vpop.permute.xlu1 %19012  ;;  %v21642_v43 = vld [vmem:[#allocation8 + $0x20] sm:$0xff]  ;;  %v7034_v6 = vadd.f32 %v21438_v33, %v21613_v15 }
 0x2dc   : > { %25464 = vst [vmem:[#allocation106_spill] sm:$0xff] %v21596_v10  ;;  %18135 = vmatprep.subr.msk.bf16.mxu1 %vm20542_vm1, %v18133_v51  ;;  %v21618_v18 = vadd.f32 %v21609_v49, %v7027_v17 }
 0x2dd   : > { %18138 = vmatpush3.bf16.xpose.msk.msra.mxu1 %vm20542_vm1, %v18133_v51 }
 0x2de   : > { %v21607_v38 = vpop.permute.xlu0 %1142  ;;  %25467 = vst [vmem:[#allocation109_spill] sm:$0xff] %v21618_v18 }
 0x2df   : > { %25466 = vst [vmem:[#allocation108_spill] sm:$0xff] %v21607_v38  ;;  %v1017_v34 = vpop.permute.xlu1 %1016  ;;  %16974 = vmatmul.mubr.msk.f32.vlgmr.msra.gmra.mrb[20].mxu0 %vm1704_vm0, %v1011_v3  ;;  %v7314_v38 = vsel %vm7313_vm2, %v21603_v5, -inf  ;;  %v21628_v3 = vld [vmem:[#allocation8 + $0x28] sm:$0xff]  ;;  %v7320_v5 = vsel %vm7313_vm2, %v21618_v18, -inf }
 0x2e0   : > { %16987 = vmatprep.mubr.msk.f32.mxu0 %vm1704_vm0, %v1017_v34  ;;  %v21634_v17 = vadd.f32 %v21628_v3, %v7030_v29 }
 0x2e1   : > { %v21615_v10 = vpop.f32.mrb[114].mxu1 }
 0x2e2   : > { %v21622_v51 = vpop.permute.xlu0 %19007  ;;  %v21626_v2 = vpop.f32.mrb[115].mxu1  ;;  %25470 = vst [vmem:[#allocation112_spill] sm:$0xff] %v21634_v17  ;;  %v7329_v18 = vsel %vm7313_vm2, %v21634_v17, -inf }
 0x2e3   : > { %25468 = vst [vmem:[#allocation110_spill] sm:$0xff] %v21622_v51  ;;  %v21630_v34 = vpop.permute.xlu1 %1082  ;;  %7315 = vmax.xlane.f32.xlu0 %v7314_v38  ;;  %v7026_v38 = vadd.f32 %v21315_v41, %v21613_v15 }
 0x2e4   : > { %25469 = vst [vmem:[#allocation111_spill] sm:$0xff] %v21630_v34  ;;  %16981 = vmatmul.mubr.msk.f32.vlgmr.msra.gmra.mrb[128].mxu1 %vm1704_vm0, %v1015_v0  ;;  %v21648_v0 = vld [vmem:[#allocation8 + $0x8] sm:$0xff]  ;;  %v21653_v34 = vadd.f32 %v21642_v43, %v7029_v39  ;;  %v7028_v39 = vadd.f32 %v21337_v31, %v21613_v15  ;;  %v7032_v31 = vadd.f32 %v21398_v1, %v21613_v15 }
 0x2e5   : > { %v7038_v1 = vadd.f32 %v21483_v32, %v21613_v15 }
 0x2e6   : > { %v21638_v62 = vpop.permute.xlu0 %1080  ;;  %25473 = vst [vmem:[#allocation115_spill] sm:$0xff] %v21653_v34  ;;  %v7326_v17 = vsel %vm7313_vm2, %v21653_v34, -inf }
 0x2e7   : > { %25471 = vst [vmem:[#allocation113_spill] sm:$0xff] %v21638_v62  ;;  %v21644_v53 = vpop.permute.xlu1 %1146  ;;  %7321 = vmax.xlane.f32.xlu0 %v7320_v5  ;;  %v21663_v5 = vld [vmem:[#allocation8 + $0x48] sm:$0xff]  ;;  %v21668_v62 = vadd.f32 %v21648_v0, %v7026_v38  ;;  %v21688_v38 = vld [vmem:[#allocation8 + $0x40] sm:$0xff] }
 0x2e8   : > { %25472 = vst [vmem:[#allocation114_spill] sm:$0xff] %v21644_v53  ;;  %v21675_v33 = vadd.f32 %v21663_v5, %v7034_v6 }
 0x2e9   : > { %v21650_v29 = vpop.f32.mrb[8].mxu0  ;;  %25476 = vst [vmem:[#allocation118_spill] sm:$0xff] %v21668_v62  ;;  %v7317_v6 = vsel %vm7313_vm2, %v21668_v62, -inf }
 0x2ea   : > { %v21657_v28 = vpop.permute.xlu0 %1144  ;;  %v21661_v53 = vpop.f32.mrb[9].mxu0  ;;  %25477 = vst [vmem:[#allocation119_spill] sm:$0xff] %v21675_v33 }
 0x2eb   : > { %25474 = vst [vmem:[#allocation116_spill] sm:$0xff] %v21657_v28  ;;  %v21665_v41 = vpop.permute.xlu1 %19022  ;;  %7330 = vmax.xlane.f32.xlu0 %v7329_v18  ;;  %v21684_v18 = vadd.f32 %v21672_v23, %v7028_v39  ;;  %v21701_v39 = vadd.f32 %v21688_v38, %v7033_v8 }
 0x2ec   : > { %25475 = vst [vmem:[#allocation117_spill] sm:$0xff] %v21665_v41 }
 0x2ed   : > { %25479 = vst [vmem:[#allocation121_spill] sm:$0xff] %v21684_v18  ;;  %25480 = vst [vmem:[#allocation122_spill] sm:$0xff] %v21701_v39  ;;  %v7323_v8 = vsel %vm7313_vm2, %v21684_v18, -inf }
 0x2ee   : > { %v1019_v28 = vpop.permute.xlu0 %1018 }
 0x2ef   : > { %v21681_v16 = vpop.permute.xlu1 %19027  ;;  %7327 = vmax.xlane.f32.xlu0 %v7326_v17  ;;  %v7341_v17 = vsel %vm7313_vm2, %v21675_v33, -inf  ;;  %v21712_v33 = vld [vmem:[#allocation8 + $0x68] sm:$0xff] }
 0x2f0   : > { %25478 = vst [vmem:[#allocation120_spill] sm:$0xff] %v21681_v16  ;;  %25483 = vst [vmem:[#allocation125_spill] sm:$0xff] %v21712_v33 }
 0x2f1   : > { %7318 = vmax.xlane.f32.xlu1 %v7317_v6  ;;  %v21694_v34 = vpop.f32.mrb[116].mxu1  ;;  %v21708_v6 = vadd.f32 %v21692_v40, %v7032_v31  ;;  %v21723_v31 = vadd.f32 %v21712_v33, %v7038_v1  ;;  %v7036_v1 = vadd.f32 %v21467_v12, %v21613_v15  ;;  %v21745_v33 = vld [vmem:[#allocation8 + $0x58] sm:$0xff]  ;;  %v7042_v12 = vadd.f32 %v21526_v46, %v21613_v15 }
 0x2f2   : > { %v19018_v25 = vpop.permute.xlu0 %19017  ;;  %v21698_v16 = vpop.f32.mrb[117].mxu1 }
 0x2f3   : > { %v19020_v51 = vunpack.i.h.bf16 %v19018_v25  ;;  %v19019_v24 = vunpack.i.l.bf16 %v19018_v25  ;;  %v21705_v62 = vpop.permute.xlu1 %1084  ;;  %7342 = vmax.xlane.f32.xlu0 %v7341_v17  ;;  %25482 = vst [vmem:[#allocation124_spill] sm:$0xff] %v21708_v6  ;;  %25484 = vst [vmem:[#allocation126_spill] sm:$0xff] %v21723_v31  ;;  %v7335_v47 = vsel %vm7313_vm2, %v21708_v6, -inf  ;;  %v21761_v6 = vadd.f32 %v21745_v33, %v7036_v1 }
 0x2f4   : > { %25481 = vst [vmem:[#allocation123_spill] sm:$0xff] %v21705_v62 }
 0x2f5   : > { %v18139_v41 = vpack.c.bf16 %v19020_v51, %v19019_v24  ;;  %7324 = vmax.xlane.f32.xlu1 %v7323_v8  ;;  %v21718_v32 = vpop.f32.mrb[10].mxu0  ;;  %v7338_v24 = vsel %vm7313_vm2, %v21701_v39, -inf  ;;  %v21735_v51 = vadd.f32 %v21716_v61, %v7031_v57  ;;  %v21739_v8 = vld [vmem:[#allocation8 + $0x60] sm:$0xff]  ;;  %v7035_v57 = vadd.f32 %v21579_v54, %v21471_v7  ;;  %25490 = vst [vmem:[#allocation132_spill] sm:$0xff] %v21761_v6 }
 0x2f6   : > { %v1021_v25 = vpop.permute.xlu0 %1020  ;;  %v21720_v62 = vpop.f32.mrb[11].mxu0  ;;  %25486 = vst [vmem:[#allocation128_spill] sm:$0xff] %v21739_v8  ;;  %v21752_v39 = vadd.f32 %v21739_v8, %v7037_v14 }
 0x2f7   : > { %v21727_v17 = vpop.permute.xlu1 %1022  ;;  %18141 = vmatprep.subr.msk.bf16.mxu0 %vm20542_vm1, %v18139_v41  ;;  %16994 = vmatprep.mubr.msk.f32.mxu1 %vm1704_vm0, %v1021_v25  ;;  %25485 = vst [vmem:[#allocation127_spill] sm:$0xff] %v21735_v51  ;;  %v7332_v7 = vsel %vm7313_vm2, %v21735_v51, -inf  ;;  %v7040_v51 = vadd.f32 %v21503_v36, %v21613_v15 }
 0x2f8   : > { %7339 = vmax.xlane.f32.xlu0 %v7338_v24  ;;  %18144 = vmatpush3.bf16.xpose.msk.msra.mxu0 %vm20542_vm1, %v18139_v41  ;;  %25488 = vst [vmem:[#allocation130_spill] sm:$0xff] %v21752_v39  ;;  %v7353_v41 = vsel %vm7313_vm2, %v21723_v31, -inf  ;;  %v7041_v31 = vadd.f32 %v21579_v54, %v21530_v30  ;;  %v7046_v30 = vadd.f32 %v21563_v9, %v21613_v15 }
 0x2f9   : > { %7336 = vmax.xlane.f32.xlu1 %v7335_v47  ;;  %v21763_v47 = vld [vmem:[#allocation8 + $0x50] sm:$0xff] }
 0x2fa   : > { %v21747_v25 = vpop.permute.xlu0 %1148  ;;  %v21770_v46 = vadd.f32 %v21763_v47, %v7035_v57  ;;  %v21785_v57 = vld [vmem:[#allocation8 + $0x78] sm:$0xff] }
 0x2fb   : > { %25487 = vst [vmem:[#allocation129_spill] sm:$0xff] %v21747_v25  ;;  %v21756_v24 = vpop.permute.xlu1 %1150  ;;  %v7170_v25 = vld [vmem:[#allocation8 + $0x88] sm:$0xff]  ;;  %25495 = vst [vmem:[#allocation137_spill] sm:$0xff] %v21785_v57 }
 0x2fc   : > { %25489 = vst [vmem:[#allocation131_spill] sm:$0xff] %v21756_v24  ;;  %7354 = vmax.xlane.f32.xlu0 %v7353_v41  ;;  %25492 = vst [vmem:[#allocation134_spill] sm:$0xff] %v21770_v46  ;;  %v21772_v24 = vadd.f32 %v7170_v25, %v7042_v12  ;;  %v7350_v41 = vsel %vm7313_vm2, %v21752_v39, -inf  ;;  %v7347_v25 = vsel %vm7313_vm2, %v21761_v6, -inf  ;;  %v7039_v6 = vadd.f32 %v21579_v54, %v21506_v48 }
 0x2fd   : > { %7333 = vmax.xlane.f32.xlu1 %v7332_v7  ;;  %v21781_v7 = vld [vmem:[#allocation8 + $0x80] sm:$0xff]  ;;  %v7344_v9 = vsel %vm7313_vm2, %v21770_v46, -inf  ;;  %v7044_v48 = vadd.f32 %v21545_v59, %v21613_v15  ;;  %v7050_v59 = vadd.f32 %v21586_v19, %v21613_v15  ;;  %v7043_v19 = vadd.f32 %v21579_v54, %v21551_v55 }
 0x2fe   : > { %v21767_v14 = vpop.permute.xlu0 %1086  ;;  %25493 = vst [vmem:[#allocation135_spill] sm:$0xff] %v21772_v24  ;;  %25494 = vst [vmem:[#allocation136_spill] sm:$0xff] %v21781_v7  ;;  %v21792_v36 = vadd.f32 %v21781_v7, %v7041_v31  ;;  %v7048_v55 = vadd.f32 %v21575_v37, %v21613_v15 }
 0x2ff   : > { %25491 = vst [vmem:[#allocation133_spill] sm:$0xff] %v21767_v14  ;;  %v19033_v1 = vpop.permute.xlu1 %19032  ;;  %16988 = vmatmul.mubr.msk.f32.vlgmr.msra.gmra.mrb[22].mxu0 %vm1704_vm0, %v1019_v28  ;;  %v7174_v28 = vld [vmem:[#allocation8 + $0xa8] sm:$0xff] }
 0x300   : > { %v19035_v18 = vunpack.i.h.bf16 %v19033_v1  ;;  %v19034_v8 = vunpack.i.l.bf16 %v19033_v1  ;;  %7351 = vmax.xlane.f32.xlu0 %v7350_v41  ;;  %25496 = vst [vmem:[#allocation138_spill] sm:$0xff] %v21792_v36  ;;  %v7365_v1 = vsel %vm7313_vm2, %v21772_v24, -inf  ;;  %v21799_v41 = vadd.f32 %v21785_v57, %v7040_v51  ;;  %v7173_v51 = vld [vmem:[#allocation8 + $0xa0] sm:$0xff] }
 0x301   : > { %7348 = vmax.xlane.f32.xlu1 %v7347_v25  ;;  %v21809_v31 = vadd.f32 %v7174_v28, %v7046_v30  ;;  %v7362_v30 = vsel %vm7313_vm2, %v21792_v36, -inf }
 0x302   : > { %v18145_v12 = vpack.c.bf16 %v19035_v18, %v19034_v8  ;;  %v21789_v39 = vpop.permute.xlu0 %19037  ;;  %25498 = vst [vmem:[#allocation140_spill] sm:$0xff] %v21799_v41  ;;  %v21807_v18 = vld [vmem:[#allocation8 + $0x70] sm:$0xff]  ;;  %v7045_v8 = vadd.f32 %v21579_v54, %v21567_v42  ;;  %v7359_v42 = vsel %vm7313_vm2, %v21799_v41, -inf }
 0x303   : > { %v21794_v14 = vpop.permute.xlu1 %1152  ;;  %25499 = vst [vmem:[#allocation141_spill] sm:$0xff] %v21807_v18  ;;  %25500 = vst [vmem:[#allocation142_spill] sm:$0xff] %v21809_v31  ;;  %v21826_v28 = vadd.f32 %v21807_v18, %v7039_v6  ;;  %v7377_v46 = vsel %vm7313_vm2, %v21809_v31, -inf  ;;  %v7177_v31 = vld [vmem:[#allocation8 + $0xc0] sm:$0xff] }
 0x304   : > { %25497 = vst [vmem:[#allocation139_spill] sm:$0xff] %v21794_v14  ;;  %18147 = vmatprep.subr.msk.bf16.mxu1 %vm20542_vm1, %v18145_v12  ;;  %7366 = vmax.xlane.f32.xlu0 %v7365_v1  ;;  %v21819_v1 = vld [vmem:[#allocation8 + $0x98] sm:$0xff]  ;;  %v7178_v14 = vld [vmem:[#allocation8 + $0xc8] sm:$0xff] }
 0x305   : > { %18150 = vmatpush3.bf16.xpose.msk.msra.mxu1 %vm20542_vm1, %v18145_v12  ;;  %7345 = vmax.xlane.f32.xlu1 %v7344_v9  ;;  %25502 = vst [vmem:[#allocation144_spill] sm:$0xff] %v21819_v1  ;;  %25503 = vst [vmem:[#allocation145_spill] sm:$0xff] %v21826_v28  ;;  %v21830_v12 = vadd.f32 %v7173_v51, %v7045_v8  ;;  %v21839_v36 = vadd.f32 %v21819_v1, %v7044_v48  ;;  %v7356_v8 = vsel %vm7313_vm2, %v21826_v28, -inf  ;;  %v7182_v28 = vld [vmem:[#allocation8 + $0xe8] sm:$0xff] }
 0x306   : > { %v21817_v25 = vpop.permute.xlu0 %19042  ;;  %v21852_v51 = vadd.f32 %v7178_v14, %v7050_v59  ;;  %v7049_v48 = vadd.f32 %v21579_v54, %v21592_v60  ;;  %v7176_v14 = vld [vmem:[#allocation8 + $0xb8] sm:$0xff] }
 0x307   : > { %25501 = vst [vmem:[#allocation143_spill] sm:$0xff] %v21817_v25  ;;  %v21821_v24 = vpop.permute.xlu1 %1026  ;;  %25504 = vst [vmem:[#allocation146_spill] sm:$0xff] %v21830_v12  ;;  %v21877_v41 = vadd.f32 %v7176_v14, %v7048_v55  ;;  %v7053_v55 = vadd.f32 %v21579_v54, %v21661_v53  ;;  %v7181_v14 = vld [vmem:[#allocation8 + $0xe0] sm:$0xff]  ;;  %v7180_v53 = vld [vmem:[#allocation8 + $0xd8] sm:$0xff] }
 0x308   : > { %7363 = vmax.xlane.f32.xlu0 %v7362_v30  ;;  %25505 = vst [vmem:[#allocation147_spill] sm:$0xff] %v21839_v36  ;;  %25506 = vst [vmem:[#allocation148_spill] sm:$0xff] %v21852_v51  ;;  %v7389_v37 = vsel %vm7313_vm2, %v21852_v51, -inf }
 0x309   : > { %7360 = vmax.xlane.f32.xlu1 %v7359_v42  ;;  %v21834_v9 = vpop.f32.mrb[118].mxu1  ;;  %v21856_v42 = vld [vmem:[#allocation8 + $0x90] sm:$0xff]  ;;  %25510 = vst [vmem:[#allocation152_spill] sm:$0xff] %v21877_v41 }
 0x30a   : > { %v1025_v6 = vpop.permute.xlu0 %1024  ;;  %v21841_v30 = vpop.f32.mrb[119].mxu1  ;;  %25507 = vst [vmem:[#allocation149_spill] sm:$0xff] %v21856_v42  ;;  %v21869_v60 = vadd.f32 %v21856_v42, %v7043_v19  ;;  %v7052_v42 = vadd.f32 %v21615_v10, %v21613_v15 }
 0x30b   : > { %v21843_v7 = vpop.permute.xlu1 %1090  ;;  %17001 = vmatprep.mubr.msk.f32.mxu0 %vm1704_vm0, %v1025_v6  ;;  %v7374_v6 = vsel %vm7313_vm2, %v21830_v12, -inf  ;;  %v7054_v12 = vadd.f32 %v21650_v29, %v21613_v15 }
 0x30c   : > { %16995 = vmatmul.mubr.msk.f32.vlgmr.msra.gmra.mrb[130].mxu1 %vm1704_vm0, %v21727_v17  ;;  %7378 = vmax.xlane.f32.xlu0 %v7377_v46  ;;  %v7371_v46 = vsel %vm7313_vm2, %v21839_v36, -inf  ;;  %25508 = vst [vmem:[#allocation150_spill] sm:$0xff] %v21869_v60  ;;  %v7047_v36 = vadd.f32 %v21579_v54, %v21577_v20  ;;  %v7368_v29 = vsel %vm7313_vm2, %v21869_v60, -inf  ;;  %v7383_v60 = vsel %vm7313_vm2, %v21877_v41, -inf }
 0x30d   : > { %7357 = vmax.xlane.f32.xlu1 %v7356_v8  ;;  %v21871_v8 = vadd.f32 %v7177_v31, %v7049_v48  ;;  %v21916_v41 = vadd.f32 %v7180_v53, %v7052_v42  ;;  %v25515_v53 = vld [vmem:[#allocation33_spill] sm:$0xff] }
 0x30e   : > { %v21862_v17 = vpop.permute.xlu0 %1088 }
 0x30f   : > { %v21866_v59 = vpop.permute.xlu1 %19052  ;;  %25509 = vst [vmem:[#allocation151_spill] sm:$0xff] %v21871_v8  ;;  %v7386_v20 = vsel %vm7313_vm2, %v21871_v8, -inf  ;;  %v21910_v8 = vld [vmem:[#allocation7 + $0x18] sm:$0xff] }
 0x310   : > { %7375 = vmax.xlane.f32.xlu0 %v7374_v6  ;;  %v21885_v6 = vld [vmem:[#allocation8 + $0xb0] sm:$0xff] }
 0x311   : > { %7372 = vmax.xlane.f32.xlu1 %v7371_v46  ;;  %25512 = vst [vmem:[#allocation154_spill] sm:$0xff] %v21885_v6  ;;  %v21893_v46 = vadd.f32 %v7182_v28, %v7054_v12  ;;  %v21900_v51 = vadd.f32 %v21885_v6, %v7047_v36  ;;  %v25514_v28 = vld [vmem:[#allocation23_spill] sm:$0xff]  ;;  %v21912_v36 = vadd.f32 %v7181_v14, %v7053_v55  ;;  %v7179_v55 = vld [vmem:[#allocation8 + $0xd0] sm:$0xff] }
 0x312   : > { %v21881_v1 = vpop.permute.xlu0 %1154  ;;  %v21883_v19 = vpop.f32.mrb[12].mxu0  ;;  %v18845_v12 = vunpack.i.h.bf16 %v25514_v28 }
 0x313   : > { %25511 = vst [vmem:[#allocation153_spill] sm:$0xff] %v21881_v1  ;;  %v21887_v31 = vpop.permute.xlu1 %19057  ;;  %v21889_v48 = vpop.f32.mrb[13].mxu0  ;;  %v18844_v1 = vunpack.i.l.bf16 %v25514_v28  ;;  %v7401_v10 = vsel %vm7313_vm2, %v21893_v46, -inf  ;;  %v7051_v28 = vadd.f32 %v21579_v54, %v21626_v2  ;;  %v7398_v2 = vsel %vm7313_vm2, %v21912_v36, -inf }
 0x314   : > { %25513 = vst [vmem:[#allocation155_spill] sm:$0xff] %v21887_v31  ;;  %7390 = vmax.xlane.f32.xlu0 %v7389_v37 }
 0x315   : > { %7369 = vmax.xlane.f32.xlu1 %v7368_v29  ;;  %v18163_v31 = vpack.c.bf16 %v18845_v12, %v18844_v1  ;;  %v7056_v1 = vadd.f32 %v21694_v34, %v21613_v15  ;;  %v7055_v15 = vadd.f32 %v21579_v54, %v21698_v16 }
 0x316   : > { %v19048_v37 = vpop.permute.xlu0 %19047 }
 0x317   : > { %v19050_v29 = vunpack.i.h.bf16 %v19048_v37  ;;  %v19049_v57 = vunpack.i.l.bf16 %v19048_v37  ;;  %v21908_v25 = vpop.permute.xlu1 %1092  ;;  %v7380_v37 = vsel %vm7313_vm2, %v21900_v51, -inf }
 0x318   : > { %7387 = vmax.xlane.f32.xlu0 %v7386_v20  ;;  %v7058_v20 = vadd.f32 %v21718_v32, %v21910_v8  ;;  %v21937_v32 = vadd.f32 %v7179_v55, %v7051_v28  ;;  %v7060_v55 = vadd.f32 %v21834_v9, %v21910_v8 }
 0x319   : > { %v18151_v6 = vpack.c.bf16 %v19050_v29, %v19049_v57  ;;  %7384 = vmax.xlane.f32.xlu1 %v7383_v60  ;;  %v21929_v57 = vld [vmem:[#allocation7 + $0x10] sm:$0xff]  ;;  %v18875_v29 = vunpack.i.h.bf16 %v25515_v53 }
 0x31a   : > { %v1029_v18 = vpop.permute.xlu0 %1028  ;;  %v21944_v42 = vadd.f32 %v21648_v0, %v7058_v20  ;;  %v7057_v60 = vadd.f32 %v21929_v57, %v21720_v62  ;;  %v7392_v34 = vsel %vm7313_vm2, %v21937_v32, -inf  ;;  %v25516_v0 = vld [vmem:[#allocation29_spill] sm:$0xff]  ;;  %v7183_v20 = vld [vmem:[#allocation8 + $0xf0] sm:$0xff] }
 0x31b   : > { %v21924_v14 = vpop.permute.xlu1 %1156  ;;  %18153 = vmatprep.subr.msk.bf16.mxu0 %vm20542_vm1, %v18151_v6  ;;  %17008 = vmatprep.mubr.msk.f32.mxu1 %vm1704_vm0, %v1029_v18  ;;  %v7395_v18 = vsel %vm7313_vm2, %v21916_v41, -inf  ;;  %v18859_v54 = vunpack.i.l.bf16 %v25516_v0  ;;  %v21971_v9 = vadd.f32 %v7183_v20, %v7055_v15  ;;  %v18905_v15 = vunpack.i.h.bf16 %v21247_v22  ;;  %v25519_v20 = vld [vmem:[#allocation50_spill] sm:$0xff] }
 0x31c   : > { %7402 = vmax.xlane.f32.xlu0 %v7401_v10  ;;  %18156 = vmatpush3.bf16.xpose.msk.msra.mxu0 %vm20542_vm1, %v18151_v6  ;;  %v7184_v6 = vld [vmem:[#allocation8 + $0xf8] sm:$0xff]  ;;  %v18874_v10 = vunpack.i.l.bf16 %v25515_v53  ;;  %v21958_v62 = vadd.f32 %v21594_v63, %v7057_v60  ;;  %v25517_v63 = vld [vmem:[#allocation18_spill] sm:$0xff] }
 0x31d   : > { %7381 = vmax.xlane.f32.xlu1 %v7380_v37  ;;  %18165 = vmatprep.subr.msk.bf16.mxu0 %vm20542_vm1, %v18163_v31  ;;  %v21950_v28 = vadd.f32 %v7184_v6, %v7056_v1  ;;  %v18860_v37 = vunpack.i.h.bf16 %v25516_v0  ;;  %v21978_v6 = vadd.f32 %v21672_v23, %v7060_v55  ;;  %v7059_v0 = vadd.f32 %v21929_v57, %v21841_v30 }
 0x31e   : > { %v18175_v16 = vpack.c.bf16 %v18875_v29, %v18874_v10  ;;  %v7062_v29 = vadd.f32 %v21883_v19, %v21910_v8  ;;  %v7404_v23 = vsel %vm7313_vm2, %v21971_v9, -inf  ;;  %v18890_v55 = vunpack.i.h.bf16 %v25519_v20 }
 0x31f   : > { %v1031_v12 = vpop.permute.xlu1 %1030  ;;  %v18169_v10 = vpack.c.bf16 %v18860_v37, %v18859_v54  ;;  %v25518_v37 = vld [vmem:[#allocation20_spill] sm:$0xff]  ;;  %v7419_v30 = vsel %vm7313_vm2, %v21978_v6, -inf }
 0x320   : > { %7399 = vmax.xlane.f32.xlu0 %v7398_v2  ;;  %v7413_v2 = vsel %vm7313_vm2, %v21944_v42, -inf  ;;  %v21997_v19 = vadd.f32 %v21628_v3, %v7062_v29  ;;  %v22009_v3 = vadd.f32 %v21609_v49, %v7059_v0 }
 0x321   : > { %7396 = vmax.xlane.f32.xlu1 %v7395_v18 }
 0x322   : > { %v7425_v49 = vsel %vm7313_vm2, %v21997_v19, -inf }
 0x323   : > { %v19063_v53 = vpop.permute.xlu1 %19062  ;;  %17002 = vmatmul.mubr.msk.f32.vlgmr.msra.gmra.mrb[24].mxu0 %vm1704_vm0, %v21821_v24  ;;  %v7407_v24 = vsel %vm7313_vm2, %v21950_v28, -inf }
 0x324   : > { %v19065_v1 = vunpack.i.h.bf16 %v19063_v53  ;;  %v19064_v18 = vunpack.i.l.bf16 %v19063_v53  ;;  %7414 = vmax.xlane.f32.xlu0 %v7413_v2  ;;  %18168 = vmatpush3.bf16.xpose.msk.msra.mxu0 %vm20542_vm1, %v18163_v31  ;;  %v7410_v31 = vsel %vm7313_vm2, %v21958_v62, -inf  ;;  %v18889_v53 = vunpack.i.l.bf16 %v25519_v20 }
 0x325   : > { %17015 = vmatprep.mubr.msk.f32.mxu0 %vm1704_vm0, %v25517_v63  ;;  %7393 = vmax.xlane.f32.xlu1 %v7392_v34  ;;  %v18904_v34 = vunpack.i.l.bf16 %v21247_v22  ;;  %v25520_v63 = vld [vmem:[#allocation28_spill] sm:$0xff] }
 0x326   : > { %v18157_v60 = vpack.c.bf16 %v19065_v1, %v19064_v18  ;;  %18177 = vmatprep.subr.msk.bf16.mxu0 %vm20542_vm1, %v18175_v16  ;;  %v7061_v18 = vadd.f32 %v21929_v57, %v21889_v48 }
 0x327   : > { %v18187_v2 = vpack.c.bf16 %v18905_v15, %v18904_v34  ;;  %v25521_v15 = vld [vmem:[#allocation24_spill] sm:$0xff]  ;;  %v18920_v34 = vunpack.i.h.bf16 %v21300_v52 }
 0x328   : > { %18159 = vmatprep.subr.msk.bf16.mxu1 %vm20542_vm1, %v18157_v60  ;;  %7411 = vmax.xlane.f32.xlu0 %v7410_v31  ;;  %v22026_v48 = vadd.f32 %v21642_v43, %v7061_v18 }
 0x329   : > { %18162 = vmatpush3.bf16.xpose.msk.msra.mxu1 %vm20542_vm1, %v18157_v60  ;;  %7408 = vmax.xlane.f32.xlu1 %v7407_v24  ;;  %v18935_v60 = vunpack.i.h.bf16 %v21317_v13  ;;  %v18934_v24 = vunpack.i.l.bf16 %v21317_v13  ;;  %v7416_v13 = vsel %vm7313_vm2, %v22009_v3, -inf }
 0x32a   : > { %18171 = vmatprep.subr.msk.bf16.mxu1 %vm20542_vm1, %v18169_v10 }
 0x32b   : > { %v16926_v22 = vpop.f32.mrb[120].mxu1  ;;  %17016 = vmatmul.mubr.msk.f32.vlgmr.msra.gmra.mrb[26].mxu0 %vm1704_vm0, %v25518_v37 }
 0x32c   : > { %v7064_v54 = vadd.f32 %v16926_v22, %v21910_v8  ;;  %v3356_v1 = vpop.f32.mrb[121].mxu1  ;;  %7420 = vmax.xlane.f32.xlu0 %v7419_v30  ;;  %18180 = vmatpush3.bf16.xpose.msk.msra.mxu0 %vm20542_vm1, %v18175_v16  ;;  %v18181_v16 = vpack.c.bf16 %v18890_v55, %v18889_v53  ;;  %v18965_v22 = vunpack.i.h.bf16 %v21491_v4  ;;  %v25523_v30 = vld [vmem:[#allocation26_spill] sm:$0xff]  ;;  %v18949_v55 = vunpack.i.l.bf16 %v21436_v21 }
 0x32d   : > { %17029 = vmatprep.mubr.msk.f32.mxu0 %vm1704_vm0, %v25520_v63  ;;  %7405 = vmax.xlane.f32.xlu1 %v7404_v23  ;;  %v7063_v31 = vadd.f32 %v21929_v57, %v3356_v1  ;;  %v7422_v23 = vsel %vm7313_vm2, %v22026_v48, -inf  ;;  %v18995_v53 = vunpack.i.h.bf16 %v21549_v45  ;;  %v25525_v1 = vld [vmem:[#allocation46_spill] sm:$0xff]  ;;  %v18980_v63 = vunpack.i.h.bf16 %v21536_v27 }
 0x32e   : > { %18189 = vmatprep.subr.msk.bf16.mxu0 %vm20542_vm1, %v18187_v2  ;;  %v22020_v29 = vadd.f32 %v21692_v40, %v7064_v54  ;;  %v18199_v40 = vpack.c.bf16 %v18935_v60, %v18934_v24  ;;  %v18979_v60 = vunpack.i.l.bf16 %v21536_v27 }
 0x32f   : > { %v22046_v0 = vadd.f32 %v21716_v61, %v7063_v31  ;;  %v25524_v61 = vld [vmem:[#allocation40_spill] sm:$0xff] }
 0x330   : > { %17009 = vmatmul.mubr.msk.f32.vlgmr.msra.gmra.mrb[132].mxu1 %vm1704_vm0, %v1031_v12  ;;  %7426 = vmax.xlane.f32.xlu0 %v7425_v49  ;;  %v25522_v12 = vld [vmem:[#allocation39_spill] sm:$0xff]  ;;  %v7431_v43 = vsel %vm7313_vm2, %v22020_v29, -inf  ;;  %v25527_v49 = vld [vmem:[#allocation117_spill] sm:$0xff]  ;;  %v18217_v31 = vpack.c.bf16 %v18980_v63, %v18979_v60  ;;  %v25539_v60 = vld [vmem:[#allocation96_spill] sm:$0xff] }
 0x331   : > { %18174 = vmatpush3.bf16.xpose.msk.msra.mxu1 %vm20542_vm1, %v18169_v10  ;;  %17022 = vmatprep.mubr.msk.f32.mxu1 %vm1704_vm0, %v25521_v15  ;;  %v18919_v10 = vunpack.i.l.bf16 %v21300_v52  ;;  %v18964_v52 = vunpack.i.l.bf16 %v21491_v4  ;;  %v18950_v4 = vunpack.i.h.bf16 %v21436_v21  ;;  %v19025_v27 = vunpack.i.h.bf16 %v25527_v49  ;;  %v25528_v15 = vld [vmem:[#allocation64_spill] sm:$0xff] }
 0x332   : > { %7417 = vmax.xlane.f32.xlu1 %v7416_v13  ;;  %18183 = vmatprep.subr.msk.bf16.mxu1 %vm20542_vm1, %v18181_v16 }
 0x333   : > { %17030 = vmatmul.mubr.msk.f32.vlgmr.msra.gmra.mrb[28].mxu0 %vm1704_vm0, %v25522_v12  ;;  %v18193_v37 = vpack.c.bf16 %v18920_v34, %v18919_v10  ;;  %v18211_v20 = vpack.c.bf16 %v18965_v22, %v18964_v52  ;;  %v18205_v54 = vpack.c.bf16 %v18950_v4, %v18949_v55  ;;  %v25531_v34 = vld [vmem:[#allocation110_spill] sm:$0xff]  ;;  %v25532_v52 = vld [vmem:[#allocation100_spill] sm:$0xff] }
 0x334   : > { %7432 = vmax.xlane.f32.xlu0 %v7431_v43  ;;  %18192 = vmatpush3.bf16.xpose.msk.msra.mxu0 %vm20542_vm1, %v18187_v2  ;;  %v18994_v2 = vunpack.i.l.bf16 %v21549_v45  ;;  %v25530_v43 = vld [vmem:[#allocation87_spill] sm:$0xff]  ;;  %v19010_v10 = vunpack.i.h.bf16 %v25531_v34 }
 0x335   : > { %17043 = vmatprep.mubr.msk.f32.mxu0 %vm1704_vm0, %v21204_v26  ;;  %18201 = vmatprep.subr.msk.bf16.mxu0 %vm20542_vm1, %v18199_v40  ;;  %v7428_v26 = vsel %vm7313_vm2, %v22046_v0, -inf }
 0x336   : > { %7423 = vmax.xlane.f32.xlu1 %v7422_v23  ;;  %v18223_v18 = vpack.c.bf16 %v18995_v53, %v18994_v2  ;;  %v19009_v23 = vunpack.i.l.bf16 %v25531_v34  ;;  %v25534_v53 = vld [vmem:[#allocation80_spill] sm:$0xff]  ;;  %v25546_v34 = vld [vmem:[#allocation31_spill] sm:$0xff] }
 0x338   : > { %17023 = vmatmul.mubr.msk.f32.vlgmr.msra.gmra.mrb[134].mxu1 %vm1704_vm0, %v25523_v30  ;;  %v18229_v55 = vpack.c.bf16 %v19010_v10, %v19009_v23  ;;  %v18865_v10 = vunpack.i.h.bf16 %v25546_v34  ;;  %v18864_v23 = vunpack.i.l.bf16 %v25546_v34  ;;  %v25564_v34 = vld [vmem:[#allocation30_spill] sm:$0xff] }
 0x339   : > { %18186 = vmatpush3.bf16.xpose.msk.msra.mxu1 %vm20542_vm1, %v18181_v16  ;;  %17036 = vmatprep.mubr.msk.f32.mxu1 %vm1704_vm0, %v25524_v61 }
 0x33a   : > { %7429 = vmax.xlane.f32.xlu1 %v7428_v26  ;;  %18195 = vmatprep.subr.msk.bf16.mxu1 %vm20542_vm1, %v18193_v37  ;;  %v19055_v26 = vunpack.i.h.bf16 %v21866_v59 }
 0x33b   : > { %17044 = vmatmul.mubr.msk.f32.vlgmr.msra.gmra.mrb[30].mxu0 %vm1704_vm0, %v21195_v35 }
 0x33c   : > { %18204 = vmatpush3.bf16.xpose.msk.msra.mxu0 %vm20542_vm1, %v18199_v40  ;;  %17057 = vmatprep.mubr.msk.f32.mxu0 %vm1704_vm0, %v21290_v58 }
 0x33d   : > { %18213 = vmatprep.subr.msk.bf16.mxu0 %vm20542_vm1, %v18211_v20 }
 0x340   : > { %17037 = vmatmul.mubr.msk.f32.vlgmr.msra.gmra.mrb[136].mxu1 %vm1704_vm0, %v25525_v1  ;;  %v19040_v1 = vunpack.i.h.bf16 %v21789_v39 }
 0x341   : > { %18198 = vmatpush3.bf16.xpose.msk.msra.mxu1 %vm20542_vm1, %v18193_v37  ;;  %17050 = vmatprep.mubr.msk.f32.mxu1 %vm1704_vm0, %v21233_v44  ;;  %v16933_v35 = vpop.f32.mrb[14].mxu0  ;;  %v22128_v37 = vpop.permute.xlu0 %1094 }
 0x342   : > { %18207 = vmatprep.subr.msk.bf16.mxu1 %vm20542_vm1, %v18205_v54  ;;  %v7066_v58 = vadd.f32 %v16933_v35, %v21910_v8  ;;  %v3439_v21 = vpop.f32.mrb[15].mxu0  ;;  %v19039_v35 = vunpack.i.l.bf16 %v21789_v39  ;;  %v25540_v39 = vld [vmem:[#allocation103_spill] sm:$0xff] }
 0x343   : > { %v7065_v45 = vadd.f32 %v21929_v57, %v3439_v21  ;;  %17058 = vmatmul.mubr.msk.f32.vlgmr.msra.gmra.mrb[32].mxu0 %vm1704_vm0, %v21347_v11  ;;  %v25538_v21 = vld [vmem:[#allocation22_spill] sm:$0xff] }
 0x344   : > { %v22093_v24 = vadd.f32 %v21663_v5, %v7066_v58  ;;  %18216 = vmatpush3.bf16.xpose.msk.msra.mxu0 %vm20542_vm1, %v18211_v20  ;;  %17071 = vmatprep.mubr.msk.f32.mxu0 %vm1704_vm0, %v21457_v50  ;;  %v19024_v5 = vunpack.i.l.bf16 %v25527_v49  ;;  %v25529_v50 = vld [vmem:[#allocation72_spill] sm:$0xff]  ;;  %v19054_v20 = vunpack.i.l.bf16 %v21866_v59  ;;  %v25537_v58 = vld [vmem:[#allocation113_spill] sm:$0xff]  ;;  %v18241_v63 = vpack.c.bf16 %v19040_v1, %v19039_v35 }
 0x345   : > { %v22100_v44 = vadd.f32 %v21688_v38, %v7065_v45  ;;  %18225 = vmatprep.subr.msk.bf16.mxu0 %vm20542_vm1, %v18223_v18  ;;  %v22152_v2 = vpop.permute.xlu0 %1158  ;;  %v18849_v45 = vunpack.i.l.bf16 %v25538_v21 }
 0x346   : > { %25526 = vst [vmem:[#allocation23_spill] sm:$0xff] %v22093_v24  ;;  %v7437_v11 = vsel %vm7313_vm2, %v22093_v24, -inf  ;;  %v18235_v13 = vpack.c.bf16 %v19025_v27, %v19024_v5  ;;  %v18247_v59 = vpack.c.bf16 %v19055_v26, %v19054_v20  ;;  %v25541_v27 = vld [vmem:[#allocation111_spill] sm:$0xff]  ;;  %v25550_v20 = vld [vmem:[#allocation56_spill] sm:$0xff] }
 0x347   : > { %7438 = vmax.xlane.f32.xlu0 %v7437_v11  ;;  %v7434_v16 = vsel %vm7313_vm2, %v22100_v44, -inf  ;;  %v25549_v26 = vld [vmem:[#allocation19_spill] sm:$0xff] }
 0x348   : > { %17051 = vmatmul.mubr.msk.f32.vlgmr.msra.gmra.mrb[138].mxu1 %vm1704_vm0, %v25528_v15  ;;  %7435 = vmax.xlane.f32.xlu1 %v7434_v16 }
 0x349   : > { %18210 = vmatpush3.bf16.xpose.msk.msra.mxu1 %vm20542_vm1, %v18205_v54  ;;  %17064 = vmatprep.mubr.msk.f32.mxu1 %vm1704_vm0, %v25529_v50  ;;  %v25536_v54 = vld [vmem:[#allocation97_spill] sm:$0xff]  ;;  %v19068_v11 = vpop.permute.xlu0 %19067 }
 0x34a   : > { %18219 = vmatprep.subr.msk.bf16.mxu1 %vm20542_vm1, %v18217_v31  ;;  %v16940_v38 = vpop.f32.mrb[122].mxu1  ;;  %v19070_v5 = vunpack.i.h.bf16 %v19068_v11  ;;  %v19069_v16 = vunpack.i.l.bf16 %v19068_v11 }
 0x34b   : > { %v7068_v40 = vadd.f32 %v16940_v38, %v21910_v8  ;;  %v3522_v12 = vpop.f32.mrb[123].mxu1  ;;  %17072 = vmatmul.mubr.msk.f32.vlgmr.msra.gmra.mrb[34].mxu0 %vm1704_vm0, %v25530_v43  ;;  %v25545_v43 = vld [vmem:[#allocation123_spill] sm:$0xff] }
 0x34c   : > { %v7067_v22 = vadd.f32 %v21929_v57, %v3522_v12  ;;  %18228 = vmatpush3.bf16.xpose.msk.msra.mxu0 %vm20542_vm1, %v18223_v18  ;;  %17085 = vmatprep.mubr.msk.f32.mxu0 %vm1704_vm0, %v25532_v52  ;;  %v18850_v18 = vunpack.i.h.bf16 %v25538_v21  ;;  %v18253_v38 = vpack.c.bf16 %v19070_v5, %v19069_v16  ;;  %v25544_v12 = vld [vmem:[#allocation105_spill] sm:$0xff]  ;;  %v25555_v21 = vld [vmem:[#allocation51_spill] sm:$0xff] }
 0x34d   : > { %v22131_v30 = vadd.f32 %v21745_v33, %v7068_v40  ;;  %18237 = vmatprep.subr.msk.bf16.mxu0 %vm20542_vm1, %v18235_v13  ;;  %v22186_v40 = vpop.permute.xlu0 %19082 }
 0x34e   : > { %v22136_v61 = vadd.f32 %v21763_v47, %v7067_v22  ;;  %v25535_v47 = vld [vmem:[#allocation93_spill] sm:$0xff]  ;;  %v18259_v49 = vpack.c.bf16 %v18850_v18, %v18849_v45  ;;  %25543 = vst [vmem:[#allocation29_spill] sm:$0xff] %v22186_v40  ;;  %v18895_v18 = vunpack.i.h.bf16 %v25555_v21  ;;  %v18894_v45 = vunpack.i.l.bf16 %v25555_v21 }
 0x34f   : > { %25533 = vst [vmem:[#allocation33_spill] sm:$0xff] %v22131_v30  ;;  %v7443_v4 = vsel %vm7313_vm2, %v22131_v30, -inf }
 0x350   : > { %17065 = vmatmul.mubr.msk.f32.vlgmr.msra.gmra.mrb[140].mxu1 %vm1704_vm0, %v25534_v53  ;;  %7444 = vmax.xlane.f32.xlu0 %v7443_v4  ;;  %v7440_v33 = vsel %vm7313_vm2, %v22136_v61, -inf  ;;  %v18910_v4 = vunpack.i.h.bf16 %v25550_v20 }
 0x351   : > { %18222 = vmatpush3.bf16.xpose.msk.msra.mxu1 %vm20542_vm1, %v18217_v31  ;;  %17078 = vmatprep.mubr.msk.f32.mxu1 %vm1704_vm0, %v25535_v47  ;;  %v25542_v31 = vld [vmem:[#allocation36_spill] sm:$0xff]  ;;  %v22202_v52 = vpop.permute.xlu0 %19097  ;;  %v25553_v47 = vld [vmem:[#allocation133_spill] sm:$0xff] }
 0x352   : > { %18231 = vmatprep.subr.msk.bf16.mxu1 %vm20542_vm1, %v18229_v55  ;;  %7441 = vmax.xlane.f32.xlu1 %v7440_v33  ;;  %v18880_v15 = vunpack.i.h.bf16 %v25542_v31  ;;  %v18879_v50 = vunpack.i.l.bf16 %v25542_v31  ;;  %25548 = vst [vmem:[#allocation20_spill] sm:$0xff] %v22202_v52  ;;  %v25643_v52 = vld [vmem:[#allocation145_spill] sm:$0xff] }
 0x353   : > { %17086 = vmatmul.mubr.msk.f32.vlgmr.msra.gmra.mrb[36].mxu0 %vm1704_vm0, %v25536_v54 }
 0x354   : > { %18240 = vmatpush3.bf16.xpose.msk.msra.mxu0 %vm20542_vm1, %v18235_v13  ;;  %17099 = vmatprep.mubr.msk.f32.mxu0 %vm1704_vm0, %v25537_v58  ;;  %v22184_v13 = vpop.permute.xlu1 %19072  ;;  %v25554_v58 = vld [vmem:[#allocation21_spill] sm:$0xff] }
 0x355   : > { %18249 = vmatprep.subr.msk.bf16.mxu0 %vm20542_vm1, %v18247_v59  ;;  %v22214_v33 = vpop.permute.xlu0 %19107 }
 0x356   : > { %25552 = vst [vmem:[#allocation28_spill] sm:$0xff] %v22214_v33 }
 0x358   : > { %17079 = vmatmul.mubr.msk.f32.vlgmr.msra.gmra.mrb[142].mxu1 %vm1704_vm0, %v25539_v60  ;;  %v22200_v22 = vpop.permute.xlu1 %19077  ;;  %v25558_v60 = vld [vmem:[#allocation128_spill] sm:$0xff] }
 0x359   : > { %18234 = vmatpush3.bf16.xpose.msk.msra.mxu1 %vm20542_vm1, %v18229_v55  ;;  %17092 = vmatprep.mubr.msk.f32.mxu1 %vm1704_vm0, %v25540_v39  ;;  %25547 = vst [vmem:[#allocation18_spill] sm:$0xff] %v22200_v22  ;;  %v18265_v55 = vpack.c.bf16 %v18865_v10, %v18864_v23  ;;  %v25565_v10 = vld [vmem:[#allocation68_spill] sm:$0xff] }
 0x35a   : > { %18243 = vmatprep.subr.msk.bf16.mxu1 %vm20542_vm1, %v18241_v63  ;;  %v18925_v23 = vunpack.i.h.bf16 %v25565_v10 }
 0x35b   : > { %17100 = vmatmul.mubr.msk.f32.vlgmr.msra.gmra.mrb[38].mxu0 %vm1704_vm0, %v25541_v27  ;;  %v25561_v27 = vld [vmem:[#allocation71_spill] sm:$0xff] }
 0x35c   : > { %18252 = vmatpush3.bf16.xpose.msk.msra.mxu0 %vm20542_vm1, %v18247_v59  ;;  %17113 = vmatprep.mubr.msk.f32.mxu0 %vm1704_vm0, %v21862_v17  ;;  %v18271_v17 = vpack.c.bf16 %v18880_v15, %v18879_v50  ;;  %v22212_v53 = vpop.permute.xlu1 %19087  ;;  %v18940_v5 = vunpack.i.h.bf16 %v25561_v27  ;;  %v18939_v16 = vunpack.i.l.bf16 %v25561_v27  ;;  %v18277_v50 = vpack.c.bf16 %v18895_v18, %v18894_v45  ;;  %v25572_v18 = vld [vmem:[#allocation53_spill] sm:$0xff] }
 0x35d   : > { %18261 = vmatprep.subr.msk.bf16.mxu0 %vm20542_vm1, %v18259_v49  ;;  %25551 = vst [vmem:[#allocation50_spill] sm:$0xff] %v22212_v53  ;;  %v25573_v45 = vld [vmem:[#allocation81_spill] sm:$0xff] }
 0x360   : > { %17093 = vmatmul.mubr.msk.f32.vlgmr.msra.gmra.mrb[144].mxu1 %vm1704_vm0, %v25544_v12  ;;  %v22242_v39 = vpop.permute.xlu1 %19092  ;;  %v25562_v12 = vld [vmem:[#allocation25_spill] sm:$0xff] }
 0x361   : > { %18246 = vmatpush3.bf16.xpose.msk.msra.mxu1 %vm20542_vm1, %v18241_v63  ;;  %17106 = vmatprep.mubr.msk.f32.mxu1 %vm1704_vm0, %v25545_v43  ;;  %v22231_v63 = vpop.permute.xlu0 %19117  ;;  %25560 = vst [vmem:[#allocation26_spill] sm:$0xff] %v22242_v39  ;;  %v25644_v39 = vld [vmem:[#allocation135_spill] sm:$0xff] }
 0x362   : > { %18255 = vmatprep.subr.msk.bf16.mxu1 %vm20542_vm1, %v18253_v38  ;;  %25556 = vst [vmem:[#allocation24_spill] sm:$0xff] %v22231_v63 }
 0x363   : > { %17114 = vmatmul.mubr.msk.f32.vlgmr.msra.gmra.mrb[40].mxu0 %vm1704_vm0, %v21843_v7  ;;  %v18909_v7 = vunpack.i.l.bf16 %v25550_v20 }
 0x364   : > { %18264 = vmatpush3.bf16.xpose.msk.msra.mxu0 %vm20542_vm1, %v18259_v49  ;;  %17127 = vmatprep.mubr.msk.f32.mxu0 %vm1704_vm0, %v25549_v26  ;;  %v22258_v43 = vpop.permute.xlu1 %19102  ;;  %v25566_v26 = vld [vmem:[#allocation54_spill] sm:$0xff] }
 0x365   : > { %18273 = vmatprep.subr.msk.bf16.mxu0 %vm20542_vm1, %v18271_v17  ;;  %v18283_v1 = vpack.c.bf16 %v18910_v4, %v18909_v7  ;;  %25563 = vst [vmem:[#allocation40_spill] sm:$0xff] %v22258_v43  ;;  %v25568_v7 = vld [vmem:[#allocation92_spill] sm:$0xff] }
 0x368   : > { %17107 = vmatmul.mubr.msk.f32.vlgmr.msra.gmra.mrb[146].mxu1 %vm1704_vm0, %v25553_v47  ;;  %v22272_v20 = vpop.permute.xlu1 %19112  ;;  %v18969_v47 = vunpack.i.l.bf16 %v25568_v7 }
 0x369   : > { %18258 = vmatpush3.bf16.xpose.msk.msra.mxu1 %vm20542_vm1, %v18253_v38  ;;  %17120 = vmatprep.mubr.msk.f32.mxu1 %vm1704_vm0, %v21908_v25  ;;  %v22222_v59 = vpop.f32.mrb[16].mxu0  ;;  %v25557_v25 = vld [vmem:[#allocation32_spill] sm:$0xff]  ;;  %25567 = vst [vmem:[#allocation46_spill] sm:$0xff] %v22272_v20 }
 0x36a   : > { %18267 = vmatprep.subr.msk.bf16.mxu1 %vm20542_vm1, %v18265_v55  ;;  %v3605_v54 = vpop.f32.mrb[17].mxu0 }
 0x36b   : > { %v7069_v35 = vadd.f32 %v21929_v57, %v3605_v54  ;;  %17128 = vmatmul.mubr.msk.f32.vlgmr.msra.gmra.mrb[42].mxu0 %vm1704_vm0, %v25554_v58 }
 0x36c   : > { %18276 = vmatpush3.bf16.xpose.msk.msra.mxu0 %vm20542_vm1, %v18271_v17  ;;  %17141 = vmatprep.mubr.msk.f32.mxu0 %vm1704_vm0, %v25557_v25  ;;  %v18295_v17 = vpack.c.bf16 %v18940_v5, %v18939_v16  ;;  %v22282_v58 = vpop.permute.xlu1 %19122  ;;  %v18955_v25 = vunpack.i.h.bf16 %v25573_v45  ;;  %v25574_v5 = vld [vmem:[#allocation70_spill] sm:$0xff]  ;;  %v25575_v16 = vld [vmem:[#allocation107_spill] sm:$0xff] }
 0x36d   : > { %v22238_v11 = vadd.f32 %v25558_v60, %v7069_v35  ;;  %18285 = vmatprep.subr.msk.bf16.mxu0 %vm20542_vm1, %v18283_v1  ;;  %v25569_v35 = vld [vmem:[#allocation27_spill] sm:$0xff]  ;;  %25571 = vst [vmem:[#allocation117_spill] sm:$0xff] %v22282_v58  ;;  %v18954_v60 = vunpack.i.l.bf16 %v25573_v45  ;;  %v25609_v58 = vld [vmem:[#allocation136_spill] sm:$0xff] }
 0x36e   : > { %v22244_v49 = vpop.f32.mrb[124].mxu1 }
 0x36f   : > { %25559 = vst [vmem:[#allocation39_spill] sm:$0xff] %v22238_v11  ;;  %v22248_v31 = vpop.f32.mrb[125].mxu1  ;;  %v7446_v15 = vsel %vm7313_vm2, %v22238_v11, -inf }
 0x370   : > { %17121 = vmatmul.mubr.msk.f32.vlgmr.msra.gmra.mrb[148].mxu1 %vm1704_vm0, %v22128_v37  ;;  %v7316_v38 = vpop.xlane.xlu0 %7315  ;;  %7447 = vmax.xlane.f32.xlu1 %v7446_v15  ;;  %v18924_v37 = vunpack.i.l.bf16 %v25565_v10 }
 0x371   : > { %18270 = vmatpush3.bf16.xpose.msk.msra.mxu1 %vm20542_vm1, %v18265_v55  ;;  %17134 = vmatprep.mubr.msk.f32.mxu1 %vm1704_vm0, %v25562_v12  ;;  %v18970_v55 = vunpack.i.h.bf16 %v25568_v7  ;;  %v7698_v15 = vsub.f32 %v25575_v16, %v7316_v38  ;;  %v25576_v12 = vld [vmem:[#allocation101_spill] sm:$0xff]  ;;  %v25578_v7 = vld [vmem:[#allocation48_spill] sm:$0xff]  ;;  %v25579_v38 = vld [vmem:[#allocation62_spill] sm:$0xff] }
 0x372   : > { %18279 = vmatprep.subr.msk.bf16.mxu1 %vm20542_vm1, %v18277_v50  ;;  %v18289_v54 = vpack.c.bf16 %v18925_v23, %v18924_v37  ;;  %v18999_v10 = vunpack.i.l.bf16 %v25576_v12  ;;  %v25577_v23 = vld [vmem:[#allocation118_spill] sm:$0xff] }
 0x373   : > { %17142 = vmatmul.mubr.msk.f32.vlgmr.msra.gmra.mrb[44].mxu0 %vm1704_vm0, %v25564_v34  ;;  %v18307_v21 = vpack.c.bf16 %v18970_v55, %v18969_v47  ;;  %v19000_v34 = vunpack.i.h.bf16 %v25576_v12  ;;  %v25585_v12 = vld [vmem:[#allocation115_spill] sm:$0xff] }
 0x374   : > { %18288 = vmatpush3.bf16.xpose.msk.msra.mxu0 %vm20542_vm1, %v18283_v1  ;;  %17155 = vmatprep.mubr.msk.f32.mxu0 %vm1704_vm0, %v25566_v26  ;;  %v7322_v4 = vpop.xlane.xlu0 %7321  ;;  %v25570_v1 = vld [vmem:[#allocation43_spill] sm:$0xff]  ;;  %v18301_v26 = vpack.c.bf16 %v18955_v25, %v18954_v60  ;;  %v25581_v25 = vld [vmem:[#allocation66_spill] sm:$0xff] }
 0x375   : > { %18297 = vmatprep.subr.msk.bf16.mxu0 %vm20542_vm1, %v18295_v17  ;;  %v25582_v60 = vld [vmem:[#allocation99_spill] sm:$0xff] }
 0x376   : > { %v18984_v16 = vunpack.i.l.bf16 %v25582_v60 }
 0x378   : > { %17135 = vmatmul.mubr.msk.f32.vlgmr.msra.gmra.mrb[150].mxu1 %vm1704_vm0, %v25569_v35  ;;  %v22290_v27 = vpop.xlane.xlu0 %7330 }
 0x379   : > { %18282 = vmatpush3.bf16.xpose.msk.msra.mxu1 %vm20542_vm1, %v18277_v50  ;;  %17148 = vmatprep.mubr.msk.f32.mxu1 %vm1704_vm0, %v25570_v1  ;;  %v18319_v1 = vpack.c.bf16 %v19000_v34, %v18999_v10 }
 0x37a   : > { %18291 = vmatprep.subr.msk.bf16.mxu1 %vm20542_vm1, %v18289_v54 }
 0x37b   : > { %17156 = vmatmul.mubr.msk.f32.vlgmr.msra.gmra.mrb[46].mxu0 %vm1704_vm0, %v25572_v18  ;;  %v25580_v18 = vld [vmem:[#allocation121_spill] sm:$0xff] }
 0x37c   : > { %18300 = vmatpush3.bf16.xpose.msk.msra.mxu0 %vm20542_vm1, %v18295_v17  ;;  %17169 = vmatprep.mubr.msk.f32.mxu0 %vm1704_vm0, %v25574_v5  ;;  %v7826_v17 = vmul.f32 1.442695, %v7698_v15  ;;  %v7328_v47 = vpop.xlane.xlu0 %7327  ;;  %v18985_v5 = vunpack.i.h.bf16 %v25582_v60  ;;  %v25590_v60 = vld [vmem:[#allocation106_spill] sm:$0xff] }
 0x37d   : > { %18309 = vmatprep.subr.msk.bf16.mxu0 %vm20542_vm1, %v18307_v21  ;;  %v7702_v34 = vsub.f32 %v25585_v12, %v7328_v47  ;;  %v25593_v12 = vld [vmem:[#allocation124_spill] sm:$0xff] }
 0x37e   : > { %v7319_v50 = vpop.xlane.xlu1 %7318 }
 0x37f   : > { %v7699_v37 = vsub.f32 %v25577_v23, %v7319_v50  ;;  %v25584_v50 = vld [vmem:[#allocation91_spill] sm:$0xff]  ;;  %v25586_v23 = vld [vmem:[#allocation120_spill] sm:$0xff] }
 0x380   : > { %17149 = vmatmul.mubr.msk.f32.vlgmr.msra.gmra.mrb[152].mxu1 %vm1704_vm0, %v25578_v7  ;;  %v19029_v7 = vunpack.i.l.bf16 %v25586_v23 }
 0x381   : > { %v7828_v55 = vmul.f32 1.442695, %v7699_v37  ;;  %18294 = vmatpush3.bf16.xpose.msk.msra.mxu1 %vm20542_vm1, %v18289_v54  ;;  %17162 = vmatprep.mubr.msk.f32.mxu1 %vm1704_vm0, %v25579_v38  ;;  %v25583_v54 = vld [vmem:[#allocation109_spill] sm:$0xff]  ;;  %v19030_v37 = vunpack.i.h.bf16 %v25586_v23 }
 0x382   : > { %18303 = vmatprep.subr.msk.bf16.mxu1 %vm20542_vm1, %v18301_v26  ;;  %v7325_v35 = vpop.xlane.xlu1 %7324  ;;  %v7700_v15 = vsub.f32 %v25583_v54, %v7322_v4 }
 0x383   : > { %19316 = vpow2.f32 %v7828_v55  ;;  %v7701_v45 = vsub.f32 %v25580_v18, %v7325_v35  ;;  %17170 = vmatmul.mubr.msk.f32.vlgmr.msra.gmra.mrb[48].mxu0 %vm1704_vm0, %v25581_v25  ;;  %v18313_v55 = vpack.c.bf16 %v18985_v5, %v18984_v16  ;;  %v25587_v35 = vld [vmem:[#allocation59_spill] sm:$0xff]  ;;  %v25589_v25 = vld [vmem:[#allocation90_spill] sm:$0xff]  ;;  %v19015_v5 = vunpack.i.h.bf16 %v25590_v60 }
 0x384   : > { %18312 = vmatpush3.bf16.xpose.msk.msra.mxu0 %vm20542_vm1, %v18307_v21  ;;  %17183 = vmatprep.mubr.msk.f32.mxu0 %vm1704_vm0, %v25584_v50  ;;  %19318 = vpow2.f32 %v7826_v17  ;;  %v7830_v4 = vmul.f32 1.442695, %v7700_v15  ;;  %v7834_v21 = vmul.f32 1.442695, %v7702_v34  ;;  %v25588_v17 = vld [vmem:[#allocation73_spill] sm:$0xff]  ;;  %v19014_v16 = vunpack.i.l.bf16 %v25590_v60  ;;  %v25592_v15 = vld [vmem:[#allocation102_spill] sm:$0xff] }
 0x385   : > { %v7832_v10 = vmul.f32 1.442695, %v7701_v45  ;;  %18321 = vmatprep.subr.msk.bf16.mxu0 %vm20542_vm1, %v18319_v1  ;;  %v18331_v45 = vpack.c.bf16 %v19030_v37, %v19029_v7 }
 0x386   : > { %v7337_v38 = vpop.xlane.xlu1 %7336  ;;  %v18325_v7 = vpack.c.bf16 %v19015_v5, %v19014_v16  ;;  %v25598_v5 = vld [vmem:[#allocation125_spill] sm:$0xff] }
 0x387   : > { %19320 = vpow2.f32 %v7832_v10  ;;  %v7705_v34 = vsub.f32 %v25593_v12, %v7337_v38  ;;  %v7070_v10 = vadd.f32 %v22222_v59, %v21910_v8 }
 0x388   : > { %17163 = vmatmul.mubr.msk.f32.vlgmr.msra.gmra.mrb[154].mxu1 %vm1704_vm0, %v25587_v35  ;;  %19322 = vpow2.f32 %v7830_v4  ;;  %v25594_v4 = vld [vmem:[#allocation155_spill] sm:$0xff] }
 0x389   : > { %18306 = vmatpush3.bf16.xpose.msk.msra.mxu1 %vm20542_vm1, %v18301_v26  ;;  %17176 = vmatprep.mubr.msk.f32.mxu1 %vm1704_vm0, %v25588_v17  ;;  %v22331_v47 = vpop.f32.mrb[18].mxu0  ;;  %v25591_v26 = vld [vmem:[#allocation112_spill] sm:$0xff]  ;;  %19324 = vpow2.f32 %v7834_v21  ;;  %v19060_v35 = vunpack.i.h.bf16 %v25594_v4  ;;  %v19059_v38 = vunpack.i.l.bf16 %v25594_v4  ;;  %v22370_v16 = vadd.f32 %v25598_v5, %v7070_v10 }
 0x38a   : > { %18315 = vmatprep.subr.msk.bf16.mxu1 %vm20542_vm1, %v18313_v55  ;;  %v3771_v18 = vpop.f32.mrb[19].mxu0  ;;  %v7703_v54 = vsub.f32 %v25591_v26, %v22290_v27  ;;  %v7071_v27 = vadd.f32 %v21929_v57, %v22248_v31  ;;  %v7334_v23 = vpop.xlane.xlu1 %7333  ;;  %v25595_v17 = vld [vmem:[#allocation84_spill] sm:$0xff]  ;;  %v25596_v31 = vld [vmem:[#allocation127_spill] sm:$0xff] }
 0x38b   : > { %17184 = vmatmul.mubr.msk.f32.vlgmr.msra.gmra.mrb[50].mxu0 %vm1704_vm0, %v25589_v25  ;;  %v7840_v25 = vmul.f32 1.442695, %v7705_v34  ;;  %v7704_v60 = vsub.f32 %v25596_v31, %v7334_v23  ;;  %v25597_v26 = vld [vmem:[#allocation95_spill] sm:$0xff]  ;;  %25599 = vst [vmem:[#allocation64_spill] sm:$0xff] %v22370_v16  ;;  %v25602_v31 = vld [vmem:[#allocation98_spill] sm:$0xff]  ;;  %v25603_v5 = vld [vmem:[#allocation116_spill] sm:$0xff] }
 0x38c   : > { %18324 = vmatpush3.bf16.xpose.msk.msra.mxu0 %vm20542_vm1, %v18319_v1  ;;  %17197 = vmatprep.mubr.msk.f32.mxu0 %vm1704_vm0, %v25592_v15  ;;  %v7836_v21 = vmul.f32 1.442695, %v7703_v54  ;;  %v25600_v15 = vld [vmem:[#allocation141_spill] sm:$0xff] }
 0x38d   : > { %v22345_v50 = vpop.eup %19316  ;;  %18333 = vmatprep.subr.msk.bf16.mxu0 %vm20542_vm1, %v18331_v45  ;;  %v22373_v12 = vadd.f32 %v25600_v15, %v7071_v27  ;;  %v18343_v27 = vpack.c.bf16 %v19060_v35, %v19059_v38  ;;  %v7073_v35 = vadd.f32 %v21929_v57, %v3771_v18  ;;  %v7449_v38 = vsel %vm7313_vm2, %v22370_v16, -inf  ;;  %v25606_v18 = vld [vmem:[#allocation104_spill] sm:$0xff] }
 0x38e   : > { %v8085_v1 = vsel %vm7313_vm2, %v22345_v50, 0.0  ;;  %v22356_v37 = vpop.eup %19318  ;;  %19326 = vpow2.f32 %v7836_v21 }
 0x38f   : > { %8086 = vadd.xlane.f32.xlu0 %v8085_v1  ;;  %v8082_v34 = vsel %vm7313_vm2, %v22356_v37, 0.0  ;;  %v25601_v1 = vld [vmem:[#allocation143_spill] sm:$0xff]  ;;  %19328 = vpow2.f32 %v7840_v25  ;;  %v7452_v21 = vsel %vm7313_vm2, %v22373_v12, -inf }
 0x390   : > { %17177 = vmatmul.mubr.msk.f32.vlgmr.msra.gmra.mrb[156].mxu1 %vm1704_vm0, %v25595_v17  ;;  %v19045_v10 = vunpack.i.h.bf16 %v25601_v1  ;;  %v19044_v4 = vunpack.i.l.bf16 %v25601_v1  ;;  %v7343_v17 = vpop.xlane.xlu0 %7342  ;;  %v25607_v1 = vld [vmem:[#allocation137_spill] sm:$0xff] }
 0x391   : > { %v22362_v59 = vpop.eup %19320  ;;  %18318 = vmatpush3.bf16.xpose.msk.msra.mxu1 %vm20542_vm1, %v18313_v55  ;;  %17190 = vmatprep.mubr.msk.f32.mxu1 %vm1704_vm0, %v25597_v26  ;;  %v7838_v26 = vmul.f32 1.442695, %v7704_v60  ;;  %v25604_v60 = vld [vmem:[#allocation94_spill] sm:$0xff] }
 0x392   : > { %18327 = vmatprep.subr.msk.bf16.mxu1 %vm20542_vm1, %v18325_v7  ;;  %v22377_v54 = vpop.f32.mrb[126].mxu1  ;;  %v8091_v55 = vsel %vm7313_vm2, %v22362_v59, 0.0  ;;  %v22391_v15 = vpop.eup %19322  ;;  %v18337_v25 = vpack.c.bf16 %v19045_v10, %v19044_v4 }
 0x393   : > { %8083 = vadd.xlane.f32.xlu0 %v8082_v34  ;;  %8092 = vadd.xlane.f32.xlu1 %v8091_v55  ;;  %v3854_v23 = vpop.f32.mrb[127].mxu1  ;;  %v7072_v34 = vadd.f32 %v22244_v49, %v21910_v8  ;;  %v25605_v49 = vld [vmem:[#allocation119_spill] sm:$0xff]  ;;  %19330 = vpow2.f32 %v7838_v26  ;;  %v8088_v10 = vsel %vm7313_vm2, %v22391_v15, 0.0  ;;  %v25611_v26 = vld [vmem:[#allocation114_spill] sm:$0xff] }
 0x394   : > { %17198 = vmatmul.mubr.msk.f32.vlgmr.msra.gmra.mrb[52].mxu0 %vm1704_vm0, %v25602_v31  ;;  %v7707_v55 = vsub.f32 %v25605_v49, %v7343_v17  ;;  %v19074_v17 = vunpack.i.l.bf16 %v22184_v13  ;;  %v7074_v49 = vadd.f32 %v22331_v47, %v21910_v8  ;;  %v25617_v47 = vld [vmem:[#allocation129_spill] sm:$0xff] }
 0x395   : > { %18336 = vmatpush3.bf16.xpose.msk.msra.mxu0 %vm20542_vm1, %v18331_v45  ;;  %17211 = vmatprep.mubr.msk.f32.mxu0 %vm1704_vm0, %v25603_v5  ;;  %v22402_v45 = vpop.eup %19324  ;;  %v22412_v31 = vadd.f32 %v25607_v1, %v7072_v34  ;;  %v7340_v5 = vpop.xlane.xlu0 %7339  ;;  %v25612_v34 = vld [vmem:[#allocation122_spill] sm:$0xff] }
 0x396   : > { %18345 = vmatprep.subr.msk.bf16.mxu0 %vm20542_vm1, %v18343_v27  ;;  %v8094_v4 = vsel %vm7313_vm2, %v22402_v45, 0.0 }
 0x397   : > { %7450 = vmax.xlane.f32.xlu0 %v7449_v38  ;;  %7453 = vmax.xlane.f32.xlu1 %v7452_v21  ;;  %25608 = vst [vmem:[#allocation72_spill] sm:$0xff] %v22412_v31  ;;  %v22415_v38 = vadd.f32 %v25609_v58, %v7073_v35  ;;  %v7844_v58 = vmul.f32 1.442695, %v7707_v55  ;;  %v7706_v35 = vsub.f32 %v25612_v34, %v7340_v5  ;;  %v25613_v21 = vld [vmem:[#allocation139_spill] sm:$0xff]  ;;  %v25616_v5 = vld [vmem:[#allocation108_spill] sm:$0xff] }
 0x398   : > { %17191 = vmatmul.mubr.msk.f32.vlgmr.msra.gmra.mrb[158].mxu1 %vm1704_vm0, %v25604_v60  ;;  %v22432_v60 = vpop.eup %19326 }
 0x399   : > { %18330 = vmatpush3.bf16.xpose.msk.msra.mxu1 %vm20542_vm1, %v18325_v7  ;;  %17204 = vmatprep.mubr.msk.f32.mxu1 %vm1704_vm0, %v25606_v18  ;;  %25610 = vst [vmem:[#allocation87_spill] sm:$0xff] %v22415_v38  ;;  %v19075_v7 = vunpack.i.h.bf16 %v22184_v13  ;;  %v25614_v18 = vld [vmem:[#allocation52_spill] sm:$0xff]  ;;  %v7455_v13 = vsel %vm7313_vm2, %v22412_v31, -inf  ;;  %v7458_v55 = vsel %vm7313_vm2, %v22415_v38, -inf  ;;  %v22441_v1 = vpop.eup %19328  ;;  %19332 = vpow2.f32 %v7844_v58 }
 0x39a   : > { %18339 = vmatprep.subr.msk.bf16.mxu1 %vm20542_vm1, %v18337_v25  ;;  %25615 = vst [vmem:[#allocation110_spill] sm:$0xff] %v22441_v1 }
 0x39b   : > { %8089 = vadd.xlane.f32.xlu0 %v8088_v10  ;;  %8095 = vadd.xlane.f32.xlu1 %v8094_v4  ;;  %v7842_v10 = vmul.f32 1.442695, %v7706_v35  ;;  %v8097_v4 = vsel %vm7313_vm2, %v22432_v60, 0.0  ;;  %v25619_v35 = vld [vmem:[#allocation153_spill] sm:$0xff] }
 0x39c   : > { %17212 = vmatmul.mubr.msk.f32.vlgmr.msra.gmra.mrb[54].mxu0 %vm1704_vm0, %v25611_v26  ;;  %v19828_v26 = vld [vmem:[#allocation8 + $0x88] sm:$0xff] }
 0x39d   : > { %18348 = vmatpush3.bf16.xpose.msk.msra.mxu0 %vm20542_vm1, %v18343_v27  ;;  %17225 = vmatprep.mubr.msk.f32.mxu0 %vm1704_vm0, %v25613_v21  ;;  %v18349_v27 = vpack.c.bf16 %v19075_v7, %v19074_v17  ;;  %v22451_v34 = vadd.f32 %v19828_v26, %v7074_v49  ;;  %v7349_v21 = vpop.xlane.xlu1 %7348  ;;  %v7076_v7 = vadd.f32 %v22377_v54, %v21910_v8  ;;  %v22460_v58 = vpop.eup %19330  ;;  %19334 = vpow2.f32 %v7842_v10  ;;  %v25620_v54 = vld [vmem:[#allocation144_spill] sm:$0xff]  ;;  %v25625_v10 = vld [vmem:[#allocation131_spill] sm:$0xff] }
 0x39e   : > { %18356 = vmatprep.subr.bf16.mxu0 %v25614_v18  ;;  %v7075_v17 = vadd.f32 %v21929_v57, %v3854_v23  ;;  %v7355_v49 = vpop.xlane.xlu0 %7354  ;;  %v25621_v23 = vld [vmem:[#allocation149_spill] sm:$0xff]  ;;  %v25624_v26 = vld [vmem:[#allocation132_spill] sm:$0xff] }
 0x39f   : > { %7456 = vmax.xlane.f32.xlu0 %v7455_v13  ;;  %7459 = vmax.xlane.f32.xlu1 %v7458_v55  ;;  %25618 = vst [vmem:[#allocation100_spill] sm:$0xff] %v22451_v34  ;;  %v22466_v13 = vadd.f32 %v25620_v54, %v7076_v7  ;;  %v25626_v7 = vld [vmem:[#allocation126_spill] sm:$0xff] }
 0x3a0   : > { %17205 = vmatmul.mubr.msk.f32.vlgmr.msra.gmra.mrb[160].mxu1 %vm1704_vm0, %v25616_v5  ;;  %v22469_v55 = vadd.f32 %v25621_v23, %v7075_v17  ;;  %v25623_v5 = vld [vmem:[#allocation57_spill] sm:$0xff]  ;;  %v7711_v17 = vsub.f32 %v25626_v7, %v7355_v49 }
 0x3a1   : > { %18342 = vmatpush3.bf16.xpose.msk.msra.mxu1 %vm20542_vm1, %v18337_v25  ;;  %17218 = vmatprep.mubr.msk.f32.mxu1 %vm1704_vm0, %v25617_v47  ;;  %v8103_v25 = vsel %vm7313_vm2, %v22441_v1, 0.0  ;;  %v7461_v47 = vsel %vm7313_vm2, %v22451_v34, -inf  ;;  %v7467_v54 = vsel %vm7313_vm2, %v22466_v13, -inf }
 0x3a2   : > { %18351 = vmatprep.subr.msk.bf16.mxu1 %vm20542_vm1, %v18349_v27  ;;  %25622 = vst [vmem:[#allocation80_spill] sm:$0xff] %v22469_v55  ;;  %v7352_v56 = vpop.xlane.xlu0 %7351 }
 0x3a3   : > { %8098 = vadd.xlane.f32.xlu0 %v8097_v4  ;;  %8104 = vadd.xlane.f32.xlu1 %v8103_v25  ;;  %v8100_v4 = vsel %vm7313_vm2, %v22460_v58, 0.0  ;;  %v7709_v25 = vsub.f32 %v25624_v26, %v7349_v21  ;;  %v7464_v21 = vsel %vm7313_vm2, %v22469_v55, -inf  ;;  %v22489_v23 = vpop.eup %19332 }
 0x3a4   : > { %17226 = vmatmul.mubr.msk.f32.vlgmr.msra.gmra.mrb[56].mxu0 %vm1704_vm0, %v25619_v35  ;;  %v25627_v35 = vld [vmem:[#allocation55_spill] sm:$0xff]  ;;  %25628 = vst [vmem:[#allocation93_spill] sm:$0xff] %v22489_v23 }
 0x3a5   : > { %18358 = vmatpush3.bf16.msra.mxu0 %v25614_v18  ;;  %v7346_v18 = vpop.xlane.xlu1 %7345 }
 0x3a6   : > { %18364 = vmatprep.subr.bf16.mxu0 %v25623_v5 }
 0x3a7   : > { %7462 = vmax.xlane.f32.xlu0 %v7461_v47  ;;  %8101 = vadd.xlane.f32.xlu1 %v8100_v4  ;;  %v7848_v47 = vmul.f32 1.442695, %v7709_v25  ;;  %v25629_v4 = vld [vmem:[#allocation134_spill] sm:$0xff]  ;;  %v22494_v49 = vpop.eup %19334 }
 0x3a8   : > { %17219 = vmatmul.mubr.msk.f32.vlgmr.msra.gmra.mrb[162].mxu1 %vm1704_vm0, %v25625_v10  ;;  %v7708_v26 = vsub.f32 %v25629_v4, %v7346_v18  ;;  %25630 = vst [vmem:[#allocation97_spill] sm:$0xff] %v22494_v49  ;;  %v25631_v10 = vld [vmem:[#allocation130_spill] sm:$0xff]  ;;  %v8106_v18 = vsel %vm7313_vm2, %v22494_v49, 0.0 }
 0x3a9   : > { %18354 = vmatpush3.bf16.xpose.msk.msra.mxu1 %vm20542_vm1, %v18349_v27  ;;  %17232 = vmatprep.mubr.msk.f32.mxu1 %vm1704_vm0, %v21924_v14  ;;  %v7852_v27 = vmul.f32 1.442695, %v7711_v17  ;;  %v8109_v14 = vsel %vm7313_vm2, %v22489_v23, 0.0  ;;  %v7710_v7 = vsub.f32 %v25631_v10, %v7352_v56  ;;  %19336 = vpow2.f32 %v7848_v47  ;;  %v25632_v25 = vld [vmem:[#allocation58_spill] sm:$0xff] }
 0x3aa   : > { %18360 = vmatprep.subr.bf16.mxu1 %v25627_v35  ;;  %v7846_v63 = vmul.f32 1.442695, %v7708_v26  ;;  %v19829_v26 = vld [vmem:[#allocation8 + $0xa8] sm:$0xff] }
 0x3ab   : > { %7468 = vmax.xlane.f32.xlu0 %v7467_v54  ;;  %7465 = vmax.xlane.f32.xlu1 %v7464_v21  ;;  %19338 = vpow2.f32 %v7852_v27  ;;  %v7850_v54 = vmul.f32 1.442695, %v7710_v7 }
 0x3ac   : > { %19340 = vpow2.f32 %v7846_v63 }
 0x3ad   : > { %19342 = vpow2.f32 %v7850_v54 }
 0x3af   : > { %8110 = vadd.xlane.f32.xlu0 %v8109_v14 }
 0x3b0   : > { %17233 = vmatmul.mubr.msk.f32.vlgmr.msra.gmra.mrb[164].mxu1 %vm1704_vm0, %v22152_v2  ;;  %v19830_v2 = vld [vmem:[#allocation8 + $0xa0] sm:$0xff] }
 0x3b1   : > { %18362 = vmatpush3.bf16.msra.mxu1 %v25627_v35 }
 0x3b2   : > { %18368 = vmatprep.subr.bf16.mxu1 %v25632_v25  ;;  %v16975_v17 = vpop.f32.mrb[20].mxu0 }
 0x3b3   : > { %8107 = vadd.xlane.f32.xlu0 %v8106_v18  ;;  %v7078_v21 = vadd.f32 %v16975_v17, %v21910_v8  ;;  %v3937_v47 = vpop.f32.mrb[21].mxu0  ;;  %v22514_v18 = vpop.eup %19336  ;;  %v19831_v17 = vld [vmem:[#allocation8 + $0xb8] sm:$0xff] }
 0x3b4   : > { %v7077_v4 = vadd.f32 %v21929_v57, %v3937_v47  ;;  %25635 = vst [vmem:[#allocation96_spill] sm:$0xff] %v22514_v18 }
 0x3b5   : > { %v22505_v56 = vadd.f32 %v19829_v26, %v7078_v21  ;;  %v22518_v47 = vpop.eup %19338  ;;  %v8115_v26 = vsel %vm7313_vm2, %v22514_v18, 0.0 }
 0x3b6   : > { %v22507_v35 = vadd.f32 %v19830_v2, %v7077_v4  ;;  %25637 = vst [vmem:[#allocation111_spill] sm:$0xff] %v22518_v47  ;;  %v22525_v2 = vpop.eup %19340 }
 0x3b7   : > { %25633 = vst [vmem:[#allocation113_spill] sm:$0xff] %v22505_v56  ;;  %v16982_v27 = vpop.f32.mrb[128].mxu1  ;;  %v7473_v14 = vsel %vm7313_vm2, %v22505_v56, -inf  ;;  %25638 = vst [vmem:[#allocation36_spill] sm:$0xff] %v22525_v2 }
 0x3b8   : > { %25634 = vst [vmem:[#allocation22_spill] sm:$0xff] %v22507_v35  ;;  %v7080_v10 = vadd.f32 %v16982_v27, %v21910_v8  ;;  %v4020_v63 = vpop.f32.mrb[129].mxu1  ;;  %7474 = vmax.xlane.f32.xlu0 %v7473_v14  ;;  %v7470_v7 = vsel %vm7313_vm2, %v22507_v35, -inf  ;;  %v25639_v27 = vld [vmem:[#allocation154_spill] sm:$0xff] }
 0x3b9   : > { %7471 = vmax.xlane.f32.xlu1 %v7470_v7  ;;  %v7079_v54 = vadd.f32 %v21929_v57, %v4020_v63  ;;  %v8112_v7 = vsel %vm7313_vm2, %v22525_v2, 0.0  ;;  %v22534_v63 = vpop.eup %19342 }
 0x3ba   : > { %v22516_v21 = vadd.f32 %v19831_v17, %v7080_v10  ;;  %v8121_v10 = vsel %vm7313_vm2, %v22518_v47, 0.0  ;;  %25641 = vst [vmem:[#allocation123_spill] sm:$0xff] %v22534_v63  ;;  %v7361_v17 = vpop.xlane.xlu1 %7360  ;;  %v8118_v20 = vsel %vm7313_vm2, %v22534_v63, 0.0 }
 0x3bb   : > { %v22528_v14 = vadd.f32 %v25639_v27, %v7079_v54  ;;  %v25642_v54 = vld [vmem:[#allocation140_spill] sm:$0xff]  ;;  %v7367_v27 = vpop.xlane.xlu0 %7366 }
 0x3bc   : > { %25636 = vst [vmem:[#allocation103_spill] sm:$0xff] %v22516_v21  ;;  %v7479_v4 = vsel %vm7313_vm2, %v22516_v21, -inf  ;;  %v7715_v40 = vsub.f32 %v25644_v39, %v7367_v27 }
 0x3bd   : > { %7480 = vmax.xlane.f32.xlu0 %v7479_v4  ;;  %8116 = vadd.xlane.f32.xlu1 %v8115_v26  ;;  %25640 = vst [vmem:[#allocation105_spill] sm:$0xff] %v22528_v14  ;;  %v7476_v4 = vsel %vm7313_vm2, %v22528_v14, -inf  ;;  %v7713_v26 = vsub.f32 %v25642_v54, %v7361_v17 }
 0x3be   : > { %v7358_v33 = vpop.xlane.xlu1 %7357 }
 0x3bf   : > { %v7856_v43 = vmul.f32 1.442695, %v7713_v26  ;;  %v7712_v53 = vsub.f32 %v25643_v52, %v7358_v33  ;;  %v7364_v22 = vpop.xlane.xlu0 %7363  ;;  %v19833_v26 = vld [vmem:[#allocation8 + $0xc0] sm:$0xff]  ;;  %v7860_v33 = vmul.f32 1.442695, %v7715_v40 }
 0x3c1   : > { %8122 = vadd.xlane.f32.xlu0 %v8121_v10  ;;  %8113 = vadd.xlane.f32.xlu1 %v8112_v7  ;;  %19344 = vpow2.f32 %v7856_v43  ;;  %v7854_v10 = vmul.f32 1.442695, %v7712_v53  ;;  %v25647_v53 = vld [vmem:[#allocation138_spill] sm:$0xff] }
 0x3c2   : > { %v7373_v55 = vpop.xlane.xlu1 %7372  ;;  %v7714_v43 = vsub.f32 %v25647_v53, %v7364_v22 }
 0x3c3   : > { %19346 = vpow2.f32 %v7854_v10 }
 0x3c4   : > { %19348 = vpow2.f32 %v7860_v33 }
 0x3c5   : > { %8119 = vadd.xlane.f32.xlu0 %v8118_v20  ;;  %7477 = vmax.xlane.f32.xlu1 %v7476_v4  ;;  %v22544_v20 = vpop.xlane.xlu0 %7378  ;;  %v19832_v4 = vld [vmem:[#allocation8 + $0xc8] sm:$0xff] }
 0x3c6   : > { %v7370_v10 = vpop.xlane.xlu1 %7369 }
 0x3ca   : > { %v22564_v22 = vpop.xlane.xlu1 %7384 }
 0x3cb   : > { %v22556_v27 = vpop.eup %19344 }
 0x3cc   : > { %25648 = vst [vmem:[#allocation56_spill] sm:$0xff] %v22556_v27  ;;  %v8127_v40 = vsel %vm7313_vm2, %v22556_v27, 0.0 }
 0x3d2   : > { %v16989_v7 = vpop.f32.mrb[22].mxu0 }
 0x3d3   : > { %v7082_v47 = vadd.f32 %v16989_v7, %v21910_v8  ;;  %v4103_v14 = vpop.f32.mrb[23].mxu0 }
 0x3d4   : > { %v7081_v17 = vadd.f32 %v21929_v57, %v4103_v14  ;;  %v22558_v57 = vpop.xlane.xlu0 %7375  ;;  %v22562_v14 = vpop.eup %19346 }
 0x3d5   : > { %v22547_v54 = vadd.f32 %v19832_v4, %v7082_v47  ;;  %v7858_v47 = vmul.f32 1.442695, %v7714_v43  ;;  %25649 = vst [vmem:[#allocation133_spill] sm:$0xff] %v22562_v14  ;;  %v22568_v4 = vld [vmem:[#allocation7 + $0x18] sm:$0xff]  ;;  %v8124_v33 = vsel %vm7313_vm2, %v22562_v14, 0.0  ;;  %v22573_v43 = vld [vmem:[#allocation7 + $0x10] sm:$0xff] }
 0x3d6   : > { %v22549_v52 = vadd.f32 %v19833_v26, %v7081_v17 }
 0x3d7   : > { %25645 = vst [vmem:[#allocation31_spill] sm:$0xff] %v22547_v54  ;;  %v7485_v39 = vsel %vm7313_vm2, %v22547_v54, -inf  ;;  %19350 = vpow2.f32 %v7858_v47  ;;  %v22582_v54 = vpop.eup %19348 }
 0x3d8   : > { %25646 = vst [vmem:[#allocation19_spill] sm:$0xff] %v22549_v52  ;;  %7486 = vmax.xlane.f32.xlu0 %v7485_v39  ;;  %v7482_v8 = vsel %vm7313_vm2, %v22549_v52, -inf  ;;  %v22566_v17 = vpop.xlane.xlu0 %7390  ;;  %25652 = vst [vmem:[#allocation32_spill] sm:$0xff] %v22582_v54 }
 0x3d9   : > { %7483 = vmax.xlane.f32.xlu1 %v7482_v8  ;;  %v19836_v8 = vld [vmem:[#allocation8 + $0xd8] sm:$0xff] }
 0x3dc   : > { %v22588_v63 = vpop.xlane.xlu0 %7387 }
 0x3dd   : > { %8128 = vadd.xlane.f32.xlu1 %v8127_v40  ;;  %v19837_v40 = vld [vmem:[#allocation8 + $0xd0] sm:$0xff] }
 0x3df   : > { %v16996_v7 = vpop.f32.mrb[130].mxu1 }
 0x3e0   : > { %v7084_v26 = vadd.f32 %v22568_v4, %v16996_v7  ;;  %v4186_v53 = vpop.f32.mrb[131].mxu1  ;;  %v22584_v7 = vpop.xlane.xlu1 %7381 }
 0x3e1   : > { %v7083_v39 = vadd.f32 %v22573_v43, %v4186_v53  ;;  %8125 = vadd.xlane.f32.xlu1 %v8124_v33  ;;  %v22592_v53 = vpop.eup %19350 }
 0x3e2   : > { %v22576_v47 = vadd.f32 %v19836_v8, %v7084_v26  ;;  %v8133_v26 = vsel %vm7313_vm2, %v22582_v54, 0.0  ;;  %25653 = vst [vmem:[#allocation128_spill] sm:$0xff] %v22592_v53  ;;  %v8130_v8 = vsel %vm7313_vm2, %v22592_v53, 0.0 }
 0x3e3   : > { %v22578_v27 = vadd.f32 %v19837_v40, %v7083_v39  ;;  %v22596_v39 = vpop.xlane.xlu0 %7402 }
 0x3e4   : > { %25650 = vst [vmem:[#allocation21_spill] sm:$0xff] %v22576_v47  ;;  %v7491_v52 = vsel %vm7313_vm2, %v22576_v47, -inf  ;;  %v22594_v33 = vpop.xlane.xlu1 %7396 }
 0x3e5   : > { %25651 = vst [vmem:[#allocation51_spill] sm:$0xff] %v22578_v27  ;;  %7492 = vmax.xlane.f32.xlu0 %v7491_v52  ;;  %v7488_v14 = vsel %vm7313_vm2, %v22578_v27, -inf  ;;  %v25654_v52 = vld [vmem:[#allocation147_spill] sm:$0xff] }
 0x3e6   : > { %7489 = vmax.xlane.f32.xlu1 %v7488_v14  ;;  %v7717_v40 = vsub.f32 %v25654_v52, %v7373_v55  ;;  %v25655_v14 = vld [vmem:[#allocation150_spill] sm:$0xff]  ;;  %v19838_v55 = vld [vmem:[#allocation8 + $0xe8] sm:$0xff] }
 0x3e7   : > { %v7716_v18 = vsub.f32 %v25655_v14, %v7370_v10  ;;  %v22604_v2 = vpop.xlane.xlu0 %7399  ;;  %v25657_v10 = vld [vmem:[#allocation142_spill] sm:$0xff] }
 0x3e8   : > { %v22601_v27 = vpop.xlane.xlu1 %7393  ;;  %v7864_v47 = vmul.f32 1.442695, %v7717_v40  ;;  %v7719_v40 = vsub.f32 %v25657_v10, %v22544_v20  ;;  %v19839_v14 = vld [vmem:[#allocation8 + $0xe0] sm:$0xff] }
 0x3e9   : > { %8134 = vadd.xlane.f32.xlu0 %v8133_v26  ;;  %v7862_v54 = vmul.f32 1.442695, %v7716_v18 }
 0x3ea   : > { %19352 = vpow2.f32 %v7864_v47 }
 0x3eb   : > { %v22609_v11 = vpop.xlane.xlu0 %7414  ;;  %19354 = vpow2.f32 %v7862_v54 }
 0x3ec   : > { %v22606_v38 = vpop.xlane.xlu1 %7408 }
 0x3ed   : > { %8131 = vadd.xlane.f32.xlu0 %v8130_v8 }
 0x3ef   : > { %v22622_v53 = vpop.xlane.xlu0 %7411 }
 0x3f3   : > { %v22643_v21 = vpop.xlane.xlu0 %7420 }
 0x3f4   : > { %v22628_v10 = vpop.eup %19352 }
 0x3f5   : > { %25660 = vst [vmem:[#allocation30_spill] sm:$0xff] %v22628_v10  ;;  %v22641_v16 = vpop.eup %19354 }
 0x3f6   : > { %v17003_v26 = vpop.f32.mrb[24].mxu0  ;;  %25662 = vst [vmem:[#allocation68_spill] sm:$0xff] %v22641_v16 }
 0x3f7   : > { %v7086_v34 = vadd.f32 %v22568_v4, %v17003_v26  ;;  %v4269_v31 = vpop.f32.mrb[25].mxu0  ;;  %v22620_v26 = vpop.xlane.xlu1 %7405 }
 0x3f8   : > { %v7085_v8 = vadd.f32 %v22573_v43, %v4269_v31  ;;  %v7868_v31 = vmul.f32 1.442695, %v7719_v40 }
 0x3f9   : > { %v22612_v52 = vadd.f32 %v19838_v55, %v7086_v34  ;;  %v25659_v34 = vld [vmem:[#allocation146_spill] sm:$0xff] }
 0x3fa   : > { %v22616_v47 = vadd.f32 %v19839_v14, %v7085_v8  ;;  %v7718_v55 = vsub.f32 %v25659_v34, %v22558_v57  ;;  %v22630_v8 = vld [vmem:[#allocation7 + $0x28] sm:$0xff]  ;;  %v22632_v14 = vld [vmem:[#allocation7 + $0x20] sm:$0xff]  ;;  %19356 = vpow2.f32 %v7868_v31  ;;  %v7720_v31 = vsub.f32 %v21900_v51, %v22584_v7  ;;  %v22662_v7 = vpop.xlane.xlu0 %7426 }
 0x3fb   : > { %25656 = vst [vmem:[#allocation71_spill] sm:$0xff] %v22612_v52  ;;  %v7497_v18 = vsel %vm7313_vm2, %v22612_v52, -inf  ;;  %v22636_v40 = vpop.xlane.xlu1 %7417 }
 0x3fc   : > { %25658 = vst [vmem:[#allocation25_spill] sm:$0xff] %v22616_v47  ;;  %7498 = vmax.xlane.f32.xlu1 %v7497_v18  ;;  %v7494_v20 = vsel %vm7313_vm2, %v22616_v47, -inf  ;;  %v25661_v18 = vld [vmem:[#allocation152_spill] sm:$0xff]  ;;  %v7866_v49 = vmul.f32 1.442695, %v7718_v55  ;;  %v8139_v47 = vsel %vm7313_vm2, %v22628_v10, 0.0 }
 0x3fd   : > { %v7721_v52 = vsub.f32 %v25661_v18, %v22564_v22  ;;  %v19840_v55 = vld [vmem:[#allocation8 + $0xf8] sm:$0xff]  ;;  %v19841_v10 = vld [vmem:[#allocation8 + $0x8] sm:$0xff] }
 0x3fe   : > { %v17017_v23 = vpop.f32.mrb[26].mxu0  ;;  %19358 = vpow2.f32 %v7866_v49  ;;  %v7870_v49 = vmul.f32 1.442695, %v7720_v31 }
 0x3ff   : > { %v4435_v54 = vpop.f32.mrb[27].mxu0  ;;  %v7090_v57 = vadd.f32 %v17017_v23, %v22630_v8  ;;  %v7872_v22 = vmul.f32 1.442695, %v7721_v52  ;;  %v19843_v52 = vld [vmem:[#allocation8 + $0xf0] sm:$0xff] }
 0x400   : > { %7495 = vmax.xlane.f32.xlu1 %v7494_v20  ;;  %v7089_v20 = vadd.f32 %v22632_v14, %v4435_v54  ;;  %v19842_v54 = vld [vmem:[#allocation8] sm:$0xff] }
 0x401   : > { %v22651_v30 = vadd.f32 %v19841_v10, %v7090_v57  ;;  %19360 = vpow2.f32 %v7872_v22  ;;  %v7725_v22 = vsub.f32 %v21916_v41, %v22594_v33 }
 0x402   : > { %19362 = vpow2.f32 %v7870_v49 }
 0x403   : > { %v17010_v34 = vpop.f32.mrb[132].mxu1  ;;  %25664 = vst [vmem:[#allocation92_spill] sm:$0xff] %v22651_v30  ;;  %v7509_v57 = vsel %vm7313_vm2, %v22651_v30, -inf  ;;  %v7880_v33 = vmul.f32 1.442695, %v7725_v22 }
 0x404   : > { %v7088_v35 = vadd.f32 %v22568_v4, %v17010_v34  ;;  %v4352_v56 = vpop.f32.mrb[133].mxu1  ;;  %8140 = vadd.xlane.f32.xlu1 %v8139_v47  ;;  %v8136_v4 = vsel %vm7313_vm2, %v22641_v16, 0.0  ;;  %v22656_v47 = vadd.f32 %v19842_v54, %v7089_v20 }
 0x405   : > { %v7087_v24 = vadd.f32 %v22573_v43, %v4352_v56  ;;  %19364 = vpow2.f32 %v7880_v33 }
 0x406   : > { %v22649_v23 = vadd.f32 %v19840_v55, %v7088_v35  ;;  %v17031_v18 = vpop.f32.mrb[28].mxu0  ;;  %25665 = vst [vmem:[#allocation27_spill] sm:$0xff] %v22656_v47  ;;  %v22660_v35 = vpop.xlane.xlu1 %7423  ;;  %v7506_v20 = vsel %vm7313_vm2, %v22656_v47, -inf }
 0x407   : > { %v4601_v1 = vpop.f32.mrb[29].mxu0  ;;  %v22664_v56 = vadd.f32 %v19843_v52, %v7087_v24  ;;  %v7094_v43 = vadd.f32 %v17031_v18, %v22630_v8  ;;  %v22671_v55 = vpop.eup %19356  ;;  %v19844_v18 = vld [vmem:[#allocation8 + $0x28] sm:$0xff] }
 0x408   : > { %25663 = vst [vmem:[#allocation54_spill] sm:$0xff] %v22649_v23  ;;  %v7503_v51 = vsel %vm7313_vm2, %v22649_v23, -inf  ;;  %8137 = vadd.xlane.f32.xlu1 %v8136_v4  ;;  %25667 = vst [vmem:[#allocation53_spill] sm:$0xff] %v22671_v55  ;;  %v22683_v52 = vpop.xlane.xlu0 %7432  ;;  %v8145_v49 = vsel %vm7313_vm2, %v22671_v55, 0.0  ;;  %v22688_v41 = vpop.eup %19358  ;;  %v7093_v33 = vadd.f32 %v22632_v14, %v4601_v1 }
 0x409   : > { %7504 = vmax.xlane.f32.xlu0 %v7503_v51  ;;  %25666 = vst [vmem:[#allocation43_spill] sm:$0xff] %v22664_v56  ;;  %v22677_v4 = vadd.f32 %v19844_v18, %v7094_v43  ;;  %v7500_v51 = vsel %vm7313_vm2, %v22664_v56, -inf  ;;  %25669 = vst [vmem:[#allocation70_spill] sm:$0xff] %v22688_v41  ;;  %v7724_v43 = vsub.f32 %v21937_v32, %v22601_v27  ;;  %v8142_v22 = vsel %vm7313_vm2, %v22688_v41, 0.0 }
 0x40a   : > { %v22675_v31 = vpop.xlane.xlu1 %7429  ;;  %v7729_v27 = vsub.f32 %v21950_v28, %v22606_v38 }
 0x40b   : > { %v17024_v10 = vpop.f32.mrb[134].mxu1  ;;  %25668 = vst [vmem:[#allocation81_spill] sm:$0xff] %v22677_v4  ;;  %v7521_v30 = vsel %vm7313_vm2, %v22677_v4, -inf  ;;  %v22696_v47 = vpop.eup %19360  ;;  %v7878_v32 = vmul.f32 1.442695, %v7724_v43  ;;  %v19846_v43 = vld [vmem:[#allocation8 + $0x10] sm:$0xff] }
 0x40c   : > { %v4518_v34 = vpop.f32.mrb[135].mxu1  ;;  %7510 = vmax.xlane.f32.xlu1 %v7509_v57  ;;  %v7092_v57 = vadd.f32 %v17024_v10, %v22630_v8  ;;  %25670 = vst [vmem:[#allocation107_spill] sm:$0xff] %v22696_v47  ;;  %v22698_v10 = vpop.xlane.xlu0 %7438  ;;  %v7888_v38 = vmul.f32 1.442695, %v7729_v27 }
 0x40d   : > { %7507 = vmax.xlane.f32.xlu0 %v7506_v20  ;;  %v7091_v55 = vadd.f32 %v22632_v14, %v4518_v34  ;;  %v8151_v34 = vsel %vm7313_vm2, %v22696_v47, 0.0  ;;  %v22716_v23 = vpop.eup %19362  ;;  %19366 = vpow2.f32 %v7878_v32  ;;  %v25676_v47 = vld [vmem:[#allocation148_spill] sm:$0xff] }
 0x40e   : > { %v17045_v24 = vpop.f32.mrb[30].mxu0  ;;  %v22692_v20 = vpop.xlane.xlu1 %7435  ;;  %25674 = vst [vmem:[#allocation62_spill] sm:$0xff] %v22716_v23  ;;  %19368 = vpow2.f32 %v7888_v38 }
 0x40f   : > { %v22679_v54 = vpop.f32.mrb[31].mxu0 }
 0x410   : > { %7501 = vmax.xlane.f32.xlu1 %v7500_v51  ;;  %v19845_v51 = vld [vmem:[#allocation8 + $0x18] sm:$0xff] }
 0x411   : > { %8146 = vadd.xlane.f32.xlu0 %v8145_v49  ;;  %v22700_v16 = vadd.f32 %v19845_v51, %v7092_v57  ;;  %v7098_v57 = vadd.f32 %v17045_v24, %v22630_v8  ;;  %v7728_v24 = vsub.f32 %v21971_v9, %v22620_v26 }
 0x412   : > { %v22709_v56 = vpop.xlane.xlu1 %7441 }
 0x413   : > { %v17038_v18 = vpop.f32.mrb[136].mxu1  ;;  %25671 = vst [vmem:[#allocation101_spill] sm:$0xff] %v22700_v16  ;;  %v7515_v28 = vsel %vm7313_vm2, %v22700_v16, -inf  ;;  %v7886_v26 = vmul.f32 1.442695, %v7728_v24 }
 0x414   : > { %v4684_v49 = vpop.f32.mrb[137].mxu1  ;;  %7522 = vmax.xlane.f32.xlu1 %v7521_v30  ;;  %v22718_v30 = vpop.xlane.xlu0 %7444  ;;  %v7096_v32 = vadd.f32 %v17038_v18, %v22630_v8 }
 0x415   : > { %8143 = vadd.xlane.f32.xlu0 %v8142_v22  ;;  %v22721_v22 = vadd.f32 %v19846_v43, %v7091_v55  ;;  %v8148_v43 = vsel %vm7313_vm2, %v22716_v23, 0.0  ;;  %v22754_v23 = vpop.eup %19364  ;;  %v7095_v38 = vadd.f32 %v22632_v14, %v4684_v49 }
 0x416   : > { %v22707_v4 = vpop.f32.mrb[32].mxu0  ;;  %v22729_v41 = vpop.xlane.xlu1 %7447  ;;  %v8163_v49 = vsel %vm7313_vm2, %v22754_v23, 0.0 }
 0x417   : > { %25672 = vst [vmem:[#allocation118_spill] sm:$0xff] %v22707_v4  ;;  %v22712_v51 = vpop.f32.mrb[33].mxu0  ;;  %25675 = vst [vmem:[#allocation121_spill] sm:$0xff] %v22721_v22  ;;  %v19847_v4 = vld [vmem:[#allocation8 + $0x48] sm:$0xff] }
 0x418   : > { %25673 = vst [vmem:[#allocation48_spill] sm:$0xff] %v22712_v51  ;;  %8152 = vadd.xlane.f32.xlu1 %v8151_v34  ;;  %v7723_v51 = vsub.f32 %v25676_v47, %v22566_v17  ;;  %v22731_v1 = vadd.f32 %v19847_v4, %v7098_v57  ;;  %v19848_v34 = vld [vmem:[#allocation8 + $0x20] sm:$0xff]  ;;  %v7512_v17 = vsel %vm7313_vm2, %v22721_v22, -inf  ;;  %v7732_v47 = vsub.f32 %v22009_v3, %v22636_v40 }
 0x419   : > { %7516 = vmax.xlane.f32.xlu0 %v7515_v28  ;;  %v22737_v28 = vadd.f32 %v19848_v34, %v7093_v33  ;;  %v25679_v33 = vld [vmem:[#allocation151_spill] sm:$0xff] }
 0x41a   : > { %25677 = vst [vmem:[#allocation66_spill] sm:$0xff] %v22731_v1  ;;  %v7876_v57 = vmul.f32 1.442695, %v7723_v51  ;;  %v7722_v34 = vsub.f32 %v25679_v33, %v22588_v63  ;;  %v7533_v16 = vsel %vm7313_vm2, %v22731_v1, -inf  ;;  %v7734_v63 = vsub.f32 %v22026_v48, %v22660_v35 }
 0x41b   : > { %v22733_v55 = vpop.f32.mrb[138].mxu1  ;;  %25678 = vst [vmem:[#allocation99_spill] sm:$0xff] %v22737_v28  ;;  %v7518_v51 = vsel %vm7313_vm2, %v22737_v28, -inf  ;;  %v7894_v24 = vmul.f32 1.442695, %v7732_v47 }
 0x41c   : > { %v22740_v27 = vpop.f32.mrb[139].mxu1  ;;  %v8087_v9 = vpop.xlane.xlu0 %8086  ;;  %8149 = vadd.xlane.f32.xlu1 %v8148_v43  ;;  %v19849_v43 = vld [vmem:[#allocation8 + $0x38] sm:$0xff]  ;;  %v7874_v33 = vmul.f32 1.442695, %v7722_v34  ;;  %v7898_v47 = vmul.f32 1.442695, %v7734_v63  ;;  %v7736_v34 = vsub.f32 %v22046_v0, %v22675_v31  ;;  %v7726_v31 = vsub.f32 %v21912_v36, %v22604_v2 }
 0x41d   : > { %7513 = vmax.xlane.f32.xlu0 %v7512_v17  ;;  %v22756_v17 = vadd.f32 %v19849_v43, %v7096_v32  ;;  %19370 = vrcp.f32 %v8087_v9  ;;  %v22767_v9 = vpop.eup %19366  ;;  %v7097_v43 = vadd.f32 %v22632_v14, %v22679_v54  ;;  %v19851_v63 = vld [vmem:[#allocation8 + $0x40] sm:$0xff]  ;;  %v7740_v36 = vsub.f32 %v22136_v61, %v22709_v56 }
 0x41e   : > { %v22746_v4 = vpop.f32.mrb[34].mxu0 }
 0x41f   : > { %v22750_v18 = vpop.f32.mrb[35].mxu0  ;;  %25680 = vst [vmem:[#allocation109_spill] sm:$0xff] %v22756_v17 }
 0x420   : > { %v8084_v3 = vpop.xlane.xlu0 %8083  ;;  %v8093_v40 = vpop.xlane.xlu1 %8092  ;;  %7534 = vmax.xlane.f32.xlu1 %v7533_v16  ;;  %v19850_v16 = vld [vmem:[#allocation8 + $0x30] sm:$0xff] }
 0x421   : > { %19372 = vrcp.f32 %v8084_v3  ;;  %7519 = vmax.xlane.f32.xlu0 %v7518_v51  ;;  %v22771_v1 = vadd.f32 %v19850_v16, %v7095_v38  ;;  %v7727_v38 = vsub.f32 %v21893_v46, %v22596_v39  ;;  %v8160_v51 = vsel %vm7313_vm2, %v22767_v9, 0.0 }
 0x422   : > { %19374 = vpow2.f32 %v7886_v26  ;;  %v7527_v26 = vsel %vm7313_vm2, %v22756_v17, -inf  ;;  %v22793_v16 = vadd.f32 %v19851_v63, %v7097_v43 }
 0x423   : > { %19376 = vpow2.f32 %v7876_v57  ;;  %v22763_v32 = vpop.f32.mrb[140].mxu1  ;;  %25681 = vst [vmem:[#allocation91_spill] sm:$0xff] %v22771_v1  ;;  %v7524_v0 = vsel %vm7313_vm2, %v22771_v1, -inf  ;;  %v7884_v43 = vmul.f32 1.442695, %v7727_v38 }
 0x424   : > { %v22773_v48 = vpop.f32.mrb[141].mxu1  ;;  %v22775_v35 = vpop.xlane.xlu0 %7450  ;;  %8164 = vadd.xlane.f32.xlu1 %v8163_v49  ;;  %19378 = vpow2.f32 %v7894_v24  ;;  %25682 = vst [vmem:[#allocation115_spill] sm:$0xff] %v22793_v16 }
 0x425   : > { %v22779_v57 = vpop.xlane.xlu1 %7453  ;;  %7528 = vmax.xlane.f32.xlu0 %v7527_v26  ;;  %19380 = vpow2.f32 %v7874_v33  ;;  %v22791_v49 = vpop.eup %19368  ;;  %v7902_v33 = vmul.f32 1.442695, %v7736_v34  ;;  %v7738_v26 = vsub.f32 %v22100_v44, %v22692_v20  ;;  %v7530_v44 = vsel %vm7313_vm2, %v22793_v16, -inf }
 0x426   : > { %v22783_v54 = vpop.f32.mrb[36].mxu0  ;;  %19382 = vpow2.f32 %v7898_v47  ;;  %v7882_v34 = vmul.f32 1.442695, %v7726_v31  ;;  %v7731_v31 = vsub.f32 %v21944_v42, %v22609_v11  ;;  %v7744_v42 = vsub.f32 %v22373_v12, %v22779_v57 }
 0x427   : > { %v22787_v3 = vpop.f32.mrb[37].mxu0  ;;  %v19371_v39 = vpop.eup %19370  ;;  %19384 = vrcp.f32 %v8093_v40  ;;  %v7906_v61 = vmul.f32 1.442695, %v7738_v26  ;;  %v7099_v26 = vadd.f32 %v22632_v14, %v22740_v27  ;;  %v7730_v14 = vsub.f32 %v21958_v62, %v22622_v53 }
 0x428   : > { %v8090_v24 = vpop.xlane.xlu0 %8089  ;;  %8161 = vadd.xlane.f32.xlu1 %v8160_v51  ;;  %v8175_v51 = vsel %vm7313_vm2, %v22791_v49, 0.0 }
 0x429   : > { %v8096_v46 = vpop.xlane.xlu1 %8095  ;;  %7525 = vmax.xlane.f32.xlu0 %v7524_v0  ;;  %19386 = vrcp.f32 %v8090_v24  ;;  %v8595_v24 = vmul.f32 %v19371_v39, %v22345_v50  ;;  %v7910_v50 = vmul.f32 1.442695, %v7740_v36 }
 0x42a   : > { %19388 = vrcp.f32 %v8096_v46 }
 0x42b   : > { %v19373_v17 = vpop.eup %19372  ;;  %v22801_v63 = vpop.f32.mrb[142].mxu1  ;;  %19390 = vpow2.f32 %v7902_v33 }
 0x42c   : > { %v22805_v1 = vpop.eup %19374  ;;  %v22809_v2 = vpop.f32.mrb[143].mxu1  ;;  %8176 = vadd.xlane.f32.xlu1 %v8175_v51  ;;  %v8594_v20 = vmul.f32 %v19373_v17, %v22356_v37  ;;  %19392 = vpow2.f32 %v7884_v43  ;;  %v25683_v51 = vld [vmem:[#allocation60_spill] sm:$0xff] }
 0x42d   : > { %v22811_v47 = vpop.xlane.xlu0 %7456  ;;  %v22816_v40 = vpop.eup %19376  ;;  %7531 = vmax.xlane.f32.xlu0 %v7530_v44  ;;  %v8172_v37 = vsel %vm7313_vm2, %v22805_v1, 0.0  ;;  %19394 = vpow2.f32 %v7882_v34 }
 0x42e   : > { %v22818_v38 = vpop.xlane.xlu1 %7459  ;;  %17239 = vmatprep.mubr.msk.f32.mxu0 %vm7313_vm2, %v8594_v20  ;;  %v22822_v56 = vpop.f32.mrb[38].mxu0  ;;  %v8157_v39 = vsel %vm7313_vm2, %v22816_v40, 0.0  ;;  %19396 = vpow2.f32 %v7906_v61  ;;  %v7892_v20 = vmul.f32 1.442695, %v7731_v31 }
 0x42f   : > { %17240 = vmatmul.mubr.msk.f32.vlgmr.msra.gmra.mrb[58].mxu0 %vm7313_vm2, %v8595_v24  ;;  %v22825_v0 = vpop.f32.mrb[39].mxu0  ;;  %v22829_v17 = vpop.eup %19378  ;;  %v19852_v24 = vld [vmem:[#allocation8 + $0x50] sm:$0xff] }
 0x430   : > { %18366 = vmatpush3.bf16.msra.mxu0 %v25623_v5  ;;  %8173 = vadd.xlane.f32.xlu1 %v8172_v37  ;;  %v22836_v33 = vpop.eup %19380  ;;  %v8184_v36 = vsel %vm7313_vm2, %v22829_v17, 0.0  ;;  %v22857_v61 = vadd.f32 %v19852_v24, %v7099_v26  ;;  %v7735_v24 = vsub.f32 %v21997_v19, %v22662_v7 }
 0x431   : > { %v8099_v46 = vpop.xlane.xlu0 %8098  ;;  %18372 = vmatprep.subr.bf16.mxu0 %v25683_v51  ;;  %8158 = vadd.xlane.f32.xlu0 %v8157_v39  ;;  %v22843_v11 = vpop.eup %19382  ;;  %v8154_v12 = vsel %vm7313_vm2, %v22836_v33, 0.0 }
 0x432   : > { %v8105_v43 = vpop.xlane.xlu1 %8104  ;;  %19398 = vrcp.f32 %v8099_v46  ;;  %v19385_v44 = vpop.eup %19384  ;;  %25685 = vst [vmem:[#allocation59_spill] sm:$0xff] %v22857_v61  ;;  %v7918_v46 = vmul.f32 1.442695, %v7744_v42  ;;  %v8190_v26 = vsel %vm7313_vm2, %v22843_v11, 0.0  ;;  %v7890_v42 = vmul.f32 1.442695, %v7730_v14 }
 0x433   : > { %v22845_v5 = vpop.f32.mrb[144].mxu1  ;;  %19400 = vpow2.f32 %v7910_v50  ;;  %v19387_v57 = vpop.eup %19386  ;;  %v7733_v50 = vsub.f32 %v21978_v6, %v22643_v21 }
 0x434   : > { %v22851_v27 = vpop.f32.mrb[145].mxu1  ;;  %8185 = vadd.xlane.f32.xlu1 %v8184_v36  ;;  %19402 = vrcp.f32 %v8105_v43  ;;  %v19389_v31 = vpop.eup %19388  ;;  %v8596_v62 = vmul.f32 %v19387_v57, %v22391_v15  ;;  %v8597_v36 = vmul.f32 %v19385_v44, %v22362_v59  ;;  %v7536_v59 = vsel %vm7313_vm2, %v22857_v61, -inf }
 0x435   : > { %25684 = vst [vmem:[#allocation120_spill] sm:$0xff] %v22851_v27  ;;  %v22853_v34 = vpop.xlane.xlu0 %7462  ;;  %8155 = vadd.xlane.f32.xlu0 %v8154_v12  ;;  %v8598_v39 = vmul.f32 %v19389_v31, %v22402_v45  ;;  %v22870_v43 = vpop.eup %19390  ;;  %v7896_v44 = vmul.f32 1.442695, %v7733_v50 }
 0x436   : > { %v8102_v37 = vpop.xlane.xlu1 %8101  ;;  %v22860_v53 = vpop.f32.mrb[40].mxu0  ;;  %17246 = vmatprep.mubr.msk.f32.mxu1 %vm7313_vm2, %v8596_v62 }
 0x437   : > { %19404 = vrcp.f32 %v8102_v37  ;;  %25686 = vst [vmem:[#allocation73_spill] sm:$0xff] %v22860_v53  ;;  %v22866_v16 = vpop.f32.mrb[41].mxu0  ;;  %17253 = vmatprep.mubr.msk.f32.mxu0 %vm7313_vm2, %v8598_v39  ;;  %17247 = vmatmul.mubr.msk.f32.vlgmr.msra.gmra.mrb[166].mxu1 %vm7313_vm2, %v8597_v36  ;;  %v22878_v45 = vpop.eup %19392  ;;  %v25774_v53 = vld [vmem:[#allocation30_spill] sm:$0xff] }
 0x438   : > { %19406 = vpow2.f32 %v7892_v20  ;;  %8191 = vadd.xlane.f32.xlu1 %v8190_v26  ;;  %18370 = vmatpush3.bf16.msra.mxu1 %v25632_v25  ;;  %v22881_v21 = vpop.eup %19394  ;;  %v25687_v20 = vld [vmem:[#allocation61_spill] sm:$0xff] }
 0x439   : > { %v7469_v15 = vpop.xlane.xlu0 %7468  ;;  %19408 = vpow2.f32 %v7918_v46  ;;  %7537 = vmax.xlane.f32.xlu0 %v7536_v59  ;;  %18376 = vmatprep.subr.bf16.mxu1 %v25687_v20  ;;  %v22888_v57 = vpop.eup %19396  ;;  %v8169_v46 = vsel %vm7313_vm2, %v22878_v45, 0.0 }
 0x43a   : > { %v7749_v6 = vsub.f32 %v22466_v13, %v7469_v15  ;;  %v8196_v13 = vsel %vm7313_vm2, %v22870_v43, 0.0  ;;  %19410 = vpow2.f32 %v7890_v42  ;;  %v8202_v19 = vsel %vm7313_vm2, %v22888_v57, 0.0 }
 0x43b   : > { %v22884_v12 = vpop.f32.mrb[146].mxu1  ;;  %v7900_v42 = vmul.f32 1.442695, %v7735_v24  ;;  %v7737_v15 = vsub.f32 %v22020_v29, %v22683_v52  ;;  %v25693_v29 = vld [vmem:[#allocation110_spill] sm:$0xff]  ;;  %v25694_v24 = vld [vmem:[#allocation23_spill] sm:$0xff] }
 0x43c   : > { %v7928_v14 = vmul.f32 1.442695, %v7749_v6  ;;  %25688 = vst [vmem:[#allocation90_spill] sm:$0xff] %v22884_v12  ;;  %v22892_v37 = vpop.f32.mrb[147].mxu1  ;;  %8197 = vadd.xlane.f32.xlu1 %v8196_v13  ;;  %v19399_v31 = vpop.eup %19398  ;;  %v25692_v13 = vld [vmem:[#allocation63_spill] sm:$0xff]  ;;  %v25724_v12 = vld [vmem:[#allocation96_spill] sm:$0xff] }
 0x43d   : > { %25689 = vst [vmem:[#allocation106_spill] sm:$0xff] %v22892_v37  ;;  %v8111_v25 = vpop.xlane.xlu0 %8110  ;;  %v22896_v62 = vpop.eup %19400  ;;  %8170 = vadd.xlane.f32.xlu0 %v8169_v46  ;;  %v8599_v50 = vmul.f32 %v19399_v31, %v22432_v60  ;;  %v8166_v60 = vsel %vm7313_vm2, %v22881_v21, 0.0  ;;  %v7904_v46 = vmul.f32 1.442695, %v7737_v15 }
 0x43e   : > { %19412 = vpow2.f32 %v7928_v14  ;;  %v22899_v39 = vpop.f32.mrb[42].mxu0  ;;  %v19403_v36 = vpop.eup %19402  ;;  %v8208_v31 = vsel %vm7313_vm2, %v22896_v62, 0.0 }
 0x43f   : > { %25690 = vst [vmem:[#allocation112_spill] sm:$0xff] %v22899_v39  ;;  %19414 = vpow2.f32 %v7896_v44  ;;  %v22901_v26 = vpop.f32.mrb[43].mxu0  ;;  %17254 = vmatmul.mubr.msk.f32.vlgmr.msra.gmra.mrb[60].mxu0 %vm7313_vm2, %v8599_v50  ;;  %v22914_v14 = vpop.xlane.xlu1 %7465  ;;  %v8601_v52 = vmul.f32 %v19403_v36, %v25693_v29 }
 0x440   : > { %25691 = vst [vmem:[#allocation102_spill] sm:$0xff] %v22901_v26  ;;  %19416 = vrcp.f32 %v8111_v25  ;;  %8203 = vadd.xlane.f32.xlu1 %v8202_v19  ;;  %18374 = vmatpush3.bf16.msra.mxu0 %v25683_v51  ;;  %v7739_v25 = vsub.f32 %v25694_v24, %v22698_v10  ;;  %v25701_v24 = vld [vmem:[#allocation22_spill] sm:$0xff] }
 0x441   : > { %v19405_v7 = vpop.eup %19404  ;;  %v8108_v6 = vpop.xlane.xlu0 %8107  ;;  %18380 = vmatprep.subr.bf16.mxu0 %v25692_v13  ;;  %8167 = vadd.xlane.f32.xlu0 %v8166_v60  ;;  %v25698_v60 = vld [vmem:[#allocation65_spill] sm:$0xff]  ;;  %v25773_v26 = vld [vmem:[#allocation118_spill] sm:$0xff] }
 0x442   : > { %19418 = vrcp.f32 %v8108_v6  ;;  %v8600_v59 = vmul.f32 %v19405_v7, %v22460_v58  ;;  %v22912_v44 = vpop.eup %19406  ;;  %v25697_v7 = vld [vmem:[#allocation33_spill] sm:$0xff] }
 0x443   : > { %v22921_v51 = vpop.f32.mrb[148].mxu1  ;;  %v22925_v58 = vpop.eup %19408  ;;  %19420 = vpow2.f32 %v7900_v42  ;;  %v8181_v10 = vsel %vm7313_vm2, %v22912_v44, 0.0  ;;  %v7741_v6 = vsub.f32 %v25697_v7, %v22718_v30  ;;  %v25699_v42 = vld [vmem:[#allocation113_spill] sm:$0xff] }
 0x444   : > { %17260 = vmatprep.mubr.msk.f32.mxu1 %vm7313_vm2, %v8600_v59  ;;  %25695 = vst [vmem:[#allocation124_spill] sm:$0xff] %v22921_v51  ;;  %v22928_v50 = vpop.f32.mrb[149].mxu1  ;;  %8209 = vadd.xlane.f32.xlu1 %v8208_v31  ;;  %v22933_v19 = vpop.eup %19410  ;;  %v8220_v61 = vsel %vm7313_vm2, %v22925_v58, 0.0  ;;  %19422 = vpow2.f32 %v7904_v46  ;;  %v25703_v51 = vld [vmem:[#allocation103_spill] sm:$0xff]  ;;  %v25705_v46 = vld [vmem:[#allocation64_spill] sm:$0xff] }
 0x445   : > { %17261 = vmatmul.mubr.msk.f32.vlgmr.msra.gmra.mrb[168].mxu1 %vm7313_vm2, %v8601_v52  ;;  %25696 = vst [vmem:[#allocation155_spill] sm:$0xff] %v22928_v50  ;;  %v7475_v36 = vpop.xlane.xlu0 %7474  ;;  %8182 = vadd.xlane.f32.xlu0 %v8181_v10  ;;  %v7908_v52 = vmul.f32 1.442695, %v7739_v25  ;;  %v7912_v25 = vmul.f32 1.442695, %v7741_v6  ;;  %v25707_v6 = vld [vmem:[#allocation97_spill] sm:$0xff] }
 0x446   : > { %18378 = vmatpush3.bf16.msra.mxu1 %v25687_v20  ;;  %v7751_v15 = vsub.f32 %v25699_v42, %v7475_v36  ;;  %v7472_v59 = vpop.xlane.xlu1 %7471  ;;  %v22939_v29 = vpop.f32.mrb[44].mxu0  ;;  %v8178_v36 = vsel %vm7313_vm2, %v22933_v19, 0.0 }
 0x447   : > { %18384 = vmatprep.subr.bf16.mxu1 %v25698_v60  ;;  %25700 = vst [vmem:[#allocation84_spill] sm:$0xff] %v22939_v29  ;;  %v7750_v20 = vsub.f32 %v25701_v24, %v7472_v59  ;;  %v22942_v31 = vpop.f32.mrb[45].mxu0 }
 0x448   : > { %25702 = vst [vmem:[#allocation127_spill] sm:$0xff] %v22942_v31  ;;  %v22946_v28 = vpop.eup %19412  ;;  %v7932_v30 = vmul.f32 1.442695, %v7751_v15  ;;  %8221 = vadd.xlane.f32.xlu1 %v8220_v61  ;;  %v7743_v15 = vsub.f32 %v25705_v46, %v22775_v35  ;;  %v25708_v31 = vld [vmem:[#allocation93_spill] sm:$0xff] }
 0x449   : > { %v22948_v7 = vpop.eup %19414  ;;  %v7930_v10 = vmul.f32 1.442695, %v7750_v20  ;;  %8179 = vadd.xlane.f32.xlu0 %v8178_v36  ;;  %v8235_v61 = vsel %vm7313_vm2, %v22946_v28, 0.0 }
 0x44a   : > { %v19417_v42 = vpop.eup %19416  ;;  %19424 = vpow2.f32 %v7932_v30  ;;  %v7481_v59 = vpop.xlane.xlu0 %7480 }
 0x44b   : > { %v8117_v24 = vpop.xlane.xlu1 %8116  ;;  %19426 = vpow2.f32 %v7908_v52  ;;  %v7753_v50 = vsub.f32 %v25703_v51, %v7481_v59  ;;  %v22953_v29 = vpop.f32.mrb[150].mxu1  ;;  %v8187_v52 = vsel %vm7313_vm2, %v22948_v7, 0.0  ;;  %v8603_v51 = vmul.f32 %v19417_v42, %v25708_v31  ;;  %v25712_v42 = vld [vmem:[#allocation67_spill] sm:$0xff] }
 0x44c   : > { %v19419_v22 = vpop.eup %19418  ;;  %25704 = vst [vmem:[#allocation95_spill] sm:$0xff] %v22953_v29  ;;  %19428 = vpow2.f32 %v7930_v10  ;;  %v22959_v20 = vpop.f32.mrb[151].mxu1  ;;  %8236 = vadd.xlane.f32.xlu1 %v8235_v61  ;;  %v7916_v61 = vmul.f32 1.442695, %v7743_v15 }
 0x44d   : > { %25706 = vst [vmem:[#allocation125_spill] sm:$0xff] %v22959_v20  ;;  %v8602_v30 = vmul.f32 %v19419_v22, %v25707_v6  ;;  %v7936_v36 = vmul.f32 1.442695, %v7753_v50  ;;  %v22965_v59 = vpop.eup %19420  ;;  %19430 = vpow2.f32 %v7912_v25  ;;  %8188 = vadd.xlane.f32.xlu0 %v8187_v52  ;;  %v25710_v22 = vld [vmem:[#allocation39_spill] sm:$0xff] }
 0x44e   : > { %v8123_v29 = vpop.xlane.xlu0 %8122  ;;  %19432 = vrcp.f32 %v8117_v24  ;;  %v22969_v10 = vpop.f32.mrb[46].mxu0  ;;  %v7742_v50 = vsub.f32 %v25710_v22, %v22729_v41  ;;  %v8193_v25 = vsel %vm7313_vm2, %v22965_v59, 0.0 }
 0x44f   : > { %17267 = vmatprep.mubr.msk.f32.mxu0 %vm7313_vm2, %v8602_v30  ;;  %v8114_v35 = vpop.xlane.xlu1 %8113  ;;  %25709 = vst [vmem:[#allocation141_spill] sm:$0xff] %v22969_v10  ;;  %19434 = vpow2.f32 %v7936_v36  ;;  %v22974_v31 = vpop.f32.mrb[47].mxu0 }
 0x450   : > { %17268 = vmatmul.mubr.msk.f32.vlgmr.msra.gmra.mrb[62].mxu0 %vm7313_vm2, %v8603_v51  ;;  %25711 = vst [vmem:[#allocation143_spill] sm:$0xff] %v22974_v31  ;;  %19436 = vrcp.f32 %v8114_v35  ;;  %v22979_v24 = vpop.eup %19422  ;;  %v7914_v15 = vmul.f32 1.442695, %v7742_v50 }
 0x451   : > { %18382 = vmatpush3.bf16.msra.mxu0 %v25692_v13  ;;  %19438 = vrcp.f32 %v8123_v29  ;;  %8194 = vadd.xlane.f32.xlu0 %v8193_v25  ;;  %v25714_v13 = vld [vmem:[#allocation72_spill] sm:$0xff]  ;;  %v8199_v51 = vsel %vm7313_vm2, %v22979_v24, 0.0 }
 0x452   : > { %18388 = vmatprep.subr.bf16.mxu0 %v25712_v42  ;;  %v8120_v46 = vpop.xlane.xlu0 %8119  ;;  %v7745_v30 = vsub.f32 %v25714_v13, %v22811_v47  ;;  %v25718_v25 = vld [vmem:[#allocation100_spill] sm:$0xff] }
 0x453   : > { %19440 = vrcp.f32 %v8120_v46  ;;  %v22981_v6 = vpop.f32.mrb[152].mxu1  ;;  %v7747_v46 = vsub.f32 %v25718_v25, %v22853_v34 }
 0x454   : > { %25713 = vst [vmem:[#allocation98_spill] sm:$0xff] %v22981_v6  ;;  %v22983_v41 = vpop.eup %19424  ;;  %19442 = vpow2.f32 %v7916_v61  ;;  %v22987_v36 = vpop.f32.mrb[153].mxu1  ;;  %v7920_v47 = vmul.f32 1.442695, %v7745_v30 }
 0x455   : > { %25715 = vst [vmem:[#allocation116_spill] sm:$0xff] %v22987_v36  ;;  %v22989_v52 = vpop.eup %19426  ;;  %v8241_v29 = vsel %vm7313_vm2, %v22983_v41, 0.0  ;;  %8200 = vadd.xlane.f32.xlu0 %v8199_v51  ;;  %19444 = vpow2.f32 %v7914_v15  ;;  %v25721_v15 = vld [vmem:[#allocation87_spill] sm:$0xff]  ;;  %v7924_v34 = vmul.f32 1.442695, %v7747_v46 }
 0x456   : > { %v22995_v35 = vpop.eup %19428  ;;  %8242 = vadd.xlane.f32.xlu1 %v8241_v29  ;;  %v22997_v22 = vpop.f32.mrb[48].mxu0  ;;  %v8205_v6 = vsel %vm7313_vm2, %v22989_v52, 0.0  ;;  %19446 = vpow2.f32 %v7920_v47  ;;  %v7746_v30 = vsub.f32 %v25721_v15, %v22818_v38  ;;  %v25726_v46 = vld [vmem:[#allocation123_spill] sm:$0xff] }
 0x457   : > { %25716 = vst [vmem:[#allocation94_spill] sm:$0xff] %v22997_v22  ;;  %v22999_v50 = vpop.f32.mrb[49].mxu0  ;;  %v23001_v61 = vpop.eup %19430  ;;  %v8238_v36 = vsel %vm7313_vm2, %v22995_v35, 0.0  ;;  %19448 = vpow2.f32 %v7924_v34  ;;  %v25731_v34 = vld [vmem:[#allocation74_spill] sm:$0xff] }
 0x458   : > { %25717 = vst [vmem:[#allocation119_spill] sm:$0xff] %v22999_v50  ;;  %v19433_v13 = vpop.eup %19432  ;;  %v25723_v50 = vld [vmem:[#allocation36_spill] sm:$0xff]  ;;  %v8211_v27 = vsel %vm7313_vm2, %v23001_v61, 0.0 }
 0x459   : > { %v23009_v51 = vpop.eup %19434  ;;  %8206 = vadd.xlane.f32.xlu0 %v8205_v6  ;;  %v8605_v6 = vmul.f32 %v19433_v13, %v25724_v12  ;;  %v7922_v12 = vmul.f32 1.442695, %v7746_v30  ;;  %v7478_v13 = vpop.xlane.xlu1 %7477 }
 0x45a   : > { %25719 = vst [vmem:[#allocation104_spill] sm:$0xff] %v23009_v51  ;;  %8239 = vadd.xlane.f32.xlu1 %v8238_v36  ;;  %v19437_v29 = vpop.eup %19436  ;;  %v8247_v47 = vsel %vm7313_vm2, %v23009_v51, 0.0 }
 0x45b   : > { %v23011_v20 = vpop.f32.mrb[154].mxu1  ;;  %v19439_v22 = vpop.eup %19438  ;;  %v8604_v10 = vmul.f32 %v19437_v29, %v25723_v50  ;;  %v25728_v29 = vld [vmem:[#allocation111_spill] sm:$0xff]  ;;  %19450 = vpow2.f32 %v7922_v12 }
 0x45c   : > { %25720 = vst [vmem:[#allocation137_spill] sm:$0xff] %v23011_v20  ;;  %v23015_v25 = vpop.f32.mrb[155].mxu1  ;;  %v8607_v20 = vmul.f32 %v19439_v22, %v25728_v29  ;;  %v25730_v22 = vld [vmem:[#allocation80_spill] sm:$0xff] }
 0x45d   : > { %25722 = vst [vmem:[#allocation136_spill] sm:$0xff] %v23015_v25  ;;  %v19441_v31 = vpop.eup %19440  ;;  %17274 = vmatprep.mubr.msk.f32.mxu1 %vm7313_vm2, %v8604_v10  ;;  %8212 = vadd.xlane.f32.xlu0 %v8211_v27  ;;  %v25729_v27 = vld [vmem:[#allocation69_spill] sm:$0xff]  ;;  %v7748_v30 = vsub.f32 %v25730_v22, %v22914_v14  ;;  %v25735_v25 = vld [vmem:[#allocation19_spill] sm:$0xff] }
 0x45e   : > { %v23021_v36 = vpop.eup %19442  ;;  %v23026_v38 = vpop.f32.mrb[50].mxu0  ;;  %v8606_v15 = vmul.f32 %v19441_v31, %v25726_v46  ;;  %17275 = vmatmul.mubr.msk.f32.vlgmr.msra.gmra.mrb[170].mxu1 %vm7313_vm2, %v8605_v6  ;;  %8248 = vadd.xlane.f32.xlu1 %v8247_v47 }
 0x45f   : > { %25725 = vst [vmem:[#allocation114_spill] sm:$0xff] %v23026_v38  ;;  %v23030_v50 = vpop.f32.mrb[51].mxu0  ;;  %18386 = vmatpush3.bf16.msra.mxu1 %v25698_v60  ;;  %v8217_v10 = vsel %vm7313_vm2, %v23021_v36, 0.0  ;;  %v23039_v31 = vpop.eup %19444  ;;  %v25737_v38 = vld [vmem:[#allocation105_spill] sm:$0xff] }
 0x460   : > { %25727 = vst [vmem:[#allocation122_spill] sm:$0xff] %v23030_v50  ;;  %17281 = vmatprep.mubr.msk.f32.mxu0 %vm7313_vm2, %v8606_v15  ;;  %18392 = vmatprep.subr.bf16.mxu1 %v25729_v27  ;;  %v23051_v46 = vpop.eup %19446  ;;  %v25734_v15 = vld [vmem:[#allocation31_spill] sm:$0xff] }
 0x461   : > { %17282 = vmatmul.mubr.msk.f32.vlgmr.msra.gmra.mrb[64].mxu0 %vm7313_vm2, %v8607_v20  ;;  %8218 = vadd.xlane.f32.xlu0 %v8217_v10  ;;  %v8214_v20 = vsel %vm7313_vm2, %v23039_v31, 0.0  ;;  %v7926_v10 = vmul.f32 1.442695, %v7748_v30  ;;  %v8223_v39 = vsel %vm7313_vm2, %v23051_v46, 0.0  ;;  %v23062_v51 = vpop.eup %19448 }
 0x462   : > { %18390 = vmatpush3.bf16.msra.mxu0 %v25712_v42 }
 0x463   : > { %18396 = vmatprep.subr.bf16.mxu0 %v25731_v34  ;;  %v23045_v60 = vpop.f32.mrb[156].mxu1 }
 0x464   : > { %25732 = vst [vmem:[#allocation139_spill] sm:$0xff] %v23045_v60  ;;  %v23047_v6 = vpop.f32.mrb[157].mxu1  ;;  %v7752_v60 = vsub.f32 %v25737_v38, %v7478_v13  ;;  %v7100_v38 = vadd.f32 %v22733_v55, %v22630_v8  ;;  %v8229_v13 = vsel %vm7313_vm2, %v23062_v51, 0.0 }
 0x465   : > { %25733 = vst [vmem:[#allocation52_spill] sm:$0xff] %v23047_v6  ;;  %v7487_v47 = vpop.xlane.xlu0 %7486  ;;  %8215 = vadd.xlane.f32.xlu0 %v8214_v20 }
 0x466   : > { %v7755_v42 = vsub.f32 %v25734_v15, %v7487_v47  ;;  %v7484_v29 = vpop.xlane.xlu1 %7483  ;;  %v23072_v15 = vpop.eup %19450 }
 0x467   : > { %v7754_v14 = vsub.f32 %v25735_v25, %v7484_v29  ;;  %v23055_v22 = vpop.f32.mrb[52].mxu0  ;;  %v7934_v25 = vmul.f32 1.442695, %v7752_v60  ;;  %v19853_v60 = vld [vmem:[#allocation8 + $0x58] sm:$0xff]  ;;  %v8226_v8 = vsel %vm7313_vm2, %v23072_v15, 0.0 }
 0x468   : > { %25736 = vst [vmem:[#allocation108_spill] sm:$0xff] %v23055_v22  ;;  %v7940_v12 = vmul.f32 1.442695, %v7755_v42  ;;  %v23058_v50 = vpop.f32.mrb[53].mxu0 }
 0x469   : > { %25738 = vst [vmem:[#allocation129_spill] sm:$0xff] %v23058_v50  ;;  %v7938_v6 = vmul.f32 1.442695, %v7754_v14  ;;  %8224 = vadd.xlane.f32.xlu0 %v8223_v39 }
 0x46a   : > { %19452 = vpow2.f32 %v7940_v12  ;;  %v8129_v20 = vpop.xlane.xlu1 %8128 }
 0x46b   : > { %19454 = vpow2.f32 %v7926_v10  ;;  %v23064_v30 = vpop.f32.mrb[158].mxu1  ;;  %v25744_v10 = vld [vmem:[#allocation21_spill] sm:$0xff] }
 0x46c   : > { %25739 = vst [vmem:[#allocation153_spill] sm:$0xff] %v23064_v30  ;;  %19456 = vpow2.f32 %v7938_v6  ;;  %v23066_v47 = vpop.f32.mrb[159].mxu1  ;;  %v23078_v6 = vadd.f32 %v19853_v60, %v7100_v38 }
 0x46d   : > { %25740 = vst [vmem:[#allocation144_spill] sm:$0xff] %v23066_v47  ;;  %19458 = vrcp.f32 %v8129_v20  ;;  %8230 = vadd.xlane.f32.xlu0 %v8229_v13 }
 0x46e   : > { %v8126_v42 = vpop.xlane.xlu1 %8125  ;;  %25743 = vst [vmem:[#allocation132_spill] sm:$0xff] %v23078_v6  ;;  %v7539_v38 = vsel %vm7313_vm2, %v23078_v6, -inf }
 0x46f   : > { %19460 = vrcp.f32 %v8126_v42  ;;  %v23074_v39 = vpop.f32.mrb[54].mxu0 }
 0x470   : > { %25741 = vst [vmem:[#allocation149_spill] sm:$0xff] %v23074_v39  ;;  %19462 = vpow2.f32 %v7934_v25  ;;  %v23076_v29 = vpop.f32.mrb[55].mxu0  ;;  %v25752_v39 = vld [vmem:[#allocation56_spill] sm:$0xff] }
 0x471   : > { %25742 = vst [vmem:[#allocation57_spill] sm:$0xff] %v23076_v29  ;;  %8227 = vadd.xlane.f32.xlu0 %v8226_v8 }
 0x472   : > { %v7493_v55 = vpop.xlane.xlu0 %7492 }
 0x473   : > { %v7757_v14 = vsub.f32 %v25744_v10, %v7493_v55  ;;  %v23083_v12 = vpop.f32.mrb[160].mxu1 }
 0x474   : > { %25745 = vst [vmem:[#allocation131_spill] sm:$0xff] %v23083_v12  ;;  %v23085_v20 = vpop.eup %19452  ;;  %v23087_v13 = vpop.f32.mrb[161].mxu1 }
 0x475   : > { %25746 = vst [vmem:[#allocation126_spill] sm:$0xff] %v23085_v20  ;;  %25747 = vst [vmem:[#allocation55_spill] sm:$0xff] %v23087_v13  ;;  %v23089_v42 = vpop.eup %19454  ;;  %v7944_v25 = vmul.f32 1.442695, %v7757_v14  ;;  %v8253_v60 = vsel %vm7313_vm2, %v23085_v20, 0.0  ;;  %7540 = vmax.xlane.f32.xlu0 %v7539_v38 }
 0x476   : > { %v23095_v30 = vpop.eup %19456  ;;  %v8135_v8 = vpop.xlane.xlu0 %8134  ;;  %8254 = vadd.xlane.f32.xlu1 %v8253_v60  ;;  %v8232_v14 = vsel %vm7313_vm2, %v23089_v42, 0.0  ;;  %v25750_v60 = vld [vmem:[#allocation133_spill] sm:$0xff] }
 0x477   : > { %19464 = vpow2.f32 %v7944_v25  ;;  %v23097_v55 = vpop.f32.mrb[56].mxu0  ;;  %v19459_v10 = vpop.eup %19458  ;;  %v8250_v6 = vsel %vm7313_vm2, %v23095_v30, 0.0 }
 0x478   : > { %25748 = vst [vmem:[#allocation134_spill] sm:$0xff] %v23097_v55  ;;  %v23099_v12 = vpop.f32.mrb[57].mxu0  ;;  %19466 = vrcp.f32 %v8135_v8 }
 0x479   : > { %25749 = vst [vmem:[#allocation130_spill] sm:$0xff] %v23099_v12  ;;  %v19461_v13 = vpop.eup %19460  ;;  %8233 = vadd.xlane.f32.xlu0 %v8232_v14  ;;  %v8609_v12 = vmul.f32 %v19459_v10, %v25752_v39 }
 0x47a   : > { %v23105_v47 = vpop.eup %19462  ;;  %v8132_v38 = vpop.xlane.xlu0 %8131  ;;  %8251 = vadd.xlane.f32.xlu1 %v8250_v6  ;;  %v8608_v25 = vmul.f32 %v19461_v13, %v25750_v60  ;;  %v25754_v6 = vld [vmem:[#allocation76_spill] sm:$0xff] }
 0x47b   : > { %19468 = vrcp.f32 %v8132_v38  ;;  %v23108_v55 = vpop.f32.mrb[162].mxu1  ;;  %v8244_v22 = vsel %vm7313_vm2, %v23105_v47, 0.0  ;;  %v7490_v60 = vpop.xlane.xlu1 %7489 }
 0x47c   : > { %25751 = vst [vmem:[#allocation58_spill] sm:$0xff] %v23108_v55  ;;  %v23111_v29 = vpop.f32.mrb[163].mxu1  ;;  %17288 = vmatprep.mubr.msk.f32.mxu1 %vm7313_vm2, %v8608_v25  ;;  %v25758_v25 = vld [vmem:[#allocation128_spill] sm:$0xff] }
 0x47d   : > { %25753 = vst [vmem:[#allocation154_spill] sm:$0xff] %v23111_v29  ;;  %17289 = vmatmul.mubr.msk.f32.vlgmr.msra.gmra.mrb[172].mxu1 %vm7313_vm2, %v8609_v12  ;;  %8245 = vadd.xlane.f32.xlu0 %v8244_v22  ;;  %v25759_v22 = vld [vmem:[#allocation32_spill] sm:$0xff]  ;;  %v25760_v29 = vld [vmem:[#allocation71_spill] sm:$0xff] }
 0x47e   : > { %18394 = vmatpush3.bf16.msra.mxu1 %v25729_v27 }
 0x47f   : > { %18400 = vmatprep.subr.bf16.mxu1 %v25754_v6 }
 0x481   : > { %v23119_v13 = vpop.eup %19464 }
 0x482   : > { %25755 = vst [vmem:[#allocation140_spill] sm:$0xff] %v23119_v13  ;;  %v8259_v8 = vsel %vm7313_vm2, %v23119_v13, 0.0  ;;  %v19467_v10 = vpop.eup %19466 }
 0x483   : > { %v23123_v39 = vpop.f32.mrb[164].mxu1  ;;  %8260 = vadd.xlane.f32.xlu1 %v8259_v8  ;;  %v8611_v55 = vmul.f32 %v19467_v10, %v25759_v22  ;;  %v25763_v10 = vld [vmem:[#allocation75_spill] sm:$0xff] }
 0x484   : > { %25756 = vst [vmem:[#allocation145_spill] sm:$0xff] %v23123_v39  ;;  %v23125_v14 = vpop.f32.mrb[165].mxu1  ;;  %v25761_v39 = vld [vmem:[#allocation78_spill] sm:$0xff] }
 0x485   : > { %25757 = vst [vmem:[#allocation135_spill] sm:$0xff] %v23125_v14  ;;  %v19469_v38 = vpop.eup %19468  ;;  %v25762_v14 = vld [vmem:[#allocation25_spill] sm:$0xff] }
 0x486   : > { %v8610_v12 = vmul.f32 %v19469_v38, %v25758_v25 }
 0x488   : > { %17295 = vmatprep.mubr.msk.f32.mxu0 %vm7313_vm2, %v8610_v12 }
 0x489   : > { %17296 = vmatmul.mubr.msk.f32.vlgmr.msra.gmra.mrb[66].mxu0 %vm7313_vm2, %v8611_v55  ;;  %v7499_v27 = vpop.xlane.xlu1 %7498 }
 0x48a   : > { %18398 = vmatpush3.bf16.msra.mxu0 %v25731_v34  ;;  %v7759_v13 = vsub.f32 %v25760_v29, %v7499_v27  ;;  %v25764_v34 = vld [vmem:[#allocation54_spill] sm:$0xff] }
 0x48b   : > { %18404 = vmatprep.subr.bf16.mxu0 %v25761_v39 }
 0x48c   : > { %v7948_v8 = vmul.f32 1.442695, %v7759_v13 }
 0x48d   : > { %v7496_v50 = vpop.xlane.xlu1 %7495 }
 0x48e   : > { %19470 = vpow2.f32 %v7948_v8  ;;  %v7758_v20 = vsub.f32 %v25762_v14, %v7496_v50  ;;  %v25769_v14 = vld [vmem:[#allocation51_spill] sm:$0xff] }
 0x48f   : > { %v7756_v27 = vsub.f32 %v25769_v14, %v7490_v60 }
 0x490   : > { %v7946_v37 = vmul.f32 1.442695, %v7758_v20 }
 0x491   : > { %v8141_v38 = vpop.xlane.xlu1 %8140 }
 0x492   : > { %19472 = vpow2.f32 %v7946_v37 }
 0x493   : > { %19127 = vrot.lane.b32.xlu0 %v25763_v10, %s20117_s10  ;;  %19474 = vrcp.f32 %v8141_v38 }
 0x495   : > { %v8138_v55 = vpop.xlane.xlu1 %8137 }
 0x496   : > { %v7505_v25 = vpop.xlane.xlu0 %7504  ;;  %19476 = vrcp.f32 %v8138_v55 }
 0x497   : > { %v7761_v12 = vsub.f32 %v25764_v34, %v7505_v25 }
 0x498   : > { %v23138_v29 = vpop.eup %19470 }
 0x499   : > { %25765 = vst [vmem:[#allocation138_spill] sm:$0xff] %v23138_v29  ;;  %v7952_v22 = vmul.f32 1.442695, %v7761_v12  ;;  %v23140_v13 = vpop.xlane.xlu1 %7510  ;;  %v8265_v50 = vsel %vm7313_vm2, %v23138_v29, 0.0  ;;  %v25770_v12 = vld [vmem:[#allocation43_spill] sm:$0xff] }
 0x49a   : > { %25766 = vst [vmem:[#allocation147_spill] sm:$0xff] %v23140_v13  ;;  %v23144_v20 = vpop.xlane.xlu0 %7507  ;;  %8266 = vadd.xlane.f32.xlu1 %v8265_v50  ;;  %v7942_v13 = vmul.f32 1.442695, %v7756_v27 }
 0x49b   : > { %25767 = vst [vmem:[#allocation150_spill] sm:$0xff] %v23144_v20  ;;  %19478 = vpow2.f32 %v7952_v22  ;;  %v25772_v20 = vld [vmem:[#allocation68_spill] sm:$0xff]  ;;  %v23155_v22 = vld [vmem:[#allocation7 + $0x28] sm:$0xff] }
 0x49c   : > { %v23146_v37 = vpop.eup %19472  ;;  %v7102_v60 = vadd.f32 %v23155_v22, %v25773_v26 }
 0x49d   : > { %25768 = vst [vmem:[#allocation142_spill] sm:$0xff] %v23146_v37  ;;  %v7502_v8 = vpop.xlane.xlu1 %7501  ;;  %v8262_v38 = vsel %vm7313_vm2, %v23146_v37, 0.0  ;;  %v19475_v25 = vpop.eup %19474 }
 0x49e   : > { %v8147_v55 = vpop.xlane.xlu0 %8146  ;;  %8263 = vadd.xlane.f32.xlu1 %v8262_v38  ;;  %v7760_v10 = vsub.f32 %v25770_v12, %v7502_v8  ;;  %v8613_v37 = vmul.f32 %v19475_v25, %v25774_v53  ;;  %v23165_v8 = vld [vmem:[#allocation8 + $0x68] sm:$0xff] }
 0x49f   : > { %19480 = vrcp.f32 %v8147_v55  ;;  %25776 = vst [vmem:[#allocation148_spill] sm:$0xff] %v23165_v8  ;;  %v23168_v26 = vadd.f32 %v23165_v8, %v7102_v60  ;;  %v25778_v55 = vld [vmem:[#allocation82_spill] sm:$0xff] }
 0x4a0   : > { %v19477_v34 = vpop.eup %19476  ;;  %v7950_v38 = vmul.f32 1.442695, %v7760_v10  ;;  %v25783_v60 = vld [vmem:[#allocation70_spill] sm:$0xff] }
 0x4a1   : > { %v23152_v29 = vpop.xlane.xlu1 %7522  ;;  %v8612_v50 = vmul.f32 %v19477_v34, %v25772_v20  ;;  %25777 = vst [vmem:[#allocation151_spill] sm:$0xff] %v23168_v26 }
 0x4a2   : > { %25771 = vst [vmem:[#allocation146_spill] sm:$0xff] %v23152_v29  ;;  %v8144_v14 = vpop.xlane.xlu0 %8143 }
 0x4a3   : > { %19482 = vrcp.f32 %v8144_v14  ;;  %17302 = vmatprep.mubr.msk.f32.mxu1 %vm7313_vm2, %v8612_v50 }
 0x4a4   : > { %17303 = vmatmul.mubr.msk.f32.vlgmr.msra.gmra.mrb[174].mxu1 %vm7313_vm2, %v8613_v37  ;;  %19484 = vpow2.f32 %v7942_v13 }
 0x4a5   : > { %v23162_v27 = vpop.eup %19478  ;;  %18402 = vmatpush3.bf16.msra.mxu1 %v25754_v6  ;;  %v8153_v20 = vpop.xlane.xlu1 %8152  ;;  %19486 = vpow2.f32 %v7950_v38  ;;  %v7545_v6 = vsel %vm7313_vm2, %v23168_v26, -inf  ;;  %v25784_v38 = vld [vmem:[#allocation53_spill] sm:$0xff] }
 0x4a6   : > { %25775 = vst [vmem:[#allocation152_spill] sm:$0xff] %v23162_v27  ;;  %18408 = vmatprep.subr.bf16.mxu1 %v25778_v55  ;;  %v23171_v53 = vpop.xlane.xlu0 %7516  ;;  %v8271_v10 = vsel %vm7313_vm2, %v23162_v27, 0.0  ;;  %19488 = vrcp.f32 %v8153_v20 }
 0x4a7   : > { %25779 = vst [vmem:[#allocation60_spill] sm:$0xff] %v23171_v53  ;;  %8272 = vadd.xlane.f32.xlu1 %v8271_v10  ;;  %v23188_v10 = vld [vmem:[#allocation7 + $0x20] sm:$0xff] }
 0x4a9   : > { %v8150_v37 = vpop.xlane.xlu1 %8149  ;;  %v19481_v25 = vpop.eup %19480 }
 0x4aa   : > { %v23175_v13 = vpop.xlane.xlu0 %7513  ;;  %19490 = vrcp.f32 %v8150_v37  ;;  %v8615_v20 = vmul.f32 %v19481_v25, %v25784_v38  ;;  %v25785_v37 = vld [vmem:[#allocation48_spill] sm:$0xff]  ;;  %v23201_v38 = vld [vmem:[#allocation8 + $0x60] sm:$0xff] }
 0x4ab   : > { %25780 = vst [vmem:[#allocation61_spill] sm:$0xff] %v23175_v13  ;;  %7546 = vmax.xlane.f32.xlu1 %v7545_v6  ;;  %v7101_v26 = vadd.f32 %v23188_v10, %v25785_v37 }
 0x4ad   : > { %v19483_v34 = vpop.eup %19482  ;;  %v23179_v12 = vpop.xlane.xlu1 %7534  ;;  %v23204_v37 = vadd.f32 %v23201_v38, %v7101_v26 }
 0x4ae   : > { %25781 = vst [vmem:[#allocation63_spill] sm:$0xff] %v23179_v12  ;;  %v23181_v50 = vpop.xlane.xlu0 %7519  ;;  %v8614_v14 = vmul.f32 %v19483_v34, %v25783_v60  ;;  %v23184_v27 = vpop.eup %19484  ;;  %v25788_v60 = vld [vmem:[#allocation85_spill] sm:$0xff] }
 0x4af   : > { %25782 = vst [vmem:[#allocation110_spill] sm:$0xff] %v23181_v50  ;;  %v23193_v29 = vpop.eup %19486  ;;  %v8256_v34 = vsel %vm7313_vm2, %v23184_v27, 0.0  ;;  %25789 = vst [vmem:[#allocation65_spill] sm:$0xff] %v23204_v37  ;;  %v25790_v50 = vld [vmem:[#allocation62_spill] sm:$0xff] }
 0x4b0   : > { %17309 = vmatprep.mubr.msk.f32.mxu0 %vm7313_vm2, %v8614_v14  ;;  %25786 = vst [vmem:[#allocation23_spill] sm:$0xff] %v23193_v29  ;;  %v19489_v25 = vpop.eup %19488  ;;  %v8268_v13 = vsel %vm7313_vm2, %v23193_v29, 0.0 }
 0x4b1   : > { %17310 = vmatmul.mubr.msk.f32.vlgmr.msra.gmra.mrb[68].mxu0 %vm7313_vm2, %v8615_v20  ;;  %v8165_v6 = vpop.xlane.xlu1 %8164 }
 0x4b2   : > { %18406 = vmatpush3.bf16.msra.mxu0 %v25761_v39  ;;  %v23196_v12 = vpop.xlane.xlu0 %7528  ;;  %8257 = vadd.xlane.f32.xlu0 %v8256_v34  ;;  %19492 = vrcp.f32 %v8165_v6  ;;  %v7103_v39 = vadd.f32 %v23188_v10, %v22773_v48  ;;  %v25791_v34 = vld [vmem:[#allocation107_spill] sm:$0xff]  ;;  %v25794_v6 = vld [vmem:[#allocation88_spill] sm:$0xff] }
 0x4b3   : > { %25787 = vst [vmem:[#allocation33_spill] sm:$0xff] %v23196_v12  ;;  %18412 = vmatprep.subr.bf16.mxu0 %v25788_v60  ;;  %v8617_v8 = vmul.f32 %v19489_v25, %v25791_v34  ;;  %v7542_v25 = vsel %vm7313_vm2, %v23204_v37, -inf  ;;  %v25797_v34 = vld [vmem:[#allocation29_spill] sm:$0xff] }
 0x4b4   : > { %v19491_v14 = vpop.eup %19490 }
 0x4b5   : > { %v8162_v20 = vpop.xlane.xlu1 %8161  ;;  %v8616_v53 = vmul.f32 %v19491_v14, %v25790_v50  ;;  %v23217_v50 = vld [vmem:[#allocation8 + $0x70] sm:$0xff] }
 0x4b6   : > { %v23209_v12 = vpop.xlane.xlu0 %7525  ;;  %19494 = vrcp.f32 %v8162_v20  ;;  %8269 = vadd.xlane.f32.xlu0 %v8268_v13  ;;  %25792 = vst [vmem:[#allocation113_spill] sm:$0xff] %v23217_v50  ;;  %v23220_v48 = vadd.f32 %v23217_v50, %v7103_v39  ;;  %v19085_v50 = vunpack.i.h.bf16 %v25797_v34 }
 0x4b7   : > { %17316 = vmatprep.mubr.msk.f32.mxu1 %vm7313_vm2, %v8616_v53  ;;  %v25796_v53 = vld [vmem:[#allocation77_spill] sm:$0xff] }
 0x4b8   : > { %17317 = vmatmul.mubr.msk.f32.vlgmr.msra.gmra.mrb[176].mxu1 %vm7313_vm2, %v8617_v8  ;;  %25793 = vst [vmem:[#allocation22_spill] sm:$0xff] %v23220_v48  ;;  %v7548_v13 = vsel %vm7313_vm2, %v23220_v48, -inf }
 0x4b9   : > { %18410 = vmatpush3.bf16.msra.mxu1 %v25778_v55  ;;  %v8177_v26 = vpop.xlane.xlu1 %8176 }
 0x4ba   : > { %18416 = vmatprep.subr.bf16.mxu1 %v25794_v6  ;;  %v23223_v14 = vpop.xlane.xlu0 %7531  ;;  %7543 = vmax.xlane.f32.xlu0 %v7542_v25  ;;  %19496 = vrcp.f32 %v8177_v26 }
 0x4bb   : > { %25795 = vst [vmem:[#allocation103_spill] sm:$0xff] %v23223_v14  ;;  %v19084_v14 = vunpack.i.l.bf16 %v25797_v34  ;;  %v25798_v34 = vld [vmem:[#allocation26_spill] sm:$0xff] }
 0x4bc   : > { %19132 = vrot.lane.b32.xlu1 %v25796_v53, %s20117_s10  ;;  %v19493_v20 = vpop.eup %19492  ;;  %v19095_v29 = vunpack.i.h.bf16 %v25798_v34 }
 0x4bd   : > { %v8174_v8 = vpop.xlane.xlu1 %8173  ;;  %v8621_v26 = vmul.f32 %v19493_v20, %v22754_v23 }
 0x4be   : > { %19498 = vrcp.f32 %v8174_v8  ;;  %v8159_v55 = vpop.xlane.xlu0 %8158  ;;  %7549 = vmax.xlane.f32.xlu0 %v7548_v13  ;;  %v18423_v8 = vpack.c.bf16 %v19085_v50, %v19084_v14 }
 0x4bf   : > { %19500 = vrcp.f32 %v8159_v55 }
 0x4c0   : > { %v19495_v39 = vpop.eup %19494 }
 0x4c1   : > { %v8186_v37 = vpop.xlane.xlu1 %8185  ;;  %v8620_v25 = vmul.f32 %v19495_v39, %v22767_v9  ;;  %v19094_v9 = vunpack.i.l.bf16 %v25798_v34  ;;  %v25799_v39 = vld [vmem:[#allocation18_spill] sm:$0xff] }
 0x4c2   : > { %19502 = vrcp.f32 %v8186_v37  ;;  %v8156_v53 = vpop.xlane.xlu0 %8155 }
 0x4c3   : > { %19504 = vrcp.f32 %v8156_v53  ;;  %17330 = vmatprep.mubr.msk.f32.mxu1 %vm7313_vm2, %v8620_v25  ;;  %v19080_v25 = vunpack.i.h.bf16 %v25799_v39 }
 0x4c4   : > { %17331 = vmatmul.mubr.msk.f32.vlgmr.msra.gmra.mrb[178].mxu1 %vm7313_vm2, %v8621_v26  ;;  %v19497_v13 = vpop.eup %19496  ;;  %v19079_v26 = vunpack.i.l.bf16 %v25799_v39  ;;  %v23266_v39 = vld [vmem:[#allocation8 + $0x78] sm:$0xff] }
 0x4c5   : > { %18418 = vmatpush3.bf16.msra.mxu1 %v25794_v6  ;;  %v8625_v23 = vmul.f32 %v19497_v13, %v22791_v49  ;;  %v23246_v6 = vpack.c.bf16 %v19095_v29, %v19094_v9  ;;  %v25800_v9 = vld [vmem:[#allocation79_spill] sm:$0xff] }
 0x4c6   : > { %18424 = vmatprep.subr.bf16.mxu1 %v18423_v8  ;;  %v23238_v48 = vpop.xlane.xlu0 %7537 }
 0x4c8   : > { %v19499_v55 = vpop.eup %19498 }
 0x4c9   : > { %v8624_v37 = vmul.f32 %v19499_v55, %v22805_v1  ;;  %v19501_v53 = vpop.eup %19500  ;;  %v8192_v1 = vpop.xlane.xlu1 %8191  ;;  %v18419_v55 = vpack.c.bf16 %v19080_v25, %v19079_v26 }
 0x4ca   : > { %v8171_v20 = vpop.xlane.xlu0 %8170  ;;  %v8619_v29 = vmul.f32 %v19501_v53, %v22816_v40  ;;  %v25801_v53 = vld [vmem:[#allocation50_spill] sm:$0xff] }
 0x4cb   : > { %17344 = vmatprep.mubr.msk.f32.mxu1 %vm7313_vm2, %v8624_v37  ;;  %19506 = vrcp.f32 %v8171_v20  ;;  %v19090_v20 = vunpack.i.h.bf16 %v25801_v53 }
 0x4cc   : > { %v19503_v50 = vpop.eup %19502  ;;  %17345 = vmatmul.mubr.msk.f32.vlgmr.msra.gmra.mrb[180].mxu1 %vm7313_vm2, %v8625_v23 }
 0x4cd   : > { %v19505_v14 = vpop.eup %19504  ;;  %18426 = vmatpush3.bf16.msra.mxu1 %v18423_v8  ;;  %v8628_v34 = vmul.f32 %v19503_v50, %v22829_v17  ;;  %v8198_v8 = vpop.xlane.xlu1 %8197  ;;  %v19089_v50 = vunpack.i.l.bf16 %v25801_v53 }
 0x4ce   : > { %18432 = vmatprep.subr.bf16.mxu1 %v23246_v6  ;;  %v8618_v49 = vmul.f32 %v19505_v14, %v22836_v33  ;;  %v8168_v13 = vpop.xlane.xlu0 %8167  ;;  %v7104_v33 = vadd.f32 %v23155_v22, %v22763_v32  ;;  %v7106_v14 = vadd.f32 %v23155_v22, %v22746_v4 }
 0x4cf   : > { %17358 = vmatprep.mubr.msk.f32.mxu1 %vm7313_vm2, %v8628_v34  ;;  %19508 = vrcp.f32 %v8168_v13 }
 0x4d0   : > { %17323 = vmatprep.mubr.msk.f32.mxu0 %vm7313_vm2, %v8618_v49  ;;  %19510 = vrcp.f32 %v8192_v1  ;;  %v23269_v25 = vadd.f32 %v23266_v39, %v7104_v33  ;;  %v18427_v1 = vpack.c.bf16 %v19090_v20, %v19089_v50  ;;  %v23275_v49 = vld [vmem:[#allocation8 + $0x88] sm:$0xff]  ;;  %v25802_v33 = vld [vmem:[#allocation20_spill] sm:$0xff] }
 0x4d1   : > { %17324 = vmatmul.mubr.msk.f32.vlgmr.msra.gmra.mrb[70].mxu0 %vm7313_vm2, %v8619_v29  ;;  %v23278_v4 = vadd.f32 %v23275_v49, %v7106_v14 }
 0x4d2   : > { %18414 = vmatpush3.bf16.msra.mxu0 %v25788_v60  ;;  %v8183_v17 = vpop.xlane.xlu0 %8182  ;;  %v8204_v60 = vpop.xlane.xlu1 %8203  ;;  %v7551_v29 = vsel %vm7313_vm2, %v23269_v25, -inf }
 0x4d3   : > { %18420 = vmatprep.subr.bf16.mxu0 %v18419_v55  ;;  %19512 = vrcp.f32 %v8183_v17 }
 0x4d4   : > { %19137 = vrot.lane.b32.xlu0 %v25800_v9, %s20117_s10  ;;  %v25840_v9 = vld [vmem:[#allocation141_spill] sm:$0xff] }
 0x4d5   : > { %v19507_v37 = vpop.eup %19506 }
 0x4d6   : > { %v8180_v40 = vpop.xlane.xlu0 %8179  ;;  %v8623_v34 = vmul.f32 %v19507_v37, %v22878_v45  ;;  %v8210_v17 = vpop.xlane.xlu1 %8209  ;;  %v19099_v37 = vunpack.i.l.bf16 %v25802_v33 }
 0x4d7   : > { %19514 = vrcp.f32 %v8180_v40  ;;  %v19100_v40 = vunpack.i.h.bf16 %v25802_v33 }
 0x4d8   : > { %19516 = vrcp.f32 %v8198_v8 }
 0x4d9   : > { %v19509_v23 = vpop.eup %19508 }
 0x4da   : > { %v8189_v32 = vpop.xlane.xlu0 %8188  ;;  %v8622_v26 = vmul.f32 %v19509_v23, %v22881_v21  ;;  %v19511_v21 = vpop.eup %19510 }
 0x4db   : > { %19518 = vrcp.f32 %v8189_v32 }
 0x4dc   : > { %17337 = vmatprep.mubr.msk.f32.mxu0 %vm7313_vm2, %v8622_v26  ;;  %19520 = vrcp.f32 %v8204_v60  ;;  %v25803_v60 = vld [vmem:[#allocation40_spill] sm:$0xff]  ;;  %v8630_v26 = vmul.f32 %v19511_v21, %v22843_v11 }
 0x4dd   : > { %17338 = vmatmul.mubr.msk.f32.vlgmr.msra.gmra.mrb[72].mxu0 %vm7313_vm2, %v8623_v34  ;;  %v19513_v45 = vpop.eup %19512  ;;  %v19105_v14 = vunpack.i.h.bf16 %v25803_v60  ;;  %v19104_v32 = vunpack.i.l.bf16 %v25803_v60 }
 0x4de   : > { %18422 = vmatpush3.bf16.msra.mxu0 %v18419_v55  ;;  %v8195_v13 = vpop.xlane.xlu0 %8194  ;;  %v7557_v55 = vsel %vm7313_vm2, %v23278_v4, -inf  ;;  %v8627_v20 = vmul.f32 %v19513_v45, %v22912_v44  ;;  %v8222_v44 = vpop.xlane.xlu1 %8221 }
 0x4df   : > { %18428 = vmatprep.subr.bf16.mxu0 %v18427_v1  ;;  %19522 = vrcp.f32 %v8195_v13  ;;  %v18439_v21 = vpack.c.bf16 %v19105_v14, %v19104_v32 }
 0x4e0   : > { %7552 = vmax.xlane.f32.xlu1 %v7551_v29  ;;  %19524 = vrcp.f32 %v8210_v17 }
 0x4e1   : > { %v19515_v8 = vpop.eup %19514 }
 0x4e2   : > { %v8201_v23 = vpop.xlane.xlu0 %8200  ;;  %v8626_v53 = vmul.f32 %v19515_v8, %v22933_v19  ;;  %v19517_v50 = vpop.eup %19516  ;;  %v18435_v19 = vpack.c.bf16 %v19100_v40, %v19099_v37  ;;  %v25804_v8 = vld [vmem:[#allocation28_spill] sm:$0xff] }
 0x4e3   : > { %19526 = vrcp.f32 %v8201_v23  ;;  %v8632_v17 = vmul.f32 %v19517_v50, %v22870_v43  ;;  %v19110_v33 = vunpack.i.h.bf16 %v25804_v8  ;;  %v19109_v11 = vunpack.i.l.bf16 %v25804_v8  ;;  %v8237_v32 = vpop.xlane.xlu1 %8236 }
 0x4e4   : > { %7558 = vmax.xlane.f32.xlu1 %v7557_v55  ;;  %17351 = vmatprep.mubr.msk.f32.mxu0 %vm7313_vm2, %v8626_v53  ;;  %v25805_v53 = vld [vmem:[#allocation46_spill] sm:$0xff] }
 0x4e5   : > { %v19519_v34 = vpop.eup %19518  ;;  %17352 = vmatmul.mubr.msk.f32.vlgmr.msra.gmra.mrb[74].mxu0 %vm7313_vm2, %v8627_v20  ;;  %v19115_v55 = vunpack.i.h.bf16 %v25805_v53  ;;  %v19114_v20 = vunpack.i.l.bf16 %v25805_v53 }
 0x4e6   : > { %18430 = vmatpush3.bf16.msra.mxu0 %v18427_v1  ;;  %17365 = vmatprep.mubr.msk.f32.mxu0 %vm7313_vm2, %v8630_v26  ;;  %v8207_v13 = vpop.xlane.xlu0 %8206  ;;  %v8629_v29 = vmul.f32 %v19519_v34, %v22948_v7  ;;  %v19521_v45 = vpop.eup %19520  ;;  %v7105_v7 = vadd.f32 %v23188_v10, %v22750_v18  ;;  %v23309_v18 = vld [vmem:[#allocation8 + $0x80] sm:$0xff]  ;;  %v25806_v34 = vld [vmem:[#allocation24_spill] sm:$0xff] }
 0x4e7   : > { %18436 = vmatprep.subr.bf16.mxu0 %v18435_v19  ;;  %19528 = vrcp.f32 %v8207_v13  ;;  %v8634_v37 = vmul.f32 %v19521_v45, %v22888_v57  ;;  %v7107_v57 = vadd.f32 %v23188_v10, %v22809_v2  ;;  %v19120_v13 = vunpack.i.h.bf16 %v25806_v34  ;;  %v8243_v8 = vpop.xlane.xlu1 %8242 }
 0x4e8   : > { %17359 = vmatmul.mubr.msk.f32.vlgmr.msra.gmra.mrb[182].mxu1 %vm7313_vm2, %v8629_v29  ;;  %19530 = vrcp.f32 %v8222_v44  ;;  %v23312_v60 = vadd.f32 %v23309_v18, %v7105_v7  ;;  %v18447_v29 = vpack.c.bf16 %v19115_v55, %v19114_v20 }
 0x4e9   : > { %v19523_v40 = vpop.eup %19522  ;;  %18434 = vmatpush3.bf16.msra.mxu1 %v23246_v6  ;;  %17372 = vmatprep.mubr.msk.f32.mxu1 %vm7313_vm2, %v8632_v17  ;;  %v18443_v6 = vpack.c.bf16 %v19110_v33, %v19109_v11  ;;  %v23322_v17 = vld [vmem:[#allocation8 + $0x90] sm:$0xff]  ;;  %v25807_v11 = vld [vmem:[#allocation117_spill] sm:$0xff] }
 0x4ea   : > { %18440 = vmatprep.subr.bf16.mxu1 %v18439_v21  ;;  %v8213_v1 = vpop.xlane.xlu0 %8212  ;;  %v8631_v43 = vmul.f32 %v19523_v40, %v22965_v59  ;;  %v19525_v23 = vpop.eup %19524  ;;  %v23325_v2 = vadd.f32 %v23322_v17, %v7107_v57  ;;  %v19124_v40 = vunpack.i.l.bf16 %v25807_v11 }
 0x4eb   : > { %19532 = vrcp.f32 %v8213_v1  ;;  %v8636_v26 = vmul.f32 %v19525_v23, %v22896_v62  ;;  %v7554_v62 = vsel %vm7313_vm2, %v23312_v60, -inf  ;;  %v25808_v1 = vld [vmem:[#allocation83_spill] sm:$0xff]  ;;  %v8240_v20 = vpop.xlane.xlu1 %8239 }
 0x4ec   : > { %17366 = vmatmul.mubr.msk.f32.vlgmr.msra.gmra.mrb[76].mxu0 %vm7313_vm2, %v8631_v43 }
 0x4ed   : > { %v19527_v50 = vpop.eup %19526  ;;  %18438 = vmatpush3.bf16.msra.mxu0 %v18435_v19  ;;  %17379 = vmatprep.mubr.msk.f32.mxu0 %vm7313_vm2, %v8634_v37  ;;  %v19119_v19 = vunpack.i.l.bf16 %v25806_v34 }
 0x4ee   : > { %18444 = vmatprep.subr.bf16.mxu0 %v18443_v6  ;;  %v8219_v59 = vpop.xlane.xlu0 %8218  ;;  %v8633_v14 = vmul.f32 %v19527_v50, %v22979_v24 }
 0x4ef   : > { %19534 = vrcp.f32 %v8219_v59  ;;  %v18451_v7 = vpack.c.bf16 %v19120_v13, %v19119_v19 }
 0x4f0   : > { %17373 = vmatmul.mubr.msk.f32.vlgmr.msra.gmra.mrb[184].mxu1 %vm7313_vm2, %v8633_v14  ;;  %v23342_v14 = vpop.xlane.xlu1 %8248 }
 0x4f1   : > { %v19529_v44 = vpop.eup %19528  ;;  %18442 = vmatpush3.bf16.msra.mxu1 %v18439_v21  ;;  %17386 = vmatprep.mubr.msk.f32.mxu1 %vm7313_vm2, %v8636_v26  ;;  %v19125_v21 = vunpack.i.h.bf16 %v25807_v11 }
 0x4f2   : > { %18448 = vmatprep.subr.bf16.mxu1 %v18447_v29  ;;  %v8216_v24 = vpop.xlane.xlu0 %8215  ;;  %v8635_v45 = vmul.f32 %v19529_v44, %v22989_v52  ;;  %v19531_v33 = vpop.eup %19530  ;;  %v7560_v52 = vsel %vm7313_vm2, %v23325_v2, -inf }
 0x4f3   : > { %19536 = vrcp.f32 %v8216_v24  ;;  %7555 = vmax.xlane.f32.xlu0 %v7554_v62  ;;  %v8640_v53 = vmul.f32 %v19531_v33, %v22925_v58  ;;  %v18455_v55 = vpack.c.bf16 %v19125_v21, %v19124_v40 }
 0x4f4   : > { %17380 = vmatmul.mubr.msk.f32.vlgmr.msra.gmra.mrb[78].mxu0 %vm7313_vm2, %v8635_v45 }
 0x4f5   : > { %19142 = vrot.lane.b32.xlu1 %v25808_v1, %s20117_s10  ;;  %v19533_v43 = vpop.eup %19532  ;;  %18446 = vmatpush3.bf16.msra.mxu0 %v18443_v6  ;;  %v19877_v1 = vld [vmem:[#allocation8 + $0x28] sm:$0xff] }
 0x4f6   : > { %18452 = vmatprep.subr.bf16.mxu0 %v18451_v7  ;;  %v8225_v37 = vpop.xlane.xlu0 %8224  ;;  %v8637_v23 = vmul.f32 %v19533_v43, %v23001_v61 }
 0x4f7   : > { %19538 = vrcp.f32 %v8225_v37  ;;  %7561 = vmax.xlane.f32.xlu0 %v7560_v52 }
 0x4f8   : > { %17387 = vmatmul.mubr.msk.f32.vlgmr.msra.gmra.mrb[186].mxu1 %vm7313_vm2, %v8637_v23  ;;  %19540 = vrcp.f32 %v8240_v20 }
 0x4f9   : > { %18450 = vmatpush3.bf16.msra.mxu1 %v18447_v29  ;;  %17400 = vmatprep.mubr.msk.f32.mxu1 %vm7313_vm2, %v8640_v53  ;;  %v19535_v50 = vpop.eup %19534 }
 0x4fa   : > { %18456 = vmatprep.subr.bf16.mxu1 %v18455_v55  ;;  %v8231_v6 = vpop.xlane.xlu0 %8230  ;;  %v8639_v58 = vmul.f32 %v19535_v50, %v23021_v36  ;;  %v7110_v50 = vadd.f32 %v23155_v22, %v22783_v54 }
 0x4fb   : > { %19542 = vrcp.f32 %v8231_v6 }
 0x4fd   : > { %v19537_v57 = vpop.eup %19536 }
 0x4fe   : > { %v8228_v59 = vpop.xlane.xlu0 %8227  ;;  %v8638_v61 = vmul.f32 %v19537_v57, %v23039_v31  ;;  %v23378_v57 = vld [vmem:[#allocation8 + $0x98] sm:$0xff] }
 0x4ff   : > { %19544 = vrcp.f32 %v8228_v59 }
 0x500   : > { %17393 = vmatprep.mubr.msk.f32.mxu0 %vm7313_vm2, %v8638_v61  ;;  %19546 = vrcp.f32 %v8237_v32 }
 0x501   : > { %v19539_v26 = vpop.eup %19538  ;;  %17394 = vmatmul.mubr.msk.f32.vlgmr.msra.gmra.mrb[80].mxu0 %vm7313_vm2, %v8639_v58  ;;  %19548 = vrcp.f32 %v8243_v8  ;;  %v25813_v8 = vld [vmem:[#allocation86_spill] sm:$0xff] }
 0x502   : > { %v23347_v34 = vpop.f32.mrb[58].mxu0  ;;  %18454 = vmatpush3.bf16.msra.mxu0 %v18451_v7  ;;  %v23349_v13 = vpop.xlane.xlu0 %7540  ;;  %v8641_v29 = vmul.f32 %v19539_v26, %v23051_v46 }
 0x503   : > { %25809 = vst [vmem:[#allocation64_spill] sm:$0xff] %v23347_v34  ;;  %v23351_v19 = vpop.f32.mrb[59].mxu0  ;;  %v23354_v31 = vpop.xlane.xlu1 %8254 }
 0x504   : > { %25810 = vst [vmem:[#allocation97_spill] sm:$0xff] %v23351_v19  ;;  %17401 = vmatmul.mubr.msk.f32.vlgmr.msra.gmra.mrb[188].mxu1 %vm7313_vm2, %v8641_v29  ;;  %v19541_v44 = vpop.eup %19540 }
 0x505   : > { %18458 = vmatpush3.bf16.msra.mxu1 %v18455_v55  ;;  %v19543_v62 = vpop.eup %19542  ;;  %v8646_v32 = vmul.f32 %v19541_v44, %v22995_v35 }
 0x506   : > { %v8234_v36 = vpop.xlane.xlu0 %8233  ;;  %v8643_v46 = vmul.f32 %v19543_v62, %v23062_v51  ;;  %v7108_v51 = vadd.f32 %v23155_v22, %v22801_v63 }
 0x507   : > { %v8252_v24 = vpop.xlane.xlu1 %8251  ;;  %19550 = vrcp.f32 %v8234_v36  ;;  %v23394_v36 = vld [vmem:[#allocation8 + $0xa8] sm:$0xff] }
 0x508   : > { %19552 = vrcp.f32 %v8252_v24  ;;  %v23381_v59 = vadd.f32 %v23378_v57, %v7108_v51  ;;  %v7109_v24 = vadd.f32 %v23188_v10, %v22787_v3 }
 0x509   : > { %v19545_v45 = vpop.eup %19544 }
 0x50a   : > { %v8246_v33 = vpop.xlane.xlu0 %8245  ;;  %v8642_v11 = vmul.f32 %v19545_v45, %v23072_v15  ;;  %v23358_v21 = vpop.f32.mrb[166].mxu1  ;;  %v23413_v45 = vld [vmem:[#allocation8 + $0xa0] sm:$0xff] }
 0x50b   : > { %25811 = vst [vmem:[#allocation93_spill] sm:$0xff] %v23358_v21  ;;  %19554 = vrcp.f32 %v8246_v33  ;;  %v23361_v40 = vpop.f32.mrb[167].mxu1  ;;  %v19547_v37 = vpop.eup %19546  ;;  %v23416_v33 = vadd.f32 %v23413_v45, %v7109_v24  ;;  %v19876_v21 = vld [vmem:[#allocation8 + $0x20] sm:$0xff] }
 0x50c   : > { %25812 = vst [vmem:[#allocation39_spill] sm:$0xff] %v23361_v40  ;;  %17407 = vmatprep.mubr.msk.f32.mxu0 %vm7313_vm2, %v8642_v11  ;;  %v19549_v52 = vpop.eup %19548  ;;  %v8645_v63 = vmul.f32 %v19547_v37, %v22946_v28  ;;  %v23397_v28 = vadd.f32 %v23394_v36, %v7110_v50  ;;  %v7113_v11 = vadd.f32 %v23188_v10, %v22825_v0  ;;  %v23433_v37 = vld [vmem:[#allocation8 + $0xc8] sm:$0xff]  ;;  %19556 = vrcp.f32 %v23342_v14 }
 0x50d   : > { %17408 = vmatmul.mubr.msk.f32.vlgmr.msra.gmra.mrb[82].mxu0 %vm7313_vm2, %v8643_v46  ;;  %19147 = vrot.lane.b32.xlu0 %v25813_v8, %s20117_s10  ;;  %v8647_v58 = vmul.f32 %v19549_v52, %v22983_v41  ;;  %v7563_v41 = vsel %vm7313_vm2, %v23381_v59, -inf  ;;  %v7566_v3 = vsel %vm7313_vm2, %v23416_v33, -inf  ;;  %v7117_v50 = vadd.f32 %v23188_v10, %v22866_v16  ;;  %v25836_v40 = vld [vmem:[#allocation143_spill] sm:$0xff] }
 0x50e   : > { %17421 = vmatprep.mubr.msk.f32.mxu0 %vm7313_vm2, %v8646_v32  ;;  %v19128_v7 = vpop.permute.xlu0 %19127  ;;  %v7114_v32 = vadd.f32 %v23155_v22, %v22822_v56  ;;  %v7112_v56 = vadd.f32 %v23155_v22, %v22845_v5 }
 0x50f   : > { %v19130_v15 = vunpack.i.h.bf16 %v19128_v7  ;;  %v19129_v43 = vunpack.i.l.bf16 %v19128_v7  ;;  %v23424_v7 = vld [vmem:[#allocation8 + $0xc0] sm:$0xff] }
 0x510   : > { %v23411_v62 = vpop.xlane.xlu1 %8260  ;;  %v23436_v0 = vadd.f32 %v23433_v37, %v7114_v32  ;;  %v23475_v32 = vld [vmem:[#allocation8 + $0xe8] sm:$0xff] }
 0x511   : > { %v18459_v23 = vpack.c.bf16 %v19130_v15, %v19129_v43  ;;  %v19551_v53 = vpop.eup %19550  ;;  %v23427_v15 = vadd.f32 %v23424_v7, %v7113_v11  ;;  %v25820_v43 = vld [vmem:[#allocation89_spill] sm:$0xff]  ;;  %v23473_v11 = vld [vmem:[#allocation7 + $0x30] sm:$0xff] }
 0x512   : > { %v23371_v55 = vpop.f32.mrb[60].mxu0  ;;  %v19553_v35 = vpop.eup %19552  ;;  %v8644_v6 = vmul.f32 %v19551_v53, %v23089_v42  ;;  %v7581_v5 = vsel %vm7313_vm2, %v23436_v0, -inf  ;;  %v7129_v34 = vadd.f32 %v23473_v11, %v25836_v40 }
 0x513   : > { %25814 = vst [vmem:[#allocation67_spill] sm:$0xff] %v23371_v55  ;;  %v23373_v20 = vpop.f32.mrb[61].mxu0  ;;  %18460 = vmatprep.subr.bf16.mxu0 %v18459_v23  ;;  %v8650_v54 = vmul.f32 %v19553_v35, %v23095_v30  ;;  %v7569_v30 = vsel %vm7313_vm2, %v23397_v28, -inf  ;;  %v7578_v52 = vsel %vm7313_vm2, %v23427_v15, -inf  ;;  %v23446_v35 = vld [vmem:[#allocation8 + $0xb8] sm:$0xff] }
 0x514   : > { %25815 = vst [vmem:[#allocation72_spill] sm:$0xff] %v23373_v20  ;;  %18462 = vmatpush3.bf16.msra.mxu0 %v18459_v23  ;;  %17414 = vmatprep.mubr.msk.f32.mxu1 %vm7313_vm2, %v8644_v6  ;;  %v23449_v6 = vadd.f32 %v23446_v35, %v7112_v56 }
 0x515   : > { %v19555_v61 = vpop.eup %19554  ;;  %17415 = vmatmul.mubr.msk.f32.vlgmr.msra.gmra.mrb[190].mxu1 %vm7313_vm2, %v8645_v63 }
 0x516   : > { %v8648_v42 = vmul.f32 %v19555_v61, %v23105_v47  ;;  %v7575_v24 = vsel %vm7313_vm2, %v23449_v6, -inf }
 0x517   : > { %17422 = vmatmul.mubr.msk.f32.vlgmr.msra.gmra.mrb[84].mxu0 %vm7313_vm2, %v8647_v58 }
 0x518   : > { %v23387_v26 = vpop.f32.mrb[168].mxu1  ;;  %17428 = vmatprep.mubr.msk.f32.mxu1 %vm7313_vm2, %v8648_v42  ;;  %17435 = vmatprep.mubr.msk.f32.mxu0 %vm7313_vm2, %v8650_v54  ;;  %v25825_v42 = vld [vmem:[#allocation73_spill] sm:$0xff] }
 0x519   : > { %25816 = vst [vmem:[#allocation100_spill] sm:$0xff] %v23387_v26  ;;  %v23391_v29 = vpop.f32.mrb[169].mxu1  ;;  %7564 = vmax.xlane.f32.xlu1 %v7563_v41  ;;  %v7118_v54 = vadd.f32 %v23155_v22, %v25825_v42  ;;  %v23464_v41 = vld [vmem:[#allocation8 + $0xe0] sm:$0xff] }
 0x51a   : > { %25817 = vst [vmem:[#allocation87_spill] sm:$0xff] %v23391_v29 }
 0x51b   : > { %v23478_v14 = vadd.f32 %v23475_v32, %v7118_v54 }
 0x51d   : > { %7570 = vmax.xlane.f32.xlu1 %v7569_v30  ;;  %v23467_v30 = vadd.f32 %v23464_v41, %v7117_v50 }
 0x51f   : > { %v7590_v50 = vsel %vm7313_vm2, %v23467_v30, -inf }
 0x523   : > { %v23405_v47 = vpop.f32.mrb[62].mxu0 }
 0x524   : > { %25818 = vst [vmem:[#allocation36_spill] sm:$0xff] %v23405_v47  ;;  %v23407_v44 = vpop.f32.mrb[63].mxu0 }
 0x525   : > { %25819 = vst [vmem:[#allocation96_spill] sm:$0xff] %v23407_v44  ;;  %v7593_v44 = vsel %vm7313_vm2, %v23478_v14, -inf }
 0x527   : > { %v23420_v46 = vpop.xlane.xlu1 %8266 }
 0x52b   : > { %v8264_v51 = vpop.xlane.xlu1 %8263 }
 0x52c   : > { %7567 = vmax.xlane.f32.xlu0 %v7566_v3  ;;  %v25826_v3 = vld [vmem:[#allocation102_spill] sm:$0xff] }
 0x52d   : > { %v7121_v56 = vadd.f32 %v23473_v11, %v25826_v3  ;;  %v23490_v3 = vld [vmem:[#allocation7 + $0x38] sm:$0xff] }
 0x52e   : > { %19152 = vrot.lane.b32.xlu1 %v25820_v43, %s20117_s10 }
 0x530   : > { %7579 = vmax.xlane.f32.xlu0 %v7578_v52 }
 0x531   : > { %v23442_v23 = vpop.f32.mrb[170].mxu1 }
 0x532   : > { %25821 = vst [vmem:[#allocation123_spill] sm:$0xff] %v23442_v23  ;;  %v23444_v53 = vpop.f32.mrb[171].mxu1  ;;  %v25827_v23 = vld [vmem:[#allocation106_spill] sm:$0xff] }
 0x533   : > { %25822 = vst [vmem:[#allocation111_spill] sm:$0xff] %v23444_v53  ;;  %v19871_v53 = vld [vmem:[#allocation8] sm:$0xff] }
 0x534   : > { %v23453_v63 = vpop.xlane.xlu1 %8272  ;;  %v23457_v61 = vpop.f32.mrb[64].mxu0  ;;  %7582 = vmax.xlane.f32.xlu0 %v7581_v5  ;;  %v23486_v47 = vadd.f32 %v19871_v53, %v7121_v56 }
 0x535   : > { %25823 = vst [vmem:[#allocation69_spill] sm:$0xff] %v23457_v61  ;;  %v23459_v58 = vpop.f32.mrb[65].mxu0 }
 0x536   : > { %25824 = vst [vmem:[#allocation80_spill] sm:$0xff] %v23459_v58  ;;  %v19557_v58 = vpop.eup %19556  ;;  %v7602_v26 = vsel %vm7313_vm2, %v23486_v47, -inf }
 0x538   : > { %v23469_v16 = vpop.xlane.xlu1 %7546  ;;  %7576 = vmax.xlane.f32.xlu0 %v7575_v24  ;;  %v7115_v24 = vadd.f32 %v23188_v10, %v25827_v23  ;;  %v25830_v23 = vld [vmem:[#allocation112_spill] sm:$0xff] }
 0x539   : > { %v7122_v53 = vadd.f32 %v25830_v23, %v23490_v3  ;;  %v25832_v23 = vld [vmem:[#allocation120_spill] sm:$0xff] }
 0x53a   : > { %v7111_v29 = vadd.f32 %v23188_v10, %v25832_v23  ;;  %v23528_v23 = vld [vmem:[#allocation8 + $0xb0] sm:$0xff] }
 0x53c   : > { %v19133_v52 = vpop.permute.xlu1 %19132  ;;  %7591 = vmax.xlane.f32.xlu0 %v7590_v50 }
 0x53d   : > { %v19135_v5 = vunpack.i.h.bf16 %v19133_v52  ;;  %v19134_v42 = vunpack.i.l.bf16 %v19133_v52  ;;  %v25828_v52 = vld [vmem:[#allocation104_spill] sm:$0xff] }
 0x53e   : > { %v8649_v50 = vmul.f32 %v19557_v58, %v25828_v52  ;;  %v19873_v58 = vld [vmem:[#allocation8 + $0x8] sm:$0xff] }
 0x53f   : > { %v18463_v61 = vpack.c.bf16 %v19135_v5, %v19134_v42  ;;  %v8258_v54 = vpop.xlane.xlu0 %8257  ;;  %v23493_v5 = vld [vmem:[#allocation8 + $0xd0] sm:$0xff] }
 0x540   : > { %19558 = vrcp.f32 %v8258_v54  ;;  %7594 = vmax.xlane.f32.xlu0 %v7593_v44  ;;  %v23496_v42 = vadd.f32 %v23493_v5, %v7115_v24  ;;  %v25831_v44 = vld [vmem:[#allocation90_spill] sm:$0xff]  ;;  %v23507_v54 = vadd.f32 %v19873_v58, %v7122_v53  ;;  %v25833_v53 = vld [vmem:[#allocation127_spill] sm:$0xff] }
 0x541   : > { %18464 = vmatprep.subr.bf16.mxu1 %v18463_v61  ;;  %19560 = vrcp.f32 %v23354_v31  ;;  %v7125_v58 = vadd.f32 %v23473_v11, %v25833_v53  ;;  %v23531_v31 = vadd.f32 %v23528_v23, %v7111_v29 }
 0x542   : > { %18466 = vmatpush3.bf16.msra.mxu1 %v18463_v61  ;;  %25829 = vst [vmem:[#allocation74_spill] sm:$0xff] %v23496_v42  ;;  %v7116_v61 = vadd.f32 %v23155_v22, %v25831_v44  ;;  %v7584_v24 = vsel %vm7313_vm2, %v23496_v42, -inf  ;;  %19562 = vrcp.f32 %v8264_v51  ;;  %v25834_v51 = vld [vmem:[#allocation84_spill] sm:$0xff]  ;;  %v19878_v42 = vld [vmem:[#allocation8 + $0x40] sm:$0xff] }
 0x543   : > { %v23500_v56 = vpop.xlane.xlu0 %8269  ;;  %v23536_v53 = vadd.f32 %v19876_v21, %v7125_v58  ;;  %v7572_v40 = vsel %vm7313_vm2, %v23531_v31, -inf  ;;  %19564 = vrcp.f32 %v23411_v62 }
 0x544   : > { %7603 = vmax.xlane.f32.xlu0 %v7602_v26  ;;  %19566 = vrcp.f32 %v23500_v56  ;;  %v25880_v56 = vld [vmem:[#allocation136_spill] sm:$0xff] }
 0x545   : > { %17429 = vmatmul.mubr.msk.f32.vlgmr.msra.gmra.mrb[192].mxu1 %vm7313_vm2, %v8649_v50  ;;  %v23516_v50 = vld [vmem:[#allocation8 + $0xd8] sm:$0xff]  ;;  %25835 = vst [vmem:[#allocation31_spill] sm:$0xff] %v23536_v53 }
 0x546   : > { %v23519_v44 = vadd.f32 %v23516_v50, %v7116_v61  ;;  %v7126_v61 = vadd.f32 %v25834_v51, %v23490_v3  ;;  %v25839_v51 = vld [vmem:[#allocation155_spill] sm:$0xff] }
 0x547   : > { %v23509_v52 = vpop.xlane.xlu0 %7543 }
 0x548   : > { %7585 = vmax.xlane.f32.xlu0 %v7584_v24  ;;  %v7605_v24 = vsel %vm7313_vm2, %v23507_v54, -inf  ;;  %v23548_v21 = vadd.f32 %v19877_v1, %v7126_v61  ;;  %v23560_v61 = vld [vmem:[#allocation8 + $0xf0] sm:$0xff] }
 0x54a   : > { %v19559_v26 = vpop.eup %19558 }
 0x54b   : > { %v23523_v55 = vpop.xlane.xlu0 %7549  ;;  %v8652_v20 = vmul.f32 %v19559_v26, %v23184_v27  ;;  %v7587_v27 = vsel %vm7313_vm2, %v23519_v44, -inf  ;;  %v19561_v8 = vpop.eup %19560 }
 0x54c   : > { %7606 = vmax.xlane.f32.xlu0 %v7605_v24 }
 0x54d   : > { %17442 = vmatprep.mubr.msk.f32.mxu1 %vm7313_vm2, %v8652_v20  ;;  %v7119_v20 = vadd.f32 %v23188_v10, %v25839_v51  ;;  %v25841_v10 = vld [vmem:[#allocation124_spill] sm:$0xff] }
 0x54e   : > { %v7120_v1 = vadd.f32 %v23155_v22, %v25841_v10  ;;  %v25845_v10 = vld [vmem:[#allocation142_spill] sm:$0xff] }
 0x54f   : > { %v19138_v19 = vpop.permute.xlu0 %19137 }
 0x550   : > { %v23542_v26 = vpop.f32.mrb[172].mxu1  ;;  %v19140_v24 = vunpack.i.h.bf16 %v19138_v19  ;;  %v19139_v29 = vunpack.i.l.bf16 %v19138_v19  ;;  %7588 = vmax.xlane.f32.xlu0 %v7587_v27  ;;  %v23554_v19 = vadd.f32 %v19878_v42, %v7129_v34  ;;  %v7614_v27 = vsel %vm7313_vm2, %v23536_v53, -inf  ;;  %v25843_v34 = vld [vmem:[#allocation126_spill] sm:$0xff] }
 0x551   : > { %25837 = vst [vmem:[#allocation19_spill] sm:$0xff] %v23542_v26  ;;  %v23544_v43 = vpop.f32.mrb[173].mxu1  ;;  %v7130_v26 = vadd.f32 %v25840_v9, %v23490_v3  ;;  %v7617_v9 = vsel %vm7313_vm2, %v23548_v21, -inf  ;;  %v8651_v42 = vmul.f32 %v19561_v8, %v25843_v34  ;;  %v25846_v8 = vld [vmem:[#allocation94_spill] sm:$0xff] }
 0x552   : > { %25838 = vst [vmem:[#allocation105_spill] sm:$0xff] %v23544_v43  ;;  %7573 = vmax.xlane.f32.xlu1 %v7572_v40  ;;  %v18467_v58 = vpack.c.bf16 %v19140_v24, %v19139_v29  ;;  %v19563_v43 = vpop.eup %19562  ;;  %v23563_v24 = vadd.f32 %v23560_v61, %v7119_v20  ;;  %v19880_v29 = vld [vmem:[#allocation8 + $0x48] sm:$0xff]  ;;  %v7626_v22 = vsel %vm7313_vm2, %v23554_v19, -inf  ;;  %v23576_v20 = vld [vmem:[#allocation8 + $0xf8] sm:$0xff] }
 0x553   : > { %v23568_v51 = vadd.f32 %v19880_v29, %v7130_v26  ;;  %v25844_v40 = vld [vmem:[#allocation119_spill] sm:$0xff]  ;;  %v8654_v53 = vmul.f32 %v19563_v43, %v25845_v10  ;;  %v7134_v26 = vadd.f32 %v25846_v8, %v23490_v3  ;;  %v25848_v43 = vld [vmem:[#allocation122_spill] sm:$0xff]  ;;  %v25852_v10 = vld [vmem:[#allocation148_spill] sm:$0xff] }
 0x554   : > { %18468 = vmatprep.subr.bf16.mxu0 %v18467_v58  ;;  %7615 = vmax.xlane.f32.xlu0 %v7614_v27  ;;  %25842 = vst [vmem:[#allocation21_spill] sm:$0xff] %v23563_v24  ;;  %v7133_v27 = vadd.f32 %v23473_v11, %v25844_v40 }
 0x555   : > { %18470 = vmatpush3.bf16.msra.mxu0 %v18467_v58  ;;  %v23579_v58 = vadd.f32 %v23576_v20, %v7120_v1  ;;  %v7629_v29 = vsel %vm7313_vm2, %v23568_v51, -inf  ;;  %v23600_v8 = vadd.f32 %v25852_v10, %v7134_v26 }
 0x556   : > { %7618 = vmax.xlane.f32.xlu1 %v7617_v9  ;;  %v7596_v9 = vsel %vm7313_vm2, %v23563_v24, -inf  ;;  %v23587_v34 = vadd.f32 %v23201_v38, %v7133_v27  ;;  %v25854_v27 = vld [vmem:[#allocation114_spill] sm:$0xff] }
 0x557   : > { %25853 = vst [vmem:[#allocation128_spill] sm:$0xff] %v23600_v8  ;;  %v7599_v38 = vsel %vm7313_vm2, %v23579_v58, -inf  ;;  %v7641_v10 = vsel %vm7313_vm2, %v23600_v8, -inf }
 0x558   : > { %17436 = vmatmul.mubr.msk.f32.vlgmr.msra.gmra.mrb[86].mxu0 %vm7313_vm2, %v8651_v42  ;;  %7627 = vmax.xlane.f32.xlu0 %v7626_v22  ;;  %25847 = vst [vmem:[#allocation133_spill] sm:$0xff] %v23587_v34  ;;  %v7137_v42 = vadd.f32 %v23473_v11, %v25848_v43  ;;  %v25851_v22 = vld [vmem:[#allocation125_spill] sm:$0xff] }
 0x559   : > { %17449 = vmatprep.mubr.msk.f32.mxu0 %vm7313_vm2, %v8654_v53  ;;  %v7123_v53 = vadd.f32 %v23473_v11, %v25851_v22 }
 0x55a   : > { %7597 = vmax.xlane.f32.xlu1 %v7596_v9  ;;  %v7138_v9 = vadd.f32 %v25854_v27, %v23490_v3  ;;  %v23607_v43 = vadd.f32 %v23309_v18, %v7137_v42  ;;  %v25859_v27 = vld [vmem:[#allocation129_spill] sm:$0xff] }
 0x55b   : > { %v7141_v18 = vadd.f32 %v23473_v11, %v25859_v27 }
 0x55c   : > { %v23593_v1 = vpop.f32.mrb[66].mxu0  ;;  %7630 = vmax.xlane.f32.xlu0 %v7629_v29  ;;  %25855 = vst [vmem:[#allocation32_spill] sm:$0xff] %v23607_v43  ;;  %v7638_v29 = vsel %vm7313_vm2, %v23587_v34, -inf  ;;  %v7650_v42 = vsel %vm7313_vm2, %v23607_v43, -inf }
 0x55d   : > { %25849 = vst [vmem:[#allocation56_spill] sm:$0xff] %v23593_v1  ;;  %v23595_v40 = vpop.f32.mrb[67].mxu0  ;;  %v25856_v1 = vld [vmem:[#allocation95_spill] sm:$0xff] }
 0x55e   : > { %25850 = vst [vmem:[#allocation76_spill] sm:$0xff] %v23595_v40  ;;  %7600 = vmax.xlane.f32.xlu1 %v7599_v38  ;;  %v7124_v22 = vadd.f32 %v25856_v1, %v23490_v3  ;;  %v19882_v40 = vld [vmem:[#allocation8 + $0x10] sm:$0xff]  ;;  %v23618_v38 = vadd.f32 %v23275_v49, %v7138_v9  ;;  %v23631_v49 = vadd.f32 %v23413_v45, %v7141_v18  ;;  %v25863_v9 = vld [vmem:[#allocation57_spill] sm:$0xff] }
 0x55f   : > { %v23613_v26 = vadd.f32 %v19882_v40, %v7123_v53  ;;  %v25861_v1 = vld [vmem:[#allocation108_spill] sm:$0xff]  ;;  %v25868_v18 = vld [vmem:[#allocation149_spill] sm:$0xff] }
 0x560   : > { %7639 = vmax.xlane.f32.xlu0 %v7638_v29  ;;  %25858 = vst [vmem:[#allocation78_spill] sm:$0xff] %v23618_v38  ;;  %v19883_v29 = vld [vmem:[#allocation8 + $0x18] sm:$0xff]  ;;  %v7142_v40 = vadd.f32 %v25861_v1, %v23490_v3  ;;  %25862 = vst [vmem:[#allocation54_spill] sm:$0xff] %v23631_v49  ;;  %v7653_v27 = vsel %vm7313_vm2, %v23618_v38, -inf  ;;  %v25872_v38 = vld [vmem:[#allocation92_spill] sm:$0xff] }
 0x561   : > { %25857 = vst [vmem:[#allocation71_spill] sm:$0xff] %v23613_v26  ;;  %v23624_v24 = vadd.f32 %v19883_v29, %v7124_v22  ;;  %v7608_v53 = vsel %vm7313_vm2, %v23613_v26, -inf  ;;  %v25867_v26 = vld [vmem:[#allocation27_spill] sm:$0xff] }
 0x562   : > { %7642 = vmax.xlane.f32.xlu1 %v7641_v10  ;;  %v7145_v10 = vadd.f32 %v23473_v11, %v25863_v9  ;;  %v23640_v29 = vadd.f32 %v23394_v36, %v7142_v40  ;;  %v7146_v9 = vadd.f32 %v25868_v18, %v23490_v3  ;;  %v25871_v40 = vld [vmem:[#allocation147_spill] sm:$0xff]  ;;  %v25875_v18 = vld [vmem:[#allocation130_spill] sm:$0xff] }
 0x563   : > { %25860 = vst [vmem:[#allocation25_spill] sm:$0xff] %v23624_v24  ;;  %v7611_v1 = vsel %vm7313_vm2, %v23624_v24, -inf  ;;  %v7763_v8 = vsub.f32 %v25872_v38, %v25871_v40 }
 0x564   : > { %7651 = vmax.xlane.f32.xlu0 %v7650_v42  ;;  %v25864_v42 = vld [vmem:[#allocation116_spill] sm:$0xff]  ;;  %25865 = vst [vmem:[#allocation51_spill] sm:$0xff] %v23640_v29  ;;  %v23649_v43 = vadd.f32 %v23424_v7, %v7145_v10  ;;  %v23665_v10 = vadd.f32 %v23433_v37, %v7146_v9  ;;  %v25879_v37 = vld [vmem:[#allocation134_spill] sm:$0xff] }
 0x565   : > { %v7127_v22 = vadd.f32 %v23473_v11, %v25864_v42  ;;  %v25870_v42 = vld [vmem:[#allocation98_spill] sm:$0xff]  ;;  %v7956_v40 = vmul.f32 1.442695, %v7763_v8  ;;  %v7150_v9 = vadd.f32 %v25879_v37, %v23490_v3 }
 0x566   : > { %7609 = vmax.xlane.f32.xlu1 %v7608_v53  ;;  %v25866_v53 = vld [vmem:[#allocation150_spill] sm:$0xff]  ;;  %25869 = vst [vmem:[#allocation43_spill] sm:$0xff] %v23649_v43  ;;  %v7128_v36 = vadd.f32 %v25870_v42, %v23490_v3  ;;  %25874 = vst [vmem:[#allocation118_spill] sm:$0xff] %v23665_v10  ;;  %v7149_v42 = vadd.f32 %v23473_v11, %v25875_v18  ;;  %v7674_v38 = vsel %vm7313_vm2, %v23649_v43, -inf  ;;  %v7677_v8 = vsel %vm7313_vm2, %v23665_v10, -inf  ;;  %v25887_v10 = vld [vmem:[#allocation99_spill] sm:$0xff] }
 0x567   : > { %v7762_v45 = vsub.f32 %v25867_v26, %v25866_v53  ;;  %v19884_v26 = vld [vmem:[#allocation8 + $0x30] sm:$0xff]  ;;  %v7665_v53 = vsel %vm7313_vm2, %v23640_v29, -inf  ;;  %v7131_v18 = vadd.f32 %v23473_v11, %v25880_v56  ;;  %v23696_v56 = vadd.f32 %v23475_v32, %v7150_v9  ;;  %v25886_v43 = vld [vmem:[#allocation110_spill] sm:$0xff]  ;;  %v25892_v9 = vld [vmem:[#allocation81_spill] sm:$0xff] }
 0x568   : > { %7654 = vmax.xlane.f32.xlu0 %v7653_v27  ;;  %v7662_v27 = vsel %vm7313_vm2, %v23631_v49, -inf  ;;  %v25891_v32 = vld [vmem:[#allocation146_spill] sm:$0xff] }
 0x569   : > { %v7954_v7 = vmul.f32 1.442695, %v7762_v45  ;;  %v25878_v45 = vld [vmem:[#allocation121_spill] sm:$0xff]  ;;  %25885 = vst [vmem:[#allocation70_spill] sm:$0xff] %v23696_v56  ;;  %v7767_v34 = vsub.f32 %v25892_v9, %v25891_v32 }
 0x56a   : > { %7612 = vmax.xlane.f32.xlu1 %v7611_v1  ;;  %v23659_v1 = vadd.f32 %v19884_v26, %v7127_v22  ;;  %v19885_v22 = vld [vmem:[#allocation8 + $0x38] sm:$0xff] }
 0x56b   : > { %v25877_v26 = vld [vmem:[#allocation61_spill] sm:$0xff]  ;;  %19568 = vpow2.f32 %v7954_v7  ;;  %v7964_v32 = vmul.f32 1.442695, %v7767_v34  ;;  %v25898_v34 = vld [vmem:[#allocation139_spill] sm:$0xff] }
 0x56c   : > { %7663 = vmax.xlane.f32.xlu0 %v7662_v27  ;;  %25873 = vst [vmem:[#allocation68_spill] sm:$0xff] %v23659_v1  ;;  %v23672_v27 = vadd.f32 %v19885_v22, %v7128_v36  ;;  %v7764_v29 = vsub.f32 %v25878_v45, %v25877_v26  ;;  %v23685_v36 = vadd.f32 %v23464_v41, %v7149_v42  ;;  %19570 = vpow2.f32 %v7956_v40  ;;  %v25883_v22 = vld [vmem:[#allocation101_spill] sm:$0xff] }
 0x56d   : > { %v23657_v24 = vpop.xlane.xlu1 %7552  ;;  %v7766_v40 = vsub.f32 %v25887_v10, %v25886_v43  ;;  %v19887_v10 = vld [vmem:[#allocation8 + $0x58] sm:$0xff] }
 0x56e   : > { %7666 = vmax.xlane.f32.xlu1 %v7665_v53  ;;  %25876 = vst [vmem:[#allocation30_spill] sm:$0xff] %v23672_v27  ;;  %v7620_v53 = vsel %vm7313_vm2, %v23659_v1, -inf  ;;  %25881 = vst [vmem:[#allocation82_spill] sm:$0xff] %v23685_v36  ;;  %v7958_v45 = vmul.f32 1.442695, %v7764_v29  ;;  %v7623_v7 = vsel %vm7313_vm2, %v23672_v27, -inf  ;;  %v19565_v27 = vpop.eup %19564 }
 0x56f   : > { %v19886_v29 = vld [vmem:[#allocation8 + $0x50] sm:$0xff]  ;;  %v19567_v43 = vpop.eup %19566 }
 0x570   : > { %7675 = vmax.xlane.f32.xlu0 %v7674_v38  ;;  %v25882_v38 = vld [vmem:[#allocation60_spill] sm:$0xff]  ;;  %19572 = vpow2.f32 %v7958_v45 }
 0x571   : > { %v23676_v62 = vpop.xlane.xlu1 %7558  ;;  %v7765_v26 = vsub.f32 %v25883_v22, %v25882_v38  ;;  %v7686_v38 = vsel %vm7313_vm2, %v23685_v36, -inf }
 0x572   : > { %7621 = vmax.xlane.f32.xlu1 %v7620_v53  ;;  %v25884_v53 = vld [vmem:[#allocation137_spill] sm:$0xff] }
 0x573   : > { %v7132_v1 = vadd.f32 %v25884_v53, %v23490_v3 }
 0x574   : > { %7678 = vmax.xlane.f32.xlu0 %v7677_v8  ;;  %v23702_v8 = vadd.f32 %v19886_v29, %v7131_v18  ;;  %v7689_v18 = vsel %vm7313_vm2, %v23696_v56, -inf  ;;  %v7962_v29 = vmul.f32 1.442695, %v7766_v40 }
 0x575   : > { %v19143_v37 = vpop.permute.xlu1 %19142 }
 0x576   : > { %v19145_v41 = vunpack.i.h.bf16 %v19143_v37  ;;  %v19144_v42 = vunpack.i.l.bf16 %v19143_v37  ;;  %7624 = vmax.xlane.f32.xlu1 %v7623_v7  ;;  %25889 = vst [vmem:[#allocation48_spill] sm:$0xff] %v23702_v8  ;;  %v7960_v37 = vmul.f32 1.442695, %v7765_v26  ;;  %v23710_v7 = vadd.f32 %v19887_v10, %v7132_v1  ;;  %v25895_v26 = vld [vmem:[#allocation140_spill] sm:$0xff]  ;;  %v25896_v1 = vld [vmem:[#allocation91_spill] sm:$0xff] }
 0x577   : > { %v23700_v49 = vpop.f32.mrb[174].mxu1  ;;  %v8653_v45 = vmul.f32 %v19565_v27, %v25895_v26  ;;  %v7768_v9 = vsub.f32 %v25896_v1, %v23209_v12  ;;  %v25897_v10 = vld [vmem:[#allocation23_spill] sm:$0xff]  ;;  %v7136_v27 = vadd.f32 %v25898_v34, %v23490_v3 }
 0x578   : > { %25888 = vst [vmem:[#allocation53_spill] sm:$0xff] %v23700_v49  ;;  %v23706_v22 = vpop.f32.mrb[175].mxu1  ;;  %v18471_v53 = vpack.c.bf16 %v19145_v41, %v19144_v42  ;;  %7687 = vmax.xlane.f32.xlu0 %v7686_v38  ;;  %25893 = vst [vmem:[#allocation62_spill] sm:$0xff] %v23710_v7  ;;  %v25894_v49 = vld [vmem:[#allocation52_spill] sm:$0xff]  ;;  %v7632_v42 = vsel %vm7313_vm2, %v23702_v8, -inf  ;;  %v23719_v38 = vpop.eup %19568  ;;  %19574 = vpow2.f32 %v7960_v37  ;;  %v8656_v40 = vmul.f32 %v19567_v43, %v25897_v10  ;;  %v25899_v37 = vld [vmem:[#allocation113_spill] sm:$0xff] }
 0x579   : > { %25890 = vst [vmem:[#allocation85_spill] sm:$0xff] %v23706_v22  ;;  %v7135_v41 = vadd.f32 %v23473_v11, %v25894_v49  ;;  %v7635_v49 = vsel %vm7313_vm2, %v23710_v7, -inf  ;;  %19576 = vpow2.f32 %v7962_v29  ;;  %v8274_v12 = vsel %vm7313_vm2, %v23719_v38, 0.0  ;;  %v25901_v43 = vld [vmem:[#allocation33_spill] sm:$0xff] }
 0x57a   : > { %18472 = vmatprep.subr.bf16.mxu1 %v18471_v53  ;;  %7690 = vmax.xlane.f32.xlu1 %v7689_v18  ;;  %19578 = vpow2.f32 %v7964_v32  ;;  %v23749_v32 = vadd.f32 %v23266_v39, %v7136_v27 }
 0x57b   : > { %18474 = vmatpush3.bf16.msra.mxu1 %v18471_v53  ;;  %v23727_v53 = vpop.eup %19570  ;;  %v23733_v18 = vadd.f32 %v25899_v37, %v7135_v41  ;;  %19580 = vrcp.f32 %v23420_v46  ;;  %v25907_v37 = vld [vmem:[#allocation63_spill] sm:$0xff] }
 0x57c   : > { %7633 = vmax.xlane.f32.xlu0 %v7632_v42  ;;  %v25902_v42 = vld [vmem:[#allocation109_spill] sm:$0xff]  ;;  %v8277_v29 = vsel %vm7313_vm2, %v23727_v53, 0.0  ;;  %v23743_v10 = vpop.eup %19572  ;;  %25905 = vst [vmem:[#allocation88_spill] sm:$0xff] %v23749_v32 }
 0x57d   : > { %25900 = vst [vmem:[#allocation107_spill] sm:$0xff] %v23733_v18  ;;  %v7769_v26 = vsub.f32 %v25902_v42, %v25901_v43  ;;  %v8280_v46 = vsel %vm7313_vm2, %v23743_v10, 0.0 }
 0x57e   : > { %17443 = vmatmul.mubr.msk.f32.vlgmr.msra.gmra.mrb[194].mxu1 %vm7313_vm2, %v8653_v45  ;;  %7636 = vmax.xlane.f32.xlu1 %v7635_v49  ;;  %v7966_v45 = vmul.f32 1.442695, %v7768_v9  ;;  %v25904_v49 = vld [vmem:[#allocation115_spill] sm:$0xff]  ;;  %v7644_v9 = vsel %vm7313_vm2, %v23733_v18, -inf }
 0x57f   : > { %17456 = vmatprep.mubr.msk.f32.mxu1 %vm7313_vm2, %v8656_v40  ;;  %v25903_v40 = vld [vmem:[#allocation103_spill] sm:$0xff]  ;;  %v7968_v42 = vmul.f32 1.442695, %v7769_v26 }
 0x580   : > { %v23739_v1 = vpop.xlane.xlu0 %7555  ;;  %8275 = vadd.xlane.f32.xlu0 %v8274_v12  ;;  %v7770_v41 = vsub.f32 %v25904_v49, %v25903_v40  ;;  %v25908_v12 = vld [vmem:[#allocation66_spill] sm:$0xff]  ;;  %19582 = vpow2.f32 %v7966_v45 }
 0x581   : > { %v7771_v43 = vsub.f32 %v25908_v12, %v25907_v37  ;;  %v7647_v37 = vsel %vm7313_vm2, %v23749_v32, -inf  ;;  %19584 = vpow2.f32 %v7968_v42  ;;  %v25913_v32 = vld [vmem:[#allocation153_spill] sm:$0xff] }
 0x582   : > { %8278 = vadd.xlane.f32.xlu1 %v8277_v29  ;;  %v23763_v39 = vpop.eup %19574  ;;  %v7970_v27 = vmul.f32 1.442695, %v7770_v41  ;;  %v25910_v29 = vld [vmem:[#allocation144_spill] sm:$0xff] }
 0x583   : > { %v7139_v49 = vadd.f32 %v23473_v11, %v25910_v29  ;;  %v23769_v26 = vpop.eup %19576  ;;  %v7972_v45 = vmul.f32 1.442695, %v7771_v43  ;;  %v8283_v41 = vsel %vm7313_vm2, %v23763_v39, 0.0  ;;  %v7140_v43 = vadd.f32 %v25913_v32, %v23490_v3 }
 0x584   : > { %v23751_v34 = vpop.f32.mrb[68].mxu0  ;;  %v23757_v22 = vpop.xlane.xlu0 %7561  ;;  %7645 = vmax.xlane.f32.xlu0 %v7644_v9  ;;  %v25911_v9 = vld [vmem:[#allocation59_spill] sm:$0xff]  ;;  %19586 = vpow2.f32 %v7970_v27  ;;  %v25916_v27 = vld [vmem:[#allocation132_spill] sm:$0xff] }
 0x585   : > { %25906 = vst [vmem:[#allocation29_spill] sm:$0xff] %v23751_v34  ;;  %v23759_v40 = vpop.f32.mrb[69].mxu0  ;;  %v7772_v12 = vsub.f32 %v25911_v9, %v23238_v48  ;;  %v23782_v42 = vadd.f32 %v23322_v17, %v7139_v49  ;;  %v8286_v48 = vsel %vm7313_vm2, %v23769_v26, 0.0  ;;  %19588 = vpow2.f32 %v7972_v45 }
 0x586   : > { %25909 = vst [vmem:[#allocation26_spill] sm:$0xff] %v23759_v40  ;;  %8281 = vadd.xlane.f32.xlu1 %v8280_v46  ;;  %v23775_v46 = vpop.eup %19578  ;;  %v23795_v17 = vadd.f32 %v23378_v57, %v7140_v43  ;;  %v25920_v57 = vld [vmem:[#allocation55_spill] sm:$0xff] }
 0x587   : > { %25914 = vst [vmem:[#allocation50_spill] sm:$0xff] %v23782_v42  ;;  %v19581_v9 = vpop.eup %19580  ;;  %v7974_v8 = vmul.f32 1.442695, %v7772_v12  ;;  %v8289_v32 = vsel %vm7313_vm2, %v23775_v46, 0.0  ;;  %v7143_v43 = vadd.f32 %v23473_v11, %v25920_v57 }
 0x588   : > { %v19148_v34 = vpop.permute.xlu0 %19147  ;;  %7648 = vmax.xlane.f32.xlu0 %v7647_v37  ;;  %25917 = vst [vmem:[#allocation40_spill] sm:$0xff] %v23795_v17 }
 0x589   : > { %v19150_v40 = vunpack.i.h.bf16 %v19148_v34  ;;  %v19149_v18 = vunpack.i.l.bf16 %v19148_v34  ;;  %19590 = vpow2.f32 %v7974_v8 }
 0x58a   : > { %8284 = vadd.xlane.f32.xlu1 %v8283_v41  ;;  %v7773_v41 = vsub.f32 %v25916_v27, %v23349_v13  ;;  %v25919_v13 = vld [vmem:[#allocation65_spill] sm:$0xff] }
 0x58b   : > { %v23777_v29 = vpop.f32.mrb[176].mxu1  ;;  %v18475_v34 = vpack.c.bf16 %v19150_v40, %v19149_v18  ;;  %v7656_v18 = vsel %vm7313_vm2, %v23782_v42, -inf  ;;  %v25918_v40 = vld [vmem:[#allocation138_spill] sm:$0xff]  ;;  %v7774_v12 = vsub.f32 %v25919_v13, %v23509_v52  ;;  %v25921_v52 = vld [vmem:[#allocation151_spill] sm:$0xff] }
 0x58c   : > { %25912 = vst [vmem:[#allocation18_spill] sm:$0xff] %v23777_v29  ;;  %v23786_v37 = vpop.f32.mrb[177].mxu1  ;;  %8287 = vadd.xlane.f32.xlu0 %v8286_v48  ;;  %v23792_v29 = vpop.eup %19582  ;;  %v8655_v49 = vmul.f32 %v19581_v9, %v25918_v40  ;;  %v7976_v45 = vmul.f32 1.442695, %v7773_v41  ;;  %v7659_v9 = vsel %vm7313_vm2, %v23795_v17, -inf  ;;  %v7775_v27 = vsub.f32 %v25921_v52, %v23469_v16  ;;  %v25947_v17 = vld [vmem:[#allocation22_spill] sm:$0xff] }
 0x58d   : > { %25915 = vst [vmem:[#allocation20_spill] sm:$0xff] %v23786_v37  ;;  %18476 = vmatprep.subr.bf16.mxu0 %v18475_v34  ;;  %v8292_v48 = vsel %vm7313_vm2, %v23792_v29, 0.0  ;;  %v7978_v41 = vmul.f32 1.442695, %v7774_v12 }
 0x58e   : > { %18478 = vmatpush3.bf16.msra.mxu0 %v18475_v34  ;;  %8290 = vadd.xlane.f32.xlu1 %v8289_v32  ;;  %v23805_v34 = vpop.eup %19584  ;;  %19592 = vpow2.f32 %v7976_v45  ;;  %v7980_v12 = vmul.f32 1.442695, %v7775_v27 }
 0x58f   : > { %v23811_v8 = vpop.eup %19586  ;;  %v8295_v32 = vsel %vm7313_vm2, %v23805_v34, 0.0  ;;  %19594 = vpow2.f32 %v7978_v41 }
 0x590   : > { %7657 = vmax.xlane.f32.xlu0 %v7656_v18  ;;  %v23817_v18 = vpop.eup %19588  ;;  %v8298_v45 = vsel %vm7313_vm2, %v23811_v8, 0.0  ;;  %19596 = vpow2.f32 %v7980_v12 }
 0x591   : > { %17450 = vmatmul.mubr.msk.f32.vlgmr.msra.gmra.mrb[88].mxu0 %vm7313_vm2, %v8655_v49  ;;  %v25923_v49 = vld [vmem:[#allocation131_spill] sm:$0xff]  ;;  %v8301_v57 = vsel %vm7313_vm2, %v23817_v18, 0.0  ;;  %19598 = vrcp.f32 %v23453_v63 }
 0x592   : > { %8293 = vadd.xlane.f32.xlu1 %v8292_v48  ;;  %v7144_v13 = vadd.f32 %v25923_v49, %v23490_v3  ;;  %v23824_v48 = vadd.f32 %v23528_v23, %v7143_v43  ;;  %v25935_v63 = vld [vmem:[#allocation35_spill] sm:$0xff] }
 0x594   : > { %7660 = vmax.xlane.f32.xlu0 %v7659_v9  ;;  %25924 = vst [vmem:[#allocation46_spill] sm:$0xff] %v23824_v48  ;;  %v23832_v9 = vpop.eup %19590  ;;  %v23835_v52 = vadd.f32 %v23446_v35, %v7144_v13  ;;  %v7668_v23 = vsel %vm7313_vm2, %v23824_v48, -inf }
 0x595   : > { %v8304_v43 = vsel %vm7313_vm2, %v23832_v9, 0.0 }
 0x596   : > { %8296 = vadd.xlane.f32.xlu1 %v8295_v32  ;;  %25926 = vst [vmem:[#allocation117_spill] sm:$0xff] %v23835_v52  ;;  %v7671_v32 = vsel %vm7313_vm2, %v23835_v52, -inf }
 0x597   : > { %v23819_v40 = vpop.f32.mrb[178].mxu1 }
 0x598   : > { %25922 = vst [vmem:[#allocation28_spill] sm:$0xff] %v23819_v40  ;;  %v23828_v16 = vpop.f32.mrb[179].mxu1  ;;  %8299 = vadd.xlane.f32.xlu0 %v8298_v45  ;;  %v23841_v27 = vpop.eup %19592 }
 0x599   : > { %25925 = vst [vmem:[#allocation24_spill] sm:$0xff] %v23828_v16  ;;  %v8307_v35 = vsel %vm7313_vm2, %v23841_v27, 0.0  ;;  %v23851_v13 = vpop.eup %19594 }
 0x59a   : > { %8302 = vadd.xlane.f32.xlu1 %v8301_v57  ;;  %v8310_v57 = vsel %vm7313_vm2, %v23851_v13, 0.0 }
 0x59c   : > { %7669 = vmax.xlane.f32.xlu0 %v7668_v23  ;;  %v23859_v23 = vpop.eup %19596 }
 0x59d   : > { %25931 = vst [vmem:[#allocation112_spill] sm:$0xff] %v23859_v23  ;;  %v19599_v37 = vpop.eup %19598 }
 0x59e   : > { %8305 = vadd.xlane.f32.xlu1 %v8304_v43 }
 0x59f   : > { %v23843_v41 = vpop.f32.mrb[180].mxu1 }
 0x5a0   : > { %25927 = vst [vmem:[#allocation73_spill] sm:$0xff] %v23843_v41  ;;  %v23847_v49 = vpop.f32.mrb[181].mxu1  ;;  %7672 = vmax.xlane.f32.xlu0 %v7671_v32  ;;  %v8313_v32 = vsel %vm7313_vm2, %v23859_v23, 0.0 }
 0x5a1   : > { %25928 = vst [vmem:[#allocation102_spill] sm:$0xff] %v23847_v49 }
 0x5a2   : > { %8308 = vadd.xlane.f32.xlu1 %v8307_v35 }
 0x5a4   : > { %v23853_v45 = vpop.f32.mrb[70].mxu0 }
 0x5a5   : > { %25929 = vst [vmem:[#allocation106_spill] sm:$0xff] %v23853_v45  ;;  %v23855_v12 = vpop.f32.mrb[71].mxu0 }
 0x5a6   : > { %25930 = vst [vmem:[#allocation104_spill] sm:$0xff] %v23855_v12  ;;  %v23861_v43 = vpop.xlane.xlu1 %7564  ;;  %8311 = vadd.xlane.f32.xlu1 %v8310_v57  ;;  %v25934_v57 = vld [vmem:[#allocation152_spill] sm:$0xff] }
 0x5a7   : > { %v8657_v52 = vmul.f32 %v19599_v37, %v25934_v57 }
 0x5aa   : > { %v23866_v41 = vpop.xlane.xlu1 %7570  ;;  %8314 = vadd.xlane.f32.xlu1 %v8313_v32 }
 0x5ae   : > { %v19153_v35 = vpop.permute.xlu1 %19152 }
 0x5af   : > { %v19155_v49 = vunpack.i.h.bf16 %v19153_v35  ;;  %v19154_v40 = vunpack.i.l.bf16 %v19153_v35 }
 0x5b0   : > { %v23868_v16 = vpop.f32.mrb[72].mxu0 }
 0x5b1   : > { %25932 = vst [vmem:[#allocation90_spill] sm:$0xff] %v23868_v16  ;;  %v23870_v45 = vpop.f32.mrb[73].mxu0  ;;  %v18479_v12 = vpack.c.bf16 %v19155_v49, %v19154_v40  ;;  %v25939_v40 = vld [vmem:[#allocation34_spill] sm:$0xff] }
 0x5b2   : > { %25933 = vst [vmem:[#allocation120_spill] sm:$0xff] %v23870_v45 }
 0x5b3   : > { %18480 = vmatprep.subr.bf16.mxu1 %v18479_v12 }
 0x5b4   : > { %18482 = vmatpush3.bf16.msra.mxu1 %v18479_v12 }
 0x5b6   : > { %19157 = vrot.lane.b32.xlu0 %v25935_v63, %s20116_s29 }
 0x5b7   : > { %17457 = vmatmul.mubr.msk.f32.vlgmr.msra.gmra.mrb[196].mxu1 %vm7313_vm2, %v8657_v52 }
 0x5b8   : > { %v23876_v48 = vpop.f32.mrb[74].mxu0 }
 0x5b9   : > { %25936 = vst [vmem:[#allocation127_spill] sm:$0xff] %v23876_v48  ;;  %v23878_v32 = vpop.xlane.xlu0 %7567  ;;  %v23880_v35 = vpop.f32.mrb[75].mxu0 }
 0x5ba   : > { %25937 = vst [vmem:[#allocation84_spill] sm:$0xff] %v23880_v35 }
 0x5bb   : > { %v23882_v16 = vpop.f32.mrb[182].mxu1  ;;  %19162 = vrot.lane.b32.xlu1 %v25939_v40, %s20116_s29 }
 0x5bc   : > { %25938 = vst [vmem:[#allocation143_spill] sm:$0xff] %v23882_v16  ;;  %v23886_v49 = vpop.f32.mrb[183].mxu1  ;;  %v7777_v16 = vsub.f32 %v23269_v25, %v23657_v24  ;;  %v7778_v25 = vsub.f32 %v23312_v60, %v23739_v1 }
 0x5bd   : > { %25940 = vst [vmem:[#allocation155_spill] sm:$0xff] %v23886_v49  ;;  %v23888_v12 = vpop.xlane.xlu0 %7579 }
 0x5bf   : > { %v23890_v37 = vpop.f32.mrb[76].mxu0 }
 0x5c0   : > { %25941 = vst [vmem:[#allocation141_spill] sm:$0xff] %v23890_v37  ;;  %v23892_v57 = vpop.f32.mrb[77].mxu0  ;;  %v7776_v37 = vsub.f32 %v25947_v17, %v23523_v55 }
 0x5c1   : > { %25942 = vst [vmem:[#allocation124_spill] sm:$0xff] %v23892_v57  ;;  %v23894_v52 = vpop.xlane.xlu0 %7582  ;;  %v7984_v57 = vmul.f32 1.442695, %v7777_v16  ;;  %v7779_v16 = vsub.f32 %v23278_v4, %v23676_v62 }
 0x5c2   : > { %v7982_v36 = vmul.f32 1.442695, %v7776_v37 }
 0x5c3   : > { %v23896_v45 = vpop.f32.mrb[184].mxu1  ;;  %19600 = vpow2.f32 %v7984_v57  ;;  %v7988_v57 = vmul.f32 1.442695, %v7779_v16 }
 0x5c4   : > { %25943 = vst [vmem:[#allocation126_spill] sm:$0xff] %v23896_v45  ;;  %v23898_v48 = vpop.f32.mrb[185].mxu1  ;;  %v25949_v45 = vld [vmem:[#allocation154_spill] sm:$0xff]  ;;  %19602 = vpow2.f32 %v7982_v36 }
 0x5c5   : > { %25944 = vst [vmem:[#allocation119_spill] sm:$0xff] %v23898_v48  ;;  %v23900_v35 = vpop.xlane.xlu0 %7576  ;;  %v7147_v48 = vadd.f32 %v23473_v11, %v25949_v45  ;;  %v7986_v45 = vmul.f32 1.442695, %v7778_v25 }
 0x5c7   : > { %v23904_v42 = vpop.f32.mrb[78].mxu0  ;;  %v23925_v17 = vadd.f32 %v23493_v5, %v7147_v48  ;;  %19604 = vpow2.f32 %v7986_v45 }
 0x5c8   : > { %25945 = vst [vmem:[#allocation142_spill] sm:$0xff] %v23904_v42  ;;  %v23906_v49 = vpop.f32.mrb[79].mxu0  ;;  %v25951_v42 = vld [vmem:[#allocation58_spill] sm:$0xff]  ;;  %19606 = vpow2.f32 %v7988_v57 }
 0x5c9   : > { %25946 = vst [vmem:[#allocation94_spill] sm:$0xff] %v23906_v49  ;;  %v23910_v40 = vpop.xlane.xlu0 %7591  ;;  %v7148_v55 = vadd.f32 %v25951_v42, %v23490_v3  ;;  %25952 = vst [vmem:[#allocation148_spill] sm:$0xff] %v23925_v17  ;;  %v7680_v1 = vsel %vm7313_vm2, %v23925_v17, -inf }
 0x5cb   : > { %v23912_v7 = vpop.f32.mrb[186].mxu1  ;;  %v23932_v37 = vadd.f32 %v23516_v50, %v7148_v55 }
 0x5cc   : > { %25948 = vst [vmem:[#allocation122_spill] sm:$0xff] %v23912_v7  ;;  %v23916_v56 = vpop.f32.mrb[187].mxu1 }
 0x5cd   : > { %25950 = vst [vmem:[#allocation125_spill] sm:$0xff] %v23916_v56  ;;  %v23920_v24 = vpop.xlane.xlu0 %7594  ;;  %25953 = vst [vmem:[#allocation114_spill] sm:$0xff] %v23932_v37  ;;  %v7683_v50 = vsel %vm7313_vm2, %v23932_v37, -inf  ;;  %v23948_v62 = vpop.eup %19600 }
 0x5ce   : > { %25958 = vst [vmem:[#allocation116_spill] sm:$0xff] %v23948_v62  ;;  %v23952_v25 = vpop.eup %19602  ;;  %v8319_v55 = vsel %vm7313_vm2, %v23948_v62, 0.0 }
 0x5cf   : > { %25959 = vst [vmem:[#allocation150_spill] sm:$0xff] %v23952_v25  ;;  %v8316_v45 = vsel %vm7313_vm2, %v23952_v25, 0.0 }
 0x5d1   : > { %v23929_v7 = vpop.xlane.xlu0 %7603 }
 0x5d4   : > { %v23934_v60 = vpop.f32.mrb[80].mxu0 }
 0x5d5   : > { %25954 = vst [vmem:[#allocation95_spill] sm:$0xff] %v23934_v60  ;;  %v23938_v42 = vpop.xlane.xlu0 %7585  ;;  %v23940_v5 = vpop.f32.mrb[81].mxu0  ;;  %7681 = vmax.xlane.f32.xlu0 %v7680_v1 }
 0x5d6   : > { %25955 = vst [vmem:[#allocation129_spill] sm:$0xff] %v23940_v5  ;;  %v23960_v1 = vpop.eup %19604 }
 0x5d7   : > { %v23942_v36 = vpop.f32.mrb[188].mxu1  ;;  %25960 = vst [vmem:[#allocation27_spill] sm:$0xff] %v23960_v1  ;;  %v8322_v60 = vsel %vm7313_vm2, %v23960_v1, 0.0  ;;  %v23972_v5 = vpop.eup %19606 }
 0x5d8   : > { %25956 = vst [vmem:[#allocation108_spill] sm:$0xff] %v23942_v36  ;;  %v23944_v4 = vpop.f32.mrb[189].mxu1  ;;  %25963 = vst [vmem:[#allocation147_spill] sm:$0xff] %v23972_v5  ;;  %v8325_v49 = vsel %vm7313_vm2, %v23972_v5, 0.0 }
 0x5d9   : > { %25957 = vst [vmem:[#allocation57_spill] sm:$0xff] %v23944_v4  ;;  %v23950_v48 = vpop.xlane.xlu0 %7606  ;;  %7684 = vmax.xlane.f32.xlu0 %v7683_v50 }
 0x5dd   : > { %v23956_v16 = vpop.xlane.xlu0 %7588  ;;  %8320 = vadd.xlane.f32.xlu0 %v8319_v55 }
 0x5df   : > { %v23962_v36 = vpop.xlane.xlu1 %7573  ;;  %8317 = vadd.xlane.f32.xlu1 %v8316_v45 }
 0x5e0   : > { %v23964_v57 = vpop.f32.mrb[82].mxu0 }
 0x5e1   : > { %25961 = vst [vmem:[#allocation149_spill] sm:$0xff] %v23964_v57  ;;  %v23966_v4 = vpop.xlane.xlu0 %7615  ;;  %v23968_v50 = vpop.f32.mrb[83].mxu0 }
 0x5e2   : > { %25962 = vst [vmem:[#allocation98_spill] sm:$0xff] %v23968_v50 }
 0x5e3   : > { %v23974_v55 = vpop.xlane.xlu1 %7618  ;;  %8323 = vadd.xlane.f32.xlu1 %v8322_v60 }
 0x5e5   : > { %v23976_v56 = vpop.xlane.xlu0 %7627 }
 0x5e7   : > { %v23980_v45 = vpop.xlane.xlu1 %7597  ;;  %8326 = vadd.xlane.f32.xlu1 %v8325_v49  ;;  %v25973_v49 = vld [vmem:[#allocation38_spill] sm:$0xff] }
 0x5e8   : > { %25964 = vst [vmem:[#allocation92_spill] sm:$0xff] %v23980_v45  ;;  %v23982_v57 = vpop.f32.mrb[190].mxu1 }
 0x5e9   : > { %25965 = vst [vmem:[#allocation130_spill] sm:$0xff] %v23982_v57  ;;  %v23984_v37 = vpop.xlane.xlu0 %7630  ;;  %v23986_v50 = vpop.f32.mrb[191].mxu1 }
 0x5ea   : > { %25966 = vst [vmem:[#allocation61_spill] sm:$0xff] %v23986_v50  ;;  %v23988_v17 = vpop.f32.mrb[84].mxu0 }
 0x5eb   : > { %25967 = vst [vmem:[#allocation121_spill] sm:$0xff] %v23988_v17  ;;  %v23990_v63 = vpop.xlane.xlu1 %7600  ;;  %v23992_v62 = vpop.f32.mrb[85].mxu0  ;;  %v25976_v17 = vld [vmem:[#allocation42_spill] sm:$0xff] }
 0x5ec   : > { %25968 = vst [vmem:[#allocation134_spill] sm:$0xff] %v23992_v62 }
 0x5ed   : > { %v23994_v60 = vpop.xlane.xlu0 %7639 }
 0x5ee   : > { %25969 = vst [vmem:[#allocation136_spill] sm:$0xff] %v23994_v60 }
 0x5ef   : > { %v23996_v1 = vpop.xlane.xlu1 %7642 }
 0x5f0   : > { %25970 = vst [vmem:[#allocation60_spill] sm:$0xff] %v23996_v1 }
 0x5f1   : > { %v23998_v5 = vpop.xlane.xlu0 %7651 }
 0x5f2   : > { %25971 = vst [vmem:[#allocation101_spill] sm:$0xff] %v23998_v5 }
 0x5f3   : > { %v24000_v23 = vpop.xlane.xlu1 %7609  ;;  %19167 = vrot.lane.b32.xlu0 %v25973_v49, %s20116_s29  ;;  %v7781_v49 = vsub.f32 %v23381_v59, %v23861_v43  ;;  %v25988_v59 = vld [vmem:[#allocation145_spill] sm:$0xff] }
 0x5f4   : > { %25972 = vst [vmem:[#allocation137_spill] sm:$0xff] %v24000_v23  ;;  %v7152_v43 = vadd.f32 %v25988_v59, %v23490_v3 }
 0x5f5   : > { %v24004_v57 = vpop.xlane.xlu0 %7654 }
 0x5f6   : > { %25974 = vst [vmem:[#allocation110_spill] sm:$0xff] %v24004_v57 }
 0x5f7   : > { %v24006_v50 = vpop.xlane.xlu1 %7612 }
 0x5f8   : > { %25975 = vst [vmem:[#allocation99_spill] sm:$0xff] %v24006_v50  ;;  %19172 = vrot.lane.b32.xlu1 %v25976_v17, %s20116_s29  ;;  %v7780_v17 = vsub.f32 %v23325_v2, %v23757_v22 }
 0x5f9   : > { %v24010_v45 = vpop.xlane.xlu0 %7663 }
 0x5fa   : > { %25977 = vst [vmem:[#allocation146_spill] sm:$0xff] %v24010_v45  ;;  %v7992_v45 = vmul.f32 1.442695, %v7781_v49  ;;  %v24046_v49 = vadd.f32 %v23576_v20, %v7152_v43 }
 0x5fb   : > { %v24012_v62 = vpop.xlane.xlu1 %7666 }
 0x5fc   : > { %25978 = vst [vmem:[#allocation81_spill] sm:$0xff] %v24012_v62  ;;  %v25985_v62 = vld [vmem:[#allocation135_spill] sm:$0xff]  ;;  %19608 = vpow2.f32 %v7992_v45  ;;  %25990 = vst [vmem:[#allocation115_spill] sm:$0xff] %v24046_v49 }
 0x5fd   : > { %v24014_v60 = vpop.xlane.xlu0 %7675 }
 0x5fe   : > { %25979 = vst [vmem:[#allocation52_spill] sm:$0xff] %v24014_v60  ;;  %v7151_v60 = vadd.f32 %v23473_v11, %v25985_v62  ;;  %v7783_v11 = vsub.f32 %v23397_v28, %v23866_v41  ;;  %v7695_v28 = vsel %vm7313_vm2, %v24046_v49, -inf }
 0x5ff   : > { %v24016_v1 = vpop.xlane.xlu1 %7621 }
 0x600   : > { %25980 = vst [vmem:[#allocation140_spill] sm:$0xff] %v24016_v1  ;;  %v7990_v1 = vmul.f32 1.442695, %v7780_v17  ;;  %v24041_v2 = vadd.f32 %v23560_v61, %v7151_v60  ;;  %v7996_v3 = vmul.f32 1.442695, %v7783_v11 }
 0x601   : > { %v24018_v5 = vpop.xlane.xlu0 %7678 }
 0x602   : > { %25981 = vst [vmem:[#allocation91_spill] sm:$0xff] %v24018_v5  ;;  %25989 = vst [vmem:[#allocation103_spill] sm:$0xff] %v24041_v2  ;;  %19610 = vpow2.f32 %v7990_v1 }
 0x603   : > { %v24020_v23 = vpop.xlane.xlu1 %7624 }
 0x604   : > { %25982 = vst [vmem:[#allocation23_spill] sm:$0xff] %v24020_v23  ;;  %v7782_v23 = vsub.f32 %v23416_v33, %v23878_v32  ;;  %v7692_v32 = vsel %vm7313_vm2, %v24041_v2, -inf }
 0x605   : > { %v24024_v57 = vpop.xlane.xlu0 %7687 }
 0x606   : > { %25983 = vst [vmem:[#allocation139_spill] sm:$0xff] %v24024_v57  ;;  %v7994_v62 = vmul.f32 1.442695, %v7782_v23  ;;  %v24056_v41 = vpop.eup %19608 }
 0x607   : > { %v24028_v50 = vpop.xlane.xlu1 %7690 }
 0x608   : > { %25984 = vst [vmem:[#allocation113_spill] sm:$0xff] %v24028_v50 }
 0x609   : > { %v24032_v25 = vpop.xlane.xlu0 %7633 }
 0x60a   : > { %25986 = vst [vmem:[#allocation33_spill] sm:$0xff] %v24032_v25 }
 0x60b   : > { %v24036_v5 = vpop.xlane.xlu1 %7636 }
 0x60c   : > { %25987 = vst [vmem:[#allocation109_spill] sm:$0xff] %v24036_v5  ;;  %v24060_v45 = vpop.eup %19610 }
 0x60d   : > { %v8276_v22 = vpop.xlane.xlu0 %8275 }
 0x60e   : > { %19612 = vrcp.f32 %v8276_v22  ;;  %v8331_v22 = vsel %vm7313_vm2, %v24056_v41, 0.0 }
 0x60f   : > { %v8279_v17 = vpop.xlane.xlu1 %8278  ;;  %19614 = vpow2.f32 %v7994_v62 }
 0x611   : > { %v24048_v33 = vpop.xlane.xlu0 %7645 }
 0x612   : > { %25991 = vst [vmem:[#allocation63_spill] sm:$0xff] %v24048_v33  ;;  %7693 = vmax.xlane.f32.xlu0 %v7692_v32  ;;  %v8328_v32 = vsel %vm7313_vm2, %v24060_v45, 0.0 }
 0x613   : > { %v8282_v61 = vpop.xlane.xlu1 %8281 }
 0x614   : > { %19616 = vrcp.f32 %v8282_v61 }
 0x615   : > { %v24052_v1 = vpop.xlane.xlu0 %7648  ;;  %19618 = vpow2.f32 %v7996_v3 }
 0x616   : > { %25992 = vst [vmem:[#allocation66_spill] sm:$0xff] %v24052_v1  ;;  %7696 = vmax.xlane.f32.xlu0 %v7695_v28  ;;  %19620 = vrcp.f32 %v8279_v17 }
 0x617   : > { %v8285_v20 = vpop.xlane.xlu1 %8284 }
 0x618   : > { %v24058_v23 = vpop.f32.mrb[192].mxu1  ;;  %v19613_v59 = vpop.eup %19612 }
 0x619   : > { %25993 = vst [vmem:[#allocation144_spill] sm:$0xff] %v24058_v23  ;;  %v24062_v60 = vpop.f32.mrb[193].mxu1  ;;  %v8288_v43 = vpop.xlane.xlu0 %8287  ;;  %v8658_v11 = vmul.f32 %v19613_v59, %v23719_v38 }
 0x61a   : > { %25994 = vst [vmem:[#allocation59_spill] sm:$0xff] %v24062_v60  ;;  %8332 = vadd.xlane.f32.xlu0 %v8331_v22  ;;  %v24071_v3 = vpop.eup %19614  ;;  %19622 = vrcp.f32 %v8288_v43 }
 0x61b   : > { %v24067_v62 = vpop.xlane.xlu1 %8290  ;;  %17463 = vmatprep.mubr.msk.f32.mxu0 %vm7313_vm2, %v8658_v11  ;;  %v8334_v60 = vsel %vm7313_vm2, %v24071_v3, 0.0  ;;  %19624 = vrcp.f32 %v8285_v20 }
 0x61c   : > { %8329 = vadd.xlane.f32.xlu1 %v8328_v32 }
 0x61d   : > { %v24074_v61 = vpop.xlane.xlu0 %7657 }
 0x61e   : > { %25995 = vst [vmem:[#allocation153_spill] sm:$0xff] %v24074_v61  ;;  %v19617_v28 = vpop.eup %19616 }
 0x61f   : > { %v8294_v23 = vpop.xlane.xlu1 %8293  ;;  %v8660_v22 = vmul.f32 %v19617_v28, %v23743_v10  ;;  %v24079_v38 = vpop.eup %19618 }
 0x620   : > { %8335 = vadd.xlane.f32.xlu1 %v8334_v60  ;;  %v8337_v11 = vsel %vm7313_vm2, %v24079_v38, 0.0  ;;  %19626 = vrcp.f32 %v8294_v23  ;;  %v7787_v23 = vsub.f32 %v23436_v0, %v23894_v52  ;;  %v7790_v52 = vsub.f32 %v23467_v30, %v23910_v40 }
 0x621   : > { %17470 = vmatprep.mubr.msk.f32.mxu1 %vm7313_vm2, %v8660_v22  ;;  %v24082_v59 = vpop.xlane.xlu0 %7660 }
 0x622   : > { %25996 = vst [vmem:[#allocation132_spill] sm:$0xff] %v24082_v59 }
 0x623   : > { %v24084_v49 = vpop.xlane.xlu1 %8296 }
 0x624   : > { %8338 = vadd.xlane.f32.xlu1 %v8337_v11  ;;  %v26001_v11 = vld [vmem:[#allocation37_spill] sm:$0xff] }
 0x625   : > { %v24088_v32 = vpop.xlane.xlu0 %8299 }
 0x627   : > { %v24090_v2 = vpop.xlane.xlu1 %8302 }
 0x629   : > { %v24092_v61 = vpop.xlane.xlu0 %7669 }
 0x62a   : > { %25997 = vst [vmem:[#allocation138_spill] sm:$0xff] %v24092_v61  ;;  %v19621_v61 = vpop.eup %19620 }
 0x62b   : > { %v24094_v10 = vpop.xlane.xlu1 %8305  ;;  %v24096_v60 = vpop.f32.mrb[86].mxu0 }
 0x62c   : > { %25998 = vst [vmem:[#allocation65_spill] sm:$0xff] %v24096_v60  ;;  %v24098_v28 = vpop.f32.mrb[87].mxu0  ;;  %v26002_v60 = vld [vmem:[#allocation45_spill] sm:$0xff]  ;;  %v19623_v43 = vpop.eup %19622 }
 0x62d   : > { %25999 = vst [vmem:[#allocation55_spill] sm:$0xff] %v24098_v28  ;;  %v24100_v22 = vpop.xlane.xlu0 %7672 }
 0x62e   : > { %26000 = vst [vmem:[#allocation151_spill] sm:$0xff] %v24100_v22  ;;  %v8659_v22 = vmul.f32 %v19621_v61, %v23727_v53  ;;  %v8004_v53 = vmul.f32 1.442695, %v7787_v23 }
 0x62f   : > { %v24102_v59 = vpop.xlane.xlu1 %8308 }
 0x630   : > { %19177 = vrot.lane.b32.xlu0 %v26001_v11, %s20116_s29  ;;  %v7786_v11 = vsub.f32 %v23427_v15, %v23888_v12  ;;  %v7785_v15 = vsub.f32 %v23449_v6, %v23900_v35  ;;  %v7784_v12 = vsub.f32 %v23531_v31, %v23962_v36  ;;  %v8010_v35 = vmul.f32 1.442695, %v7790_v52 }
 0x631   : > { %v19158_v1 = vpop.permute.xlu0 %19157 }
 0x632   : > { %v19160_v33 = vunpack.i.h.bf16 %v19158_v1  ;;  %v19159_v25 = vunpack.i.l.bf16 %v19158_v1  ;;  %v8662_v1 = vmul.f32 %v19623_v43, %v23769_v26  ;;  %v8000_v0 = vmul.f32 1.442695, %v7785_v15 }
 0x633   : > { %v24106_v5 = vpop.xlane.xlu1 %8311 }
 0x634   : > { %v18483_v17 = vpack.c.bf16 %v19160_v33, %v19159_v25 }
 0x635   : > { %19182 = vrot.lane.b32.xlu1 %v26002_v60, %s20116_s29  ;;  %v8002_v60 = vmul.f32 1.442695, %v7786_v11 }
 0x636   : > { %18484 = vmatprep.subr.bf16.mxu0 %v18483_v17 }
 0x637   : > { %v24110_v28 = vpop.xlane.xlu1 %8314  ;;  %18486 = vmatpush3.bf16.msra.mxu0 %v18483_v17  ;;  %v19625_v17 = vpop.eup %19624  ;;  %19628 = vpow2.f32 %v8002_v60  ;;  %v7998_v60 = vmul.f32 1.442695, %v7784_v12 }
 0x638   : > { %v19627_v57 = vpop.eup %19626  ;;  %v8661_v26 = vmul.f32 %v19625_v17, %v23763_v39  ;;  %19630 = vpow2.f32 %v8004_v53  ;;  %v7791_v39 = vsub.f32 %v23478_v14, %v23920_v24 }
 0x639   : > { %v8664_v61 = vmul.f32 %v19627_v57, %v23792_v29  ;;  %19632 = vpow2.f32 %v8000_v0 }
 0x63a   : > { %17464 = vmatmul.mubr.msk.f32.vlgmr.msra.gmra.mrb[90].mxu0 %vm7313_vm2, %v8659_v22  ;;  %19634 = vpow2.f32 %v7998_v60  ;;  %v8012_v36 = vmul.f32 1.442695, %v7791_v39 }
 0x63b   : > { %v19163_v25 = vpop.permute.xlu1 %19162  ;;  %17477 = vmatprep.mubr.msk.f32.mxu0 %vm7313_vm2, %v8662_v1  ;;  %19636 = vpow2.f32 %v8010_v35 }
 0x63c   : > { %v19165_v33 = vunpack.i.h.bf16 %v19163_v25  ;;  %v19164_v20 = vunpack.i.l.bf16 %v19163_v25  ;;  %19638 = vpow2.f32 %v8012_v36  ;;  %v7794_v36 = vsub.f32 %v23486_v47, %v23929_v7 }
 0x63d   : > { %19640 = vrcp.f32 %v24067_v62  ;;  %v26008_v62 = vld [vmem:[#allocation47_spill] sm:$0xff]  ;;  %v7789_v47 = vsub.f32 %v23519_v44, %v23956_v16 }
 0x63e   : > { %v18487_v50 = vpack.c.bf16 %v19165_v33, %v19164_v20  ;;  %19642 = vrcp.f32 %v24088_v32 }
 0x63f   : > { %19644 = vrcp.f32 %v24084_v49 }
 0x640   : > { %18488 = vmatprep.subr.bf16.mxu1 %v18487_v50  ;;  %19646 = vrcp.f32 %v24094_v10  ;;  %v7795_v10 = vsub.f32 %v23507_v54, %v23950_v48  ;;  %v8008_v54 = vmul.f32 1.442695, %v7789_v47 }
 0x641   : > { %18490 = vmatpush3.bf16.msra.mxu1 %v18487_v50  ;;  %v24130_v6 = vpop.eup %19628 }
 0x642   : > { %v8346_v31 = vsel %vm7313_vm2, %v24130_v6, 0.0  ;;  %v24136_v29 = vpop.eup %19630 }
 0x643   : > { %v8349_v40 = vsel %vm7313_vm2, %v24136_v29, 0.0  ;;  %v24144_v50 = vpop.eup %19632 }
 0x644   : > { %17471 = vmatmul.mubr.msk.f32.vlgmr.msra.gmra.mrb[198].mxu1 %vm7313_vm2, %v8661_v26  ;;  %v24146_v14 = vpop.eup %19634  ;;  %v8343_v24 = vsel %vm7313_vm2, %v24144_v50, 0.0  ;;  %v26007_v26 = vld [vmem:[#allocation41_spill] sm:$0xff] }
 0x645   : > { %17484 = vmatprep.mubr.msk.f32.mxu1 %vm7313_vm2, %v8664_v61  ;;  %v8340_v22 = vsel %vm7313_vm2, %v24146_v14, 0.0  ;;  %v24152_v11 = vpop.eup %19636 }
 0x646   : > { %v8358_v43 = vsel %vm7313_vm2, %v24152_v11, 0.0  ;;  %v24156_v1 = vpop.eup %19638 }
 0x647   : > { %v8361_v25 = vsel %vm7313_vm2, %v24156_v1, 0.0  ;;  %v19641_v35 = vpop.eup %19640 }
 0x648   : > { %v19643_v32 = vpop.eup %19642 }
 0x64f   : > { %8347 = vadd.xlane.f32.xlu0 %v8346_v31  ;;  %v8663_v31 = vmul.f32 %v19641_v35, %v23775_v46  ;;  %v8020_v46 = vmul.f32 1.442695, %v7795_v10  ;;  %v26010_v35 = vld [vmem:[#allocation31_spill] sm:$0xff] }
 0x651   : > { %v24138_v57 = vpop.f32.mrb[194].mxu1 }
 0x652   : > { %26003 = vst [vmem:[#allocation131_spill] sm:$0xff] %v24138_v57  ;;  %v24140_v30 = vpop.f32.mrb[195].mxu1  ;;  %v26048_v57 = vld [vmem:[#allocation52_spill] sm:$0xff] }
 0x653   : > { %26004 = vst [vmem:[#allocation152_spill] sm:$0xff] %v24140_v30  ;;  %8350 = vadd.xlane.f32.xlu0 %v8349_v40  ;;  %v8666_v40 = vmul.f32 %v19643_v32, %v23811_v8  ;;  %v26009_v8 = vld [vmem:[#allocation74_spill] sm:$0xff]  ;;  %v7798_v32 = vsub.f32 %v26010_v35, %v23966_v4 }
 0x657   : > { %8344 = vadd.xlane.f32.xlu0 %v8343_v24 }
 0x659   : > { %8341 = vadd.xlane.f32.xlu1 %v8340_v22 }
 0x65d   : > { %8359 = vadd.xlane.f32.xlu1 %v8358_v43  ;;  %v8018_v43 = vmul.f32 1.442695, %v7794_v36 }
 0x65f   : > { %19648 = vpow2.f32 %v8018_v43 }
 0x660   : > { %19650 = vpow2.f32 %v8020_v46 }
 0x661   : > { %8362 = vadd.xlane.f32.xlu1 %v8361_v25  ;;  %19652 = vpow2.f32 %v8008_v54 }
 0x662   : > { %v24160_v33 = vpop.xlane.xlu0 %7681 }
 0x664   : > { %v24162_v20 = vpop.f32.mrb[88].mxu0 }
 0x665   : > { %26005 = vst [vmem:[#allocation22_spill] sm:$0xff] %v24162_v20  ;;  %v24164_v23 = vpop.f32.mrb[89].mxu0 }
 0x666   : > { %26006 = vst [vmem:[#allocation154_spill] sm:$0xff] %v24164_v23  ;;  %v24166_v17 = vpop.xlane.xlu0 %7684  ;;  %v26034_v23 = vld [vmem:[#allocation25_spill] sm:$0xff] }
 0x66a   : > { %v24170_v53 = vpop.xlane.xlu0 %8320 }
 0x66c   : > { %v24172_v15 = vpop.xlane.xlu1 %8317 }
 0x66d   : > { %19187 = vrot.lane.b32.xlu0 %v26007_v26, %s20116_s29 }
 0x66e   : > { %v19168_v12 = vpop.permute.xlu0 %19167 }
 0x66f   : > { %v19170_v61 = vunpack.i.h.bf16 %v19168_v12  ;;  %v19169_v0 = vunpack.i.l.bf16 %v19168_v12  ;;  %v19645_v12 = vpop.eup %19644 }
 0x670   : > { %v24176_v52 = vpop.xlane.xlu1 %8323  ;;  %v8665_v7 = vmul.f32 %v19645_v12, %v23805_v34  ;;  %v8026_v34 = vmul.f32 1.442695, %v7798_v32 }
 0x671   : > { %v18491_v60 = vpack.c.bf16 %v19170_v61, %v19169_v0  ;;  %v19647_v61 = vpop.eup %19646  ;;  %v7788_v0 = vsub.f32 %v26009_v8, %v23938_v42  ;;  %v7799_v42 = vsub.f32 %v23548_v21, %v23974_v55 }
 0x672   : > { %19192 = vrot.lane.b32.xlu1 %v26008_v62, %s20116_s29  ;;  %v24202_v44 = vpop.eup %19648 }
 0x673   : > { %18492 = vmatprep.subr.bf16.mxu0 %v18491_v60  ;;  %v8006_v48 = vmul.f32 1.442695, %v7788_v0  ;;  %v24212_v36 = vpop.eup %19650 }
 0x674   : > { %v24182_v39 = vpop.xlane.xlu1 %8326  ;;  %18494 = vmatpush3.bf16.msra.mxu0 %v18491_v60  ;;  %v8668_v60 = vmul.f32 %v19647_v61, %v23832_v9  ;;  %v8373_v4 = vsel %vm7313_vm2, %v24212_v36, 0.0 }
 0x675   : > { %19654 = vpow2.f32 %v8006_v48 }
 0x676   : > { %19656 = vpow2.f32 %v8026_v34 }
 0x677   : > { %17478 = vmatmul.mubr.msk.f32.vlgmr.msra.gmra.mrb[92].mxu0 %vm7313_vm2, %v8663_v31  ;;  %v8370_v31 = vsel %vm7313_vm2, %v24202_v44, 0.0 }
 0x678   : > { %v19173_v49 = vpop.permute.xlu1 %19172  ;;  %17491 = vmatprep.mubr.msk.f32.mxu0 %vm7313_vm2, %v8666_v40  ;;  %v8028_v40 = vmul.f32 1.442695, %v7799_v42  ;;  %v7802_v42 = vsub.f32 %v23554_v19, %v23976_v56  ;;  %v7793_v56 = vsub.f32 %v23579_v58, %v23990_v63 }
 0x679   : > { %v19175_v24 = vunpack.i.h.bf16 %v19173_v49  ;;  %v19174_v22 = vunpack.i.l.bf16 %v19173_v49  ;;  %v24216_v49 = vpop.eup %19652 }
 0x67a   : > { %19658 = vpow2.f32 %v8028_v40  ;;  %v8355_v55 = vsel %vm7313_vm2, %v24216_v49, 0.0 }
 0x67b   : > { %v18495_v25 = vpack.c.bf16 %v19175_v24, %v19174_v22  ;;  %19660 = vrcp.f32 %v24090_v2  ;;  %v26014_v2 = vld [vmem:[#allocation49_spill] sm:$0xff] }
 0x67c   : > { %19662 = vrcp.f32 %v24106_v5 }
 0x67d   : > { %18496 = vmatprep.subr.bf16.mxu1 %v18495_v25  ;;  %19664 = vrcp.f32 %v24102_v59 }
 0x67e   : > { %18498 = vmatpush3.bf16.msra.mxu1 %v18495_v25  ;;  %19666 = vrcp.f32 %v24172_v15 }
 0x67f   : > { %v24218_v21 = vpop.eup %19654 }
 0x680   : > { %v8352_v24 = vsel %vm7313_vm2, %v24218_v21, 0.0  ;;  %v24224_v22 = vpop.eup %19656 }
 0x681   : > { %17485 = vmatmul.mubr.msk.f32.vlgmr.msra.gmra.mrb[200].mxu1 %vm7313_vm2, %v8665_v7  ;;  %v8382_v43 = vsel %vm7313_vm2, %v24224_v22, 0.0  ;;  %v26013_v7 = vld [vmem:[#allocation44_spill] sm:$0xff] }
 0x682   : > { %17498 = vmatprep.mubr.msk.f32.mxu1 %vm7313_vm2, %v8668_v60 }
 0x684   : > { %v24228_v10 = vpop.eup %19658 }
 0x685   : > { %v8385_v25 = vsel %vm7313_vm2, %v24228_v10, 0.0  ;;  %v19661_v35 = vpop.eup %19660 }
 0x686   : > { %v19663_v5 = vpop.eup %19662  ;;  %v8667_v34 = vmul.f32 %v19661_v35, %v23817_v18  ;;  %v26019_v35 = vld [vmem:[#allocation92_spill] sm:$0xff] }
 0x687   : > { %v8670_v59 = vmul.f32 %v19663_v5, %v23851_v13  ;;  %v26020_v5 = vld [vmem:[#allocation21_spill] sm:$0xff] }
 0x68a   : > { %v24206_v16 = vpop.f32.mrb[196].mxu1 }
 0x68b   : > { %26011 = vst [vmem:[#allocation58_spill] sm:$0xff] %v24206_v16  ;;  %v24208_v9 = vpop.f32.mrb[197].mxu1 }
 0x68c   : > { %26012 = vst [vmem:[#allocation135_spill] sm:$0xff] %v24208_v9  ;;  %8371 = vadd.xlane.f32.xlu0 %v8370_v31  ;;  %v26015_v31 = vld [vmem:[#allocation75_spill] sm:$0xff]  ;;  %v26031_v9 = vld [vmem:[#allocation78_spill] sm:$0xff] }
 0x690   : > { %8374 = vadd.xlane.f32.xlu0 %v8373_v4 }
 0x694   : > { %8356 = vadd.xlane.f32.xlu0 %v8355_v55  ;;  %v8034_v55 = vmul.f32 1.442695, %v7802_v42 }
 0x696   : > { %8353 = vadd.xlane.f32.xlu1 %v8352_v24  ;;  %v7803_v24 = vsub.f32 %v23568_v51, %v23984_v37  ;;  %19668 = vpow2.f32 %v8034_v55  ;;  %v26018_v51 = vld [vmem:[#allocation133_spill] sm:$0xff] }
 0x698   : > { %v8036_v19 = vmul.f32 1.442695, %v7803_v24 }
 0x69a   : > { %8383 = vadd.xlane.f32.xlu1 %v8382_v43  ;;  %v19665_v43 = vpop.eup %19664  ;;  %19670 = vpow2.f32 %v8036_v19 }
 0x69b   : > { %v8669_v13 = vmul.f32 %v19665_v43, %v23841_v27  ;;  %v26021_v27 = vld [vmem:[#allocation60_spill] sm:$0xff] }
 0x69e   : > { %8386 = vadd.xlane.f32.xlu1 %v8385_v25  ;;  %v19667_v25 = vpop.eup %19666 }
 0x69f   : > { %v24232_v12 = vpop.xlane.xlu0 %7693 }
 0x6a0   : > { %v24272_v58 = vpop.eup %19668 }
 0x6a3   : > { %v24234_v61 = vpop.xlane.xlu0 %7696 }
 0x6a7   : > { %v24238_v46 = vpop.xlane.xlu0 %8332 }
 0x6a9   : > { %v24240_v47 = vpop.xlane.xlu1 %8329 }
 0x6aa   : > { %19197 = vrot.lane.b32.xlu0 %v26013_v7, %s20116_s29 }
 0x6ab   : > { %v19178_v8 = vpop.permute.xlu0 %19177 }
 0x6ac   : > { %v19180_v0 = vunpack.i.h.bf16 %v19178_v8  ;;  %v19179_v60 = vunpack.i.l.bf16 %v19178_v8  ;;  %v26016_v8 = vld [vmem:[#allocation150_spill] sm:$0xff] }
 0x6ad   : > { %v24244_v54 = vpop.xlane.xlu1 %8335 }
 0x6ae   : > { %v18499_v48 = vpack.c.bf16 %v19180_v0, %v19179_v60  ;;  %v8672_v0 = vmul.f32 %v19667_v25, %v26016_v8  ;;  %v8016_v60 = vmul.f32 1.442695, %v7793_v56 }
 0x6af   : > { %19202 = vrot.lane.b32.xlu1 %v26014_v2, %s20116_s29 }
 0x6b0   : > { %18500 = vmatprep.subr.bf16.mxu0 %v18499_v48  ;;  %19672 = vpow2.f32 %v8016_v60 }
 0x6b1   : > { %v24250_v32 = vpop.xlane.xlu1 %8338  ;;  %18502 = vmatpush3.bf16.msra.mxu0 %v18499_v48  ;;  %v26017_v48 = vld [vmem:[#allocation136_spill] sm:$0xff] }
 0x6b2   : > { %v7806_v37 = vsub.f32 %v26018_v51, %v26017_v48 }
 0x6b3   : > { %19207 = vrot.lane.b32.xlu1 %v26015_v31, %s20116_s29 }
 0x6b4   : > { %17492 = vmatmul.mubr.msk.f32.vlgmr.msra.gmra.mrb[94].mxu0 %vm7313_vm2, %v8667_v34  ;;  %v7792_v34 = vsub.f32 %v26020_v5, %v26019_v35  ;;  %v8042_v42 = vmul.f32 1.442695, %v7806_v37 }
 0x6b5   : > { %v19183_v40 = vpop.permute.xlu1 %19182  ;;  %17505 = vmatprep.mubr.msk.f32.mxu0 %vm7313_vm2, %v8670_v59  ;;  %v26022_v59 = vld [vmem:[#allocation128_spill] sm:$0xff] }
 0x6b6   : > { %v19185_v15 = vunpack.i.h.bf16 %v19183_v40  ;;  %v19184_v4 = vunpack.i.l.bf16 %v19183_v40  ;;  %v8014_v63 = vmul.f32 1.442695, %v7792_v34  ;;  %v7807_v40 = vsub.f32 %v26022_v59, %v26021_v27  ;;  %v26023_v27 = vld [vmem:[#allocation79_spill] sm:$0xff] }
 0x6b7   : > { %19674 = vpow2.f32 %v8042_v42 }
 0x6b8   : > { %v18503_v18 = vpack.c.bf16 %v19185_v15, %v19184_v4  ;;  %v8394_v15 = vsel %vm7313_vm2, %v24272_v58, 0.0  ;;  %v24278_v4 = vpop.eup %19670  ;;  %19676 = vpow2.f32 %v8014_v63  ;;  %v8044_v55 = vmul.f32 1.442695, %v7807_v40 }
 0x6b9   : > { %v8397_v24 = vsel %vm7313_vm2, %v24278_v4, 0.0 }
 0x6ba   : > { %18504 = vmatprep.subr.bf16.mxu1 %v18503_v18  ;;  %19678 = vpow2.f32 %v8044_v55 }
 0x6bb   : > { %18506 = vmatpush3.bf16.msra.mxu1 %v18503_v18  ;;  %v24282_v18 = vpop.eup %19672  ;;  %19680 = vrcp.f32 %v24110_v28  ;;  %v26024_v28 = vld [vmem:[#allocation77_spill] sm:$0xff] }
 0x6bc   : > { %v8367_v43 = vsel %vm7313_vm2, %v24282_v18, 0.0  ;;  %19682 = vrcp.f32 %v24176_v52 }
 0x6bd   : > { %19684 = vrcp.f32 %v24170_v53 }
 0x6be   : > { %17499 = vmatmul.mubr.msk.f32.vlgmr.msra.gmra.mrb[202].mxu1 %vm7313_vm2, %v8669_v13  ;;  %19686 = vrcp.f32 %v24240_v47  ;;  %v26029_v47 = vld [vmem:[#allocation32_spill] sm:$0xff] }
 0x6bf   : > { %17512 = vmatprep.mubr.msk.f32.mxu1 %vm7313_vm2, %v8672_v0 }
 0x6c1   : > { %v24286_v25 = vpop.eup %19674 }
 0x6c2   : > { %v24288_v19 = vpop.eup %19676  ;;  %v8406_v56 = vsel %vm7313_vm2, %v24286_v25, 0.0 }
 0x6c3   : > { %v8364_v13 = vsel %vm7313_vm2, %v24288_v19, 0.0 }
 0x6c4   : > { %v24294_v8 = vpop.eup %19678 }
 0x6c5   : > { %v8409_v0 = vsel %vm7313_vm2, %v24294_v8, 0.0  ;;  %v19681_v59 = vpop.eup %19680 }
 0x6c6   : > { %v19683_v52 = vpop.eup %19682 }
 0x6c7   : > { %v19685_v16 = vpop.eup %19684 }
 0x6c9   : > { %8395 = vadd.xlane.f32.xlu0 %v8394_v15  ;;  %v26025_v15 = vld [vmem:[#allocation112_spill] sm:$0xff] }
 0x6ca   : > { %v8671_v55 = vmul.f32 %v19681_v59, %v26025_v15  ;;  %v26030_v15 = vld [vmem:[#allocation110_spill] sm:$0xff] }
 0x6cb   : > { %v7811_v20 = vsub.f32 %v26031_v9, %v26030_v15  ;;  %v26037_v9 = vld [vmem:[#allocation146_spill] sm:$0xff] }
 0x6cd   : > { %8398 = vadd.xlane.f32.xlu0 %v8397_v24  ;;  %v26026_v24 = vld [vmem:[#allocation86_spill] sm:$0xff] }
 0x6d1   : > { %8368 = vadd.xlane.f32.xlu0 %v8367_v43  ;;  %v26027_v43 = vld [vmem:[#allocation27_spill] sm:$0xff] }
 0x6d5   : > { %8407 = vadd.xlane.f32.xlu0 %v8406_v56  ;;  %v8674_v56 = vmul.f32 %v19683_v52, %v26027_v43  ;;  %v26032_v52 = vld [vmem:[#allocation116_spill] sm:$0xff] }
 0x6d6   : > { %v8673_v43 = vmul.f32 %v19685_v16, %v26032_v52  ;;  %v26040_v52 = vld [vmem:[#allocation51_spill] sm:$0xff] }
 0x6d7   : > { %8365 = vadd.xlane.f32.xlu1 %v8364_v13 }
 0x6db   : > { %8410 = vadd.xlane.f32.xlu1 %v8409_v0 }
 0x6dc   : > { %v24298_v60 = vpop.xlane.xlu0 %8347 }
 0x6e0   : > { %v24300_v48 = vpop.xlane.xlu0 %8350 }
 0x6e4   : > { %v24304_v51 = vpop.xlane.xlu0 %8344 }
 0x6e6   : > { %v24306_v37 = vpop.xlane.xlu1 %8341 }
 0x6e8   : > { %v19188_v35 = vpop.permute.xlu0 %19187 }
 0x6e9   : > { %v19190_v5 = vunpack.i.h.bf16 %v19188_v35  ;;  %v19189_v34 = vunpack.i.l.bf16 %v19188_v35  ;;  %v26028_v35 = vld [vmem:[#allocation101_spill] sm:$0xff] }
 0x6ea   : > { %v24308_v42 = vpop.xlane.xlu1 %8359 }
 0x6eb   : > { %v18507_v63 = vpack.c.bf16 %v19190_v5, %v19189_v34  ;;  %19212 = vrot.lane.b32.xlu0 %v26023_v27, %s20116_s29  ;;  %v7810_v5 = vsub.f32 %v26029_v47, %v26028_v35 }
 0x6ec   : > { %19217 = vrot.lane.b32.xlu1 %v26024_v28, %s20116_s29 }
 0x6ed   : > { %18508 = vmatprep.subr.bf16.mxu0 %v18507_v63  ;;  %v8050_v59 = vmul.f32 1.442695, %v7810_v5 }
 0x6ee   : > { %v24316_v40 = vpop.xlane.xlu1 %8362  ;;  %18510 = vmatpush3.bf16.msra.mxu0 %v18507_v63  ;;  %v19687_v63 = vpop.eup %19686 }
 0x6ef   : > { %19688 = vpow2.f32 %v8050_v59 }
 0x6f0   : > { %19222 = vrot.lane.b32.xlu1 %v26026_v24, %s20116_s29 }
 0x6f1   : > { %17506 = vmatmul.mubr.msk.f32.vlgmr.msra.gmra.mrb[96].mxu0 %vm7313_vm2, %v8671_v55  ;;  %v8676_v55 = vmul.f32 %v19687_v63, %v24060_v45  ;;  %v26039_v63 = vld [vmem:[#allocation81_spill] sm:$0xff] }
 0x6f2   : > { %v19193_v53 = vpop.permute.xlu1 %19192  ;;  %17519 = vmatprep.mubr.msk.f32.mxu0 %vm7313_vm2, %v8674_v56  ;;  %v8052_v56 = vmul.f32 1.442695, %v7811_v20  ;;  %v7815_v59 = vsub.f32 %v26040_v52, %v26039_v63 }
 0x6f3   : > { %v19195_v13 = vunpack.i.h.bf16 %v19193_v53  ;;  %v19194_v0 = vunpack.i.l.bf16 %v19193_v53  ;;  %v26033_v53 = vld [vmem:[#allocation99_spill] sm:$0xff] }
 0x6f4   : > { %v7797_v35 = vsub.f32 %v26034_v23, %v26033_v53  ;;  %19690 = vpow2.f32 %v8052_v56  ;;  %v8060_v23 = vmul.f32 1.442695, %v7815_v59 }
 0x6f5   : > { %v18511_v34 = vpack.c.bf16 %v19195_v13, %v19194_v0  ;;  %v26035_v13 = vld [vmem:[#allocation137_spill] sm:$0xff]  ;;  %v26036_v0 = vld [vmem:[#allocation71_spill] sm:$0xff] }
 0x6f6   : > { %v7796_v47 = vsub.f32 %v26036_v0, %v26035_v13  ;;  %v8024_v5 = vmul.f32 1.442695, %v7797_v35 }
 0x6f7   : > { %18512 = vmatprep.subr.bf16.mxu1 %v18511_v34 }
 0x6f8   : > { %18514 = vmatpush3.bf16.msra.mxu1 %v18511_v34  ;;  %v26038_v34 = vld [vmem:[#allocation54_spill] sm:$0xff]  ;;  %v8022_v16 = vmul.f32 1.442695, %v7796_v47  ;;  %19692 = vpow2.f32 %v8024_v5 }
 0x6f9   : > { %v7814_v15 = vsub.f32 %v26038_v34, %v26037_v9  ;;  %v24340_v20 = vpop.eup %19688 }
 0x6fa   : > { %19694 = vpow2.f32 %v8022_v16 }
 0x6fb   : > { %17513 = vmatmul.mubr.msk.f32.vlgmr.msra.gmra.mrb[204].mxu1 %vm7313_vm2, %v8673_v43  ;;  %v8058_v45 = vmul.f32 1.442695, %v7814_v15  ;;  %v8418_v43 = vsel %vm7313_vm2, %v24340_v20, 0.0 }
 0x6fc   : > { %17526 = vmatprep.mubr.msk.f32.mxu1 %vm7313_vm2, %v8676_v55 }
 0x6fd   : > { %19696 = vpow2.f32 %v8058_v45 }
 0x6fe   : > { %v24344_v55 = vpop.eup %19690  ;;  %19698 = vpow2.f32 %v8060_v23 }
 0x6ff   : > { %v8421_v53 = vsel %vm7313_vm2, %v24344_v55, 0.0  ;;  %19700 = vrcp.f32 %v24182_v39 }
 0x700   : > { %19702 = vrcp.f32 %v24244_v54  ;;  %v26046_v54 = vld [vmem:[#allocation147_spill] sm:$0xff] }
 0x701   : > { %19704 = vrcp.f32 %v24238_v46 }
 0x702   : > { %v24350_v35 = vpop.eup %19692  ;;  %19706 = vrcp.f32 %v24306_v37  ;;  %v26047_v37 = vld [vmem:[#allocation83_spill] sm:$0xff] }
 0x703   : > { %v8379_v47 = vsel %vm7313_vm2, %v24350_v35, 0.0  ;;  %19708 = vrcp.f32 %v24250_v32 }
 0x704   : > { %v24354_v0 = vpop.eup %19694  ;;  %19710 = vrcp.f32 %v24298_v60  ;;  %v26050_v60 = vld [vmem:[#allocation38_spill] sm:$0xff] }
 0x705   : > { %v8376_v9 = vsel %vm7313_vm2, %v24354_v0, 0.0 }
 0x707   : > { %v24358_v5 = vpop.eup %19696 }
 0x708   : > { %v8430_v34 = vsel %vm7313_vm2, %v24358_v5, 0.0  ;;  %v24364_v15 = vpop.eup %19698 }
 0x709   : > { %v8433_v52 = vsel %vm7313_vm2, %v24364_v15, 0.0 }
 0x70a   : > { %8419 = vadd.xlane.f32.xlu0 %v8418_v43 }
 0x70d   : > { %v24346_v56 = vpop.f32.mrb[90].mxu0 }
 0x70e   : > { %26041 = vst [vmem:[#allocation145_spill] sm:$0xff] %v24346_v56  ;;  %8422 = vadd.xlane.f32.xlu0 %v8421_v53  ;;  %v24352_v13 = vpop.f32.mrb[91].mxu0  ;;  %v26045_v53 = vld [vmem:[#allocation35_spill] sm:$0xff] }
 0x70f   : > { %26042 = vst [vmem:[#allocation41_spill] sm:$0xff] %v24352_v13 }
 0x712   : > { %8380 = vadd.xlane.f32.xlu0 %v8379_v47 }
 0x714   : > { %8377 = vadd.xlane.f32.xlu1 %v8376_v9 }
 0x716   : > { %8431 = vadd.xlane.f32.xlu0 %v8430_v34 }
 0x717   : > { %v24366_v16 = vpop.f32.mrb[198].mxu1 }
 0x718   : > { %26043 = vst [vmem:[#allocation47_spill] sm:$0xff] %v24366_v16  ;;  %v24368_v45 = vpop.f32.mrb[199].mxu1 }
 0x719   : > { %26044 = vst [vmem:[#allocation74_spill] sm:$0xff] %v24368_v45  ;;  %v24370_v63 = vpop.xlane.xlu0 %8371 }
 0x71a   : > { %8434 = vadd.xlane.f32.xlu0 %v8433_v52  ;;  %v19701_v52 = vpop.eup %19700 }
 0x71b   : > { %v19703_v56 = vpop.eup %19702  ;;  %v8675_v13 = vmul.f32 %v19701_v52, %v26046_v54  ;;  %v26049_v52 = vld [vmem:[#allocation43_spill] sm:$0xff] }
 0x71c   : > { %v7818_v54 = vsub.f32 %v26049_v52, %v26048_v57 }
 0x71d   : > { %v24374_v59 = vpop.xlane.xlu0 %8374 }
 0x71e   : > { %v8066_v28 = vmul.f32 1.442695, %v7818_v54 }
 0x720   : > { %19712 = vpow2.f32 %v8066_v28 }
 0x721   : > { %v24378_v23 = vpop.xlane.xlu0 %8356 }
 0x723   : > { %v24380_v43 = vpop.xlane.xlu1 %8353 }
 0x725   : > { %19227 = vrot.lane.b32.xlu1 %v26045_v53, %s20118_s21  ;;  %v19198_v47 = vpop.permute.xlu0 %19197  ;;  %v8678_v53 = vmul.f32 %v19703_v56, %v24071_v3 }
 0x726   : > { %v19200_v9 = vunpack.i.h.bf16 %v19198_v47  ;;  %v19199_v34 = vunpack.i.l.bf16 %v19198_v47 }
 0x727   : > { %v24384_v16 = vpop.xlane.xlu1 %8383 }
 0x728   : > { %v18515_v45 = vpack.c.bf16 %v19200_v9, %v19199_v34 }
 0x72a   : > { %18516 = vmatprep.subr.bf16.mxu0 %v18515_v45 }
 0x72b   : > { %v24388_v39 = vpop.xlane.xlu1 %8386  ;;  %18518 = vmatpush3.bf16.msra.mxu0 %v18515_v45  ;;  %v19705_v45 = vpop.eup %19704 }
 0x72c   : > { %v19707_v30 = vpop.eup %19706 }
 0x72d   : > { %v8680_v2 = vmul.f32 %v19707_v30, %v24146_v14  ;;  %v26056_v30 = vld [vmem:[#allocation68_spill] sm:$0xff] }
 0x72e   : > { %17520 = vmatmul.mubr.msk.f32.vlgmr.msra.gmra.mrb[98].mxu0 %vm7313_vm2, %v8675_v13  ;;  %v8677_v13 = vmul.f32 %v19705_v45, %v24056_v41  ;;  %v26053_v41 = vld [vmem:[#allocation23_spill] sm:$0xff]  ;;  %v26054_v45 = vld [vmem:[#allocation30_spill] sm:$0xff] }
 0x72f   : > { %v19203_v47 = vpop.permute.xlu1 %19202  ;;  %17533 = vmatprep.mubr.msk.f32.mxu0 %vm7313_vm2, %v8678_v53 }
 0x730   : > { %v19205_v46 = vunpack.i.h.bf16 %v19203_v47  ;;  %v19204_v9 = vunpack.i.l.bf16 %v19203_v47  ;;  %19232 = vrot.lane.b32.xlu0 %v26047_v37, %s20116_s29  ;;  %v19709_v47 = vpop.eup %19708  ;;  %v26051_v37 = vld [vmem:[#allocation91_spill] sm:$0xff] }
 0x731   : > { %v19711_v57 = vpop.eup %19710  ;;  %v8679_v52 = vmul.f32 %v19709_v47, %v24079_v38 }
 0x732   : > { %v18519_v34 = vpack.c.bf16 %v19205_v46, %v19204_v9  ;;  %v26052_v46 = vld [vmem:[#allocation118_spill] sm:$0xff]  ;;  %v8682_v54 = vmul.f32 %v19711_v57, %v24130_v6 }
 0x733   : > { %v19208_v32 = vpop.permute.xlu1 %19207  ;;  %v7819_v9 = vsub.f32 %v26052_v46, %v26051_v37  ;;  %v26055_v37 = vld [vmem:[#allocation140_spill] sm:$0xff]  ;;  %v24420_v46 = vpop.eup %19712 }
 0x734   : > { %v19210_v3 = vunpack.i.h.bf16 %v19208_v32  ;;  %v19209_v56 = vunpack.i.l.bf16 %v19208_v32  ;;  %18520 = vmatprep.subr.bf16.mxu1 %v18519_v34  ;;  %19237 = vrot.lane.b32.xlu0 %v26050_v60, %s20118_s21  ;;  %v7801_v32 = vsub.f32 %v26054_v45, %v26053_v41  ;;  %v7800_v14 = vsub.f32 %v26056_v30, %v26055_v37 }
 0x735   : > { %18522 = vmatpush3.bf16.msra.mxu1 %v18519_v34  ;;  %v8068_v34 = vmul.f32 1.442695, %v7819_v9  ;;  %v8442_v9 = vsel %vm7313_vm2, %v24420_v46, 0.0 }
 0x736   : > { %v18523_v53 = vpack.c.bf16 %v19210_v3, %v19209_v56  ;;  %v8032_v3 = vmul.f32 1.442695, %v7801_v32  ;;  %v26057_v56 = vld [vmem:[#allocation139_spill] sm:$0xff]  ;;  %v8030_v38 = vmul.f32 1.442695, %v7800_v14 }
 0x737   : > { %19714 = vpow2.f32 %v8068_v34 }
 0x738   : > { %17527 = vmatmul.mubr.msk.f32.vlgmr.msra.gmra.mrb[206].mxu1 %vm7313_vm2, %v8677_v13  ;;  %18524 = vmatprep.subr.bf16.mxu0 %v18523_v53  ;;  %19716 = vpow2.f32 %v8032_v3  ;;  %v26059_v13 = vld [vmem:[#allocation113_spill] sm:$0xff] }
 0x739   : > { %18526 = vmatpush3.bf16.msra.mxu0 %v18523_v53  ;;  %17540 = vmatprep.mubr.msk.f32.mxu1 %vm7313_vm2, %v8680_v2  ;;  %v26058_v2 = vld [vmem:[#allocation82_spill] sm:$0xff]  ;;  %19718 = vpow2.f32 %v8030_v38 }
 0x73a   : > { %v7822_v60 = vsub.f32 %v26058_v2, %v26057_v56  ;;  %v26060_v53 = vld [vmem:[#allocation70_spill] sm:$0xff] }
 0x73b   : > { %v7823_v47 = vsub.f32 %v26060_v53, %v26059_v13 }
 0x73c   : > { %17534 = vmatmul.mubr.msk.f32.vlgmr.msra.gmra.mrb[100].mxu0 %vm7313_vm2, %v8679_v52  ;;  %v8074_v28 = vmul.f32 1.442695, %v7822_v60 }
 0x73d   : > { %17547 = vmatprep.mubr.msk.f32.mxu0 %vm7313_vm2, %v8682_v54  ;;  %v8076_v6 = vmul.f32 1.442695, %v7823_v47 }
 0x73e   : > { %19720 = vpow2.f32 %v8074_v28 }
 0x73f   : > { %19722 = vpow2.f32 %v8076_v6 }
 0x740   : > { %19724 = vrcp.f32 %v24300_v48 }
 0x741   : > { %v24424_v57 = vpop.eup %19714  ;;  %19726 = vrcp.f32 %v24308_v42  ;;  %v26065_v42 = vld [vmem:[#allocation89_spill] sm:$0xff] }
 0x742   : > { %v8445_v41 = vsel %vm7313_vm2, %v24424_v57, 0.0  ;;  %v24432_v45 = vpop.eup %19716  ;;  %19728 = vrcp.f32 %v24304_v51 }
 0x743   : > { %v24434_v32 = vpop.eup %19718  ;;  %v8391_v54 = vsel %vm7313_vm2, %v24432_v45, 0.0  ;;  %19730 = vrcp.f32 %v24380_v43 }
 0x744   : > { %v8388_v30 = vsel %vm7313_vm2, %v24434_v32, 0.0  ;;  %19732 = vrcp.f32 %v24316_v40 }
 0x745   : > { %19734 = vrcp.f32 %v24370_v63 }
 0x748   : > { %v24438_v37 = vpop.eup %19720 }
 0x749   : > { %8443 = vadd.xlane.f32.xlu1 %v8442_v9  ;;  %v8454_v3 = vsel %vm7313_vm2, %v24438_v37, 0.0  ;;  %v24446_v56 = vpop.eup %19722 }
 0x74a   : > { %v24426_v52 = vpop.f32.mrb[92].mxu0  ;;  %v8457_v38 = vsel %vm7313_vm2, %v24446_v56, 0.0  ;;  %v19725_v48 = vpop.eup %19724 }
 0x74b   : > { %26061 = vst [vmem:[#allocation31_spill] sm:$0xff] %v24426_v52  ;;  %v24428_v34 = vpop.f32.mrb[93].mxu0  ;;  %v8683_v43 = vmul.f32 %v19725_v48, %v24136_v29 }
 0x74d   : > { %8446 = vadd.xlane.f32.xlu1 %v8445_v41 }
 0x751   : > { %8392 = vadd.xlane.f32.xlu1 %v8391_v54 }
 0x753   : > { %8389 = vadd.xlane.f32.xlu0 %v8388_v30 }
 0x754   : > { %v24442_v14 = vpop.f32.mrb[200].mxu1 }
 0x755   : > { %26062 = vst [vmem:[#allocation44_spill] sm:$0xff] %v24442_v14  ;;  %v24448_v2 = vpop.f32.mrb[201].mxu1  ;;  %8455 = vadd.xlane.f32.xlu1 %v8454_v3  ;;  %v26064_v3 = vld [vmem:[#allocation37_spill] sm:$0xff] }
 0x756   : > { %26063 = vst [vmem:[#allocation75_spill] sm:$0xff] %v24448_v2  ;;  %v24450_v60 = vpop.xlane.xlu0 %8395 }
 0x759   : > { %8458 = vadd.xlane.f32.xlu1 %v8457_v38  ;;  %v19727_v38 = vpop.eup %19726 }
 0x75a   : > { %v24454_v28 = vpop.xlane.xlu0 %8398  ;;  %v19729_v40 = vpop.eup %19728 }
 0x75b   : > { %v19731_v63 = vpop.eup %19730  ;;  %v8681_v29 = vmul.f32 %v19729_v40, %v24144_v50 }
 0x75c   : > { %v19733_v48 = vpop.eup %19732 }
 0x75e   : > { %v24456_v13 = vpop.xlane.xlu0 %8368 }
 0x762   : > { %v24460_v53 = vpop.xlane.xlu0 %8407 }
 0x764   : > { %v24462_v47 = vpop.xlane.xlu1 %8365 }
 0x766   : > { %v19213_v6 = vpop.permute.xlu0 %19212 }
 0x767   : > { %v19215_v9 = vunpack.i.h.bf16 %v19213_v6  ;;  %v19214_v41 = vunpack.i.l.bf16 %v19213_v6 }
 0x768   : > { %v24466_v54 = vpop.xlane.xlu1 %8410 }
 0x769   : > { %v18531_v30 = vpack.c.bf16 %v19215_v9, %v19214_v41  ;;  %19242 = vrot.lane.b32.xlu0 %v26064_v3, %s20118_s21  ;;  %v8686_v9 = vmul.f32 %v19727_v38, %v24152_v11  ;;  %v26066_v11 = vld [vmem:[#allocation109_spill] sm:$0xff] }
 0x76a   : > { %19247 = vrot.lane.b32.xlu1 %v26065_v42, %s20116_s29 }
 0x76b   : > { %18532 = vmatprep.subr.bf16.mxu0 %v18531_v30 }
 0x76c   : > { %v19218_v51 = vpop.permute.xlu1 %19217  ;;  %18534 = vmatpush3.bf16.msra.mxu0 %v18531_v30 }
 0x76d   : > { %v19220_v6 = vunpack.i.h.bf16 %v19218_v51  ;;  %v19219_v14 = vunpack.i.l.bf16 %v19218_v51  ;;  %19252 = vrot.lane.b32.xlu0 %v26007_v26, %s20118_s21  ;;  %v8684_v26 = vmul.f32 %v19731_v63, %v24218_v21  ;;  %v19735_v51 = vpop.eup %19734 }
 0x76e   : > { %v8690_v50 = vmul.f32 %v19735_v51, %v24202_v44  ;;  %v26071_v51 = vld [vmem:[#allocation34_spill] sm:$0xff] }
 0x76f   : > { %v18527_v41 = vpack.c.bf16 %v19220_v6, %v19219_v14  ;;  %17548 = vmatmul.mubr.msk.f32.vlgmr.msra.gmra.mrb[102].mxu0 %vm7313_vm2, %v8683_v43  ;;  %v26067_v14 = vld [vmem:[#allocation62_spill] sm:$0xff]  ;;  %v8687_v43 = vmul.f32 %v19733_v48, %v24156_v1  ;;  %v26068_v6 = vld [vmem:[#allocation33_spill] sm:$0xff] }
 0x770   : > { %v19223_v3 = vpop.permute.xlu1 %19222  ;;  %17561 = vmatprep.mubr.msk.f32.mxu0 %vm7313_vm2, %v8686_v9  ;;  %v7805_v38 = vsub.f32 %v26067_v14, %v26066_v11  ;;  %v26069_v9 = vld [vmem:[#allocation48_spill] sm:$0xff] }
 0x771   : > { %v19225_v2 = vunpack.i.h.bf16 %v19223_v3  ;;  %v19224_v52 = vunpack.i.l.bf16 %v19223_v3  ;;  %18528 = vmatprep.subr.bf16.mxu1 %v18527_v41 }
 0x772   : > { %18530 = vmatpush3.bf16.msra.mxu1 %v18527_v41  ;;  %v7804_v41 = vsub.f32 %v26069_v9, %v26068_v6  ;;  %v8040_v21 = vmul.f32 1.442695, %v7805_v38 }
 0x773   : > { %v18539_v30 = vpack.c.bf16 %v19225_v2, %v19224_v52 }
 0x774   : > { %v8038_v52 = vmul.f32 1.442695, %v7804_v41  ;;  %19736 = vpow2.f32 %v8040_v21 }
 0x775   : > { %17541 = vmatmul.mubr.msk.f32.vlgmr.msra.gmra.mrb[208].mxu1 %vm7313_vm2, %v8681_v29  ;;  %18540 = vmatprep.subr.bf16.mxu0 %v18539_v30 }
 0x776   : > { %17554 = vmatprep.mubr.msk.f32.mxu1 %vm7313_vm2, %v8684_v26  ;;  %18542 = vmatpush3.bf16.msra.mxu0 %v18539_v30  ;;  %19738 = vpow2.f32 %v8038_v52 }
 0x777   : > { %19740 = vrcp.f32 %v24374_v59 }
 0x778   : > { %19742 = vrcp.f32 %v24384_v16 }
 0x779   : > { %17562 = vmatmul.mubr.msk.f32.vlgmr.msra.gmra.mrb[104].mxu0 %vm7313_vm2, %v8687_v43  ;;  %19744 = vrcp.f32 %v24378_v23 }
 0x77a   : > { %17575 = vmatprep.mubr.msk.f32.mxu0 %vm7313_vm2, %v8690_v50  ;;  %19746 = vrcp.f32 %v24462_v47 }
 0x77b   : > { %19748 = vrcp.f32 %v24388_v39 }
 0x77c   : > { %19750 = vrcp.f32 %v24450_v60 }
 0x77e   : > { %v24494_v40 = vpop.eup %19736 }
 0x77f   : > { %v8403_v63 = vsel %vm7313_vm2, %v24494_v40, 0.0 }
 0x780   : > { %v24498_v1 = vpop.eup %19738 }
 0x781   : > { %v8400_v44 = vsel %vm7313_vm2, %v24498_v1, 0.0  ;;  %v19741_v41 = vpop.eup %19740 }
 0x782   : > { %v19743_v50 = vpop.eup %19742  ;;  %v8691_v23 = vmul.f32 %v19741_v41, %v24212_v36 }
 0x787   : > { %v24492_v2 = vpop.f32.mrb[94].mxu0 }
 0x788   : > { %v24496_v3 = vpop.f32.mrb[95].mxu0 }
 0x78c   : > { %8404 = vadd.xlane.f32.xlu0 %v8403_v63 }
 0x78e   : > { %8401 = vadd.xlane.f32.xlu1 %v8400_v44  ;;  %v8694_v44 = vmul.f32 %v19743_v50, %v24224_v22 }
 0x791   : > { %v24504_v29 = vpop.f32.mrb[202].mxu1 }
 0x792   : > { %26070 = vst [vmem:[#allocation150_spill] sm:$0xff] %v24504_v29  ;;  %v24506_v30 = vpop.f32.mrb[203].mxu1 }
 0x797   : > { %v24508_v48 = vpop.xlane.xlu0 %8419 }
 0x79b   : > { %v24510_v26 = vpop.xlane.xlu0 %8422 }
 0x79f   : > { %19262 = vrot.lane.b32.xlu1 %v26071_v51, %s20118_s21  ;;  %v24515_v11 = vpop.xlane.xlu0 %8380 }
 0x7a1   : > { %v24518_v14 = vpop.xlane.xlu1 %8377 }
 0x7a2   : > { %19257 = vrot.lane.b32.xlu0 %v26013_v7, %s20118_s21  ;;  %v26072_v7 = vld [vmem:[#allocation63_spill] sm:$0xff] }
 0x7a3   : > { %19267 = vrot.lane.b32.xlu1 %v26015_v31, %s20118_s21  ;;  %v24524_v38 = vpop.xlane.xlu0 %8431  ;;  %v26073_v31 = vld [vmem:[#allocation107_spill] sm:$0xff] }
 0x7a4   : > { %v7808_v21 = vsub.f32 %v26073_v31, %v26072_v7  ;;  %v26074_v7 = vld [vmem:[#allocation66_spill] sm:$0xff] }
 0x7a5   : > { %v19228_v59 = vpop.permute.xlu1 %19227 }
 0x7a6   : > { %v19230_v43 = vunpack.i.h.bf16 %v19228_v59  ;;  %v19229_v6 = vunpack.i.l.bf16 %v19228_v59  ;;  %v19745_v59 = vpop.eup %19744  ;;  %v8046_v39 = vmul.f32 1.442695, %v7808_v21 }
 0x7a7   : > { %v24528_v9 = vpop.xlane.xlu0 %8434  ;;  %v19747_v60 = vpop.eup %19746  ;;  %v8685_v36 = vmul.f32 %v19745_v59, %v24216_v49 }
 0x7a8   : > { %v18547_v16 = vpack.c.bf16 %v19230_v43, %v19229_v6  ;;  %v19749_v22 = vpop.eup %19748  ;;  %19752 = vpow2.f32 %v8046_v39  ;;  %v8688_v50 = vmul.f32 %v19747_v60, %v24288_v19  ;;  %v26077_v39 = vld [vmem:[#allocation42_spill] sm:$0xff] }
 0x7aa   : > { %18548 = vmatprep.subr.bf16.mxu0 %v18547_v16 }
 0x7ab   : > { %v19233_v52 = vpop.permute.xlu0 %19232  ;;  %18550 = vmatpush3.bf16.msra.mxu0 %v18547_v16  ;;  %v26075_v16 = vld [vmem:[#allocation88_spill] sm:$0xff] }
 0x7ac   : > { %v19235_v47 = vunpack.i.h.bf16 %v19233_v52  ;;  %v19234_v63 = vunpack.i.l.bf16 %v19233_v52  ;;  %v7809_v31 = vsub.f32 %v26075_v16, %v26074_v7  ;;  %v19751_v52 = vpop.eup %19750  ;;  %v26079_v16 = vld [vmem:[#allocation40_spill] sm:$0xff] }
 0x7ae   : > { %v18535_v51 = vpack.c.bf16 %v19235_v47, %v19234_v63  ;;  %17576 = vmatmul.mubr.msk.f32.vlgmr.msra.gmra.mrb[106].mxu0 %vm7313_vm2, %v8691_v23  ;;  %v8048_v21 = vmul.f32 1.442695, %v7809_v31  ;;  %v8695_v23 = vmul.f32 %v19749_v22, %v24228_v10  ;;  %v8698_v47 = vmul.f32 %v19751_v52, %v24272_v58 }
 0x7af   : > { %v19238_v43 = vpop.permute.xlu0 %19237  ;;  %17589 = vmatprep.mubr.msk.f32.mxu0 %vm7313_vm2, %v8694_v44 }
 0x7b0   : > { %v19240_v6 = vunpack.i.h.bf16 %v19238_v43  ;;  %v19239_v29 = vunpack.i.l.bf16 %v19238_v43  ;;  %18536 = vmatprep.subr.bf16.mxu1 %v18535_v51  ;;  %19754 = vpow2.f32 %v8048_v21 }
 0x7b1   : > { %18538 = vmatpush3.bf16.msra.mxu1 %v18535_v51  ;;  %19756 = vrcp.f32 %v24454_v28 }
 0x7b2   : > { %v18555_v41 = vpack.c.bf16 %v19240_v6, %v19239_v29  ;;  %v24548_v49 = vpop.eup %19752  ;;  %19758 = vrcp.f32 %v24460_v53  ;;  %v26081_v53 = vld [vmem:[#allocation50_spill] sm:$0xff] }
 0x7b3   : > { %v8412_v19 = vsel %vm7313_vm2, %v24548_v49, 0.0  ;;  %19760 = vrcp.f32 %v24466_v54 }
 0x7b4   : > { %17555 = vmatmul.mubr.msk.f32.vlgmr.msra.gmra.mrb[210].mxu1 %vm7313_vm2, %v8685_v36  ;;  %18556 = vmatprep.subr.bf16.mxu0 %v18555_v41  ;;  %19762 = vrcp.f32 %v24508_v48 }
 0x7b5   : > { %17568 = vmatprep.mubr.msk.f32.mxu1 %vm7313_vm2, %v8688_v50  ;;  %18558 = vmatpush3.bf16.msra.mxu0 %v18555_v41  ;;  %19764 = vrcp.f32 %v24456_v13  ;;  %v26080_v41 = vld [vmem:[#allocation153_spill] sm:$0xff]  ;;  %v26082_v13 = vld [vmem:[#allocation138_spill] sm:$0xff] }
 0x7b6   : > { %19766 = vrcp.f32 %v24518_v14  ;;  %v7812_v22 = vsub.f32 %v26081_v53, %v26080_v41 }
 0x7b8   : > { %17590 = vmatmul.mubr.msk.f32.vlgmr.msra.gmra.mrb[108].mxu0 %vm7313_vm2, %v8695_v23 }
 0x7b9   : > { %17603 = vmatprep.mubr.msk.f32.mxu0 %vm7313_vm2, %v8698_v47 }
 0x7ba   : > { %v24552_v29 = vpop.eup %19754 }
 0x7bb   : > { %v8415_v10 = vsel %vm7313_vm2, %v24552_v29, 0.0  ;;  %v19757_v52 = vpop.eup %19756 }
 0x7bc   : > { %v19759_v48 = vpop.eup %19758 }
 0x7c1   : > { %8413 = vadd.xlane.f32.xlu0 %v8412_v19 }
 0x7c4   : > { %v24554_v63 = vpop.f32.mrb[96].mxu0 }
 0x7c5   : > { %v24556_v44 = vpop.f32.mrb[97].mxu0 }
 0x7c7   : > { %8416 = vadd.xlane.f32.xlu1 %v8415_v10  ;;  %v8054_v10 = vmul.f32 1.442695, %v7812_v22 }
 0x7ce   : > { %v24560_v58 = vpop.f32.mrb[204].mxu1 }
 0x7cf   : > { %26076 = vst [vmem:[#allocation136_spill] sm:$0xff] %v24560_v58  ;;  %v24562_v51 = vpop.f32.mrb[205].mxu1  ;;  %v19761_v58 = vpop.eup %19760 }
 0x7d6   : > { %v24564_v59 = vpop.xlane.xlu1 %8443 }
 0x7d7   : > { %19272 = vrot.lane.b32.xlu0 %v26023_v27, %s20118_s21  ;;  %v26078_v27 = vld [vmem:[#allocation132_spill] sm:$0xff] }
 0x7d8   : > { %19277 = vrot.lane.b32.xlu1 %v26077_v39, %s20118_s21  ;;  %v7813_v31 = vsub.f32 %v26079_v16, %v26078_v27  ;;  %v26083_v39 = vld [vmem:[#allocation46_spill] sm:$0xff]  ;;  %v8699_v16 = vmul.f32 %v19757_v52, %v24278_v4  ;;  %v8703_v52 = vmul.f32 %v19761_v58, %v24294_v8 }
 0x7d9   : > { %v7816_v27 = vsub.f32 %v26083_v39, %v26082_v13  ;;  %v26084_v13 = vld [vmem:[#allocation151_spill] sm:$0xff]  ;;  %v26085_v39 = vld [vmem:[#allocation117_spill] sm:$0xff] }
 0x7da   : > { %v24570_v43 = vpop.xlane.xlu1 %8446  ;;  %v8056_v21 = vmul.f32 1.442695, %v7813_v31  ;;  %v8702_v31 = vmul.f32 %v19759_v48, %v24286_v25 }
 0x7db   : > { %19282 = vrot.lane.b32.xlu0 %v26026_v24, %s20118_s21 }
 0x7dc   : > { %19768 = vpow2.f32 %v8056_v21 }
 0x7dd   : > { %19770 = vpow2.f32 %v8054_v10 }
 0x7de   : > { %v24575_v60 = vpop.xlane.xlu1 %8392 }
 0x7e0   : > { %v24578_v6 = vpop.xlane.xlu0 %8389 }
 0x7e2   : > { %v24581_v7 = vpop.xlane.xlu1 %8455 }
 0x7e4   : > { %v19243_v24 = vpop.permute.xlu0 %19242 }
 0x7e5   : > { %v19245_v28 = vunpack.i.h.bf16 %v19243_v24  ;;  %v19244_v36 = vunpack.i.l.bf16 %v19243_v24 }
 0x7e6   : > { %v24590_v50 = vpop.xlane.xlu1 %8458 }
 0x7e7   : > { %v18563_v54 = vpack.c.bf16 %v19245_v28, %v19244_v36  ;;  %v19763_v28 = vpop.eup %19762 }
 0x7e8   : > { %v19253_v23 = vpop.permute.xlu0 %19252  ;;  %v19765_v22 = vpop.eup %19764  ;;  %v8706_v25 = vmul.f32 %v19763_v28, %v24340_v20 }
 0x7e9   : > { %v19255_v47 = vunpack.i.h.bf16 %v19253_v23  ;;  %v19254_v19 = vunpack.i.l.bf16 %v19253_v23  ;;  %18564 = vmatprep.subr.bf16.mxu0 %v18563_v54  ;;  %v8062_v23 = vmul.f32 1.442695, %v7816_v27  ;;  %v19767_v4 = vpop.eup %19766  ;;  %v8689_v21 = vmul.f32 %v19765_v22, %v24282_v18 }
 0x7ea   : > { %v19248_v14 = vpop.permute.xlu1 %19247  ;;  %18566 = vmatpush3.bf16.msra.mxu0 %v18563_v54  ;;  %v7817_v54 = vsub.f32 %v26085_v39, %v26084_v13 }
 0x7eb   : > { %v18571_v24 = vpack.c.bf16 %v19255_v47, %v19254_v19  ;;  %v19250_v41 = vunpack.i.h.bf16 %v19248_v14  ;;  %v19249_v53 = vunpack.i.l.bf16 %v19248_v14  ;;  %19772 = vpow2.f32 %v8062_v23  ;;  %v24608_v19 = vpop.eup %19768 }
 0x7ec   : > { %v8064_v48 = vmul.f32 1.442695, %v7817_v54  ;;  %v8692_v47 = vmul.f32 %v19767_v4, %v24354_v0  ;;  %v24610_v8 = vpop.eup %19770  ;;  %v8427_v18 = vsel %vm7313_vm2, %v24608_v19, 0.0 }
 0x7ed   : > { %v18543_v36 = vpack.c.bf16 %v19250_v41, %v19249_v53  ;;  %17604 = vmatmul.mubr.msk.f32.vlgmr.msra.gmra.mrb[110].mxu0 %vm7313_vm2, %v8699_v16  ;;  %18572 = vmatprep.subr.bf16.mxu0 %v18571_v24  ;;  %v8424_v20 = vsel %vm7313_vm2, %v24610_v8, 0.0 }
 0x7ee   : > { %18574 = vmatpush3.bf16.msra.mxu0 %v18571_v24  ;;  %17617 = vmatprep.mubr.msk.f32.mxu0 %vm7313_vm2, %v8702_v31  ;;  %19774 = vpow2.f32 %v8064_v48  ;;  %v26086_v31 = vld [vmem:[#allocation45_spill] sm:$0xff]  ;;  %v26088_v48 = vld [vmem:[#allocation114_spill] sm:$0xff] }
 0x7ef   : > { %18544 = vmatprep.subr.bf16.mxu1 %v18543_v36  ;;  %19776 = vrcp.f32 %v24510_v26 }
 0x7f0   : > { %18546 = vmatpush3.bf16.msra.mxu1 %v18543_v36  ;;  %19778 = vrcp.f32 %v24524_v38  ;;  %v26087_v36 = vld [vmem:[#allocation148_spill] sm:$0xff] }
 0x7f1   : > { %17618 = vmatmul.mubr.msk.f32.vlgmr.msra.gmra.mrb[112].mxu0 %vm7313_vm2, %v8703_v52  ;;  %v7820_v22 = vsub.f32 %v26087_v36, %v24160_v33  ;;  %19780 = vrcp.f32 %v24515_v11 }
 0x7f2   : > { %17631 = vmatprep.mubr.msk.f32.mxu0 %vm7313_vm2, %v8706_v25  ;;  %19782 = vrcp.f32 %v24578_v6 }
 0x7f3   : > { %17569 = vmatmul.mubr.msk.f32.vlgmr.msra.gmra.mrb[212].mxu1 %vm7313_vm2, %v8689_v21  ;;  %v8070_v39 = vmul.f32 1.442695, %v7820_v22  ;;  %19784 = vrcp.f32 %v24528_v9 }
 0x7f4   : > { %17582 = vmatprep.mubr.msk.f32.mxu1 %vm7313_vm2, %v8692_v47  ;;  %19786 = vrcp.f32 %v24564_v59  ;;  %v7821_v47 = vsub.f32 %v26088_v48, %v24166_v17  ;;  %v26089_v17 = vld [vmem:[#allocation103_spill] sm:$0xff]  ;;  %v26091_v48 = vld [vmem:[#allocation49_spill] sm:$0xff] }
 0x7f5   : > { %v24616_v58 = vpop.eup %19772  ;;  %19788 = vpow2.f32 %v8070_v39 }
 0x7f6   : > { %v8436_v0 = vsel %vm7313_vm2, %v24616_v58, 0.0  ;;  %v8072_v39 = vmul.f32 1.442695, %v7821_v47 }
 0x7f8   : > { %v24620_v10 = vpop.eup %19774  ;;  %19790 = vpow2.f32 %v8072_v39  ;;  %v13911_v39 = vld [vmem:[#allocation10 + $0x28] sm:$0xff] }
 0x7f9   : > { %v8439_v16 = vsel %vm7313_vm2, %v24620_v10, 0.0  ;;  %v19777_v25 = vpop.eup %19776 }
 0x7fa   : > { %8428 = vadd.xlane.f32.xlu0 %v8427_v18  ;;  %v19779_v11 = vpop.eup %19778  ;;  %v8707_v59 = vmul.f32 %v19777_v25, %v24344_v55 }
 0x7fb   : > { %v19781_v6 = vpop.eup %19780 }
 0x7fc   : > { %8425 = vadd.xlane.f32.xlu1 %v8424_v20  ;;  %v19783_v9 = vpop.eup %19782 }
 0x7fd   : > { %v19785_v22 = vpop.eup %19784  ;;  %v8696_v55 = vmul.f32 %v19783_v9, %v24434_v32 }
 0x800   : > { %8437 = vadd.xlane.f32.xlu1 %v8436_v0 }
 0x801   : > { %v24622_v27 = vpop.f32.mrb[98].mxu0 }
 0x802   : > { %v24624_v14 = vpop.f32.mrb[99].mxu0 }
 0x804   : > { %8440 = vadd.xlane.f32.xlu1 %v8439_v16  ;;  %v8710_v16 = vmul.f32 %v19779_v11, %v24358_v5 }
 0x80b   : > { %v24628_v24 = vpop.f32.mrb[206].mxu1 }
 0x80c   : > { %v24630_v41 = vpop.f32.mrb[207].mxu1 }
 0x80f   : > { %v24632_v53 = vpop.f32.mrb[100].mxu0 }
 0x810   : > { %19287 = vrot.lane.b32.xlu0 %v26086_v31, %s20118_s21  ;;  %v24636_v28 = vpop.f32.mrb[101].mxu0  ;;  %v8693_v31 = vmul.f32 %v19781_v6, %v24350_v35  ;;  %v8711_v35 = vmul.f32 %v19785_v22, %v24364_v15 }
 0x815   : > { %19292 = vrot.lane.b32.xlu1 %v26008_v62, %s20118_s21 }
 0x819   : > { %v24645_v23 = vpop.xlane.xlu0 %8404 }
 0x81b   : > { %v24648_v13 = vpop.xlane.xlu1 %8401 }
 0x81d   : > { %v19258_v54 = vpop.permute.xlu0 %19257 }
 0x81e   : > { %v19260_v62 = vunpack.i.h.bf16 %v19258_v54  ;;  %v19259_v26 = vunpack.i.l.bf16 %v19258_v54  ;;  %v7824_v54 = vsub.f32 %v26089_v17, %v24232_v12 }
 0x81f   : > { %v19263_v38 = vpop.permute.xlu1 %19262 }
 0x820   : > { %v18579_v4 = vpack.c.bf16 %v19260_v62, %v19259_v26  ;;  %v19265_v52 = vunpack.i.h.bf16 %v19263_v38  ;;  %v19264_v33 = vunpack.i.l.bf16 %v19263_v38  ;;  %v19787_v62 = vpop.eup %19786  ;;  %v8078_v26 = vmul.f32 1.442695, %v7824_v54  ;;  %v26090_v38 = vld [vmem:[#allocation115_spill] sm:$0xff] }
 0x821   : > { %v24665_v5 = vpop.eup %19788  ;;  %v7825_v12 = vsub.f32 %v26090_v38, %v24234_v61 }
 0x822   : > { %v18551_v21 = vpack.c.bf16 %v19265_v52, %v19264_v33  ;;  %18580 = vmatprep.subr.bf16.mxu0 %v18579_v4  ;;  %v8448_v32 = vsel %vm7313_vm2, %v24665_v5, 0.0  ;;  %19792 = vpow2.f32 %v8078_v26  ;;  %v24674_v15 = vpop.eup %19790 }
 0x823   : > { %v19268_v18 = vpop.permute.xlu1 %19267  ;;  %18582 = vmatpush3.bf16.msra.mxu0 %v18579_v4  ;;  %v8714_v4 = vmul.f32 %v19787_v62, %v24420_v46  ;;  %v8080_v52 = vmul.f32 1.442695, %v7825_v12  ;;  %v8451_v33 = vsel %vm7313_vm2, %v24674_v15, 0.0 }
 0x824   : > { %v19270_v20 = vunpack.i.h.bf16 %v19268_v18  ;;  %v19269_v0 = vunpack.i.l.bf16 %v19268_v18  ;;  %18552 = vmatprep.subr.bf16.mxu1 %v18551_v21  ;;  %v26092_v18 = vld [vmem:[#allocation83_spill] sm:$0xff] }
 0x825   : > { %18554 = vmatpush3.bf16.msra.mxu1 %v18551_v21  ;;  %19794 = vpow2.f32 %v8080_v52  ;;  %v13912_v52 = vld [vmem:[#allocation10 + $0x30] sm:$0xff] }
 0x826   : > { %v18587_v36 = vpack.c.bf16 %v19270_v20, %v19269_v0  ;;  %17632 = vmatmul.mubr.msk.f32.vlgmr.msra.gmra.mrb[114].mxu0 %vm7313_vm2, %v8707_v59  ;;  %19796 = vrcp.f32 %v24570_v43 }
 0x827   : > { %17645 = vmatprep.mubr.msk.f32.mxu0 %vm7313_vm2, %v8710_v16  ;;  %19798 = vrcp.f32 %v24581_v7  ;;  %v26093_v16 = vld [vmem:[#allocation77_spill] sm:$0xff] }
 0x828   : > { %17583 = vmatmul.mubr.msk.f32.vlgmr.msra.gmra.mrb[214].mxu1 %vm7313_vm2, %v8693_v31  ;;  %18588 = vmatprep.subr.bf16.mxu0 %v18587_v36  ;;  %19800 = vrcp.f32 %v24590_v50 }
 0x829   : > { %17596 = vmatprep.mubr.msk.f32.mxu1 %vm7313_vm2, %v8696_v55  ;;  %18590 = vmatpush3.bf16.msra.mxu0 %v18587_v36  ;;  %19802 = vrcp.f32 %v24575_v60 }
 0x82a   : > { %19804 = vrcp.f32 %v24648_v13 }
 0x82b   : > { %19806 = vrcp.f32 %v24645_v23 }
 0x82c   : > { %17646 = vmatmul.mubr.msk.f32.vlgmr.msra.gmra.mrb[116].mxu0 %vm7313_vm2, %v8711_v35  ;;  %v24678_v25 = vpop.eup %19792 }
 0x82d   : > { %17659 = vmatprep.mubr.msk.f32.mxu0 %vm7313_vm2, %v8714_v4  ;;  %v8460_v61 = vsel %vm7313_vm2, %v24678_v25, 0.0 }
 0x82f   : > { %8449 = vadd.xlane.f32.xlu0 %v8448_v32  ;;  %v24682_v46 = vpop.eup %19794 }
 0x830   : > { %v8463_v11 = vsel %vm7313_vm2, %v24682_v46, 0.0  ;;  %v19797_v17 = vpop.eup %19796 }
 0x831   : > { %v19799_v55 = vpop.eup %19798  ;;  %v8715_v26 = vmul.f32 %v19797_v17, %v24424_v57  ;;  %v14557_v17 = vld [vmem:[#allocation10 + $0x48] sm:$0xff] }
 0x832   : > { %v19801_v4 = vpop.eup %19800  ;;  %v8718_v32 = vmul.f32 %v19799_v55, %v24438_v37  ;;  %v26096_v55 = vld [vmem:[#allocation155_spill] sm:$0xff] }
 0x839   : > { %8452 = vadd.xlane.f32.xlu1 %v8451_v33  ;;  %v13913_v33 = vld [vmem:[#allocation10 + $0x38] sm:$0xff] }
 0x83a   : > { %v18615_v57 = vpack.c.bf16 %v13913_v33, %v13912_v52  ;;  %v26107_v52 = vld [vmem:[#allocation95_spill] sm:$0xff]  ;;  %v26108_v33 = vld [vmem:[#allocation57_spill] sm:$0xff] }
 0x83d   : > { %8461 = vadd.xlane.f32.xlu1 %v8460_v61 }
 0x841   : > { %8464 = vadd.xlane.f32.xlu1 %v8463_v11  ;;  %v19803_v11 = vpop.eup %19802 }
 0x842   : > { %v24686_v21 = vpop.f32.mrb[102].mxu0  ;;  %v8697_v37 = vmul.f32 %v19803_v11, %v24432_v45  ;;  %v14556_v45 = vld [vmem:[#allocation10 + $0x40] sm:$0xff] }
 0x843   : > { %v24688_v6 = vpop.f32.mrb[103].mxu0 }
 0x845   : > { %19297 = vrot.lane.b32.xlu0 %v26091_v48, %s20118_s21  ;;  %v19805_v48 = vpop.eup %19804 }
 0x848   : > { %v24692_v47 = vpop.f32.mrb[208].mxu1 }
 0x849   : > { %19307 = vrot.lane.b32.xlu0 %v26092_v18, %s20118_s21  ;;  %v24696_v9 = vpop.f32.mrb[209].mxu1  ;;  %v8719_v18 = vmul.f32 %v19801_v4, %v24446_v56  ;;  %v26105_v4 = vld [vmem:[#allocation122_spill] sm:$0xff] }
 0x84c   : > { %v24699_v59 = vpop.f32.mrb[104].mxu0 }
 0x84d   : > { %19312 = vrot.lane.b32.xlu0 %v26065_v42, %s20118_s21  ;;  %v24704_v20 = vpop.f32.mrb[105].mxu0  ;;  %v13910_v42 = vld [vmem:[#allocation10 + $0x20] sm:$0xff] }
 0x84e   : > { %v24706_v0 = vpop.xlane.xlu0 %8413  ;;  %v18611_v35 = vpack.c.bf16 %v13911_v39, %v13910_v42  ;;  %v13909_v42 = vld [vmem:[#allocation10 + $0x18] sm:$0xff] }
 0x84f   : > { %19808 = vrcp.f32 %v24706_v0 }
 0x852   : > { %19302 = vrot.lane.b32.xlu1 %v26093_v16, %s20118_s21  ;;  %v19273_v31 = vpop.permute.xlu0 %19272  ;;  %v13906_v16 = vld [vmem:[#allocation10] sm:$0xff] }
 0x853   : > { %v19275_v43 = vunpack.i.h.bf16 %v19273_v31  ;;  %v19274_v36 = vunpack.i.l.bf16 %v19273_v31  ;;  %v13907_v31 = vld [vmem:[#allocation10 + $0x8] sm:$0xff] }
 0x854   : > { %v24713_v7 = vpop.xlane.xlu1 %8416  ;;  %v18619_v56 = vpack.c.bf16 %v13907_v31, %v13906_v16  ;;  %v26111_v31 = vld [vmem:[#allocation149_spill] sm:$0xff] }
 0x855   : > { %v18595_v22 = vpack.c.bf16 %v19275_v43, %v19274_v36  ;;  %v26094_v43 = vld [vmem:[#allocation84_spill] sm:$0xff]  ;;  %v8700_v36 = vmul.f32 %v19805_v48, %v24498_v1  ;;  %v24731_v1 = vpack.c.bf16 %v14557_v17, %v14556_v45  ;;  %v26114_v45 = vld [vmem:[#allocation134_spill] sm:$0xff]  ;;  %19810 = vrcp.f32 %v24713_v7  ;;  %v26118_v7 = vld [vmem:[#allocation55_spill] sm:$0xff] }
 0x856   : > { %v19283_v54 = vpop.permute.xlu0 %19282  ;;  %v26109_v48 = vld [vmem:[#allocation108_spill] sm:$0xff] }
 0x857   : > { %v19285_v62 = vunpack.i.h.bf16 %v19283_v54  ;;  %v19284_v50 = vunpack.i.l.bf16 %v19283_v54  ;;  %18596 = vmatprep.subr.bf16.mxu0 %v18595_v22  ;;  %v26095_v54 = vld [vmem:[#allocation127_spill] sm:$0xff] }
 0x858   : > { %v19278_v60 = vpop.permute.xlu1 %19277  ;;  %18598 = vmatpush3.bf16.msra.mxu0 %v18595_v22  ;;  %v13908_v22 = vld [vmem:[#allocation10 + $0x10] sm:$0xff] }
 0x859   : > { %v18603_v38 = vpack.c.bf16 %v19285_v62, %v19284_v50  ;;  %v19280_v13 = vunpack.i.h.bf16 %v19278_v60  ;;  %v19279_v12 = vunpack.i.l.bf16 %v19278_v60  ;;  %v18623_v39 = vpack.c.bf16 %v13909_v42, %v13908_v22  ;;  %v26097_v62 = vld [vmem:[#allocation143_spill] sm:$0xff]  ;;  %v26098_v50 = vld [vmem:[#allocation124_spill] sm:$0xff]  ;;  %v26099_v60 = vld [vmem:[#allocation141_spill] sm:$0xff] }
 0x85a   : > { %v26113_v42 = vld [vmem:[#allocation130_spill] sm:$0xff] }
 0x85b   : > { %v18559_v61 = vpack.c.bf16 %v19280_v13, %v19279_v12  ;;  %17660 = vmatmul.mubr.msk.f32.vlgmr.msra.gmra.mrb[118].mxu0 %vm7313_vm2, %v8715_v26  ;;  %18604 = vmatprep.subr.bf16.mxu0 %v18603_v38  ;;  %v26101_v26 = vld [vmem:[#allocation126_spill] sm:$0xff]  ;;  %v26104_v12 = vld [vmem:[#allocation125_spill] sm:$0xff] }
 0x85c   : > { %18606 = vmatpush3.bf16.msra.mxu0 %v18603_v38  ;;  %17673 = vmatprep.mubr.msk.f32.mxu0 %vm7313_vm2, %v8718_v32  ;;  %v26102_v38 = vld [vmem:[#allocation94_spill] sm:$0xff]  ;;  %v26106_v32 = vld [vmem:[#allocation129_spill] sm:$0xff] }
 0x85d   : > { %18560 = vmatprep.subr.bf16.mxu1 %v18559_v61  ;;  %18612 = vmatprep.subr.bf16.mxu0 %v18611_v35  ;;  %v26103_v13 = vld [vmem:[#allocation142_spill] sm:$0xff] }
 0x85e   : > { %18562 = vmatpush3.bf16.msra.mxu1 %v18559_v61 }
 0x85f   : > { %17674 = vmatmul.mubr.msk.f32.vlgmr.msra.gmra.mrb[120].mxu0 %vm7313_vm2, %v8719_v18  ;;  %v26110_v18 = vld [vmem:[#allocation98_spill] sm:$0xff] }
 0x860   : > { %18614 = vmatpush3.bf16.msra.mxu0 %v18611_v35  ;;  %17691 = vmatprep.mubr.msk.f32.mxu0 %vm1704_vm0, %v26094_v43  ;;  %v26100_v35 = vld [vmem:[#allocation119_spill] sm:$0xff]  ;;  %v26112_v43 = vld [vmem:[#allocation61_spill] sm:$0xff] }
 0x861   : > { %17597 = vmatmul.mubr.msk.f32.vlgmr.msra.gmra.mrb[216].mxu1 %vm7313_vm2, %v8697_v37  ;;  %18616 = vmatprep.subr.bf16.mxu0 %v18615_v57 }
 0x862   : > { %17610 = vmatprep.mubr.msk.f32.mxu1 %vm7313_vm2, %v8700_v36 }
 0x864   : > { %18618 = vmatpush3.bf16.msra.mxu0 %v18615_v57 }
 0x865   : > { %18620 = vmatprep.subr.bf16.mxu0 %v18619_v56 }
 0x867   : > { %17692 = vmatmul.mubr.msk.f32.vlgmr.msra.gmra.mrb[122].mxu0 %vm1704_vm0, %v26095_v54 }
 0x868   : > { %17694 = vmatprep.mubr.msk.f32.mxu0 %vm1704_vm0, %v26096_v55  ;;  %18622 = vmatpush3.bf16.msra.mxu0 %v18619_v56  ;;  %v19807_v55 = vpop.eup %19806 }
 0x869   : > { %18624 = vmatprep.subr.bf16.mxu0 %v18623_v39 }
 0x86b   : > { %17695 = vmatmul.mubr.msk.f32.gmra.mrb[124].mxu0 %vm1704_vm0, %v26097_v62  ;;  %v26115_v62 = vld [vmem:[#allocation121_spill] sm:$0xff] }
 0x86c   : > { %17697 = vmatprep.mubr.msk.f32.mxu0 %vm1704_vm0, %v26098_v50  ;;  %18626 = vmatpush3.bf16.msra.mxu0 %v18623_v39  ;;  %v19809_v50 = vpop.eup %19808 }
 0x86d   : > { %18628 = vmatprep.subr.bf16.mxu0 %v24731_v1 }
 0x86f   : > { %17698 = vmatmul.mubr.msk.f32.gmra.mrb[126].mxu0 %vm1704_vm0, %v26099_v60  ;;  %v26116_v60 = vld [vmem:[#allocation59_spill] sm:$0xff] }
 0x870   : > { %17700 = vmatprep.mubr.msk.f32.mxu0 %vm1704_vm0, %v26100_v35 }
 0x873   : > { %17701 = vmatmul.mubr.msk.f32.gmra.mrb[128].mxu0 %vm1704_vm0, %v26101_v26  ;;  %v8701_v26 = vmul.f32 %v19807_v55, %v24494_v40  ;;  %v26120_v40 = vld [vmem:[#allocation152_spill] sm:$0xff]  ;;  %v14914_v55 = vld [vmem:[#allocation10 + $0x68] sm:$0xff] }
 0x874   : > { %17703 = vmatprep.mubr.msk.f32.mxu0 %vm1704_vm0, %v26102_v38  ;;  %v26117_v38 = vld [vmem:[#allocation144_spill] sm:$0xff] }
 0x877   : > { %17704 = vmatmul.mubr.msk.f32.gmra.mrb[130].mxu0 %vm1704_vm0, %v26103_v13  ;;  %v8704_v13 = vmul.f32 %v19809_v50, %v24548_v49  ;;  %v26121_v49 = vld [vmem:[#allocation131_spill] sm:$0xff] }
 0x878   : > { %17706 = vmatprep.mubr.msk.f32.mxu0 %vm1704_vm0, %v26104_v12  ;;  %v26128_v50 = vld [vmem:[#allocation39_spill] sm:$0xff] }
 0x87b   : > { %17707 = vmatmul.mubr.msk.f32.gmra.mrb[132].mxu0 %vm1704_vm0, %v26105_v4 }
 0x87c   : > { %17709 = vmatprep.mubr.msk.f32.mxu0 %vm1704_vm0, %v26106_v32 }
 0x87f   : > { %17710 = vmatmul.mubr.msk.f32.gmra.mrb[134].mxu0 %vm1704_vm0, %v26107_v52  ;;  %v26119_v52 = vld [vmem:[#allocation65_spill] sm:$0xff] }
 0x880   : > { %17712 = vmatprep.mubr.msk.f32.mxu0 %vm1704_vm0, %v26108_v33 }
 0x881   : > { %v24758_v61 = vpop.f32.mrb[106].mxu0 }
 0x882   : > { %v24760_v11 = vpop.f32.mrb[107].mxu0 }
 0x883   : > { %17713 = vmatmul.mubr.msk.f32.gmra.mrb[136].mxu0 %vm1704_vm0, %v26109_v48  ;;  %v19811_v48 = vpop.eup %19810 }
 0x884   : > { %17715 = vmatprep.mubr.msk.f32.mxu0 %vm1704_vm0, %v26110_v18 }
 0x887   : > { %v24768_v57 = vpop.xlane.xlu0 %8428  ;;  %v24770_v16 = vpop.f32.mrb[210].mxu1  ;;  %17716 = vmatmul.mubr.msk.f32.gmra.mrb[138].mxu0 %vm1704_vm0, %v26111_v31  ;;  %v8705_v31 = vmul.f32 %v19811_v48, %v24552_v29  ;;  %v26126_v29 = vld [vmem:[#allocation97_spill] sm:$0xff] }
 0x888   : > { %v24774_v37 = vpop.f32.mrb[211].mxu1  ;;  %17718 = vmatprep.mubr.msk.f32.mxu0 %vm1704_vm0, %v26112_v43  ;;  %v26122_v43 = vld [vmem:[#allocation154_spill] sm:$0xff]  ;;  %v26139_v48 = vld [vmem:[#allocation69_spill] sm:$0xff] }
 0x889   : > { %v8426_v36 = vpop.xlane.xlu1 %8425 }
 0x88a   : > { %19812 = vrcp.f32 %v8426_v36 }
 0x88b   : > { %v19288_v56 = vpop.permute.xlu0 %19287  ;;  %v24778_v22 = vpop.f32.mrb[108].mxu0  ;;  %17719 = vmatmul.mubr.msk.f32.gmra.mrb[140].mxu0 %vm1704_vm0, %v26113_v42  ;;  %v26124_v42 = vld [vmem:[#allocation135_spill] sm:$0xff]  ;;  %19814 = vrcp.f32 %v24768_v57 }
 0x88c   : > { %v19290_v23 = vunpack.i.h.bf16 %v19288_v56  ;;  %v19289_v0 = vunpack.i.l.bf16 %v19288_v56  ;;  %v24782_v39 = vpop.f32.mrb[109].mxu0  ;;  %17721 = vmatprep.mubr.msk.f32.mxu0 %vm1704_vm0, %v26114_v45  ;;  %v26123_v56 = vld [vmem:[#allocation22_spill] sm:$0xff] }
 0x88d   : > { %v8438_v17 = vpop.xlane.xlu1 %8437  ;;  %v26125_v45 = vld [vmem:[#allocation58_spill] sm:$0xff] }
 0x88e   : > { %v18567_v54 = vpack.c.bf16 %v19290_v23, %v19289_v0  ;;  %v14558_v23 = vld [vmem:[#allocation10 + $0x50] sm:$0xff]  ;;  %v14559_v0 = vld [vmem:[#allocation10 + $0x58] sm:$0xff]  ;;  %19816 = vrcp.f32 %v8438_v17 }
 0x88f   : > { %17722 = vmatmul.mubr.msk.f32.gmra.mrb[142].mxu0 %vm1704_vm0, %v26115_v62  ;;  %v26127_v62 = vld [vmem:[#allocation64_spill] sm:$0xff] }
 0x890   : > { %18568 = vmatprep.subr.bf16.mxu1 %v18567_v54  ;;  %17724 = vmatprep.mubr.msk.f32.mxu0 %vm1704_vm0, %v26116_v60 }
 0x891   : > { %v24791_v35 = vpop.xlane.xlu1 %8440  ;;  %18570 = vmatpush3.bf16.msra.mxu1 %v18567_v54  ;;  %v18631_v54 = vpack.c.bf16 %v14559_v0, %v14558_v23  ;;  %v26142_v0 = vld [vmem:[#allocation76_spill] sm:$0xff] }
 0x892   : > { %19818 = vrcp.f32 %v24791_v35  ;;  %v26149_v35 = vld [vmem:[#allocation18_spill] sm:$0xff] }
 0x893   : > { %17725 = vmatmul.mubr.msk.f32.gmra.mrb[144].mxu0 %vm1704_vm0, %v26117_v38  ;;  %v26130_v38 = vld [vmem:[#allocation72_spill] sm:$0xff] }
 0x894   : > { %17611 = vmatmul.mubr.msk.f32.vlgmr.msra.gmra.mrb[218].mxu1 %vm7313_vm2, %v8701_v26  ;;  %17727 = vmatprep.mubr.msk.f32.mxu0 %vm1704_vm0, %v26118_v7  ;;  %v19813_v18 = vpop.eup %19812  ;;  %v26129_v26 = vld [vmem:[#allocation93_spill] sm:$0xff]  ;;  %v26132_v7 = vld [vmem:[#allocation87_spill] sm:$0xff] }
 0x895   : > { %v19293_v12 = vpop.permute.xlu1 %19292  ;;  %17624 = vmatprep.mubr.msk.f32.mxu1 %vm7313_vm2, %v8704_v13  ;;  %v8708_v36 = vmul.f32 %v19813_v18, %v24610_v8  ;;  %v14913_v8 = vld [vmem:[#allocation10 + $0x60] sm:$0xff]  ;;  %v26131_v13 = vld [vmem:[#allocation67_spill] sm:$0xff] }
 0x896   : > { %v19295_v4 = vunpack.i.h.bf16 %v19293_v12  ;;  %v19294_v32 = vunpack.i.l.bf16 %v19293_v12  ;;  %v24826_v60 = vpack.c.bf16 %v14914_v55, %v14913_v8  ;;  %v26133_v12 = vld [vmem:[#allocation100_spill] sm:$0xff] }
 0x897   : > { %17728 = vmatmul.mubr.msk.f32.gmra.mrb[146].mxu0 %vm1704_vm0, %v26119_v52  ;;  %v26137_v52 = vld [vmem:[#allocation123_spill] sm:$0xff] }
 0x898   : > { %v18575_v33 = vpack.c.bf16 %v19295_v4, %v19294_v32  ;;  %17730 = vmatprep.mubr.msk.f32.mxu0 %vm1704_vm0, %v26120_v40  ;;  %v26135_v4 = vld [vmem:[#allocation36_spill] sm:$0xff]  ;;  %v26136_v32 = vld [vmem:[#allocation111_spill] sm:$0xff] }
 0x899   : > { %v26138_v40 = vld [vmem:[#allocation80_spill] sm:$0xff] }
 0x89a   : > { %18576 = vmatprep.subr.bf16.mxu1 %v18575_v33 }
 0x89b   : > { %18578 = vmatpush3.bf16.msra.mxu1 %v18575_v33  ;;  %17731 = vmatmul.mubr.msk.f32.gmra.mrb[148].mxu0 %vm1704_vm0, %v26121_v49 }
 0x89c   : > { %17733 = vmatprep.mubr.msk.f32.mxu0 %vm1704_vm0, %v26122_v43 }
 0x89e   : > { %17625 = vmatmul.mubr.msk.f32.vlgmr.msra.gmra.mrb[220].mxu1 %vm7313_vm2, %v8705_v31  ;;  %v26140_v31 = vld [vmem:[#allocation105_spill] sm:$0xff] }
 0x89f   : > { %17638 = vmatprep.mubr.msk.f32.mxu1 %vm7313_vm2, %v8708_v36  ;;  %17734 = vmatmul.mubr.msk.f32.gmra.mrb[150].mxu0 %vm1704_vm0, %v26123_v56  ;;  %v26141_v56 = vld [vmem:[#allocation19_spill] sm:$0xff] }
 0x8a0   : > { %17736 = vmatprep.mubr.msk.f32.mxu0 %vm1704_vm0, %v26124_v42  ;;  %v19815_v42 = vpop.eup %19814 }
 0x8a1   : > { %v8709_v55 = vmul.f32 %v19815_v42, %v24608_v19  ;;  %v26146_v19 = vld [vmem:[#allocation26_spill] sm:$0xff] }
 0x8a3   : > { %17737 = vmatmul.mubr.msk.f32.gmra.mrb[152].mxu0 %vm1704_vm0, %v26125_v45  ;;  %v19817_v45 = vpop.eup %19816 }
 0x8a4   : > { %17747 = vmatprep.mubr.msk.f32.mxu0 %vm1704_vm0, %v26126_v29 }
 0x8a7   : > { %17748 = vmatmul.mubr.msk.f32.vlgmr.msra.gmra.mrb[122].mxu0 %vm1704_vm0, %v26127_v62 }
 0x8a8   : > { %17750 = vmatprep.mubr.msk.f32.mxu0 %vm1704_vm0, %v26128_v50  ;;  %18630 = vmatpush3.bf16.msra.mxu0 %v24731_v1  ;;  %v26134_v1 = vld [vmem:[#allocation96_spill] sm:$0xff] }
 0x8a9   : > { %18632 = vmatprep.subr.bf16.mxu0 %v18631_v54  ;;  %v26143_v50 = vld [vmem:[#allocation56_spill] sm:$0xff] }
 0x8ab   : > { %17751 = vmatmul.mubr.msk.f32.gmra.mrb[124].mxu0 %vm1704_vm0, %v26129_v26  ;;  %v26144_v26 = vld [vmem:[#allocation85_spill] sm:$0xff] }
 0x8ac   : > { %17753 = vmatprep.mubr.msk.f32.mxu0 %vm1704_vm0, %v26130_v38  ;;  %18634 = vmatpush3.bf16.msra.mxu0 %v18631_v54  ;;  %v8712_v38 = vmul.f32 %v19817_v45, %v24616_v58  ;;  %v26148_v58 = vld [vmem:[#allocation20_spill] sm:$0xff]  ;;  %v26151_v45 = vld [vmem:[#allocation106_spill] sm:$0xff] }
 0x8ad   : > { %18636 = vmatprep.subr.bf16.mxu0 %v24826_v60 }
 0x8af   : > { %17754 = vmatmul.mubr.msk.f32.gmra.mrb[126].mxu0 %vm1704_vm0, %v26131_v13 }
 0x8b0   : > { %17756 = vmatprep.mubr.msk.f32.mxu0 %vm1704_vm0, %v26132_v7  ;;  %v26145_v7 = vld [vmem:[#allocation53_spill] sm:$0xff] }
 0x8b3   : > { %17757 = vmatmul.mubr.msk.f32.gmra.mrb[128].mxu0 %vm1704_vm0, %v26133_v12 }
 0x8b4   : > { %17759 = vmatprep.mubr.msk.f32.mxu0 %vm1704_vm0, %v26134_v1 }
 0x8b7   : > { %17760 = vmatmul.mubr.msk.f32.gmra.mrb[130].mxu0 %vm1704_vm0, %v26135_v4  ;;  %v26147_v4 = vld [vmem:[#allocation29_spill] sm:$0xff] }
 0x8b8   : > { %17762 = vmatprep.mubr.msk.f32.mxu0 %vm1704_vm0, %v26136_v32 }
 0x8bb   : > { %17763 = vmatmul.mubr.msk.f32.gmra.mrb[132].mxu0 %vm1704_vm0, %v26137_v52 }
 0x8bc   : > { %v8450_v33 = vpop.xlane.xlu0 %8449  ;;  %17765 = vmatprep.mubr.msk.f32.mxu0 %vm1704_vm0, %v26138_v40 }
 0x8bd   : > { %19820 = vrcp.f32 %v8450_v33  ;;  %v26150_v33 = vld [vmem:[#allocation104_spill] sm:$0xff] }
 0x8bf   : > { %17766 = vmatmul.mubr.msk.f32.gmra.mrb[134].mxu0 %vm1704_vm0, %v26139_v48 }
 0x8c0   : > { %v19298_v18 = vpop.permute.xlu0 %19297  ;;  %v24852_v49 = vpop.f32.mrb[110].mxu0  ;;  %17768 = vmatprep.mubr.msk.f32.mxu0 %vm1704_vm0, %v26140_v31 }
 0x8c1   : > { %v19300_v43 = vunpack.i.h.bf16 %v19298_v18  ;;  %v19299_v36 = vunpack.i.l.bf16 %v19298_v18  ;;  %v24856_v57 = vpop.f32.mrb[111].mxu0 }
 0x8c3   : > { %v18583_v17 = vpack.c.bf16 %v19300_v43, %v19299_v36  ;;  %17769 = vmatmul.mubr.msk.f32.gmra.mrb[136].mxu0 %vm1704_vm0, %v26141_v56  ;;  %v19819_v36 = vpop.eup %19818 }
 0x8c4   : > { %v24860_v23 = vpop.f32.mrb[112].mxu0  ;;  %17771 = vmatprep.mubr.msk.f32.mxu0 %vm1704_vm0, %v26142_v0  ;;  %v19308_v12 = vpop.permute.xlu0 %19307 }
 0x8c5   : > { %v24864_v29 = vpop.f32.mrb[113].mxu0  ;;  %18584 = vmatprep.subr.bf16.mxu1 %v18583_v17  ;;  %v19310_v52 = vunpack.i.h.bf16 %v19308_v12  ;;  %v19309_v40 = vunpack.i.l.bf16 %v19308_v12  ;;  %v26154_v12 = vld [vmem:[#allocation120_spill] sm:$0xff] }
 0x8c6   : > { %v8453_v54 = vpop.xlane.xlu1 %8452  ;;  %v24866_v8 = vpop.f32.mrb[212].mxu1  ;;  %18586 = vmatpush3.bf16.msra.mxu1 %v18583_v17 }
 0x8c7   : > { %v24869_v62 = vpop.f32.mrb[213].mxu1  ;;  %17772 = vmatmul.mubr.msk.f32.gmra.mrb[138].mxu0 %vm1704_vm0, %v26143_v50  ;;  %19822 = vrcp.f32 %v8453_v54  ;;  %v19821_v17 = vpop.eup %19820  ;;  %v18599_v56 = vpack.c.bf16 %v19310_v52, %v19309_v40  ;;  %v26152_v54 = vld [vmem:[#allocation24_spill] sm:$0xff]  ;;  %v26157_v52 = vld [vmem:[#allocation73_spill] sm:$0xff] }
 0x8c8   : > { %17774 = vmatprep.mubr.msk.f32.mxu0 %vm1704_vm0, %v26144_v26  ;;  %v19313_v31 = vpop.permute.xlu0 %19312  ;;  %v8716_v26 = vmul.f32 %v19821_v17, %v24665_v5  ;;  %v26155_v5 = vld [vmem:[#allocation90_spill] sm:$0xff] }
 0x8c9   : > { %17639 = vmatmul.mubr.msk.f32.vlgmr.msra.gmra.mrb[222].mxu1 %vm7313_vm2, %v8709_v55  ;;  %v19315_v42 = vunpack.i.h.bf16 %v19313_v31  ;;  %v19314_v0 = vunpack.i.l.bf16 %v19313_v31  ;;  %v8713_v55 = vmul.f32 %v19819_v36, %v24620_v10  ;;  %v26163_v31 = vld [vmem:[#allocation75_spill] sm:$0xff]  ;;  %v26165_v36 = vld [vmem:[#allocation150_spill] sm:$0xff] }
 0x8ca   : > { %v8462_v13 = vpop.xlane.xlu1 %8461  ;;  %17652 = vmatprep.mubr.msk.f32.mxu1 %vm7313_vm2, %v8712_v38 }
 0x8cb   : > { %17775 = vmatmul.mubr.msk.f32.gmra.mrb[140].mxu0 %vm1704_vm0, %v26145_v7  ;;  %19824 = vrcp.f32 %v8462_v13  ;;  %v18607_v13 = vpack.c.bf16 %v19315_v42, %v19314_v0  ;;  %v26153_v7 = vld [vmem:[#allocation28_spill] sm:$0xff] }
 0x8cc   : > { %17777 = vmatprep.mubr.msk.f32.mxu0 %vm1704_vm0, %v26146_v19 }
 0x8ce   : > { %v8465_v1 = vpop.xlane.xlu1 %8464 }
 0x8cf   : > { %17778 = vmatmul.mubr.msk.f32.gmra.mrb[142].mxu0 %vm1704_vm0, %v26147_v4  ;;  %19826 = vrcp.f32 %v8465_v1 }
 0x8d0   : > { %17780 = vmatprep.mubr.msk.f32.mxu0 %vm1704_vm0, %v26148_v58  ;;  %v26156_v58 = vld [vmem:[#allocation102_spill] sm:$0xff] }
 0x8d1   : > { %v19823_v50 = vpop.eup %19822 }
 0x8d2   : > { %v19303_v32 = vpop.permute.xlu1 %19302  ;;  %v8717_v19 = vmul.f32 %v19823_v50, %v24674_v15  ;;  %v14915_v15 = vld [vmem:[#allocation10 + $0x70] sm:$0xff] }
 0x8d3   : > { %v19305_v48 = vunpack.i.h.bf16 %v19303_v32  ;;  %v19304_v18 = vunpack.i.l.bf16 %v19303_v32  ;;  %17781 = vmatmul.mubr.msk.f32.gmra.mrb[144].mxu0 %vm1704_vm0, %v26149_v35  ;;  %v14916_v32 = vld [vmem:[#allocation10 + $0x78] sm:$0xff]  ;;  %v26162_v35 = vld [vmem:[#allocation31_spill] sm:$0xff] }
 0x8d4   : > { %17783 = vmatprep.mubr.msk.f32.mxu0 %vm1704_vm0, %v26150_v33  ;;  %v18639_v40 = vpack.c.bf16 %v14916_v32, %v14915_v15  ;;  %v26164_v33 = vld [vmem:[#allocation44_spill] sm:$0xff] }
 0x8d5   : > { %v18591_v43 = vpack.c.bf16 %v19305_v48, %v19304_v18  ;;  %v19825_v38 = vpop.eup %19824  ;;  %v26159_v48 = vld [vmem:[#allocation145_spill] sm:$0xff]  ;;  %v26160_v18 = vld [vmem:[#allocation74_spill] sm:$0xff] }
 0x8d6   : > { %v8720_v1 = vmul.f32 %v19825_v38, %v24678_v25  ;;  %v26158_v25 = vld [vmem:[#allocation41_spill] sm:$0xff] }
 0x8d7   : > { %18592 = vmatprep.subr.bf16.mxu1 %v18591_v43  ;;  %17784 = vmatmul.mubr.msk.f32.gmra.mrb[146].mxu0 %vm1704_vm0, %v26151_v45 }
 0x8d8   : > { %18594 = vmatpush3.bf16.msra.mxu1 %v18591_v43  ;;  %17786 = vmatprep.mubr.msk.f32.mxu0 %vm1704_vm0, %v26152_v54 }
 0x8d9   : > { %18600 = vmatprep.subr.bf16.mxu1 %v18599_v56  ;;  %v19827_v10 = vpop.eup %19826 }
 0x8da   : > { %v8721_v4 = vmul.f32 %v19827_v10, %v24682_v46  ;;  %v26161_v46 = vld [vmem:[#allocation47_spill] sm:$0xff] }
 0x8db   : > { %17653 = vmatmul.mubr.msk.f32.vlgmr.msra.gmra.mrb[224].mxu1 %vm7313_vm2, %v8713_v55  ;;  %17787 = vmatmul.mubr.msk.f32.gmra.mrb[148].mxu0 %vm1704_vm0, %v26153_v7 }
 0x8dc   : > { %18602 = vmatpush3.bf16.msra.mxu1 %v18599_v56  ;;  %17666 = vmatprep.mubr.msk.f32.mxu1 %vm7313_vm2, %v8716_v26 }
 0x8dd   : > { %17789 = vmatprep.mubr.msk.f32.mxu0 %vm1704_vm0, %v26154_v12  ;;  %18608 = vmatprep.subr.bf16.mxu1 %v18607_v13 }
 0x8df   : > { %17667 = vmatmul.mubr.msk.f32.vlgmr.msra.gmra.mrb[226].mxu1 %vm7313_vm2, %v8717_v19  ;;  %17790 = vmatmul.mubr.msk.f32.gmra.mrb[150].mxu0 %vm1704_vm0, %v26155_v5 }
 0x8e0   : > { %18610 = vmatpush3.bf16.msra.mxu1 %v18607_v13  ;;  %17680 = vmatprep.mubr.msk.f32.mxu1 %vm7313_vm2, %v8720_v1 }
 0x8e1   : > { %17792 = vmatprep.mubr.msk.f32.mxu0 %vm1704_vm0, %v26156_v58 }
 0x8e3   : > { %17681 = vmatmul.mubr.msk.f32.vlgmr.msra.gmra.mrb[228].mxu1 %vm7313_vm2, %v8721_v4  ;;  %17793 = vmatmul.mubr.msk.f32.gmra.mrb[152].mxu0 %vm1704_vm0, %v26157_v52 }
 0x8e4   : > { %17803 = vmatprep.mubr.msk.f32.mxu0 %vm1704_vm0, %v26158_v25 }
 0x8e7   : > { %17804 = vmatmul.mubr.msk.f32.vlgmr.msra.gmra.mrb[122].mxu0 %vm1704_vm0, %v26159_v48 }
 0x8e8   : > { %17806 = vmatprep.mubr.msk.f32.mxu0 %vm1704_vm0, %v26160_v18  ;;  %18638 = vmatpush3.bf16.msra.mxu0 %v24826_v60 }
 0x8e9   : > { %18640 = vmatprep.subr.bf16.mxu0 %v18639_v40 }
 0x8eb   : > { %17807 = vmatmul.mubr.msk.f32.gmra.mrb[124].mxu0 %vm1704_vm0, %v26161_v46 }
 0x8ec   : > { %17809 = vmatprep.mubr.msk.f32.mxu0 %vm1704_vm0, %v24428_v34  ;;  %18642 = vmatpush3.bf16.msra.mxu0 %v18639_v40 }
 0x8ef   : > { %17810 = vmatmul.mubr.msk.f32.gmra.mrb[126].mxu0 %vm1704_vm0, %v26162_v35 }
 0x8f0   : > { %17812 = vmatprep.mubr.msk.f32.mxu0 %vm1704_vm0, %v26163_v31 }
 0x8f3   : > { %17813 = vmatmul.mubr.msk.f32.gmra.mrb[128].mxu0 %vm1704_vm0, %v26164_v33 }
 0x8f4   : > { %17815 = vmatprep.mubr.msk.f32.mxu0 %vm1704_vm0, %v24496_v3 }
 0x8f7   : > { %17816 = vmatmul.mubr.msk.f32.gmra.mrb[130].mxu0 %vm1704_vm0, %v24492_v2  ;;  %v26166_v2 = vld [vmem:[#allocation136_spill] sm:$0xff] }
 0x8f8   : > { %17818 = vmatprep.mubr.msk.f32.mxu0 %vm1704_vm0, %v24506_v30 }
 0x8f9   : > { %v17633_v34 = vpop.f32.mrb[114].mxu0 }
 0x8fa   : > { %v13330_v60 = vpop.f32.mrb[115].mxu0 }
 0x8fb   : > { %v17584_v43 = vpop.f32.mrb[214].mxu1  ;;  %17819 = vmatmul.mubr.msk.f32.gmra.mrb[132].mxu0 %vm1704_vm0, %v26165_v36 }
 0x8fc   : > { %v12763_v17 = vpop.f32.mrb[215].mxu1  ;;  %17821 = vmatprep.mubr.msk.f32.mxu0 %vm1704_vm0, %v24556_v44 }
 0x8ff   : > { %v17647_v56 = vpop.f32.mrb[116].mxu0  ;;  %17822 = vmatmul.mubr.msk.f32.gmra.mrb[134].mxu0 %vm1704_vm0, %v24554_v63 }
 0x900   : > { %v13492_v3 = vpop.f32.mrb[117].mxu0  ;;  %17824 = vmatprep.mubr.msk.f32.mxu0 %vm1704_vm0, %v24562_v51 }
 0x903   : > { %17825 = vmatmul.mubr.msk.f32.gmra.mrb[136].mxu0 %vm1704_vm0, %v26166_v2 }
 0x904   : > { %17827 = vmatprep.mubr.msk.f32.mxu0 %vm1704_vm0, %v24624_v14 }
 0x907   : > { %17828 = vmatmul.mubr.msk.f32.gmra.mrb[138].mxu0 %vm1704_vm0, %v24622_v27 }
 0x908   : > { %17830 = vmatprep.mubr.msk.f32.mxu0 %vm1704_vm0, %v24630_v41 }
 0x90b   : > { %17831 = vmatmul.mubr.msk.f32.gmra.mrb[140].mxu0 %vm1704_vm0, %v24628_v24 }
 0x90c   : > { %17833 = vmatprep.mubr.msk.f32.mxu0 %vm1704_vm0, %v24636_v28 }
 0x90f   : > { %17834 = vmatmul.mubr.msk.f32.gmra.mrb[142].mxu0 %vm1704_vm0, %v24632_v53 }
 0x910   : > { %17836 = vmatprep.mubr.msk.f32.mxu0 %vm1704_vm0, %v24696_v9 }
 0x913   : > { %17837 = vmatmul.mubr.msk.f32.gmra.mrb[144].mxu0 %vm1704_vm0, %v24692_v47 }
 0x914   : > { %17839 = vmatprep.mubr.msk.f32.mxu0 %vm1704_vm0, %v24688_v6 }
 0x917   : > { %17840 = vmatmul.mubr.msk.f32.gmra.mrb[146].mxu0 %vm1704_vm0, %v24686_v21 }
 0x918   : > { %17842 = vmatprep.mubr.msk.f32.mxu0 %vm1704_vm0, %v24774_v37 }
 0x91b   : > { %17843 = vmatmul.mubr.msk.f32.gmra.mrb[148].mxu0 %vm1704_vm0, %v24770_v16  ;;  %v25023_v16 = vld [vmem:[%s25150_s6] ss:$0 sm:$0xff] }
 0x91c   : > { %17845 = vmatprep.mubr.msk.f32.mxu0 %vm1704_vm0, %v24704_v20 }
 0x91f   : > { %17846 = vmatmul.mubr.msk.f32.gmra.mrb[150].mxu0 %vm1704_vm0, %v24699_v59 }
 0x920   : > { %17848 = vmatprep.mubr.msk.f32.mxu0 %vm1704_vm0, %v24869_v62 }
 0x923   : > { %17849 = vmatmul.mubr.msk.f32.gmra.mrb[152].mxu0 %vm1704_vm0, %v24866_v8 }
 0x924   : > { %17859 = vmatprep.mubr.msk.f32.mxu0 %vm1704_vm0, %v24760_v11 }
 0x927   : > { %17860 = vmatmul.mubr.msk.f32.vlgmr.msra.gmra.mrb[122].mxu0 %vm1704_vm0, %v24758_v61 }
 0x928   : > { %17862 = vmatprep.mubr.msk.f32.mxu0 %vm1704_vm0, %v12763_v17 }
 0x92b   : > { %17863 = vmatmul.mubr.msk.f32.gmra.mrb[124].mxu0 %vm1704_vm0, %v17584_v43 }
 0x92c   : > { %17865 = vmatprep.mubr.msk.f32.mxu0 %vm1704_vm0, %v24782_v39 }
 0x92e   : > { %v17661_v30 = vpop.f32.mrb[118].mxu0 }
 0x92f   : > { %v13654_v63 = vpop.f32.mrb[119].mxu0  ;;  %17866 = vmatmul.mubr.msk.f32.gmra.mrb[126].mxu0 %vm1704_vm0, %v24778_v22 }
 0x932   : > { %v17675_v44 = vpop.f32.mrb[120].mxu0 }
 0x933   : > { %v13816_v51 = vpop.f32.mrb[121].mxu0 }
 0x934   : > { %v17598_v27 = vpop.f32.mrb[216].mxu1 }
 0x935   : > { %v12925_v14 = vpop.f32.mrb[217].mxu1 }
 0x936   : > { %17868 = vmatprep.mubr.msk.f32.mxu0 %vm1704_vm0, %v12925_v14 }
 0x937   : > { %17869 = vmatmul.mubr.msk.f32.gmra.mrb[128].mxu0 %vm1704_vm0, %v17598_v27 }
 0x938   : > { %17871 = vmatprep.mubr.msk.f32.mxu0 %vm1704_vm0, %v24856_v57 }
 0x93b   : > { %17872 = vmatmul.mubr.msk.f32.gmra.mrb[130].mxu0 %vm1704_vm0, %v24852_v49 }
 0x967   : > { %v17612_v24 = vpop.f32.mrb[218].mxu1 }
 0x968   : > { %v13087_v41 = vpop.f32.mrb[219].mxu1 }
 0x969   : > { %17874 = vmatprep.mubr.msk.f32.mxu0 %vm1704_vm0, %v13087_v41 }
 0x96a   : > { %17875 = vmatmul.mubr.msk.f32.gmra.mrb[132].mxu0 %vm1704_vm0, %v17612_v24 }
 0x96b   : > { %17877 = vmatprep.mubr.msk.f32.mxu0 %vm1704_vm0, %v24864_v29 }
 0x96e   : > { %17878 = vmatmul.mubr.msk.f32.gmra.mrb[134].mxu0 %vm1704_vm0, %v24860_v23 }
 0x971   : > { %v17626_v53 = vpop.f32.mrb[220].mxu1 }
 0x972   : > { %v13249_v28 = vpop.f32.mrb[221].mxu1 }
 0x973   : > { %17880 = vmatprep.mubr.msk.f32.mxu0 %vm1704_vm0, %v13249_v28 }
 0x974   : > { %17881 = vmatmul.mubr.msk.f32.gmra.mrb[136].mxu0 %vm1704_vm0, %v17626_v53 }
 0x975   : > { %17883 = vmatprep.mubr.msk.f32.mxu0 %vm1704_vm0, %v13330_v60 }
 0x978   : > { %17884 = vmatmul.mubr.msk.f32.gmra.mrb[138].mxu0 %vm1704_vm0, %v17633_v34 }
 0x99c   : > { %v17640_v21 = vpop.f32.mrb[222].mxu1 }
 0x99d   : > { %v13411_v6 = vpop.f32.mrb[223].mxu1 }
 0x99e   : > { %17886 = vmatprep.mubr.msk.f32.mxu0 %vm1704_vm0, %v13411_v6 }
 0x99f   : > { %17887 = vmatmul.mubr.msk.f32.gmra.mrb[140].mxu0 %vm1704_vm0, %v17640_v21 }
 0x9a0   : > { %17889 = vmatprep.mubr.msk.f32.mxu0 %vm1704_vm0, %v13492_v3 }
 0x9a3   : > { %17890 = vmatmul.mubr.msk.f32.gmra.mrb[142].mxu0 %vm1704_vm0, %v17647_v56 }
 0x9ae   : > { %v17654_v47 = vpop.f32.mrb[224].mxu1 }
 0x9af   : > { %v13573_v9 = vpop.f32.mrb[225].mxu1 }
 0x9b0   : > { %17892 = vmatprep.mubr.msk.f32.mxu0 %vm1704_vm0, %v13573_v9 }
 0x9b1   : > { %17893 = vmatmul.mubr.msk.f32.gmra.mrb[144].mxu0 %vm1704_vm0, %v17654_v47 }
 0x9b2   : > { %v17668_v59 = vpop.f32.mrb[226].mxu1  ;;  %17895 = vmatprep.mubr.msk.f32.mxu0 %vm1704_vm0, %v13654_v63 }
 0x9b3   : > { %v13735_v20 = vpop.f32.mrb[227].mxu1 }
 0x9b5   : > { %17896 = vmatmul.mubr.msk.f32.gmra.mrb[146].mxu0 %vm1704_vm0, %v17661_v30 }
 0x9b6   : > { %v17682_v61 = vpop.f32.mrb[228].mxu1  ;;  %17898 = vmatprep.mubr.msk.f32.mxu0 %vm1704_vm0, %v13735_v20 }
 0x9b7   : > { %v13897_v11 = vpop.f32.mrb[229].mxu1 }
 0x9b9   : > { %17899 = vmatmul.mubr.msk.f32.gmra.mrb[148].mxu0 %vm1704_vm0, %v17668_v59 }
 0x9ba   : > { %17901 = vmatprep.mubr.msk.f32.mxu0 %vm1704_vm0, %v13816_v51 }
 0x9bd   : > { %17902 = vmatmul.mubr.msk.f32.gmra.mrb[150].mxu0 %vm1704_vm0, %v17675_v44 }
 0x9be   : > { %17904 = vmatprep.mubr.msk.f32.mxu0 %vm1704_vm0, %v13897_v11 }
 0x9c1   : > { %17905 = vmatmul.mubr.msk.f32.gmra.mrb[152].mxu0 %vm1704_vm0, %v17682_v61 }
 0x9fa   : > { %v17861_v37 = vpop.f32.mrb[122].mxu0 }
 0x9fb   : > { %v15278_v22 = vadd.f32 %v17861_v37, %v25023_v16  ;;  %v15079_v39 = vpop.f32.mrb[123].mxu0 }
 0x9fc   : > { %v15277_v49 = vadd.f32 %v25023_v16, %v15079_v39 }
 0x9fd   : > { %15310 = vst [vmem:[%s25029_s19 + $0x8] sm:$0xff] %v15278_v22 }
 0x9fe   : > { %15309 = vst [vmem:[%s25029_s19] sm:$0xff] %v15277_v49  ;;  %v17864_v57 = vpop.f32.mrb[124].mxu0 }
 0x9ff   : > { %v15280_v23 = vadd.f32 %v17864_v57, %v25023_v16  ;;  %v15089_v29 = vpop.f32.mrb[125].mxu0 }
 0xa00   : > { %v15279_v8 = vadd.f32 %v25023_v16, %v15089_v29 }
 0xa01   : > { %15312 = vst [vmem:[%s25029_s19 + $0x18] sm:$0xff] %v15280_v23 }
 0xa02   : > { %15311 = vst [vmem:[%s25029_s19 + $0x10] sm:$0xff] %v15279_v8  ;;  %v17867_v62 = vpop.f32.mrb[126].mxu0 }
 0xa03   : > { %v15282_v42 = vadd.f32 %v17867_v62, %v25023_v16  ;;  %v15099_v0 = vpop.f32.mrb[127].mxu0 }
 0xa04   : > { %v15281_v45 = vadd.f32 %v25023_v16, %v15099_v0 }
 0xa05   : > { %15314 = vst [vmem:[%s25029_s19 + $0x28] sm:$0xff] %v15282_v42 }
 0xa06   : > { %15313 = vst [vmem:[%s25029_s19 + $0x20] sm:$0xff] %v15281_v45 }
 0xa0a   : > { %v17870_v54 = vpop.f32.mrb[128].mxu0 }
 0xa0b   : > { %v15284_v55 = vadd.f32 %v17870_v54, %v25023_v16  ;;  %v15109_v50 = vpop.f32.mrb[129].mxu0 }
 0xa0c   : > { %v15283_v26 = vadd.f32 %v25023_v16, %v15109_v50 }
 0xa0d   : > { %15316 = vst [vmem:[%s25029_s19 + $0x38] sm:$0xff] %v15284_v55 }
 0xa0e   : > { %15315 = vst [vmem:[%s25029_s19 + $0x30] sm:$0xff] %v15283_v26  ;;  %v17873_v38 = vpop.f32.mrb[130].mxu0 }
 0xa0f   : > { %v15286_v13 = vadd.f32 %v17873_v38, %v25023_v16  ;;  %v15119_v7 = vpop.f32.mrb[131].mxu0 }
 0xa10   : > { %v15285_v19 = vadd.f32 %v25023_v16, %v15119_v7 }
 0xa11   : > { %15318 = vst [vmem:[%s25029_s19 + $0x48] sm:$0xff] %v15286_v13 }
 0xa12   : > { %15317 = vst [vmem:[%s25029_s19 + $0x40] sm:$0xff] %v15285_v19 }
 0xa3d   : > { %v17876_v12 = vpop.f32.mrb[132].mxu0 }
 0xa3e   : > { %v15288_v10 = vadd.f32 %v17876_v12, %v25023_v16  ;;  %v15129_v1 = vpop.f32.mrb[133].mxu0 }
 0xa3f   : > { %v15287_v5 = vadd.f32 %v25023_v16, %v15129_v1 }
 0xa40   : > { %15320 = vst [vmem:[%s25029_s19 + $0x58] sm:$0xff] %v15288_v10 }
 0xa41   : > { %15319 = vst [vmem:[%s25029_s19 + $0x50] sm:$0xff] %v15287_v5  ;;  %v17879_v4 = vpop.f32.mrb[134].mxu0 }
 0xa42   : > { %v15290_v58 = vadd.f32 %v17879_v4, %v25023_v16  ;;  %v15139_v15 = vpop.f32.mrb[135].mxu0 }
 0xa43   : > { %v15289_v32 = vadd.f32 %v25023_v16, %v15139_v15 }
 0xa44   : > { %15322 = vst [vmem:[%s25029_s19 + $0x68] sm:$0xff] %v15290_v58 }
 0xa45   : > { %15321 = vst [vmem:[%s25029_s19 + $0x60] sm:$0xff] %v15289_v32 }
 0xa47   : > { %v17882_v52 = vpop.f32.mrb[136].mxu0 }
 0xa48   : > { %v15292_v25 = vadd.f32 %v17882_v52, %v25023_v16  ;;  %v15149_v40 = vpop.f32.mrb[137].mxu0 }
 0xa49   : > { %v15291_v48 = vadd.f32 %v25023_v16, %v15149_v40 }
 0xa4a   : > { %15324 = vst [vmem:[%s25029_s19 + $0x78] sm:$0xff] %v15292_v25 }
 0xa4b   : > { %15323 = vst [vmem:[%s25029_s19 + $0x70] sm:$0xff] %v15291_v48  ;;  %v17885_v18 = vpop.f32.mrb[138].mxu0 }
 0xa4c   : > { %v15294_v46 = vadd.f32 %v17885_v18, %v25023_v16  ;;  %v15159_v35 = vpop.f32.mrb[139].mxu0 }
 0xa4d   : > { %v15293_v31 = vadd.f32 %v25023_v16, %v15159_v35 }
 0xa4e   : > { %15326 = vst [vmem:[%s25029_s19 + $0x88] sm:$0xff] %v15294_v46 }
 0xa4f   : > { %15325 = vst [vmem:[%s25029_s19 + $0x80] sm:$0xff] %v15293_v31 }
 0xa72   : > { %v17888_v33 = vpop.f32.mrb[140].mxu0 }
 0xa73   : > { %v15296_v34 = vadd.f32 %v17888_v33, %v25023_v16  ;;  %v15169_v60 = vpop.f32.mrb[141].mxu0 }
 0xa74   : > { %v15295_v43 = vadd.f32 %v25023_v16, %v15169_v60 }
 0xa75   : > { %15328 = vst [vmem:[%s25029_s19 + $0x98] sm:$0xff] %v15296_v34 }
 0xa76   : > { %15327 = vst [vmem:[%s25029_s19 + $0x90] sm:$0xff] %v15295_v43  ;;  %v17891_v36 = vpop.f32.mrb[142].mxu0 }
 0xa77   : > { %v15298_v17 = vadd.f32 %v17891_v36, %v25023_v16  ;;  %v15179_v56 = vpop.f32.mrb[143].mxu0 }
 0xa78   : > { %v15297_v3 = vadd.f32 %v25023_v16, %v15179_v56 }
 0xa79   : > { %15330 = vst [vmem:[%s25029_s19 + $0xa8] sm:$0xff] %v15298_v17 }
 0xa7a   : > { %15329 = vst [vmem:[%s25029_s19 + $0xa0] sm:$0xff] %v15297_v3 }
 0xa84   : > { %v17894_v2 = vpop.f32.mrb[144].mxu0 }
 0xa85   : > { %v15300_v30 = vadd.f32 %v17894_v2, %v25023_v16  ;;  %v15189_v63 = vpop.f32.mrb[145].mxu0 }
 0xa86   : > { %v15299_v44 = vadd.f32 %v25023_v16, %v15189_v63 }
 0xa87   : > { %15332 = vst [vmem:[%s25029_s19 + $0xb8] sm:$0xff] %v15300_v30 }
 0xa88   : > { %15331 = vst [vmem:[%s25029_s19 + $0xb0] sm:$0xff] %v15299_v44  ;;  %v17897_v51 = vpop.f32.mrb[146].mxu0 }
 0xa89   : > { %v15302_v27 = vadd.f32 %v17897_v51, %v25023_v16  ;;  %v15199_v14 = vpop.f32.mrb[147].mxu0 }
 0xa8a   : > { %v15301_v24 = vadd.f32 %v25023_v16, %v15199_v14 }
 0xa8b   : > { %15334 = vst [vmem:[%s25029_s19 + $0xc8] sm:$0xff] %v15302_v27 }
 0xa8c   : > { %15333 = vst [vmem:[%s25029_s19 + $0xc0] sm:$0xff] %v15301_v24  ;;  %v17900_v41 = vpop.f32.mrb[148].mxu0 }
 0xa8d   : > { %v15304_v53 = vadd.f32 %v17900_v41, %v25023_v16  ;;  %v15209_v28 = vpop.f32.mrb[149].mxu0 }
 0xa8e   : > { %v15303_v21 = vadd.f32 %v25023_v16, %v15209_v28 }
 0xa8f   : > { %15336 = vst [vmem:[%s25029_s19 + $0xd8] sm:$0xff] %v15304_v53 }
 0xa90   : > { %15335 = vst [vmem:[%s25029_s19 + $0xd0] sm:$0xff] %v15303_v21  ;;  %v17903_v6 = vpop.f32.mrb[150].mxu0 }
 0xa91   : > { %v15306_v47 = vadd.f32 %v17903_v6, %v25023_v16  ;;  %v15219_v9 = vpop.f32.mrb[151].mxu0 }
 0xa92   : > { %v15305_v59 = vadd.f32 %v25023_v16, %v15219_v9 }
 0xa93   : > { %15338 = vst [vmem:[%s25029_s19 + $0xe8] sm:$0xff] %v15306_v47 }
 0xa94   : > { %15337 = vst [vmem:[%s25029_s19 + $0xe0] sm:$0xff] %v15305_v59  ;;  %v17906_v20 = vpop.f32.mrb[152].mxu0 }
 0xa95   : > { %v15308_v61 = vadd.f32 %v17906_v20, %v25023_v16  ;;  %v15229_v11 = vpop.f32.mrb[153].mxu0 }
 0xa96   : > { %v15307_v37 = vadd.f32 %v25023_v16, %v15229_v11 }
 0xa97   : > { %15340 = vst [vmem:[%s25029_s19 + $0xf8] sm:$0xff] %v15308_v61 }
 0xa98   : > { %15339 = vst [vmem:[%s25029_s19 + $0xf0] sm:$0xff] %v15307_v37 }
 0xa99   : > { %20043 = shalt.err (!%p20040_p13)
}
 0xa9a   : > { %s20044_s29 = scalar_lea.hbm %s25095_s8, 4096  ;;  %s20048_s17 = scalar_lea.hbm %s25151_s7, 8192 }
 0xa9b   : > { %p20045_p0 = scmp.ne.s32.totalorder %s25095_s8, %s20044_s29  ;;  %p20049_p1 = scmp.lt.u32.totalorder %s25095_s8, %s25151_s7 }
 0xa9c   : > { %p20050_p2 = scmp.lt.u32.totalorder %s20048_s17, %s20044_s29  ;;  %p20052_p8 = scmp.lt.u32.totalorder %s20044_s29, %s25095_s8 }
 0xa9d   : > { %p20046_p5 = pnand %p20045_p0, %p20313_p6 }
 0xa9e   : > { %p20051_p4 = por %p20050_p2, %p20049_p1 }
 0xa9f   : > { %p20047_p11 = pneg %p20046_p5 }
 0xaa0   : > { %p20053_p10 = por %p20052_p8, %p20051_p4 }
 0xaa2   : > { %p20054_p12 = pnand %p20053_p10, %p20047_p11 }
 0xaa4   : > { %20057 = shalt.err (!%p20054_p12)
}
 0xaa5   : > { %s20120_s15 = smov 128   ;;  %s20121_s11 = smov 8  }
 0xaa6   : > { %18757 = dma.vmem_to_hbm [thread:$0]  (%p20313_p6), %s25097_s22, 4096, %s25095_s8, %s15342_s28, %s20120_s15, %s20120_s15, %s20121_s11  }
 0xaa7 PF: > { %s26167_s16 = sld [smem:[#allocation16_spill]]  ;;  %s26168_s18 = sld [smem:[#allocation17_spill]] }
 0xaa8   : > { %p26170_p7 = scmp.ge.s32.totalorder %s20104_s27, 2 }
 0xaad   : > { %s15370_s23 = sand.u32 1, %s26167_s16   ;;  %p26169_p3 = scmp.ne.s32.totalorder %s26168_s18, 0 }
 0xaae   : > { %s15371_s30 = scalar_lea.sflag [#allocation4], %s15370_s23 }
 0xaaf   : > { %p18777_p9 = pnand %p26170_p7, %p26169_p3 }
 0xab1   : > { %20087 = dma.done.wait (!%p18777_p9), %s15371_s30, 4096  }
 0xab2   : > { %20089 = vsyncadd (!%p18777_p9), %s15371_s30, 4294963200  ;;  %p22_p13 = scmp.ge.s32.totalorder %s20303_s20, 4   ;;  %s26171_s24 = smov %s20096_s25 }
 0xab3   : > { %s26172_s25 = smov %s20100_s26  ;;  %s26173_s26 = smov %s20319_s13 }
 0xab4   : > { %s26174_s27 = smov %s20303_s20  ;;  %24 = sbr.rel (!%p22_p13) target bundleno = 7 (0x7), region = 109 }
 0xabb   :  { %15376 = vsyncpa [#allocation3], 1 }
 0xabc   :  { %15378 = vsyncpa [#allocation3 + $0x1], 1 }
 0xabd   :  { %15379 = vsyncpa [#allocation6], 1 }
 0xabe   :  { %15380 = vsyncpa [#allocation9], 1 }
 0xabf   :  { %15381 = vsyncpa [#allocation4], 1 }
 0xac0   :  { %15383 = vsyncpa [#allocation4 + $0x1], 1 }

</bundles_post_ra>
